<compile_context>
chip_gen: v6e
topology: v6e:2x2x1
jax: 0.10.0
libtpu: 0.0.40
codegen_flags: <defaults>
</compile_context>

<pallas_src>
import functools

import jax
import jax.numpy as jnp
from jax.experimental import pallas as pl
from jax.experimental.pallas import tpu as pltpu


# ------------------------------ fused kernel -------------------------------- #

def _fused_decoder_kernel(h_ref, mask_ref,
                          wq_ref, bq_ref, wk_ref, bk_ref, wv_ref, bv_ref,
                          wo_ref, bo_ref, cc_ref,
                          f1w_ref, f1b_ref, f2w_ref, f2b_ref,
                          n1g_ref, n1b_ref, n2g_ref, n2b_ref, n3g_ref, n3b_ref,
                          lng_ref, lnb_ref, fcw_ref, fcb_ref,
                          o_ref, *, n_layers, n_heads, head_dim, eps):
    """Single program: full decoder stack over all B*T rows (block-diag causal mask)."""
    scale = 1.0 / (head_dim ** 0.5)

    def bf(x):
        return x if x.dtype == jnp.bfloat16 else x.astype(jnp.bfloat16)

    def mm(x, w, dn):
        # bf16 x bf16 operands, f32 accumulation on the MXU.
        return jax.lax.dot_general(bf(x), bf(w), (dn, ((), ())),
                                   preferred_element_type=jnp.float32)

    def layernorm(z, g, b):
        mu = jnp.mean(z, axis=-1, keepdims=True)
        var = jnp.mean(jnp.square(z - mu), axis=-1, keepdims=True)
        return (z - mu) * jax.lax.rsqrt(var + eps) * g + b

    mask = mask_ref[...]                              # (M, M) additive mask, f32
    h = h_ref[...].astype(jnp.float32)                # (M, E)

    for l in range(n_layers):                         # statically unrolled
        # ---- causal self-attention.  Per-head weights were pre-sliced in the wrapper,
        #      so there are no 32-lane activation slices; the head concat is folded into
        #      the out-projection accumulation. ----
        attn = None
        for hh in range(n_heads):                     # statically unrolled
            qh = mm(h, wq_ref[l, hh], ((1,), (1,))) + bq_ref[l, hh]        # (M, Dh)
            kh = mm(h, wk_ref[l, hh], ((1,), (1,))) + bk_ref[l, hh]        # (M, Dh)
            vh = bf(mm(h, wv_ref[l, hh], ((1,), (1,))) + bv_ref[l, hh])    # (M, Dh) bf16
            s = mm(qh, kh, ((1,), (1,))) * scale + mask                    # (M, M) f32
            s = s - jnp.max(s, axis=-1, keepdims=True)
            p = jnp.exp(s)
            p = p * pl.reciprocal(jnp.sum(p, axis=-1, keepdims=True), approx=True)
            oh = mm(p, vh, ((1,), (0,)))                                   # (M, Dh)
            c = mm(oh, wo_ref[l, hh], ((1,), (0,)))                        # (M, E)
            attn = c if attn is None else attn + c
        sa = attn + bo_ref[l]
        h = layernorm(h + sa, n1g_ref[l], n1b_ref[l])

        # ---- cross attention against memory == zeros((1,B,E)):
        #      softmax over a single zero key -> output == out_proj(v_bias),
        #      a per-layer constant vector (precomputed, broadcast here). ----
        h = layernorm(h + cc_ref[l], n2g_ref[l], n2b_ref[l])

        # ---- feed-forward: ReLU fused with the bf16 cast consumed by ff2 ----
        f = bf(jnp.maximum(mm(h, f1w_ref[l], ((1,), (1,))) + f1b_ref[l], 0.0))  # (M, FF)
        f = mm(f, f2w_ref[l], ((1,), (1,))) + f2b_ref[l]                        # (M, E)
        h = layernorm(h + f, n3g_ref[l], n3b_ref[l])

    # ---- final LayerNorm + vocab projection (lane-padded to a multiple of 128) ----
    h = layernorm(h, lng_ref[...], lnb_ref[...])
    o_ref[...] = mm(h, fcw_ref[...], ((1,), (1,))) + fcb_ref[...]


# ------------------------------ parameter prep ------------------------------ #

def init_params(key, vocab_size, block_size, embed_dim, n_layers, ff_dim):
    """Raw PyTorch-layout parameters (f32)."""
    keys = iter(jax.random.split(key, 8 + 16 * n_layers))

    def w(shape, s=0.02):
        return (s * jax.random.normal(next(keys), shape)).astype(jnp.float32)

    ones = lambda: jnp.ones((embed_dim,), jnp.float32)
    zeros = lambda: jnp.zeros((embed_dim,), jnp.float32)

    params = dict(
        token_emb=w((vocab_size, embed_dim)),
        pos_emb=w((block_size, embed_dim)),
        ln_g=ones(), ln_b=zeros(),
        fc_w=w((vocab_size, embed_dim)),
        fc_b=w((vocab_size,)),
        layers=[],
    )
    for _ in range(n_layers):
        params['layers'].append(dict(
            sa_in_w=w((3 * embed_dim, embed_dim)),
            sa_in_b=w((3 * embed_dim,)),
            sa_out_w=w((embed_dim, embed_dim)),
            sa_out_b=w((embed_dim,)),
            mha_in_w=w((3 * embed_dim, embed_dim)),   # cross-attn (memory == 0)
            mha_in_b=w((3 * embed_dim,)),
            mha_out_w=w((embed_dim, embed_dim)),
            mha_out_b=w((embed_dim,)),
            ff1_w=w((ff_dim, embed_dim)),
            ff1_b=w((ff_dim,)),
            ff2_w=w((embed_dim, ff_dim)),
            ff2_b=w((embed_dim,)),
            n1_g=ones(), n1_b=zeros(),
            n2_g=ones(), n2_b=zeros(),
            n3_g=ones(), n3_b=zeros(),
        ))
    return params


def prepare_params(raw, n_heads):
    """One-time prep: stack per-layer weights, pre-slice attention weights per head
    (lane-dense (L,H,Dh,E)), cast matmul weights to bf16 (f32 accumulation in-kernel),
    pad the vocab projection to a 128-lane multiple, and fold the zero-memory
    cross-attention into a per-layer constant vector."""
    E = raw['token_emb'].shape[1]
    H = n_heads
    Dh = E // H
    V = raw['fc_w'].shape[0]
    Vp = ((V + 127) // 128) * 128
    L = len(raw['layers'])

    def stack(fn):
        return jnp.stack([fn(lp) for lp in raw['layers']])

    f32 = jnp.float32

    # per-head q/k/v projection weights in PyTorch (out, in) layout -> (L, H, Dh, E)
    wq = stack(lambda lp: lp['sa_in_w'][:E].reshape(H, Dh, E)).astype(jnp.bfloat16)
    wk = stack(lambda lp: lp['sa_in_w'][E:2 * E].reshape(H, Dh, E)).astype(jnp.bfloat16)
    wv = stack(lambda lp: lp['sa_in_w'][2 * E:].reshape(H, Dh, E)).astype(jnp.bfloat16)
    bq = stack(lambda lp: lp['sa_in_b'][:E].reshape(H, 1, Dh)).astype(f32)
    bk = stack(lambda lp: lp['sa_in_b'][E:2 * E].reshape(H, 1, Dh)).astype(f32)
    bv = stack(lambda lp: lp['sa_in_b'][2 * E:].reshape(H, 1, Dh)).astype(f32)
    # out-projection, head-major and pre-transposed: wo[l,h] = W_out[:, h*Dh:(h+1)*Dh].T
    wo = stack(lambda lp: lp['sa_out_w'].T.reshape(H, Dh, E)).astype(jnp.bfloat16)
    bo = stack(lambda lp: lp['sa_out_b'].reshape(1, E)).astype(f32)

    # cross-attn over zero memory: out = out_proj(value_bias)  (per layer, shape (E,))
    cross_c = stack(lambda lp: (lp['mha_in_b'][2 * E:] @ lp['mha_out_w'].T
                                + lp['mha_out_b']).reshape(1, E)).astype(f32)

    fc_w = jnp.zeros((Vp, E), f32).at[:V].set(raw['fc_w'])
    fc_b = jnp.zeros((Vp,), f32).at[:V].set(raw['fc_b'])

    return dict(
        token_emb=raw['token_emb'].astype(f32),
        pos_emb=raw['pos_emb'].astype(f32),
        wq=wq, bq=bq, wk=wk, bk=bk, wv=wv, bv=bv, wo=wo, bo=bo,
        cross_c=cross_c,
        ff1_w=stack(lambda lp: lp['ff1_w']).astype(jnp.bfloat16),
        ff1_b=stack(lambda lp: lp['ff1_b'].reshape(1, -1)).astype(f32),
        ff2_w=stack(lambda lp: lp['ff2_w']).astype(jnp.bfloat16),
        ff2_b=stack(lambda lp: lp['ff2_b'].reshape(1, E)).astype(f32),
        n1_g=stack(lambda lp: lp['n1_g'].reshape(1, E)).astype(f32),
        n1_b=stack(lambda lp: lp['n1_b'].reshape(1, E)).astype(f32),
        n2_g=stack(lambda lp: lp['n2_g'].reshape(1, E)).astype(f32),
        n2_b=stack(lambda lp: lp['n2_b'].reshape(1, E)).astype(f32),
        n3_g=stack(lambda lp: lp['n3_g'].reshape(1, E)).astype(f32),
        n3_b=stack(lambda lp: lp['n3_b'].reshape(1, E)).astype(f32),
        ln_g=raw['ln_g'].reshape(1, E).astype(f32),
        ln_b=raw['ln_b'].reshape(1, E).astype(f32),
        fc_w=fc_w.astype(jnp.bfloat16),
        fc_b=fc_b.reshape(1, Vp).astype(f32),
    )


_WEIGHT_ORDER = ['wq', 'bq', 'wk', 'bk', 'wv', 'bv', 'wo', 'bo', 'cross_c',
                 'ff1_w', 'ff1_b', 'ff2_w', 'ff2_b',
                 'n1_g', 'n1_b', 'n2_g', 'n2_b', 'n3_g', 'n3_b',
                 'ln_g', 'ln_b', 'fc_w', 'fc_b']


# --------------------------------- forward ----------------------------------- #

def transformer_decoder_forward(params, x_ids, *, embed_dim, n_heads, n_layers,
                                vocab_size, eps=1e-5):
    B, T = x_ids.shape
    E = embed_dim
    M = B * T
    Vp = params['fc_w'].shape[0]
    assert T <= params['pos_emb'].shape[0], "sequence longer than block_size"

    # token + position embedding (gather kept in plain JAX glue; not a matmul hot path)
    tok = jnp.take(params['token_emb'], x_ids, axis=0)           # (B, T, E)
    pos = params['pos_emb'][:T][None, :, :]                      # (1, T, E)
    h = (tok + pos).astype(jnp.float32).reshape(M, E)            # batch-major rows

    # block-diagonal causal additive mask over the collapsed (B*T) row axis (1 KiB)
    ids = jnp.arange(M)
    same_batch = (ids[:, None] // T) == (ids[None, :] // T)
    causal = ids[None, :] <= ids[:, None]
    mask = jnp.where(same_batch & causal, 0.0, -1e9).astype(jnp.float32)

    weights = [params[n] for n in _WEIGHT_ORDER]

    def full_spec(shape):  # whole array resident in VMEM for the single grid step
        nd = len(shape)
        return pl.BlockSpec(shape, lambda i, _nd=nd: (0,) * _nd)

    kern = functools.partial(_fused_decoder_kernel, n_layers=n_layers,
                             n_heads=n_heads, head_dim=E // n_heads, eps=eps)

    logits = pl.pallas_call(
        kern,
        out_shape=jax.ShapeDtypeStruct((M, Vp), jnp.float32),
        grid_spec=pltpu.PrefetchScalarGridSpec(
            num_scalar_prefetch=0,
            grid=(1,),                                           # single fused program
            in_specs=[full_spec(h.shape), full_spec(mask.shape)]
                     + [full_spec(w.shape) for w in weights],
            out_specs=full_spec((M, Vp)),                        # lane-dense output slab
        ),
        compiler_params=pltpu.CompilerParams(
            dimension_semantics=("arbitrary",),
            vmem_limit_bytes=32 * 1024 * 1024,
        ),
    )(h, mask, *weights)

    return logits.reshape(B, T, Vp)[:, :, :vocab_size]


# ---------------------------------- main -------------------------------------- #

if __name__ == "__main__":
    VOCAB, BLOCK, EMBED, HEADS, LAYERS = 64, 16, 128, 4, 2   # module defaults: E=128, H=4, L=2
    FF_DIM = 2048          # nn.TransformerDecoderLayer default dim_feedforward
    B, T = 2, 8

    key = jax.random.PRNGKey(0)
    pkey, xkey = jax.random.split(key)
    raw = init_params(pkey, VOCAB, BLOCK, EMBED, LAYERS, FF_DIM)
    params = prepare_params(raw, HEADS)
    x_ids = jax.random.randint(xkey, (B, T), 0, VOCAB, dtype=jnp.int32)

    fwd = jax.jit(functools.partial(transformer_decoder_forward,
                                    embed_dim=EMBED, n_heads=HEADS,
                                    n_layers=LAYERS, vocab_size=VOCAB))
    logits = fwd(params, x_ids)
    jax.block_until_ready(logits)

    assert logits.shape == (B, T, VOCAB), logits.shape
    assert bool(jnp.all(jnp.isfinite(logits)))
    print("KERNEL_OK")
</pallas_src>

<mosaic_0001>
module attributes {stable_mosaic.version = 11 : i64} {
  func.func @_fused_decoder_kernel(%arg0: i32, %arg1: memref<16x128xf32, #tpu.memory_space<vmem>>, %arg2: memref<16x16xf32, #tpu.memory_space<vmem>>, %arg3: memref<2x4x32x128xbf16, #tpu.memory_space<vmem>>, %arg4: memref<2x4x1x32xf32, #tpu.memory_space<vmem>>, %arg5: memref<2x4x32x128xbf16, #tpu.memory_space<vmem>>, %arg6: memref<2x4x1x32xf32, #tpu.memory_space<vmem>>, %arg7: memref<2x4x32x128xbf16, #tpu.memory_space<vmem>>, %arg8: memref<2x4x1x32xf32, #tpu.memory_space<vmem>>, %arg9: memref<2x4x32x128xbf16, #tpu.memory_space<vmem>>, %arg10: memref<2x1x128xf32, #tpu.memory_space<vmem>>, %arg11: memref<2x1x128xf32, #tpu.memory_space<vmem>>, %arg12: memref<2x2048x128xbf16, #tpu.memory_space<vmem>>, %arg13: memref<2x1x2048xf32, #tpu.memory_space<vmem>>, %arg14: memref<2x128x2048xbf16, #tpu.memory_space<vmem>>, %arg15: memref<2x1x128xf32, #tpu.memory_space<vmem>>, %arg16: memref<2x1x128xf32, #tpu.memory_space<vmem>>, %arg17: memref<2x1x128xf32, #tpu.memory_space<vmem>>, %arg18: memref<2x1x128xf32, #tpu.memory_space<vmem>>, %arg19: memref<2x1x128xf32, #tpu.memory_space<vmem>>, %arg20: memref<2x1x128xf32, #tpu.memory_space<vmem>>, %arg21: memref<2x1x128xf32, #tpu.memory_space<vmem>>, %arg22: memref<1x128xf32, #tpu.memory_space<vmem>>, %arg23: memref<1x128xf32, #tpu.memory_space<vmem>>, %arg24: memref<128x128xbf16, #tpu.memory_space<vmem>>, %arg25: memref<1x128xf32, #tpu.memory_space<vmem>>, %arg26: memref<16x128xf32, #tpu.memory_space<vmem>>) attributes {dimension_semantics = [#tpu.dimension_semantics<arbitrary>], iteration_bounds = array<i64: 1>, scalar_prefetch = 0 : i64, scratch_operands = 0 : i64, tpu.core_type = #tpu.core_type<tc>, window_params = [{pipeline_mode = #tpu.pipeline_mode<synchronous>, transform_indices = @transform_0, window_bounds = array<i64: 16, 128>}, {pipeline_mode = #tpu.pipeline_mode<synchronous>, transform_indices = @transform_1, window_bounds = array<i64: 16, 16>}, {pipeline_mode = #tpu.pipeline_mode<synchronous>, transform_indices = @transform_2, window_bounds = array<i64: 2, 4, 32, 128>}, {pipeline_mode = #tpu.pipeline_mode<synchronous>, transform_indices = @transform_3, window_bounds = array<i64: 2, 4, 1, 32>}, {pipeline_mode = #tpu.pipeline_mode<synchronous>, transform_indices = @transform_4, window_bounds = array<i64: 2, 4, 32, 128>}, {pipeline_mode = #tpu.pipeline_mode<synchronous>, transform_indices = @transform_5, window_bounds = array<i64: 2, 4, 1, 32>}, {pipeline_mode = #tpu.pipeline_mode<synchronous>, transform_indices = @transform_6, window_bounds = array<i64: 2, 4, 32, 128>}, {pipeline_mode = #tpu.pipeline_mode<synchronous>, transform_indices = @transform_7, window_bounds = array<i64: 2, 4, 1, 32>}, {pipeline_mode = #tpu.pipeline_mode<synchronous>, transform_indices = @transform_8, window_bounds = array<i64: 2, 4, 32, 128>}, {pipeline_mode = #tpu.pipeline_mode<synchronous>, transform_indices = @transform_9, window_bounds = array<i64: 2, 1, 128>}, {pipeline_mode = #tpu.pipeline_mode<synchronous>, transform_indices = @transform_10, window_bounds = array<i64: 2, 1, 128>}, {pipeline_mode = #tpu.pipeline_mode<synchronous>, transform_indices = @transform_11, window_bounds = array<i64: 2, 2048, 128>}, {pipeline_mode = #tpu.pipeline_mode<synchronous>, transform_indices = @transform_12, window_bounds = array<i64: 2, 1, 2048>}, {pipeline_mode = #tpu.pipeline_mode<synchronous>, transform_indices = @transform_13, window_bounds = array<i64: 2, 128, 2048>}, {pipeline_mode = #tpu.pipeline_mode<synchronous>, transform_indices = @transform_14, window_bounds = array<i64: 2, 1, 128>}, {pipeline_mode = #tpu.pipeline_mode<synchronous>, transform_indices = @transform_15, window_bounds = array<i64: 2, 1, 128>}, {pipeline_mode = #tpu.pipeline_mode<synchronous>, transform_indices = @transform_16, window_bounds = array<i64: 2, 1, 128>}, {pipeline_mode = #tpu.pipeline_mode<synchronous>, transform_indices = @transform_17, window_bounds = array<i64: 2, 1, 128>}, {pipeline_mode = #tpu.pipeline_mode<synchronous>, transform_indices = @transform_18, window_bounds = array<i64: 2, 1, 128>}, {pipeline_mode = #tpu.pipeline_mode<synchronous>, transform_indices = @transform_19, window_bounds = array<i64: 2, 1, 128>}, {pipeline_mode = #tpu.pipeline_mode<synchronous>, transform_indices = @transform_20, window_bounds = array<i64: 2, 1, 128>}, {pipeline_mode = #tpu.pipeline_mode<synchronous>, transform_indices = @transform_21, window_bounds = array<i64: 1, 128>}, {pipeline_mode = #tpu.pipeline_mode<synchronous>, transform_indices = @transform_22, window_bounds = array<i64: 1, 128>}, {pipeline_mode = #tpu.pipeline_mode<synchronous>, transform_indices = @transform_23, window_bounds = array<i64: 128, 128>}, {pipeline_mode = #tpu.pipeline_mode<synchronous>, transform_indices = @transform_24, window_bounds = array<i64: 1, 128>}, {pipeline_mode = #tpu.pipeline_mode<synchronous>, transform_indices = @transform_25, window_bounds = array<i64: 16, 128>}]} {
    %c0 = arith.constant 0 : index
    %c0_0 = arith.constant 0 : index
    %0 = vector.load %arg2[%c0, %c0_0] : memref<16x16xf32, #tpu.memory_space<vmem>>, vector<16x16xf32>
    %c0_1 = arith.constant 0 : index
    %c0_2 = arith.constant 0 : index
    %1 = vector.load %arg1[%c0_1, %c0_2] : memref<16x128xf32, #tpu.memory_space<vmem>>, vector<16x128xf32>
    %c0_3 = arith.constant 0 : index
    %c0_4 = arith.constant 0 : index
    %c0_5 = arith.constant 0 : index
    %c0_6 = arith.constant 0 : index
    %2 = vector.load %arg3[%c0_3, %c0_4, %c0_5, %c0_6] : memref<2x4x32x128xbf16, #tpu.memory_space<vmem>>, vector<1x1x32x128xbf16>
    %3 = vector.shape_cast %2 : vector<1x1x32x128xbf16> to vector<32x128xbf16>
    %4 = arith.truncf %1 : vector<16x128xf32> to vector<16x128xbf16>
    %cst = arith.constant dense<0.000000e+00> : vector<16x32xf32>
    %5 = tpu.matmul %4, %3, %cst {dimension_numbers = #tpu.dot_dimension_numbers<[1], [1], [0], [0], [0, 0, 1, 0], [], []>} : vector<16x128xbf16>, vector<32x128xbf16>, vector<16x32xf32> -> vector<16x32xf32>
    %c0_7 = arith.constant 0 : index
    %c0_8 = arith.constant 0 : index
    %c0_9 = arith.constant 0 : index
    %c0_10 = arith.constant 0 : index
    %6 = vector.load %arg4[%c0_7, %c0_8, %c0_9, %c0_10] : memref<2x4x1x32xf32, #tpu.memory_space<vmem>>, vector<1x1x1x32xf32>
    %7 = vector.shape_cast %6 : vector<1x1x1x32xf32> to vector<1x32xf32>
    %8 = vector.broadcast %7 : vector<1x32xf32> to vector<16x32xf32>
    %9 = arith.addf %5, %8 : vector<16x32xf32>
    %c0_11 = arith.constant 0 : index
    %c0_12 = arith.constant 0 : index
    %c0_13 = arith.constant 0 : index
    %c0_14 = arith.constant 0 : index
    %10 = vector.load %arg5[%c0_11, %c0_12, %c0_13, %c0_14] : memref<2x4x32x128xbf16, #tpu.memory_space<vmem>>, vector<1x1x32x128xbf16>
    %11 = vector.shape_cast %10 : vector<1x1x32x128xbf16> to vector<32x128xbf16>
    %12 = arith.truncf %1 : vector<16x128xf32> to vector<16x128xbf16>
    %cst_15 = arith.constant dense<0.000000e+00> : vector<16x32xf32>
    %13 = tpu.matmul %12, %11, %cst_15 {dimension_numbers = #tpu.dot_dimension_numbers<[1], [1], [0], [0], [0, 0, 1, 0], [], []>} : vector<16x128xbf16>, vector<32x128xbf16>, vector<16x32xf32> -> vector<16x32xf32>
    %c0_16 = arith.constant 0 : index
    %c0_17 = arith.constant 0 : index
    %c0_18 = arith.constant 0 : index
    %c0_19 = arith.constant 0 : index
    %14 = vector.load %arg6[%c0_16, %c0_17, %c0_18, %c0_19] : memref<2x4x1x32xf32, #tpu.memory_space<vmem>>, vector<1x1x1x32xf32>
    %15 = vector.shape_cast %14 : vector<1x1x1x32xf32> to vector<1x32xf32>
    %16 = vector.broadcast %15 : vector<1x32xf32> to vector<16x32xf32>
    %17 = arith.addf %13, %16 : vector<16x32xf32>
    %c0_20 = arith.constant 0 : index
    %c0_21 = arith.constant 0 : index
    %c0_22 = arith.constant 0 : index
    %c0_23 = arith.constant 0 : index
    %18 = vector.load %arg7[%c0_20, %c0_21, %c0_22, %c0_23] : memref<2x4x32x128xbf16, #tpu.memory_space<vmem>>, vector<1x1x32x128xbf16>
    %19 = vector.shape_cast %18 : vector<1x1x32x128xbf16> to vector<32x128xbf16>
    %20 = arith.truncf %1 : vector<16x128xf32> to vector<16x128xbf16>
    %cst_24 = arith.constant dense<0.000000e+00> : vector<16x32xf32>
    %21 = tpu.matmul %20, %19, %cst_24 {dimension_numbers = #tpu.dot_dimension_numbers<[1], [1], [0], [0], [0, 0, 1, 0], [], []>} : vector<16x128xbf16>, vector<32x128xbf16>, vector<16x32xf32> -> vector<16x32xf32>
    %c0_25 = arith.constant 0 : index
    %c0_26 = arith.constant 0 : index
    %c0_27 = arith.constant 0 : index
    %c0_28 = arith.constant 0 : index
    %22 = vector.load %arg8[%c0_25, %c0_26, %c0_27, %c0_28] : memref<2x4x1x32xf32, #tpu.memory_space<vmem>>, vector<1x1x1x32xf32>
    %23 = vector.shape_cast %22 : vector<1x1x1x32xf32> to vector<1x32xf32>
    %24 = vector.broadcast %23 : vector<1x32xf32> to vector<16x32xf32>
    %25 = arith.addf %21, %24 : vector<16x32xf32>
    %26 = arith.truncf %25 : vector<16x32xf32> to vector<16x32xbf16>
    %27 = arith.truncf %9 : vector<16x32xf32> to vector<16x32xbf16>
    %28 = arith.truncf %17 : vector<16x32xf32> to vector<16x32xbf16>
    %cst_29 = arith.constant dense<0.000000e+00> : vector<16x16xf32>
    %29 = tpu.matmul %27, %28, %cst_29 {dimension_numbers = #tpu.dot_dimension_numbers<[1], [1], [0], [0], [0, 0, 1, 0], [], []>} : vector<16x32xbf16>, vector<16x32xbf16>, vector<16x16xf32> -> vector<16x16xf32>
    %cst_30 = arith.constant 0.176776692 : f32
    %30 = vector.broadcast %cst_30 : f32 to vector<16x16xf32>
    %31 = arith.mulf %29, %30 : vector<16x16xf32>
    %32 = arith.addf %31, %0 : vector<16x16xf32>
    %cst_31 = arith.constant dense<0xFF800000> : vector<16xf32>
    %33 = vector.multi_reduction <maximumf>, %32, %cst_31 [1] : vector<16x16xf32> to vector<16xf32>
    %34 = vector.shape_cast %33 : vector<16xf32> to vector<16x1xf32>
    %35 = vector.broadcast %34 : vector<16x1xf32> to vector<16x16xf32>
    %36 = arith.subf %32, %35 : vector<16x16xf32>
    %37 = math.exp %36 : vector<16x16xf32>
    %cst_32 = arith.constant dense<0.000000e+00> : vector<16xf32>
    %38 = vector.multi_reduction <add>, %37, %cst_32 [1] : vector<16x16xf32> to vector<16xf32>
    %39 = vector.shape_cast %38 : vector<16xf32> to vector<16x1xf32>
    %40 = tpu.reciprocal %39 {approx = true} : vector<16x1xf32> -> vector<16x1xf32>
    %41 = vector.broadcast %40 : vector<16x1xf32> to vector<16x16xf32>
    %42 = arith.mulf %37, %41 : vector<16x16xf32>
    %43 = arith.truncf %42 : vector<16x16xf32> to vector<16x16xbf16>
    %cst_33 = arith.constant dense<0.000000e+00> : vector<16x32xf32>
    %44 = tpu.matmul %43, %26, %cst_33 {dimension_numbers = #tpu.dot_dimension_numbers<[1], [0], [0], [1], [0, 0, 1, 1], [], []>} : vector<16x16xbf16>, vector<16x32xbf16>, vector<16x32xf32> -> vector<16x32xf32>
    %c0_34 = arith.constant 0 : index
    %c0_35 = arith.constant 0 : index
    %c0_36 = arith.constant 0 : index
    %c0_37 = arith.constant 0 : index
    %45 = vector.load %arg9[%c0_34, %c0_35, %c0_36, %c0_37] : memref<2x4x32x128xbf16, #tpu.memory_space<vmem>>, vector<1x1x32x128xbf16>
    %46 = vector.shape_cast %45 : vector<1x1x32x128xbf16> to vector<32x128xbf16>
    %47 = arith.truncf %44 : vector<16x32xf32> to vector<16x32xbf16>
    %cst_38 = arith.constant dense<0.000000e+00> : vector<16x128xf32>
    %48 = tpu.matmul %47, %46, %cst_38 {dimension_numbers = #tpu.dot_dimension_numbers<[1], [0], [0], [1], [0, 0, 1, 1], [], []>} : vector<16x32xbf16>, vector<32x128xbf16>, vector<16x128xf32> -> vector<16x128xf32>
    %c0_39 = arith.constant 0 : index
    %c1 = arith.constant 1 : index
    %c0_40 = arith.constant 0 : index
    %c0_41 = arith.constant 0 : index
    %49 = vector.load %arg3[%c0_39, %c1, %c0_40, %c0_41] : memref<2x4x32x128xbf16, #tpu.memory_space<vmem>>, vector<1x1x32x128xbf16>
    %50 = vector.shape_cast %49 : vector<1x1x32x128xbf16> to vector<32x128xbf16>
    %51 = arith.truncf %1 : vector<16x128xf32> to vector<16x128xbf16>
    %cst_42 = arith.constant dense<0.000000e+00> : vector<16x32xf32>
    %52 = tpu.matmul %51, %50, %cst_42 {dimension_numbers = #tpu.dot_dimension_numbers<[1], [1], [0], [0], [0, 0, 1, 0], [], []>} : vector<16x128xbf16>, vector<32x128xbf16>, vector<16x32xf32> -> vector<16x32xf32>
    %c0_43 = arith.constant 0 : index
    %c1_44 = arith.constant 1 : index
    %c0_45 = arith.constant 0 : index
    %c0_46 = arith.constant 0 : index
    %53 = vector.load %arg4[%c0_43, %c1_44, %c0_45, %c0_46] : memref<2x4x1x32xf32, #tpu.memory_space<vmem>>, vector<1x1x1x32xf32>
    %54 = vector.shape_cast %53 : vector<1x1x1x32xf32> to vector<1x32xf32>
    %55 = vector.broadcast %54 : vector<1x32xf32> to vector<16x32xf32>
    %56 = arith.addf %52, %55 : vector<16x32xf32>
    %c0_47 = arith.constant 0 : index
    %c1_48 = arith.constant 1 : index
    %c0_49 = arith.constant 0 : index
    %c0_50 = arith.constant 0 : index
    %57 = vector.load %arg5[%c0_47, %c1_48, %c0_49, %c0_50] : memref<2x4x32x128xbf16, #tpu.memory_space<vmem>>, vector<1x1x32x128xbf16>
    %58 = vector.shape_cast %57 : vector<1x1x32x128xbf16> to vector<32x128xbf16>
    %59 = arith.truncf %1 : vector<16x128xf32> to vector<16x128xbf16>
    %cst_51 = arith.constant dense<0.000000e+00> : vector<16x32xf32>
    %60 = tpu.matmul %59, %58, %cst_51 {dimension_numbers = #tpu.dot_dimension_numbers<[1], [1], [0], [0], [0, 0, 1, 0], [], []>} : vector<16x128xbf16>, vector<32x128xbf16>, vector<16x32xf32> -> vector<16x32xf32>
    %c0_52 = arith.constant 0 : index
    %c1_53 = arith.constant 1 : index
    %c0_54 = arith.constant 0 : index
    %c0_55 = arith.constant 0 : index
    %61 = vector.load %arg6[%c0_52, %c1_53, %c0_54, %c0_55] : memref<2x4x1x32xf32, #tpu.memory_space<vmem>>, vector<1x1x1x32xf32>
    %62 = vector.shape_cast %61 : vector<1x1x1x32xf32> to vector<1x32xf32>
    %63 = vector.broadcast %62 : vector<1x32xf32> to vector<16x32xf32>
    %64 = arith.addf %60, %63 : vector<16x32xf32>
    %c0_56 = arith.constant 0 : index
    %c1_57 = arith.constant 1 : index
    %c0_58 = arith.constant 0 : index
    %c0_59 = arith.constant 0 : index
    %65 = vector.load %arg7[%c0_56, %c1_57, %c0_58, %c0_59] : memref<2x4x32x128xbf16, #tpu.memory_space<vmem>>, vector<1x1x32x128xbf16>
    %66 = vector.shape_cast %65 : vector<1x1x32x128xbf16> to vector<32x128xbf16>
    %67 = arith.truncf %1 : vector<16x128xf32> to vector<16x128xbf16>
    %cst_60 = arith.constant dense<0.000000e+00> : vector<16x32xf32>
    %68 = tpu.matmul %67, %66, %cst_60 {dimension_numbers = #tpu.dot_dimension_numbers<[1], [1], [0], [0], [0, 0, 1, 0], [], []>} : vector<16x128xbf16>, vector<32x128xbf16>, vector<16x32xf32> -> vector<16x32xf32>
    %c0_61 = arith.constant 0 : index
    %c1_62 = arith.constant 1 : index
    %c0_63 = arith.constant 0 : index
    %c0_64 = arith.constant 0 : index
    %69 = vector.load %arg8[%c0_61, %c1_62, %c0_63, %c0_64] : memref<2x4x1x32xf32, #tpu.memory_space<vmem>>, vector<1x1x1x32xf32>
    %70 = vector.shape_cast %69 : vector<1x1x1x32xf32> to vector<1x32xf32>
    %71 = vector.broadcast %70 : vector<1x32xf32> to vector<16x32xf32>
    %72 = arith.addf %68, %71 : vector<16x32xf32>
    %73 = arith.truncf %72 : vector<16x32xf32> to vector<16x32xbf16>
    %74 = arith.truncf %56 : vector<16x32xf32> to vector<16x32xbf16>
    %75 = arith.truncf %64 : vector<16x32xf32> to vector<16x32xbf16>
    %cst_65 = arith.constant dense<0.000000e+00> : vector<16x16xf32>
    %76 = tpu.matmul %74, %75, %cst_65 {dimension_numbers = #tpu.dot_dimension_numbers<[1], [1], [0], [0], [0, 0, 1, 0], [], []>} : vector<16x32xbf16>, vector<16x32xbf16>, vector<16x16xf32> -> vector<16x16xf32>
    %cst_66 = arith.constant 0.176776692 : f32
    %77 = vector.broadcast %cst_66 : f32 to vector<16x16xf32>
    %78 = arith.mulf %76, %77 : vector<16x16xf32>
    %79 = arith.addf %78, %0 : vector<16x16xf32>
    %cst_67 = arith.constant dense<0xFF800000> : vector<16xf32>
    %80 = vector.multi_reduction <maximumf>, %79, %cst_67 [1] : vector<16x16xf32> to vector<16xf32>
    %81 = vector.shape_cast %80 : vector<16xf32> to vector<16x1xf32>
    %82 = vector.broadcast %81 : vector<16x1xf32> to vector<16x16xf32>
    %83 = arith.subf %79, %82 : vector<16x16xf32>
    %84 = math.exp %83 : vector<16x16xf32>
    %cst_68 = arith.constant dense<0.000000e+00> : vector<16xf32>
    %85 = vector.multi_reduction <add>, %84, %cst_68 [1] : vector<16x16xf32> to vector<16xf32>
    %86 = vector.shape_cast %85 : vector<16xf32> to vector<16x1xf32>
    %87 = tpu.reciprocal %86 {approx = true} : vector<16x1xf32> -> vector<16x1xf32>
    %88 = vector.broadcast %87 : vector<16x1xf32> to vector<16x16xf32>
    %89 = arith.mulf %84, %88 : vector<16x16xf32>
    %90 = arith.truncf %89 : vector<16x16xf32> to vector<16x16xbf16>
    %cst_69 = arith.constant dense<0.000000e+00> : vector<16x32xf32>
    %91 = tpu.matmul %90, %73, %cst_69 {dimension_numbers = #tpu.dot_dimension_numbers<[1], [0], [0], [1], [0, 0, 1, 1], [], []>} : vector<16x16xbf16>, vector<16x32xbf16>, vector<16x32xf32> -> vector<16x32xf32>
    %c0_70 = arith.constant 0 : index
    %c1_71 = arith.constant 1 : index
    %c0_72 = arith.constant 0 : index
    %c0_73 = arith.constant 0 : index
    %92 = vector.load %arg9[%c0_70, %c1_71, %c0_72, %c0_73] : memref<2x4x32x128xbf16, #tpu.memory_space<vmem>>, vector<1x1x32x128xbf16>
    %93 = vector.shape_cast %92 : vector<1x1x32x128xbf16> to vector<32x128xbf16>
    %94 = arith.truncf %91 : vector<16x32xf32> to vector<16x32xbf16>
    %cst_74 = arith.constant dense<0.000000e+00> : vector<16x128xf32>
    %95 = tpu.matmul %94, %93, %cst_74 {dimension_numbers = #tpu.dot_dimension_numbers<[1], [0], [0], [1], [0, 0, 1, 1], [], []>} : vector<16x32xbf16>, vector<32x128xbf16>, vector<16x128xf32> -> vector<16x128xf32>
    %96 = arith.addf %48, %95 : vector<16x128xf32>
    %c0_75 = arith.constant 0 : index
    %c2 = arith.constant 2 : index
    %c0_76 = arith.constant 0 : index
    %c0_77 = arith.constant 0 : index
    %97 = vector.load %arg3[%c0_75, %c2, %c0_76, %c0_77] : memref<2x4x32x128xbf16, #tpu.memory_space<vmem>>, vector<1x1x32x128xbf16>
    %98 = vector.shape_cast %97 : vector<1x1x32x128xbf16> to vector<32x128xbf16>
    %99 = arith.truncf %1 : vector<16x128xf32> to vector<16x128xbf16>
    %cst_78 = arith.constant dense<0.000000e+00> : vector<16x32xf32>
    %100 = tpu.matmul %99, %98, %cst_78 {dimension_numbers = #tpu.dot_dimension_numbers<[1], [1], [0], [0], [0, 0, 1, 0], [], []>} : vector<16x128xbf16>, vector<32x128xbf16>, vector<16x32xf32> -> vector<16x32xf32>
    %c0_79 = arith.constant 0 : index
    %c2_80 = arith.constant 2 : index
    %c0_81 = arith.constant 0 : index
    %c0_82 = arith.constant 0 : index
    %101 = vector.load %arg4[%c0_79, %c2_80, %c0_81, %c0_82] : memref<2x4x1x32xf32, #tpu.memory_space<vmem>>, vector<1x1x1x32xf32>
    %102 = vector.shape_cast %101 : vector<1x1x1x32xf32> to vector<1x32xf32>
    %103 = vector.broadcast %102 : vector<1x32xf32> to vector<16x32xf32>
    %104 = arith.addf %100, %103 : vector<16x32xf32>
    %c0_83 = arith.constant 0 : index
    %c2_84 = arith.constant 2 : index
    %c0_85 = arith.constant 0 : index
    %c0_86 = arith.constant 0 : index
    %105 = vector.load %arg5[%c0_83, %c2_84, %c0_85, %c0_86] : memref<2x4x32x128xbf16, #tpu.memory_space<vmem>>, vector<1x1x32x128xbf16>
    %106 = vector.shape_cast %105 : vector<1x1x32x128xbf16> to vector<32x128xbf16>
    %107 = arith.truncf %1 : vector<16x128xf32> to vector<16x128xbf16>
    %cst_87 = arith.constant dense<0.000000e+00> : vector<16x32xf32>
    %108 = tpu.matmul %107, %106, %cst_87 {dimension_numbers = #tpu.dot_dimension_numbers<[1], [1], [0], [0], [0, 0, 1, 0], [], []>} : vector<16x128xbf16>, vector<32x128xbf16>, vector<16x32xf32> -> vector<16x32xf32>
    %c0_88 = arith.constant 0 : index
    %c2_89 = arith.constant 2 : index
    %c0_90 = arith.constant 0 : index
    %c0_91 = arith.constant 0 : index
    %109 = vector.load %arg6[%c0_88, %c2_89, %c0_90, %c0_91] : memref<2x4x1x32xf32, #tpu.memory_space<vmem>>, vector<1x1x1x32xf32>
    %110 = vector.shape_cast %109 : vector<1x1x1x32xf32> to vector<1x32xf32>
    %111 = vector.broadcast %110 : vector<1x32xf32> to vector<16x32xf32>
    %112 = arith.addf %108, %111 : vector<16x32xf32>
    %c0_92 = arith.constant 0 : index
    %c2_93 = arith.constant 2 : index
    %c0_94 = arith.constant 0 : index
    %c0_95 = arith.constant 0 : index
    %113 = vector.load %arg7[%c0_92, %c2_93, %c0_94, %c0_95] : memref<2x4x32x128xbf16, #tpu.memory_space<vmem>>, vector<1x1x32x128xbf16>
    %114 = vector.shape_cast %113 : vector<1x1x32x128xbf16> to vector<32x128xbf16>
    %115 = arith.truncf %1 : vector<16x128xf32> to vector<16x128xbf16>
    %cst_96 = arith.constant dense<0.000000e+00> : vector<16x32xf32>
    %116 = tpu.matmul %115, %114, %cst_96 {dimension_numbers = #tpu.dot_dimension_numbers<[1], [1], [0], [0], [0, 0, 1, 0], [], []>} : vector<16x128xbf16>, vector<32x128xbf16>, vector<16x32xf32> -> vector<16x32xf32>
    %c0_97 = arith.constant 0 : index
    %c2_98 = arith.constant 2 : index
    %c0_99 = arith.constant 0 : index
    %c0_100 = arith.constant 0 : index
    %117 = vector.load %arg8[%c0_97, %c2_98, %c0_99, %c0_100] : memref<2x4x1x32xf32, #tpu.memory_space<vmem>>, vector<1x1x1x32xf32>
    %118 = vector.shape_cast %117 : vector<1x1x1x32xf32> to vector<1x32xf32>
    %119 = vector.broadcast %118 : vector<1x32xf32> to vector<16x32xf32>
    %120 = arith.addf %116, %119 : vector<16x32xf32>
    %121 = arith.truncf %120 : vector<16x32xf32> to vector<16x32xbf16>
    %122 = arith.truncf %104 : vector<16x32xf32> to vector<16x32xbf16>
    %123 = arith.truncf %112 : vector<16x32xf32> to vector<16x32xbf16>
    %cst_101 = arith.constant dense<0.000000e+00> : vector<16x16xf32>
    %124 = tpu.matmul %122, %123, %cst_101 {dimension_numbers = #tpu.dot_dimension_numbers<[1], [1], [0], [0], [0, 0, 1, 0], [], []>} : vector<16x32xbf16>, vector<16x32xbf16>, vector<16x16xf32> -> vector<16x16xf32>
    %cst_102 = arith.constant 0.176776692 : f32
    %125 = vector.broadcast %cst_102 : f32 to vector<16x16xf32>
    %126 = arith.mulf %124, %125 : vector<16x16xf32>
    %127 = arith.addf %126, %0 : vector<16x16xf32>
    %cst_103 = arith.constant dense<0xFF800000> : vector<16xf32>
    %128 = vector.multi_reduction <maximumf>, %127, %cst_103 [1] : vector<16x16xf32> to vector<16xf32>
    %129 = vector.shape_cast %128 : vector<16xf32> to vector<16x1xf32>
    %130 = vector.broadcast %129 : vector<16x1xf32> to vector<16x16xf32>
    %131 = arith.subf %127, %130 : vector<16x16xf32>
    %132 = math.exp %131 : vector<16x16xf32>
    %cst_104 = arith.constant dense<0.000000e+00> : vector<16xf32>
    %133 = vector.multi_reduction <add>, %132, %cst_104 [1] : vector<16x16xf32> to vector<16xf32>
    %134 = vector.shape_cast %133 : vector<16xf32> to vector<16x1xf32>
    %135 = tpu.reciprocal %134 {approx = true} : vector<16x1xf32> -> vector<16x1xf32>
    %136 = vector.broadcast %135 : vector<16x1xf32> to vector<16x16xf32>
    %137 = arith.mulf %132, %136 : vector<16x16xf32>
    %138 = arith.truncf %137 : vector<16x16xf32> to vector<16x16xbf16>
    %cst_105 = arith.constant dense<0.000000e+00> : vector<16x32xf32>
    %139 = tpu.matmul %138, %121, %cst_105 {dimension_numbers = #tpu.dot_dimension_numbers<[1], [0], [0], [1], [0, 0, 1, 1], [], []>} : vector<16x16xbf16>, vector<16x32xbf16>, vector<16x32xf32> -> vector<16x32xf32>
    %c0_106 = arith.constant 0 : index
    %c2_107 = arith.constant 2 : index
    %c0_108 = arith.constant 0 : index
    %c0_109 = arith.constant 0 : index
    %140 = vector.load %arg9[%c0_106, %c2_107, %c0_108, %c0_109] : memref<2x4x32x128xbf16, #tpu.memory_space<vmem>>, vector<1x1x32x128xbf16>
    %141 = vector.shape_cast %140 : vector<1x1x32x128xbf16> to vector<32x128xbf16>
    %142 = arith.truncf %139 : vector<16x32xf32> to vector<16x32xbf16>
    %cst_110 = arith.constant dense<0.000000e+00> : vector<16x128xf32>
    %143 = tpu.matmul %142, %141, %cst_110 {dimension_numbers = #tpu.dot_dimension_numbers<[1], [0], [0], [1], [0, 0, 1, 1], [], []>} : vector<16x32xbf16>, vector<32x128xbf16>, vector<16x128xf32> -> vector<16x128xf32>
    %144 = arith.addf %96, %143 : vector<16x128xf32>
    %c0_111 = arith.constant 0 : index
    %c3 = arith.constant 3 : index
    %c0_112 = arith.constant 0 : index
    %c0_113 = arith.constant 0 : index
    %145 = vector.load %arg3[%c0_111, %c3, %c0_112, %c0_113] : memref<2x4x32x128xbf16, #tpu.memory_space<vmem>>, vector<1x1x32x128xbf16>
    %146 = vector.shape_cast %145 : vector<1x1x32x128xbf16> to vector<32x128xbf16>
    %147 = arith.truncf %1 : vector<16x128xf32> to vector<16x128xbf16>
    %cst_114 = arith.constant dense<0.000000e+00> : vector<16x32xf32>
    %148 = tpu.matmul %147, %146, %cst_114 {dimension_numbers = #tpu.dot_dimension_numbers<[1], [1], [0], [0], [0, 0, 1, 0], [], []>} : vector<16x128xbf16>, vector<32x128xbf16>, vector<16x32xf32> -> vector<16x32xf32>
    %c0_115 = arith.constant 0 : index
    %c3_116 = arith.constant 3 : index
    %c0_117 = arith.constant 0 : index
    %c0_118 = arith.constant 0 : index
    %149 = vector.load %arg4[%c0_115, %c3_116, %c0_117, %c0_118] : memref<2x4x1x32xf32, #tpu.memory_space<vmem>>, vector<1x1x1x32xf32>
    %150 = vector.shape_cast %149 : vector<1x1x1x32xf32> to vector<1x32xf32>
    %151 = vector.broadcast %150 : vector<1x32xf32> to vector<16x32xf32>
    %152 = arith.addf %148, %151 : vector<16x32xf32>
    %c0_119 = arith.constant 0 : index
    %c3_120 = arith.constant 3 : index
    %c0_121 = arith.constant 0 : index
    %c0_122 = arith.constant 0 : index
    %153 = vector.load %arg5[%c0_119, %c3_120, %c0_121, %c0_122] : memref<2x4x32x128xbf16, #tpu.memory_space<vmem>>, vector<1x1x32x128xbf16>
    %154 = vector.shape_cast %153 : vector<1x1x32x128xbf16> to vector<32x128xbf16>
    %155 = arith.truncf %1 : vector<16x128xf32> to vector<16x128xbf16>
    %cst_123 = arith.constant dense<0.000000e+00> : vector<16x32xf32>
    %156 = tpu.matmul %155, %154, %cst_123 {dimension_numbers = #tpu.dot_dimension_numbers<[1], [1], [0], [0], [0, 0, 1, 0], [], []>} : vector<16x128xbf16>, vector<32x128xbf16>, vector<16x32xf32> -> vector<16x32xf32>
    %c0_124 = arith.constant 0 : index
    %c3_125 = arith.constant 3 : index
    %c0_126 = arith.constant 0 : index
    %c0_127 = arith.constant 0 : index
    %157 = vector.load %arg6[%c0_124, %c3_125, %c0_126, %c0_127] : memref<2x4x1x32xf32, #tpu.memory_space<vmem>>, vector<1x1x1x32xf32>
    %158 = vector.shape_cast %157 : vector<1x1x1x32xf32> to vector<1x32xf32>
    %159 = vector.broadcast %158 : vector<1x32xf32> to vector<16x32xf32>
    %160 = arith.addf %156, %159 : vector<16x32xf32>
    %c0_128 = arith.constant 0 : index
    %c3_129 = arith.constant 3 : index
    %c0_130 = arith.constant 0 : index
    %c0_131 = arith.constant 0 : index
    %161 = vector.load %arg7[%c0_128, %c3_129, %c0_130, %c0_131] : memref<2x4x32x128xbf16, #tpu.memory_space<vmem>>, vector<1x1x32x128xbf16>
    %162 = vector.shape_cast %161 : vector<1x1x32x128xbf16> to vector<32x128xbf16>
    %163 = arith.truncf %1 : vector<16x128xf32> to vector<16x128xbf16>
    %cst_132 = arith.constant dense<0.000000e+00> : vector<16x32xf32>
    %164 = tpu.matmul %163, %162, %cst_132 {dimension_numbers = #tpu.dot_dimension_numbers<[1], [1], [0], [0], [0, 0, 1, 0], [], []>} : vector<16x128xbf16>, vector<32x128xbf16>, vector<16x32xf32> -> vector<16x32xf32>
    %c0_133 = arith.constant 0 : index
    %c3_134 = arith.constant 3 : index
    %c0_135 = arith.constant 0 : index
    %c0_136 = arith.constant 0 : index
    %165 = vector.load %arg8[%c0_133, %c3_134, %c0_135, %c0_136] : memref<2x4x1x32xf32, #tpu.memory_space<vmem>>, vector<1x1x1x32xf32>
    %166 = vector.shape_cast %165 : vector<1x1x1x32xf32> to vector<1x32xf32>
    %167 = vector.broadcast %166 : vector<1x32xf32> to vector<16x32xf32>
    %168 = arith.addf %164, %167 : vector<16x32xf32>
    %169 = arith.truncf %168 : vector<16x32xf32> to vector<16x32xbf16>
    %170 = arith.truncf %152 : vector<16x32xf32> to vector<16x32xbf16>
    %171 = arith.truncf %160 : vector<16x32xf32> to vector<16x32xbf16>
    %cst_137 = arith.constant dense<0.000000e+00> : vector<16x16xf32>
    %172 = tpu.matmul %170, %171, %cst_137 {dimension_numbers = #tpu.dot_dimension_numbers<[1], [1], [0], [0], [0, 0, 1, 0], [], []>} : vector<16x32xbf16>, vector<16x32xbf16>, vector<16x16xf32> -> vector<16x16xf32>
    %cst_138 = arith.constant 0.176776692 : f32
    %173 = vector.broadcast %cst_138 : f32 to vector<16x16xf32>
    %174 = arith.mulf %172, %173 : vector<16x16xf32>
    %175 = arith.addf %174, %0 : vector<16x16xf32>
    %cst_139 = arith.constant dense<0xFF800000> : vector<16xf32>
    %176 = vector.multi_reduction <maximumf>, %175, %cst_139 [1] : vector<16x16xf32> to vector<16xf32>
    %177 = vector.shape_cast %176 : vector<16xf32> to vector<16x1xf32>
    %178 = vector.broadcast %177 : vector<16x1xf32> to vector<16x16xf32>
    %179 = arith.subf %175, %178 : vector<16x16xf32>
    %180 = math.exp %179 : vector<16x16xf32>
    %cst_140 = arith.constant dense<0.000000e+00> : vector<16xf32>
    %181 = vector.multi_reduction <add>, %180, %cst_140 [1] : vector<16x16xf32> to vector<16xf32>
    %182 = vector.shape_cast %181 : vector<16xf32> to vector<16x1xf32>
    %183 = tpu.reciprocal %182 {approx = true} : vector<16x1xf32> -> vector<16x1xf32>
    %184 = vector.broadcast %183 : vector<16x1xf32> to vector<16x16xf32>
    %185 = arith.mulf %180, %184 : vector<16x16xf32>
    %186 = arith.truncf %185 : vector<16x16xf32> to vector<16x16xbf16>
    %cst_141 = arith.constant dense<0.000000e+00> : vector<16x32xf32>
    %187 = tpu.matmul %186, %169, %cst_141 {dimension_numbers = #tpu.dot_dimension_numbers<[1], [0], [0], [1], [0, 0, 1, 1], [], []>} : vector<16x16xbf16>, vector<16x32xbf16>, vector<16x32xf32> -> vector<16x32xf32>
    %c0_142 = arith.constant 0 : index
    %c3_143 = arith.constant 3 : index
    %c0_144 = arith.constant 0 : index
    %c0_145 = arith.constant 0 : index
    %188 = vector.load %arg9[%c0_142, %c3_143, %c0_144, %c0_145] : memref<2x4x32x128xbf16, #tpu.memory_space<vmem>>, vector<1x1x32x128xbf16>
    %189 = vector.shape_cast %188 : vector<1x1x32x128xbf16> to vector<32x128xbf16>
    %190 = arith.truncf %187 : vector<16x32xf32> to vector<16x32xbf16>
    %cst_146 = arith.constant dense<0.000000e+00> : vector<16x128xf32>
    %191 = tpu.matmul %190, %189, %cst_146 {dimension_numbers = #tpu.dot_dimension_numbers<[1], [0], [0], [1], [0, 0, 1, 1], [], []>} : vector<16x32xbf16>, vector<32x128xbf16>, vector<16x128xf32> -> vector<16x128xf32>
    %192 = arith.addf %144, %191 : vector<16x128xf32>
    %c0_147 = arith.constant 0 : index
    %c0_148 = arith.constant 0 : index
    %c0_149 = arith.constant 0 : index
    %193 = vector.load %arg10[%c0_147, %c0_148, %c0_149] : memref<2x1x128xf32, #tpu.memory_space<vmem>>, vector<1x1x128xf32>
    %194 = vector.shape_cast %193 : vector<1x1x128xf32> to vector<1x128xf32>
    %195 = vector.broadcast %194 : vector<1x128xf32> to vector<16x128xf32>
    %196 = arith.addf %192, %195 : vector<16x128xf32>
    %197 = arith.addf %1, %196 : vector<16x128xf32>
    %c0_150 = arith.constant 0 : index
    %c0_151 = arith.constant 0 : index
    %c0_152 = arith.constant 0 : index
    %198 = vector.load %arg16[%c0_150, %c0_151, %c0_152] : memref<2x1x128xf32, #tpu.memory_space<vmem>>, vector<1x1x128xf32>
    %199 = vector.shape_cast %198 : vector<1x1x128xf32> to vector<1x128xf32>
    %c0_153 = arith.constant 0 : index
    %c0_154 = arith.constant 0 : index
    %c0_155 = arith.constant 0 : index
    %200 = vector.load %arg17[%c0_153, %c0_154, %c0_155] : memref<2x1x128xf32, #tpu.memory_space<vmem>>, vector<1x1x128xf32>
    %201 = vector.shape_cast %200 : vector<1x1x128xf32> to vector<1x128xf32>
    %cst_156 = arith.constant dense<0.000000e+00> : vector<16xf32>
    %202 = vector.multi_reduction <add>, %197, %cst_156 [1] : vector<16x128xf32> to vector<16xf32>
    %203 = vector.shape_cast %202 : vector<16xf32> to vector<16x1xf32>
    %cst_157 = arith.constant 1.280000e+02 : f32
    %204 = vector.broadcast %cst_157 : f32 to vector<16x1xf32>
    %205 = arith.divf %203, %204 : vector<16x1xf32>
    %206 = vector.broadcast %205 : vector<16x1xf32> to vector<16x128xf32>
    %207 = arith.subf %197, %206 : vector<16x128xf32>
    %208 = arith.mulf %207, %207 : vector<16x128xf32>
    %cst_158 = arith.constant dense<0.000000e+00> : vector<16xf32>
    %209 = vector.multi_reduction <add>, %208, %cst_158 [1] : vector<16x128xf32> to vector<16xf32>
    %210 = vector.shape_cast %209 : vector<16xf32> to vector<16x1xf32>
    %cst_159 = arith.constant 1.280000e+02 : f32
    %211 = vector.broadcast %cst_159 : f32 to vector<16x1xf32>
    %212 = arith.divf %210, %211 : vector<16x1xf32>
    %213 = vector.broadcast %205 : vector<16x1xf32> to vector<16x128xf32>
    %214 = arith.subf %197, %213 : vector<16x128xf32>
    %cst_160 = arith.constant 9.99999974E-6 : f32
    %215 = vector.broadcast %cst_160 : f32 to vector<16x1xf32>
    %216 = arith.addf %212, %215 : vector<16x1xf32>
    %217 = math.rsqrt %216 : vector<16x1xf32>
    %218 = vector.broadcast %217 : vector<16x1xf32> to vector<16x128xf32>
    %219 = arith.mulf %214, %218 : vector<16x128xf32>
    %220 = vector.broadcast %199 : vector<1x128xf32> to vector<16x128xf32>
    %221 = arith.mulf %219, %220 : vector<16x128xf32>
    %222 = vector.broadcast %201 : vector<1x128xf32> to vector<16x128xf32>
    %223 = arith.addf %221, %222 : vector<16x128xf32>
    %c0_161 = arith.constant 0 : index
    %c0_162 = arith.constant 0 : index
    %c0_163 = arith.constant 0 : index
    %224 = vector.load %arg11[%c0_161, %c0_162, %c0_163] : memref<2x1x128xf32, #tpu.memory_space<vmem>>, vector<1x1x128xf32>
    %225 = vector.shape_cast %224 : vector<1x1x128xf32> to vector<1x128xf32>
    %226 = vector.broadcast %225 : vector<1x128xf32> to vector<16x128xf32>
    %227 = arith.addf %223, %226 : vector<16x128xf32>
    %c0_164 = arith.constant 0 : index
    %c0_165 = arith.constant 0 : index
    %c0_166 = arith.constant 0 : index
    %228 = vector.load %arg18[%c0_164, %c0_165, %c0_166] : memref<2x1x128xf32, #tpu.memory_space<vmem>>, vector<1x1x128xf32>
    %229 = vector.shape_cast %228 : vector<1x1x128xf32> to vector<1x128xf32>
    %c0_167 = arith.constant 0 : index
    %c0_168 = arith.constant 0 : index
    %c0_169 = arith.constant 0 : index
    %230 = vector.load %arg19[%c0_167, %c0_168, %c0_169] : memref<2x1x128xf32, #tpu.memory_space<vmem>>, vector<1x1x128xf32>
    %231 = vector.shape_cast %230 : vector<1x1x128xf32> to vector<1x128xf32>
    %cst_170 = arith.constant dense<0.000000e+00> : vector<16xf32>
    %232 = vector.multi_reduction <add>, %227, %cst_170 [1] : vector<16x128xf32> to vector<16xf32>
    %233 = vector.shape_cast %232 : vector<16xf32> to vector<16x1xf32>
    %cst_171 = arith.constant 1.280000e+02 : f32
    %234 = vector.broadcast %cst_171 : f32 to vector<16x1xf32>
    %235 = arith.divf %233, %234 : vector<16x1xf32>
    %236 = vector.broadcast %235 : vector<16x1xf32> to vector<16x128xf32>
    %237 = arith.subf %227, %236 : vector<16x128xf32>
    %238 = arith.mulf %237, %237 : vector<16x128xf32>
    %cst_172 = arith.constant dense<0.000000e+00> : vector<16xf32>
    %239 = vector.multi_reduction <add>, %238, %cst_172 [1] : vector<16x128xf32> to vector<16xf32>
    %240 = vector.shape_cast %239 : vector<16xf32> to vector<16x1xf32>
    %cst_173 = arith.constant 1.280000e+02 : f32
    %241 = vector.broadcast %cst_173 : f32 to vector<16x1xf32>
    %242 = arith.divf %240, %241 : vector<16x1xf32>
    %243 = vector.broadcast %235 : vector<16x1xf32> to vector<16x128xf32>
    %244 = arith.subf %227, %243 : vector<16x128xf32>
    %cst_174 = arith.constant 9.99999974E-6 : f32
    %245 = vector.broadcast %cst_174 : f32 to vector<16x1xf32>
    %246 = arith.addf %242, %245 : vector<16x1xf32>
    %247 = math.rsqrt %246 : vector<16x1xf32>
    %248 = vector.broadcast %247 : vector<16x1xf32> to vector<16x128xf32>
    %249 = arith.mulf %244, %248 : vector<16x128xf32>
    %250 = vector.broadcast %229 : vector<1x128xf32> to vector<16x128xf32>
    %251 = arith.mulf %249, %250 : vector<16x128xf32>
    %252 = vector.broadcast %231 : vector<1x128xf32> to vector<16x128xf32>
    %253 = arith.addf %251, %252 : vector<16x128xf32>
    %c0_175 = arith.constant 0 : index
    %c0_176 = arith.constant 0 : index
    %c0_177 = arith.constant 0 : index
    %254 = vector.load %arg12[%c0_175, %c0_176, %c0_177] : memref<2x2048x128xbf16, #tpu.memory_space<vmem>>, vector<1x2048x128xbf16>
    %255 = vector.shape_cast %254 : vector<1x2048x128xbf16> to vector<2048x128xbf16>
    %256 = arith.truncf %253 : vector<16x128xf32> to vector<16x128xbf16>
    %cst_178 = arith.constant dense<0.000000e+00> : vector<16x2048xf32>
    %257 = tpu.matmul %256, %255, %cst_178 {dimension_numbers = #tpu.dot_dimension_numbers<[1], [1], [0], [0], [0, 0, 1, 0], [], []>} : vector<16x128xbf16>, vector<2048x128xbf16>, vector<16x2048xf32> -> vector<16x2048xf32>
    %c0_179 = arith.constant 0 : index
    %c0_180 = arith.constant 0 : index
    %c0_181 = arith.constant 0 : index
    %258 = vector.load %arg13[%c0_179, %c0_180, %c0_181] : memref<2x1x2048xf32, #tpu.memory_space<vmem>>, vector<1x1x2048xf32>
    %259 = vector.shape_cast %258 : vector<1x1x2048xf32> to vector<1x2048xf32>
    %260 = vector.broadcast %259 : vector<1x2048xf32> to vector<16x2048xf32>
    %261 = arith.addf %257, %260 : vector<16x2048xf32>
    %cst_182 = arith.constant 0.000000e+00 : f32
    %262 = vector.broadcast %cst_182 : f32 to vector<16x2048xf32>
    %263 = arith.maximumf %261, %262 : vector<16x2048xf32>
    %264 = arith.truncf %263 : vector<16x2048xf32> to vector<16x2048xbf16>
    %c0_183 = arith.constant 0 : index
    %c0_184 = arith.constant 0 : index
    %c0_185 = arith.constant 0 : index
    %265 = vector.load %arg14[%c0_183, %c0_184, %c0_185] : memref<2x128x2048xbf16, #tpu.memory_space<vmem>>, vector<1x128x2048xbf16>
    %266 = vector.shape_cast %265 : vector<1x128x2048xbf16> to vector<128x2048xbf16>
    %cst_186 = arith.constant dense<0.000000e+00> : vector<16x128xf32>
    %267 = tpu.matmul %264, %266, %cst_186 {dimension_numbers = #tpu.dot_dimension_numbers<[1], [1], [0], [0], [0, 0, 1, 0], [], []>} : vector<16x2048xbf16>, vector<128x2048xbf16>, vector<16x128xf32> -> vector<16x128xf32>
    %c0_187 = arith.constant 0 : index
    %c0_188 = arith.constant 0 : index
    %c0_189 = arith.constant 0 : index
    %268 = vector.load %arg15[%c0_187, %c0_188, %c0_189] : memref<2x1x128xf32, #tpu.memory_space<vmem>>, vector<1x1x128xf32>
    %269 = vector.shape_cast %268 : vector<1x1x128xf32> to vector<1x128xf32>
    %270 = vector.broadcast %269 : vector<1x128xf32> to vector<16x128xf32>
    %271 = arith.addf %267, %270 : vector<16x128xf32>
    %272 = arith.addf %253, %271 : vector<16x128xf32>
    %c0_190 = arith.constant 0 : index
    %c0_191 = arith.constant 0 : index
    %c0_192 = arith.constant 0 : index
    %273 = vector.load %arg20[%c0_190, %c0_191, %c0_192] : memref<2x1x128xf32, #tpu.memory_space<vmem>>, vector<1x1x128xf32>
    %274 = vector.shape_cast %273 : vector<1x1x128xf32> to vector<1x128xf32>
    %c0_193 = arith.constant 0 : index
    %c0_194 = arith.constant 0 : index
    %c0_195 = arith.constant 0 : index
    %275 = vector.load %arg21[%c0_193, %c0_194, %c0_195] : memref<2x1x128xf32, #tpu.memory_space<vmem>>, vector<1x1x128xf32>
    %276 = vector.shape_cast %275 : vector<1x1x128xf32> to vector<1x128xf32>
    %cst_196 = arith.constant dense<0.000000e+00> : vector<16xf32>
    %277 = vector.multi_reduction <add>, %272, %cst_196 [1] : vector<16x128xf32> to vector<16xf32>
    %278 = vector.shape_cast %277 : vector<16xf32> to vector<16x1xf32>
    %cst_197 = arith.constant 1.280000e+02 : f32
    %279 = vector.broadcast %cst_197 : f32 to vector<16x1xf32>
    %280 = arith.divf %278, %279 : vector<16x1xf32>
    %281 = vector.broadcast %280 : vector<16x1xf32> to vector<16x128xf32>
    %282 = arith.subf %272, %281 : vector<16x128xf32>
    %283 = arith.mulf %282, %282 : vector<16x128xf32>
    %cst_198 = arith.constant dense<0.000000e+00> : vector<16xf32>
    %284 = vector.multi_reduction <add>, %283, %cst_198 [1] : vector<16x128xf32> to vector<16xf32>
    %285 = vector.shape_cast %284 : vector<16xf32> to vector<16x1xf32>
    %cst_199 = arith.constant 1.280000e+02 : f32
    %286 = vector.broadcast %cst_199 : f32 to vector<16x1xf32>
    %287 = arith.divf %285, %286 : vector<16x1xf32>
    %288 = vector.broadcast %280 : vector<16x1xf32> to vector<16x128xf32>
    %289 = arith.subf %272, %288 : vector<16x128xf32>
    %cst_200 = arith.constant 9.99999974E-6 : f32
    %290 = vector.broadcast %cst_200 : f32 to vector<16x1xf32>
    %291 = arith.addf %287, %290 : vector<16x1xf32>
    %292 = math.rsqrt %291 : vector<16x1xf32>
    %293 = vector.broadcast %292 : vector<16x1xf32> to vector<16x128xf32>
    %294 = arith.mulf %289, %293 : vector<16x128xf32>
    %295 = vector.broadcast %274 : vector<1x128xf32> to vector<16x128xf32>
    %296 = arith.mulf %294, %295 : vector<16x128xf32>
    %297 = vector.broadcast %276 : vector<1x128xf32> to vector<16x128xf32>
    %298 = arith.addf %296, %297 : vector<16x128xf32>
    %c1_201 = arith.constant 1 : index
    %c0_202 = arith.constant 0 : index
    %c0_203 = arith.constant 0 : index
    %c0_204 = arith.constant 0 : index
    %299 = vector.load %arg3[%c1_201, %c0_202, %c0_203, %c0_204] : memref<2x4x32x128xbf16, #tpu.memory_space<vmem>>, vector<1x1x32x128xbf16>
    %300 = vector.shape_cast %299 : vector<1x1x32x128xbf16> to vector<32x128xbf16>
    %301 = arith.truncf %298 : vector<16x128xf32> to vector<16x128xbf16>
    %cst_205 = arith.constant dense<0.000000e+00> : vector<16x32xf32>
    %302 = tpu.matmul %301, %300, %cst_205 {dimension_numbers = #tpu.dot_dimension_numbers<[1], [1], [0], [0], [0, 0, 1, 0], [], []>} : vector<16x128xbf16>, vector<32x128xbf16>, vector<16x32xf32> -> vector<16x32xf32>
    %c1_206 = arith.constant 1 : index
    %c0_207 = arith.constant 0 : index
    %c0_208 = arith.constant 0 : index
    %c0_209 = arith.constant 0 : index
    %303 = vector.load %arg4[%c1_206, %c0_207, %c0_208, %c0_209] : memref<2x4x1x32xf32, #tpu.memory_space<vmem>>, vector<1x1x1x32xf32>
    %304 = vector.shape_cast %303 : vector<1x1x1x32xf32> to vector<1x32xf32>
    %305 = vector.broadcast %304 : vector<1x32xf32> to vector<16x32xf32>
    %306 = arith.addf %302, %305 : vector<16x32xf32>
    %c1_210 = arith.constant 1 : index
    %c0_211 = arith.constant 0 : index
    %c0_212 = arith.constant 0 : index
    %c0_213 = arith.constant 0 : index
    %307 = vector.load %arg5[%c1_210, %c0_211, %c0_212, %c0_213] : memref<2x4x32x128xbf16, #tpu.memory_space<vmem>>, vector<1x1x32x128xbf16>
    %308 = vector.shape_cast %307 : vector<1x1x32x128xbf16> to vector<32x128xbf16>
    %309 = arith.truncf %298 : vector<16x128xf32> to vector<16x128xbf16>
    %cst_214 = arith.constant dense<0.000000e+00> : vector<16x32xf32>
    %310 = tpu.matmul %309, %308, %cst_214 {dimension_numbers = #tpu.dot_dimension_numbers<[1], [1], [0], [0], [0, 0, 1, 0], [], []>} : vector<16x128xbf16>, vector<32x128xbf16>, vector<16x32xf32> -> vector<16x32xf32>
    %c1_215 = arith.constant 1 : index
    %c0_216 = arith.constant 0 : index
    %c0_217 = arith.constant 0 : index
    %c0_218 = arith.constant 0 : index
    %311 = vector.load %arg6[%c1_215, %c0_216, %c0_217, %c0_218] : memref<2x4x1x32xf32, #tpu.memory_space<vmem>>, vector<1x1x1x32xf32>
    %312 = vector.shape_cast %311 : vector<1x1x1x32xf32> to vector<1x32xf32>
    %313 = vector.broadcast %312 : vector<1x32xf32> to vector<16x32xf32>
    %314 = arith.addf %310, %313 : vector<16x32xf32>
    %c1_219 = arith.constant 1 : index
    %c0_220 = arith.constant 0 : index
    %c0_221 = arith.constant 0 : index
    %c0_222 = arith.constant 0 : index
    %315 = vector.load %arg7[%c1_219, %c0_220, %c0_221, %c0_222] : memref<2x4x32x128xbf16, #tpu.memory_space<vmem>>, vector<1x1x32x128xbf16>
    %316 = vector.shape_cast %315 : vector<1x1x32x128xbf16> to vector<32x128xbf16>
    %317 = arith.truncf %298 : vector<16x128xf32> to vector<16x128xbf16>
    %cst_223 = arith.constant dense<0.000000e+00> : vector<16x32xf32>
    %318 = tpu.matmul %317, %316, %cst_223 {dimension_numbers = #tpu.dot_dimension_numbers<[1], [1], [0], [0], [0, 0, 1, 0], [], []>} : vector<16x128xbf16>, vector<32x128xbf16>, vector<16x32xf32> -> vector<16x32xf32>
    %c1_224 = arith.constant 1 : index
    %c0_225 = arith.constant 0 : index
    %c0_226 = arith.constant 0 : index
    %c0_227 = arith.constant 0 : index
    %319 = vector.load %arg8[%c1_224, %c0_225, %c0_226, %c0_227] : memref<2x4x1x32xf32, #tpu.memory_space<vmem>>, vector<1x1x1x32xf32>
    %320 = vector.shape_cast %319 : vector<1x1x1x32xf32> to vector<1x32xf32>
    %321 = vector.broadcast %320 : vector<1x32xf32> to vector<16x32xf32>
    %322 = arith.addf %318, %321 : vector<16x32xf32>
    %323 = arith.truncf %322 : vector<16x32xf32> to vector<16x32xbf16>
    %324 = arith.truncf %306 : vector<16x32xf32> to vector<16x32xbf16>
    %325 = arith.truncf %314 : vector<16x32xf32> to vector<16x32xbf16>
    %cst_228 = arith.constant dense<0.000000e+00> : vector<16x16xf32>
    %326 = tpu.matmul %324, %325, %cst_228 {dimension_numbers = #tpu.dot_dimension_numbers<[1], [1], [0], [0], [0, 0, 1, 0], [], []>} : vector<16x32xbf16>, vector<16x32xbf16>, vector<16x16xf32> -> vector<16x16xf32>
    %cst_229 = arith.constant 0.176776692 : f32
    %327 = vector.broadcast %cst_229 : f32 to vector<16x16xf32>
    %328 = arith.mulf %326, %327 : vector<16x16xf32>
    %329 = arith.addf %328, %0 : vector<16x16xf32>
    %cst_230 = arith.constant dense<0xFF800000> : vector<16xf32>
    %330 = vector.multi_reduction <maximumf>, %329, %cst_230 [1] : vector<16x16xf32> to vector<16xf32>
    %331 = vector.shape_cast %330 : vector<16xf32> to vector<16x1xf32>
    %332 = vector.broadcast %331 : vector<16x1xf32> to vector<16x16xf32>
    %333 = arith.subf %329, %332 : vector<16x16xf32>
    %334 = math.exp %333 : vector<16x16xf32>
    %cst_231 = arith.constant dense<0.000000e+00> : vector<16xf32>
    %335 = vector.multi_reduction <add>, %334, %cst_231 [1] : vector<16x16xf32> to vector<16xf32>
    %336 = vector.shape_cast %335 : vector<16xf32> to vector<16x1xf32>
    %337 = tpu.reciprocal %336 {approx = true} : vector<16x1xf32> -> vector<16x1xf32>
    %338 = vector.broadcast %337 : vector<16x1xf32> to vector<16x16xf32>
    %339 = arith.mulf %334, %338 : vector<16x16xf32>
    %340 = arith.truncf %339 : vector<16x16xf32> to vector<16x16xbf16>
    %cst_232 = arith.constant dense<0.000000e+00> : vector<16x32xf32>
    %341 = tpu.matmul %340, %323, %cst_232 {dimension_numbers = #tpu.dot_dimension_numbers<[1], [0], [0], [1], [0, 0, 1, 1], [], []>} : vector<16x16xbf16>, vector<16x32xbf16>, vector<16x32xf32> -> vector<16x32xf32>
    %c1_233 = arith.constant 1 : index
    %c0_234 = arith.constant 0 : index
    %c0_235 = arith.constant 0 : index
    %c0_236 = arith.constant 0 : index
    %342 = vector.load %arg9[%c1_233, %c0_234, %c0_235, %c0_236] : memref<2x4x32x128xbf16, #tpu.memory_space<vmem>>, vector<1x1x32x128xbf16>
    %343 = vector.shape_cast %342 : vector<1x1x32x128xbf16> to vector<32x128xbf16>
    %344 = arith.truncf %341 : vector<16x32xf32> to vector<16x32xbf16>
    %cst_237 = arith.constant dense<0.000000e+00> : vector<16x128xf32>
    %345 = tpu.matmul %344, %343, %cst_237 {dimension_numbers = #tpu.dot_dimension_numbers<[1], [0], [0], [1], [0, 0, 1, 1], [], []>} : vector<16x32xbf16>, vector<32x128xbf16>, vector<16x128xf32> -> vector<16x128xf32>
    %c1_238 = arith.constant 1 : index
    %c1_239 = arith.constant 1 : index
    %c0_240 = arith.constant 0 : index
    %c0_241 = arith.constant 0 : index
    %346 = vector.load %arg3[%c1_238, %c1_239, %c0_240, %c0_241] : memref<2x4x32x128xbf16, #tpu.memory_space<vmem>>, vector<1x1x32x128xbf16>
    %347 = vector.shape_cast %346 : vector<1x1x32x128xbf16> to vector<32x128xbf16>
    %348 = arith.truncf %298 : vector<16x128xf32> to vector<16x128xbf16>
    %cst_242 = arith.constant dense<0.000000e+00> : vector<16x32xf32>
    %349 = tpu.matmul %348, %347, %cst_242 {dimension_numbers = #tpu.dot_dimension_numbers<[1], [1], [0], [0], [0, 0, 1, 0], [], []>} : vector<16x128xbf16>, vector<32x128xbf16>, vector<16x32xf32> -> vector<16x32xf32>
    %c1_243 = arith.constant 1 : index
    %c1_244 = arith.constant 1 : index
    %c0_245 = arith.constant 0 : index
    %c0_246 = arith.constant 0 : index
    %350 = vector.load %arg4[%c1_243, %c1_244, %c0_245, %c0_246] : memref<2x4x1x32xf32, #tpu.memory_space<vmem>>, vector<1x1x1x32xf32>
    %351 = vector.shape_cast %350 : vector<1x1x1x32xf32> to vector<1x32xf32>
    %352 = vector.broadcast %351 : vector<1x32xf32> to vector<16x32xf32>
    %353 = arith.addf %349, %352 : vector<16x32xf32>
    %c1_247 = arith.constant 1 : index
    %c1_248 = arith.constant 1 : index
    %c0_249 = arith.constant 0 : index
    %c0_250 = arith.constant 0 : index
    %354 = vector.load %arg5[%c1_247, %c1_248, %c0_249, %c0_250] : memref<2x4x32x128xbf16, #tpu.memory_space<vmem>>, vector<1x1x32x128xbf16>
    %355 = vector.shape_cast %354 : vector<1x1x32x128xbf16> to vector<32x128xbf16>
    %356 = arith.truncf %298 : vector<16x128xf32> to vector<16x128xbf16>
    %cst_251 = arith.constant dense<0.000000e+00> : vector<16x32xf32>
    %357 = tpu.matmul %356, %355, %cst_251 {dimension_numbers = #tpu.dot_dimension_numbers<[1], [1], [0], [0], [0, 0, 1, 0], [], []>} : vector<16x128xbf16>, vector<32x128xbf16>, vector<16x32xf32> -> vector<16x32xf32>
    %c1_252 = arith.constant 1 : index
    %c1_253 = arith.constant 1 : index
    %c0_254 = arith.constant 0 : index
    %c0_255 = arith.constant 0 : index
    %358 = vector.load %arg6[%c1_252, %c1_253, %c0_254, %c0_255] : memref<2x4x1x32xf32, #tpu.memory_space<vmem>>, vector<1x1x1x32xf32>
    %359 = vector.shape_cast %358 : vector<1x1x1x32xf32> to vector<1x32xf32>
    %360 = vector.broadcast %359 : vector<1x32xf32> to vector<16x32xf32>
    %361 = arith.addf %357, %360 : vector<16x32xf32>
    %c1_256 = arith.constant 1 : index
    %c1_257 = arith.constant 1 : index
    %c0_258 = arith.constant 0 : index
    %c0_259 = arith.constant 0 : index
    %362 = vector.load %arg7[%c1_256, %c1_257, %c0_258, %c0_259] : memref<2x4x32x128xbf16, #tpu.memory_space<vmem>>, vector<1x1x32x128xbf16>
    %363 = vector.shape_cast %362 : vector<1x1x32x128xbf16> to vector<32x128xbf16>
    %364 = arith.truncf %298 : vector<16x128xf32> to vector<16x128xbf16>
    %cst_260 = arith.constant dense<0.000000e+00> : vector<16x32xf32>
    %365 = tpu.matmul %364, %363, %cst_260 {dimension_numbers = #tpu.dot_dimension_numbers<[1], [1], [0], [0], [0, 0, 1, 0], [], []>} : vector<16x128xbf16>, vector<32x128xbf16>, vector<16x32xf32> -> vector<16x32xf32>
    %c1_261 = arith.constant 1 : index
    %c1_262 = arith.constant 1 : index
    %c0_263 = arith.constant 0 : index
    %c0_264 = arith.constant 0 : index
    %366 = vector.load %arg8[%c1_261, %c1_262, %c0_263, %c0_264] : memref<2x4x1x32xf32, #tpu.memory_space<vmem>>, vector<1x1x1x32xf32>
    %367 = vector.shape_cast %366 : vector<1x1x1x32xf32> to vector<1x32xf32>
    %368 = vector.broadcast %367 : vector<1x32xf32> to vector<16x32xf32>
    %369 = arith.addf %365, %368 : vector<16x32xf32>
    %370 = arith.truncf %369 : vector<16x32xf32> to vector<16x32xbf16>
    %371 = arith.truncf %353 : vector<16x32xf32> to vector<16x32xbf16>
    %372 = arith.truncf %361 : vector<16x32xf32> to vector<16x32xbf16>
    %cst_265 = arith.constant dense<0.000000e+00> : vector<16x16xf32>
    %373 = tpu.matmul %371, %372, %cst_265 {dimension_numbers = #tpu.dot_dimension_numbers<[1], [1], [0], [0], [0, 0, 1, 0], [], []>} : vector<16x32xbf16>, vector<16x32xbf16>, vector<16x16xf32> -> vector<16x16xf32>
    %cst_266 = arith.constant 0.176776692 : f32
    %374 = vector.broadcast %cst_266 : f32 to vector<16x16xf32>
    %375 = arith.mulf %373, %374 : vector<16x16xf32>
    %376 = arith.addf %375, %0 : vector<16x16xf32>
    %cst_267 = arith.constant dense<0xFF800000> : vector<16xf32>
    %377 = vector.multi_reduction <maximumf>, %376, %cst_267 [1] : vector<16x16xf32> to vector<16xf32>
    %378 = vector.shape_cast %377 : vector<16xf32> to vector<16x1xf32>
    %379 = vector.broadcast %378 : vector<16x1xf32> to vector<16x16xf32>
    %380 = arith.subf %376, %379 : vector<16x16xf32>
    %381 = math.exp %380 : vector<16x16xf32>
    %cst_268 = arith.constant dense<0.000000e+00> : vector<16xf32>
    %382 = vector.multi_reduction <add>, %381, %cst_268 [1] : vector<16x16xf32> to vector<16xf32>
    %383 = vector.shape_cast %382 : vector<16xf32> to vector<16x1xf32>
    %384 = tpu.reciprocal %383 {approx = true} : vector<16x1xf32> -> vector<16x1xf32>
    %385 = vector.broadcast %384 : vector<16x1xf32> to vector<16x16xf32>
    %386 = arith.mulf %381, %385 : vector<16x16xf32>
    %387 = arith.truncf %386 : vector<16x16xf32> to vector<16x16xbf16>
    %cst_269 = arith.constant dense<0.000000e+00> : vector<16x32xf32>
    %388 = tpu.matmul %387, %370, %cst_269 {dimension_numbers = #tpu.dot_dimension_numbers<[1], [0], [0], [1], [0, 0, 1, 1], [], []>} : vector<16x16xbf16>, vector<16x32xbf16>, vector<16x32xf32> -> vector<16x32xf32>
    %c1_270 = arith.constant 1 : index
    %c1_271 = arith.constant 1 : index
    %c0_272 = arith.constant 0 : index
    %c0_273 = arith.constant 0 : index
    %389 = vector.load %arg9[%c1_270, %c1_271, %c0_272, %c0_273] : memref<2x4x32x128xbf16, #tpu.memory_space<vmem>>, vector<1x1x32x128xbf16>
    %390 = vector.shape_cast %389 : vector<1x1x32x128xbf16> to vector<32x128xbf16>
    %391 = arith.truncf %388 : vector<16x32xf32> to vector<16x32xbf16>
    %cst_274 = arith.constant dense<0.000000e+00> : vector<16x128xf32>
    %392 = tpu.matmul %391, %390, %cst_274 {dimension_numbers = #tpu.dot_dimension_numbers<[1], [0], [0], [1], [0, 0, 1, 1], [], []>} : vector<16x32xbf16>, vector<32x128xbf16>, vector<16x128xf32> -> vector<16x128xf32>
    %393 = arith.addf %345, %392 : vector<16x128xf32>
    %c1_275 = arith.constant 1 : index
    %c2_276 = arith.constant 2 : index
    %c0_277 = arith.constant 0 : index
    %c0_278 = arith.constant 0 : index
    %394 = vector.load %arg3[%c1_275, %c2_276, %c0_277, %c0_278] : memref<2x4x32x128xbf16, #tpu.memory_space<vmem>>, vector<1x1x32x128xbf16>
    %395 = vector.shape_cast %394 : vector<1x1x32x128xbf16> to vector<32x128xbf16>
    %396 = arith.truncf %298 : vector<16x128xf32> to vector<16x128xbf16>
    %cst_279 = arith.constant dense<0.000000e+00> : vector<16x32xf32>
    %397 = tpu.matmul %396, %395, %cst_279 {dimension_numbers = #tpu.dot_dimension_numbers<[1], [1], [0], [0], [0, 0, 1, 0], [], []>} : vector<16x128xbf16>, vector<32x128xbf16>, vector<16x32xf32> -> vector<16x32xf32>
    %c1_280 = arith.constant 1 : index
    %c2_281 = arith.constant 2 : index
    %c0_282 = arith.constant 0 : index
    %c0_283 = arith.constant 0 : index
    %398 = vector.load %arg4[%c1_280, %c2_281, %c0_282, %c0_283] : memref<2x4x1x32xf32, #tpu.memory_space<vmem>>, vector<1x1x1x32xf32>
    %399 = vector.shape_cast %398 : vector<1x1x1x32xf32> to vector<1x32xf32>
    %400 = vector.broadcast %399 : vector<1x32xf32> to vector<16x32xf32>
    %401 = arith.addf %397, %400 : vector<16x32xf32>
    %c1_284 = arith.constant 1 : index
    %c2_285 = arith.constant 2 : index
    %c0_286 = arith.constant 0 : index
    %c0_287 = arith.constant 0 : index
    %402 = vector.load %arg5[%c1_284, %c2_285, %c0_286, %c0_287] : memref<2x4x32x128xbf16, #tpu.memory_space<vmem>>, vector<1x1x32x128xbf16>
    %403 = vector.shape_cast %402 : vector<1x1x32x128xbf16> to vector<32x128xbf16>
    %404 = arith.truncf %298 : vector<16x128xf32> to vector<16x128xbf16>
    %cst_288 = arith.constant dense<0.000000e+00> : vector<16x32xf32>
    %405 = tpu.matmul %404, %403, %cst_288 {dimension_numbers = #tpu.dot_dimension_numbers<[1], [1], [0], [0], [0, 0, 1, 0], [], []>} : vector<16x128xbf16>, vector<32x128xbf16>, vector<16x32xf32> -> vector<16x32xf32>
    %c1_289 = arith.constant 1 : index
    %c2_290 = arith.constant 2 : index
    %c0_291 = arith.constant 0 : index
    %c0_292 = arith.constant 0 : index
    %406 = vector.load %arg6[%c1_289, %c2_290, %c0_291, %c0_292] : memref<2x4x1x32xf32, #tpu.memory_space<vmem>>, vector<1x1x1x32xf32>
    %407 = vector.shape_cast %406 : vector<1x1x1x32xf32> to vector<1x32xf32>
    %408 = vector.broadcast %407 : vector<1x32xf32> to vector<16x32xf32>
    %409 = arith.addf %405, %408 : vector<16x32xf32>
    %c1_293 = arith.constant 1 : index
    %c2_294 = arith.constant 2 : index
    %c0_295 = arith.constant 0 : index
    %c0_296 = arith.constant 0 : index
    %410 = vector.load %arg7[%c1_293, %c2_294, %c0_295, %c0_296] : memref<2x4x32x128xbf16, #tpu.memory_space<vmem>>, vector<1x1x32x128xbf16>
    %411 = vector.shape_cast %410 : vector<1x1x32x128xbf16> to vector<32x128xbf16>
    %412 = arith.truncf %298 : vector<16x128xf32> to vector<16x128xbf16>
    %cst_297 = arith.constant dense<0.000000e+00> : vector<16x32xf32>
    %413 = tpu.matmul %412, %411, %cst_297 {dimension_numbers = #tpu.dot_dimension_numbers<[1], [1], [0], [0], [0, 0, 1, 0], [], []>} : vector<16x128xbf16>, vector<32x128xbf16>, vector<16x32xf32> -> vector<16x32xf32>
    %c1_298 = arith.constant 1 : index
    %c2_299 = arith.constant 2 : index
    %c0_300 = arith.constant 0 : index
    %c0_301 = arith.constant 0 : index
    %414 = vector.load %arg8[%c1_298, %c2_299, %c0_300, %c0_301] : memref<2x4x1x32xf32, #tpu.memory_space<vmem>>, vector<1x1x1x32xf32>
    %415 = vector.shape_cast %414 : vector<1x1x1x32xf32> to vector<1x32xf32>
    %416 = vector.broadcast %415 : vector<1x32xf32> to vector<16x32xf32>
    %417 = arith.addf %413, %416 : vector<16x32xf32>
    %418 = arith.truncf %417 : vector<16x32xf32> to vector<16x32xbf16>
    %419 = arith.truncf %401 : vector<16x32xf32> to vector<16x32xbf16>
    %420 = arith.truncf %409 : vector<16x32xf32> to vector<16x32xbf16>
    %cst_302 = arith.constant dense<0.000000e+00> : vector<16x16xf32>
    %421 = tpu.matmul %419, %420, %cst_302 {dimension_numbers = #tpu.dot_dimension_numbers<[1], [1], [0], [0], [0, 0, 1, 0], [], []>} : vector<16x32xbf16>, vector<16x32xbf16>, vector<16x16xf32> -> vector<16x16xf32>
    %cst_303 = arith.constant 0.176776692 : f32
    %422 = vector.broadcast %cst_303 : f32 to vector<16x16xf32>
    %423 = arith.mulf %421, %422 : vector<16x16xf32>
    %424 = arith.addf %423, %0 : vector<16x16xf32>
    %cst_304 = arith.constant dense<0xFF800000> : vector<16xf32>
    %425 = vector.multi_reduction <maximumf>, %424, %cst_304 [1] : vector<16x16xf32> to vector<16xf32>
    %426 = vector.shape_cast %425 : vector<16xf32> to vector<16x1xf32>
    %427 = vector.broadcast %426 : vector<16x1xf32> to vector<16x16xf32>
    %428 = arith.subf %424, %427 : vector<16x16xf32>
    %429 = math.exp %428 : vector<16x16xf32>
    %cst_305 = arith.constant dense<0.000000e+00> : vector<16xf32>
    %430 = vector.multi_reduction <add>, %429, %cst_305 [1] : vector<16x16xf32> to vector<16xf32>
    %431 = vector.shape_cast %430 : vector<16xf32> to vector<16x1xf32>
    %432 = tpu.reciprocal %431 {approx = true} : vector<16x1xf32> -> vector<16x1xf32>
    %433 = vector.broadcast %432 : vector<16x1xf32> to vector<16x16xf32>
    %434 = arith.mulf %429, %433 : vector<16x16xf32>
    %435 = arith.truncf %434 : vector<16x16xf32> to vector<16x16xbf16>
    %cst_306 = arith.constant dense<0.000000e+00> : vector<16x32xf32>
    %436 = tpu.matmul %435, %418, %cst_306 {dimension_numbers = #tpu.dot_dimension_numbers<[1], [0], [0], [1], [0, 0, 1, 1], [], []>} : vector<16x16xbf16>, vector<16x32xbf16>, vector<16x32xf32> -> vector<16x32xf32>
    %c1_307 = arith.constant 1 : index
    %c2_308 = arith.constant 2 : index
    %c0_309 = arith.constant 0 : index
    %c0_310 = arith.constant 0 : index
    %437 = vector.load %arg9[%c1_307, %c2_308, %c0_309, %c0_310] : memref<2x4x32x128xbf16, #tpu.memory_space<vmem>>, vector<1x1x32x128xbf16>
    %438 = vector.shape_cast %437 : vector<1x1x32x128xbf16> to vector<32x128xbf16>
    %439 = arith.truncf %436 : vector<16x32xf32> to vector<16x32xbf16>
    %cst_311 = arith.constant dense<0.000000e+00> : vector<16x128xf32>
    %440 = tpu.matmul %439, %438, %cst_311 {dimension_numbers = #tpu.dot_dimension_numbers<[1], [0], [0], [1], [0, 0, 1, 1], [], []>} : vector<16x32xbf16>, vector<32x128xbf16>, vector<16x128xf32> -> vector<16x128xf32>
    %441 = arith.addf %393, %440 : vector<16x128xf32>
    %c1_312 = arith.constant 1 : index
    %c3_313 = arith.constant 3 : index
    %c0_314 = arith.constant 0 : index
    %c0_315 = arith.constant 0 : index
    %442 = vector.load %arg3[%c1_312, %c3_313, %c0_314, %c0_315] : memref<2x4x32x128xbf16, #tpu.memory_space<vmem>>, vector<1x1x32x128xbf16>
    %443 = vector.shape_cast %442 : vector<1x1x32x128xbf16> to vector<32x128xbf16>
    %444 = arith.truncf %298 : vector<16x128xf32> to vector<16x128xbf16>
    %cst_316 = arith.constant dense<0.000000e+00> : vector<16x32xf32>
    %445 = tpu.matmul %444, %443, %cst_316 {dimension_numbers = #tpu.dot_dimension_numbers<[1], [1], [0], [0], [0, 0, 1, 0], [], []>} : vector<16x128xbf16>, vector<32x128xbf16>, vector<16x32xf32> -> vector<16x32xf32>
    %c1_317 = arith.constant 1 : index
    %c3_318 = arith.constant 3 : index
    %c0_319 = arith.constant 0 : index
    %c0_320 = arith.constant 0 : index
    %446 = vector.load %arg4[%c1_317, %c3_318, %c0_319, %c0_320] : memref<2x4x1x32xf32, #tpu.memory_space<vmem>>, vector<1x1x1x32xf32>
    %447 = vector.shape_cast %446 : vector<1x1x1x32xf32> to vector<1x32xf32>
    %448 = vector.broadcast %447 : vector<1x32xf32> to vector<16x32xf32>
    %449 = arith.addf %445, %448 : vector<16x32xf32>
    %c1_321 = arith.constant 1 : index
    %c3_322 = arith.constant 3 : index
    %c0_323 = arith.constant 0 : index
    %c0_324 = arith.constant 0 : index
    %450 = vector.load %arg5[%c1_321, %c3_322, %c0_323, %c0_324] : memref<2x4x32x128xbf16, #tpu.memory_space<vmem>>, vector<1x1x32x128xbf16>
    %451 = vector.shape_cast %450 : vector<1x1x32x128xbf16> to vector<32x128xbf16>
    %452 = arith.truncf %298 : vector<16x128xf32> to vector<16x128xbf16>
    %cst_325 = arith.constant dense<0.000000e+00> : vector<16x32xf32>
    %453 = tpu.matmul %452, %451, %cst_325 {dimension_numbers = #tpu.dot_dimension_numbers<[1], [1], [0], [0], [0, 0, 1, 0], [], []>} : vector<16x128xbf16>, vector<32x128xbf16>, vector<16x32xf32> -> vector<16x32xf32>
    %c1_326 = arith.constant 1 : index
    %c3_327 = arith.constant 3 : index
    %c0_328 = arith.constant 0 : index
    %c0_329 = arith.constant 0 : index
    %454 = vector.load %arg6[%c1_326, %c3_327, %c0_328, %c0_329] : memref<2x4x1x32xf32, #tpu.memory_space<vmem>>, vector<1x1x1x32xf32>
    %455 = vector.shape_cast %454 : vector<1x1x1x32xf32> to vector<1x32xf32>
    %456 = vector.broadcast %455 : vector<1x32xf32> to vector<16x32xf32>
    %457 = arith.addf %453, %456 : vector<16x32xf32>
    %c1_330 = arith.constant 1 : index
    %c3_331 = arith.constant 3 : index
    %c0_332 = arith.constant 0 : index
    %c0_333 = arith.constant 0 : index
    %458 = vector.load %arg7[%c1_330, %c3_331, %c0_332, %c0_333] : memref<2x4x32x128xbf16, #tpu.memory_space<vmem>>, vector<1x1x32x128xbf16>
    %459 = vector.shape_cast %458 : vector<1x1x32x128xbf16> to vector<32x128xbf16>
    %460 = arith.truncf %298 : vector<16x128xf32> to vector<16x128xbf16>
    %cst_334 = arith.constant dense<0.000000e+00> : vector<16x32xf32>
    %461 = tpu.matmul %460, %459, %cst_334 {dimension_numbers = #tpu.dot_dimension_numbers<[1], [1], [0], [0], [0, 0, 1, 0], [], []>} : vector<16x128xbf16>, vector<32x128xbf16>, vector<16x32xf32> -> vector<16x32xf32>
    %c1_335 = arith.constant 1 : index
    %c3_336 = arith.constant 3 : index
    %c0_337 = arith.constant 0 : index
    %c0_338 = arith.constant 0 : index
    %462 = vector.load %arg8[%c1_335, %c3_336, %c0_337, %c0_338] : memref<2x4x1x32xf32, #tpu.memory_space<vmem>>, vector<1x1x1x32xf32>
    %463 = vector.shape_cast %462 : vector<1x1x1x32xf32> to vector<1x32xf32>
    %464 = vector.broadcast %463 : vector<1x32xf32> to vector<16x32xf32>
    %465 = arith.addf %461, %464 : vector<16x32xf32>
    %466 = arith.truncf %465 : vector<16x32xf32> to vector<16x32xbf16>
    %467 = arith.truncf %449 : vector<16x32xf32> to vector<16x32xbf16>
    %468 = arith.truncf %457 : vector<16x32xf32> to vector<16x32xbf16>
    %cst_339 = arith.constant dense<0.000000e+00> : vector<16x16xf32>
    %469 = tpu.matmul %467, %468, %cst_339 {dimension_numbers = #tpu.dot_dimension_numbers<[1], [1], [0], [0], [0, 0, 1, 0], [], []>} : vector<16x32xbf16>, vector<16x32xbf16>, vector<16x16xf32> -> vector<16x16xf32>
    %cst_340 = arith.constant 0.176776692 : f32
    %470 = vector.broadcast %cst_340 : f32 to vector<16x16xf32>
    %471 = arith.mulf %469, %470 : vector<16x16xf32>
    %472 = arith.addf %471, %0 : vector<16x16xf32>
    %cst_341 = arith.constant dense<0xFF800000> : vector<16xf32>
    %473 = vector.multi_reduction <maximumf>, %472, %cst_341 [1] : vector<16x16xf32> to vector<16xf32>
    %474 = vector.shape_cast %473 : vector<16xf32> to vector<16x1xf32>
    %475 = vector.broadcast %474 : vector<16x1xf32> to vector<16x16xf32>
    %476 = arith.subf %472, %475 : vector<16x16xf32>
    %477 = math.exp %476 : vector<16x16xf32>
    %cst_342 = arith.constant dense<0.000000e+00> : vector<16xf32>
    %478 = vector.multi_reduction <add>, %477, %cst_342 [1] : vector<16x16xf32> to vector<16xf32>
    %479 = vector.shape_cast %478 : vector<16xf32> to vector<16x1xf32>
    %480 = tpu.reciprocal %479 {approx = true} : vector<16x1xf32> -> vector<16x1xf32>
    %481 = vector.broadcast %480 : vector<16x1xf32> to vector<16x16xf32>
    %482 = arith.mulf %477, %481 : vector<16x16xf32>
    %483 = arith.truncf %482 : vector<16x16xf32> to vector<16x16xbf16>
    %cst_343 = arith.constant dense<0.000000e+00> : vector<16x32xf32>
    %484 = tpu.matmul %483, %466, %cst_343 {dimension_numbers = #tpu.dot_dimension_numbers<[1], [0], [0], [1], [0, 0, 1, 1], [], []>} : vector<16x16xbf16>, vector<16x32xbf16>, vector<16x32xf32> -> vector<16x32xf32>
    %c1_344 = arith.constant 1 : index
    %c3_345 = arith.constant 3 : index
    %c0_346 = arith.constant 0 : index
    %c0_347 = arith.constant 0 : index
    %485 = vector.load %arg9[%c1_344, %c3_345, %c0_346, %c0_347] : memref<2x4x32x128xbf16, #tpu.memory_space<vmem>>, vector<1x1x32x128xbf16>
    %486 = vector.shape_cast %485 : vector<1x1x32x128xbf16> to vector<32x128xbf16>
    %487 = arith.truncf %484 : vector<16x32xf32> to vector<16x32xbf16>
    %cst_348 = arith.constant dense<0.000000e+00> : vector<16x128xf32>
    %488 = tpu.matmul %487, %486, %cst_348 {dimension_numbers = #tpu.dot_dimension_numbers<[1], [0], [0], [1], [0, 0, 1, 1], [], []>} : vector<16x32xbf16>, vector<32x128xbf16>, vector<16x128xf32> -> vector<16x128xf32>
    %489 = arith.addf %441, %488 : vector<16x128xf32>
    %c1_349 = arith.constant 1 : index
    %c0_350 = arith.constant 0 : index
    %c0_351 = arith.constant 0 : index
    %490 = vector.load %arg10[%c1_349, %c0_350, %c0_351] : memref<2x1x128xf32, #tpu.memory_space<vmem>>, vector<1x1x128xf32>
    %491 = vector.shape_cast %490 : vector<1x1x128xf32> to vector<1x128xf32>
    %492 = vector.broadcast %491 : vector<1x128xf32> to vector<16x128xf32>
    %493 = arith.addf %489, %492 : vector<16x128xf32>
    %494 = arith.addf %298, %493 : vector<16x128xf32>
    %c1_352 = arith.constant 1 : index
    %c0_353 = arith.constant 0 : index
    %c0_354 = arith.constant 0 : index
    %495 = vector.load %arg16[%c1_352, %c0_353, %c0_354] : memref<2x1x128xf32, #tpu.memory_space<vmem>>, vector<1x1x128xf32>
    %496 = vector.shape_cast %495 : vector<1x1x128xf32> to vector<1x128xf32>
    %c1_355 = arith.constant 1 : index
    %c0_356 = arith.constant 0 : index
    %c0_357 = arith.constant 0 : index
    %497 = vector.load %arg17[%c1_355, %c0_356, %c0_357] : memref<2x1x128xf32, #tpu.memory_space<vmem>>, vector<1x1x128xf32>
    %498 = vector.shape_cast %497 : vector<1x1x128xf32> to vector<1x128xf32>
    %cst_358 = arith.constant dense<0.000000e+00> : vector<16xf32>
    %499 = vector.multi_reduction <add>, %494, %cst_358 [1] : vector<16x128xf32> to vector<16xf32>
    %500 = vector.shape_cast %499 : vector<16xf32> to vector<16x1xf32>
    %cst_359 = arith.constant 1.280000e+02 : f32
    %501 = vector.broadcast %cst_359 : f32 to vector<16x1xf32>
    %502 = arith.divf %500, %501 : vector<16x1xf32>
    %503 = vector.broadcast %502 : vector<16x1xf32> to vector<16x128xf32>
    %504 = arith.subf %494, %503 : vector<16x128xf32>
    %505 = arith.mulf %504, %504 : vector<16x128xf32>
    %cst_360 = arith.constant dense<0.000000e+00> : vector<16xf32>
    %506 = vector.multi_reduction <add>, %505, %cst_360 [1] : vector<16x128xf32> to vector<16xf32>
    %507 = vector.shape_cast %506 : vector<16xf32> to vector<16x1xf32>
    %cst_361 = arith.constant 1.280000e+02 : f32
    %508 = vector.broadcast %cst_361 : f32 to vector<16x1xf32>
    %509 = arith.divf %507, %508 : vector<16x1xf32>
    %510 = vector.broadcast %502 : vector<16x1xf32> to vector<16x128xf32>
    %511 = arith.subf %494, %510 : vector<16x128xf32>
    %cst_362 = arith.constant 9.99999974E-6 : f32
    %512 = vector.broadcast %cst_362 : f32 to vector<16x1xf32>
    %513 = arith.addf %509, %512 : vector<16x1xf32>
    %514 = math.rsqrt %513 : vector<16x1xf32>
    %515 = vector.broadcast %514 : vector<16x1xf32> to vector<16x128xf32>
    %516 = arith.mulf %511, %515 : vector<16x128xf32>
    %517 = vector.broadcast %496 : vector<1x128xf32> to vector<16x128xf32>
    %518 = arith.mulf %516, %517 : vector<16x128xf32>
    %519 = vector.broadcast %498 : vector<1x128xf32> to vector<16x128xf32>
    %520 = arith.addf %518, %519 : vector<16x128xf32>
    %c1_363 = arith.constant 1 : index
    %c0_364 = arith.constant 0 : index
    %c0_365 = arith.constant 0 : index
    %521 = vector.load %arg11[%c1_363, %c0_364, %c0_365] : memref<2x1x128xf32, #tpu.memory_space<vmem>>, vector<1x1x128xf32>
    %522 = vector.shape_cast %521 : vector<1x1x128xf32> to vector<1x128xf32>
    %523 = vector.broadcast %522 : vector<1x128xf32> to vector<16x128xf32>
    %524 = arith.addf %520, %523 : vector<16x128xf32>
    %c1_366 = arith.constant 1 : index
    %c0_367 = arith.constant 0 : index
    %c0_368 = arith.constant 0 : index
    %525 = vector.load %arg18[%c1_366, %c0_367, %c0_368] : memref<2x1x128xf32, #tpu.memory_space<vmem>>, vector<1x1x128xf32>
    %526 = vector.shape_cast %525 : vector<1x1x128xf32> to vector<1x128xf32>
    %c1_369 = arith.constant 1 : index
    %c0_370 = arith.constant 0 : index
    %c0_371 = arith.constant 0 : index
    %527 = vector.load %arg19[%c1_369, %c0_370, %c0_371] : memref<2x1x128xf32, #tpu.memory_space<vmem>>, vector<1x1x128xf32>
    %528 = vector.shape_cast %527 : vector<1x1x128xf32> to vector<1x128xf32>
    %cst_372 = arith.constant dense<0.000000e+00> : vector<16xf32>
    %529 = vector.multi_reduction <add>, %524, %cst_372 [1] : vector<16x128xf32> to vector<16xf32>
    %530 = vector.shape_cast %529 : vector<16xf32> to vector<16x1xf32>
    %cst_373 = arith.constant 1.280000e+02 : f32
    %531 = vector.broadcast %cst_373 : f32 to vector<16x1xf32>
    %532 = arith.divf %530, %531 : vector<16x1xf32>
    %533 = vector.broadcast %532 : vector<16x1xf32> to vector<16x128xf32>
    %534 = arith.subf %524, %533 : vector<16x128xf32>
    %535 = arith.mulf %534, %534 : vector<16x128xf32>
    %cst_374 = arith.constant dense<0.000000e+00> : vector<16xf32>
    %536 = vector.multi_reduction <add>, %535, %cst_374 [1] : vector<16x128xf32> to vector<16xf32>
    %537 = vector.shape_cast %536 : vector<16xf32> to vector<16x1xf32>
    %cst_375 = arith.constant 1.280000e+02 : f32
    %538 = vector.broadcast %cst_375 : f32 to vector<16x1xf32>
    %539 = arith.divf %537, %538 : vector<16x1xf32>
    %540 = vector.broadcast %532 : vector<16x1xf32> to vector<16x128xf32>
    %541 = arith.subf %524, %540 : vector<16x128xf32>
    %cst_376 = arith.constant 9.99999974E-6 : f32
    %542 = vector.broadcast %cst_376 : f32 to vector<16x1xf32>
    %543 = arith.addf %539, %542 : vector<16x1xf32>
    %544 = math.rsqrt %543 : vector<16x1xf32>
    %545 = vector.broadcast %544 : vector<16x1xf32> to vector<16x128xf32>
    %546 = arith.mulf %541, %545 : vector<16x128xf32>
    %547 = vector.broadcast %526 : vector<1x128xf32> to vector<16x128xf32>
    %548 = arith.mulf %546, %547 : vector<16x128xf32>
    %549 = vector.broadcast %528 : vector<1x128xf32> to vector<16x128xf32>
    %550 = arith.addf %548, %549 : vector<16x128xf32>
    %c1_377 = arith.constant 1 : index
    %c0_378 = arith.constant 0 : index
    %c0_379 = arith.constant 0 : index
    %551 = vector.load %arg12[%c1_377, %c0_378, %c0_379] : memref<2x2048x128xbf16, #tpu.memory_space<vmem>>, vector<1x2048x128xbf16>
    %552 = vector.shape_cast %551 : vector<1x2048x128xbf16> to vector<2048x128xbf16>
    %553 = arith.truncf %550 : vector<16x128xf32> to vector<16x128xbf16>
    %cst_380 = arith.constant dense<0.000000e+00> : vector<16x2048xf32>
    %554 = tpu.matmul %553, %552, %cst_380 {dimension_numbers = #tpu.dot_dimension_numbers<[1], [1], [0], [0], [0, 0, 1, 0], [], []>} : vector<16x128xbf16>, vector<2048x128xbf16>, vector<16x2048xf32> -> vector<16x2048xf32>
    %c1_381 = arith.constant 1 : index
    %c0_382 = arith.constant 0 : index
    %c0_383 = arith.constant 0 : index
    %555 = vector.load %arg13[%c1_381, %c0_382, %c0_383] : memref<2x1x2048xf32, #tpu.memory_space<vmem>>, vector<1x1x2048xf32>
    %556 = vector.shape_cast %555 : vector<1x1x2048xf32> to vector<1x2048xf32>
    %557 = vector.broadcast %556 : vector<1x2048xf32> to vector<16x2048xf32>
    %558 = arith.addf %554, %557 : vector<16x2048xf32>
    %cst_384 = arith.constant 0.000000e+00 : f32
    %559 = vector.broadcast %cst_384 : f32 to vector<16x2048xf32>
    %560 = arith.maximumf %558, %559 : vector<16x2048xf32>
    %561 = arith.truncf %560 : vector<16x2048xf32> to vector<16x2048xbf16>
    %c1_385 = arith.constant 1 : index
    %c0_386 = arith.constant 0 : index
    %c0_387 = arith.constant 0 : index
    %562 = vector.load %arg14[%c1_385, %c0_386, %c0_387] : memref<2x128x2048xbf16, #tpu.memory_space<vmem>>, vector<1x128x2048xbf16>
    %563 = vector.shape_cast %562 : vector<1x128x2048xbf16> to vector<128x2048xbf16>
    %cst_388 = arith.constant dense<0.000000e+00> : vector<16x128xf32>
    %564 = tpu.matmul %561, %563, %cst_388 {dimension_numbers = #tpu.dot_dimension_numbers<[1], [1], [0], [0], [0, 0, 1, 0], [], []>} : vector<16x2048xbf16>, vector<128x2048xbf16>, vector<16x128xf32> -> vector<16x128xf32>
    %c1_389 = arith.constant 1 : index
    %c0_390 = arith.constant 0 : index
    %c0_391 = arith.constant 0 : index
    %565 = vector.load %arg15[%c1_389, %c0_390, %c0_391] : memref<2x1x128xf32, #tpu.memory_space<vmem>>, vector<1x1x128xf32>
    %566 = vector.shape_cast %565 : vector<1x1x128xf32> to vector<1x128xf32>
    %567 = vector.broadcast %566 : vector<1x128xf32> to vector<16x128xf32>
    %568 = arith.addf %564, %567 : vector<16x128xf32>
    %569 = arith.addf %550, %568 : vector<16x128xf32>
    %c1_392 = arith.constant 1 : index
    %c0_393 = arith.constant 0 : index
    %c0_394 = arith.constant 0 : index
    %570 = vector.load %arg20[%c1_392, %c0_393, %c0_394] : memref<2x1x128xf32, #tpu.memory_space<vmem>>, vector<1x1x128xf32>
    %571 = vector.shape_cast %570 : vector<1x1x128xf32> to vector<1x128xf32>
    %c1_395 = arith.constant 1 : index
    %c0_396 = arith.constant 0 : index
    %c0_397 = arith.constant 0 : index
    %572 = vector.load %arg21[%c1_395, %c0_396, %c0_397] : memref<2x1x128xf32, #tpu.memory_space<vmem>>, vector<1x1x128xf32>
    %573 = vector.shape_cast %572 : vector<1x1x128xf32> to vector<1x128xf32>
    %cst_398 = arith.constant dense<0.000000e+00> : vector<16xf32>
    %574 = vector.multi_reduction <add>, %569, %cst_398 [1] : vector<16x128xf32> to vector<16xf32>
    %575 = vector.shape_cast %574 : vector<16xf32> to vector<16x1xf32>
    %cst_399 = arith.constant 1.280000e+02 : f32
    %576 = vector.broadcast %cst_399 : f32 to vector<16x1xf32>
    %577 = arith.divf %575, %576 : vector<16x1xf32>
    %578 = vector.broadcast %577 : vector<16x1xf32> to vector<16x128xf32>
    %579 = arith.subf %569, %578 : vector<16x128xf32>
    %580 = arith.mulf %579, %579 : vector<16x128xf32>
    %cst_400 = arith.constant dense<0.000000e+00> : vector<16xf32>
    %581 = vector.multi_reduction <add>, %580, %cst_400 [1] : vector<16x128xf32> to vector<16xf32>
    %582 = vector.shape_cast %581 : vector<16xf32> to vector<16x1xf32>
    %cst_401 = arith.constant 1.280000e+02 : f32
    %583 = vector.broadcast %cst_401 : f32 to vector<16x1xf32>
    %584 = arith.divf %582, %583 : vector<16x1xf32>
    %585 = vector.broadcast %577 : vector<16x1xf32> to vector<16x128xf32>
    %586 = arith.subf %569, %585 : vector<16x128xf32>
    %cst_402 = arith.constant 9.99999974E-6 : f32
    %587 = vector.broadcast %cst_402 : f32 to vector<16x1xf32>
    %588 = arith.addf %584, %587 : vector<16x1xf32>
    %589 = math.rsqrt %588 : vector<16x1xf32>
    %590 = vector.broadcast %589 : vector<16x1xf32> to vector<16x128xf32>
    %591 = arith.mulf %586, %590 : vector<16x128xf32>
    %592 = vector.broadcast %571 : vector<1x128xf32> to vector<16x128xf32>
    %593 = arith.mulf %591, %592 : vector<16x128xf32>
    %594 = vector.broadcast %573 : vector<1x128xf32> to vector<16x128xf32>
    %595 = arith.addf %593, %594 : vector<16x128xf32>
    %c0_403 = arith.constant 0 : index
    %c0_404 = arith.constant 0 : index
    %596 = vector.load %arg22[%c0_403, %c0_404] : memref<1x128xf32, #tpu.memory_space<vmem>>, vector<1x128xf32>
    %c0_405 = arith.constant 0 : index
    %c0_406 = arith.constant 0 : index
    %597 = vector.load %arg23[%c0_405, %c0_406] : memref<1x128xf32, #tpu.memory_space<vmem>>, vector<1x128xf32>
    %cst_407 = arith.constant dense<0.000000e+00> : vector<16xf32>
    %598 = vector.multi_reduction <add>, %595, %cst_407 [1] : vector<16x128xf32> to vector<16xf32>
    %599 = vector.shape_cast %598 : vector<16xf32> to vector<16x1xf32>
    %cst_408 = arith.constant 1.280000e+02 : f32
    %600 = vector.broadcast %cst_408 : f32 to vector<16x1xf32>
    %601 = arith.divf %599, %600 : vector<16x1xf32>
    %602 = vector.broadcast %601 : vector<16x1xf32> to vector<16x128xf32>
    %603 = arith.subf %595, %602 : vector<16x128xf32>
    %604 = arith.mulf %603, %603 : vector<16x128xf32>
    %cst_409 = arith.constant dense<0.000000e+00> : vector<16xf32>
    %605 = vector.multi_reduction <add>, %604, %cst_409 [1] : vector<16x128xf32> to vector<16xf32>
    %606 = vector.shape_cast %605 : vector<16xf32> to vector<16x1xf32>
    %cst_410 = arith.constant 1.280000e+02 : f32
    %607 = vector.broadcast %cst_410 : f32 to vector<16x1xf32>
    %608 = arith.divf %606, %607 : vector<16x1xf32>
    %609 = vector.broadcast %601 : vector<16x1xf32> to vector<16x128xf32>
    %610 = arith.subf %595, %609 : vector<16x128xf32>
    %cst_411 = arith.constant 9.99999974E-6 : f32
    %611 = vector.broadcast %cst_411 : f32 to vector<16x1xf32>
    %612 = arith.addf %608, %611 : vector<16x1xf32>
    %613 = math.rsqrt %612 : vector<16x1xf32>
    %614 = vector.broadcast %613 : vector<16x1xf32> to vector<16x128xf32>
    %615 = arith.mulf %610, %614 : vector<16x128xf32>
    %616 = vector.broadcast %596 : vector<1x128xf32> to vector<16x128xf32>
    %617 = arith.mulf %615, %616 : vector<16x128xf32>
    %618 = vector.broadcast %597 : vector<1x128xf32> to vector<16x128xf32>
    %619 = arith.addf %617, %618 : vector<16x128xf32>
    %c0_412 = arith.constant 0 : index
    %c0_413 = arith.constant 0 : index
    %620 = vector.load %arg24[%c0_412, %c0_413] : memref<128x128xbf16, #tpu.memory_space<vmem>>, vector<128x128xbf16>
    %621 = arith.truncf %619 : vector<16x128xf32> to vector<16x128xbf16>
    %cst_414 = arith.constant dense<0.000000e+00> : vector<16x128xf32>
    %622 = tpu.matmul %621, %620, %cst_414 {dimension_numbers = #tpu.dot_dimension_numbers<[1], [1], [0], [0], [0, 0, 1, 0], [], []>} : vector<16x128xbf16>, vector<128x128xbf16>, vector<16x128xf32> -> vector<16x128xf32>
    %c0_415 = arith.constant 0 : index
    %c0_416 = arith.constant 0 : index
    %623 = vector.load %arg25[%c0_415, %c0_416] : memref<1x128xf32, #tpu.memory_space<vmem>>, vector<1x128xf32>
    %624 = vector.broadcast %623 : vector<1x128xf32> to vector<16x128xf32>
    %625 = arith.addf %622, %624 : vector<16x128xf32>
    %c0_417 = arith.constant 0 : index
    %c0_418 = arith.constant 0 : index
    %626 = vector.load %arg26[%c0_417, %c0_418] : memref<16x128xf32, #tpu.memory_space<vmem>>, vector<16x128xf32>
    tpu.vector_store %arg26[%c0_417, %c0_418], %625 {strides = array<i32>} : memref<16x128xf32, #tpu.memory_space<vmem>>, vector<16x128xf32>,
    return
  }
  func.func @transform_0(%arg0: i32) -> (i32, i32) {
    %c0_i32 = arith.constant 0 : i32
    %c0_i32_0 = arith.constant 0 : i32
    %c0_i32_1 = arith.constant 0 : i32
    return %c0_i32, %c0_i32_0 : i32, i32
  }
  func.func @transform_1(%arg0: i32) -> (i32, i32) {
    %c0_i32 = arith.constant 0 : i32
    %c0_i32_0 = arith.constant 0 : i32
    %c0_i32_1 = arith.constant 0 : i32
    return %c0_i32, %c0_i32_0 : i32, i32
  }
  func.func @transform_2(%arg0: i32) -> (i32, i32, i32, i32) {
    %c0_i32 = arith.constant 0 : i32
    %c0_i32_0 = arith.constant 0 : i32
    %c0_i32_1 = arith.constant 0 : i32
    %c0_i32_2 = arith.constant 0 : i32
    %c0_i32_3 = arith.constant 0 : i32
    return %c0_i32, %c0_i32_0, %c0_i32_1, %c0_i32_2 : i32, i32, i32, i32
  }
  func.func @transform_3(%arg0: i32) -> (i32, i32, i32, i32) {
    %c0_i32 = arith.constant 0 : i32
    %c0_i32_0 = arith.constant 0 : i32
    %c0_i32_1 = arith.constant 0 : i32
    %c0_i32_2 = arith.constant 0 : i32
    %c0_i32_3 = arith.constant 0 : i32
    return %c0_i32, %c0_i32_0, %c0_i32_1, %c0_i32_2 : i32, i32, i32, i32
  }
  func.func @transform_4(%arg0: i32) -> (i32, i32, i32, i32) {
    %c0_i32 = arith.constant 0 : i32
    %c0_i32_0 = arith.constant 0 : i32
    %c0_i32_1 = arith.constant 0 : i32
    %c0_i32_2 = arith.constant 0 : i32
    %c0_i32_3 = arith.constant 0 : i32
    return %c0_i32, %c0_i32_0, %c0_i32_1, %c0_i32_2 : i32, i32, i32, i32
  }
  func.func @transform_5(%arg0: i32) -> (i32, i32, i32, i32) {
    %c0_i32 = arith.constant 0 : i32
    %c0_i32_0 = arith.constant 0 : i32
    %c0_i32_1 = arith.constant 0 : i32
    %c0_i32_2 = arith.constant 0 : i32
    %c0_i32_3 = arith.constant 0 : i32
    return %c0_i32, %c0_i32_0, %c0_i32_1, %c0_i32_2 : i32, i32, i32, i32
  }
  func.func @transform_6(%arg0: i32) -> (i32, i32, i32, i32) {
    %c0_i32 = arith.constant 0 : i32
    %c0_i32_0 = arith.constant 0 : i32
    %c0_i32_1 = arith.constant 0 : i32
    %c0_i32_2 = arith.constant 0 : i32
    %c0_i32_3 = arith.constant 0 : i32
    return %c0_i32, %c0_i32_0, %c0_i32_1, %c0_i32_2 : i32, i32, i32, i32
  }
  func.func @transform_7(%arg0: i32) -> (i32, i32, i32, i32) {
    %c0_i32 = arith.constant 0 : i32
    %c0_i32_0 = arith.constant 0 : i32
    %c0_i32_1 = arith.constant 0 : i32
    %c0_i32_2 = arith.constant 0 : i32
    %c0_i32_3 = arith.constant 0 : i32
    return %c0_i32, %c0_i32_0, %c0_i32_1, %c0_i32_2 : i32, i32, i32, i32
  }
  func.func @transform_8(%arg0: i32) -> (i32, i32, i32, i32) {
    %c0_i32 = arith.constant 0 : i32
    %c0_i32_0 = arith.constant 0 : i32
    %c0_i32_1 = arith.constant 0 : i32
    %c0_i32_2 = arith.constant 0 : i32
    %c0_i32_3 = arith.constant 0 : i32
    return %c0_i32, %c0_i32_0, %c0_i32_1, %c0_i32_2 : i32, i32, i32, i32
  }
  func.func @transform_9(%arg0: i32) -> (i32, i32, i32) {
    %c0_i32 = arith.constant 0 : i32
    %c0_i32_0 = arith.constant 0 : i32
    %c0_i32_1 = arith.constant 0 : i32
    %c0_i32_2 = arith.constant 0 : i32
    return %c0_i32, %c0_i32_0, %c0_i32_1 : i32, i32, i32
  }
  func.func @transform_10(%arg0: i32) -> (i32, i32, i32) {
    %c0_i32 = arith.constant 0 : i32
    %c0_i32_0 = arith.constant 0 : i32
    %c0_i32_1 = arith.constant 0 : i32
    %c0_i32_2 = arith.constant 0 : i32
    return %c0_i32, %c0_i32_0, %c0_i32_1 : i32, i32, i32
  }
  func.func @transform_11(%arg0: i32) -> (i32, i32, i32) {
    %c0_i32 = arith.constant 0 : i32
    %c0_i32_0 = arith.constant 0 : i32
    %c0_i32_1 = arith.constant 0 : i32
    %c0_i32_2 = arith.constant 0 : i32
    return %c0_i32, %c0_i32_0, %c0_i32_1 : i32, i32, i32
  }
  func.func @transform_12(%arg0: i32) -> (i32, i32, i32) {
    %c0_i32 = arith.constant 0 : i32
    %c0_i32_0 = arith.constant 0 : i32
    %c0_i32_1 = arith.constant 0 : i32
    %c0_i32_2 = arith.constant 0 : i32
    return %c0_i32, %c0_i32_0, %c0_i32_1 : i32, i32, i32
  }
  func.func @transform_13(%arg0: i32) -> (i32, i32, i32) {
    %c0_i32 = arith.constant 0 : i32
    %c0_i32_0 = arith.constant 0 : i32
    %c0_i32_1 = arith.constant 0 : i32
    %c0_i32_2 = arith.constant 0 : i32
    return %c0_i32, %c0_i32_0, %c0_i32_1 : i32, i32, i32
  }
  func.func @transform_14(%arg0: i32) -> (i32, i32, i32) {
    %c0_i32 = arith.constant 0 : i32
    %c0_i32_0 = arith.constant 0 : i32
    %c0_i32_1 = arith.constant 0 : i32
    %c0_i32_2 = arith.constant 0 : i32
    return %c0_i32, %c0_i32_0, %c0_i32_1 : i32, i32, i32
  }
  func.func @transform_15(%arg0: i32) -> (i32, i32, i32) {
    %c0_i32 = arith.constant 0 : i32
    %c0_i32_0 = arith.constant 0 : i32
    %c0_i32_1 = arith.constant 0 : i32
    %c0_i32_2 = arith.constant 0 : i32
    return %c0_i32, %c0_i32_0, %c0_i32_1 : i32, i32, i32
  }
  func.func @transform_16(%arg0: i32) -> (i32, i32, i32) {
    %c0_i32 = arith.constant 0 : i32
    %c0_i32_0 = arith.constant 0 : i32
    %c0_i32_1 = arith.constant 0 : i32
    %c0_i32_2 = arith.constant 0 : i32
    return %c0_i32, %c0_i32_0, %c0_i32_1 : i32, i32, i32
  }
  func.func @transform_17(%arg0: i32) -> (i32, i32, i32) {
    %c0_i32 = arith.constant 0 : i32
    %c0_i32_0 = arith.constant 0 : i32
    %c0_i32_1 = arith.constant 0 : i32
    %c0_i32_2 = arith.constant 0 : i32
    return %c0_i32, %c0_i32_0, %c0_i32_1 : i32, i32, i32
  }
  func.func @transform_18(%arg0: i32) -> (i32, i32, i32) {
    %c0_i32 = arith.constant 0 : i32
    %c0_i32_0 = arith.constant 0 : i32
    %c0_i32_1 = arith.constant 0 : i32
    %c0_i32_2 = arith.constant 0 : i32
    return %c0_i32, %c0_i32_0, %c0_i32_1 : i32, i32, i32
  }
  func.func @transform_19(%arg0: i32) -> (i32, i32, i32) {
    %c0_i32 = arith.constant 0 : i32
    %c0_i32_0 = arith.constant 0 : i32
    %c0_i32_1 = arith.constant 0 : i32
    %c0_i32_2 = arith.constant 0 : i32
    return %c0_i32, %c0_i32_0, %c0_i32_1 : i32, i32, i32
  }
  func.func @transform_20(%arg0: i32) -> (i32, i32, i32) {
    %c0_i32 = arith.constant 0 : i32
    %c0_i32_0 = arith.constant 0 : i32
    %c0_i32_1 = arith.constant 0 : i32
    %c0_i32_2 = arith.constant 0 : i32
    return %c0_i32, %c0_i32_0, %c0_i32_1 : i32, i32, i32
  }
  func.func @transform_21(%arg0: i32) -> (i32, i32) {
    %c0_i32 = arith.constant 0 : i32
    %c0_i32_0 = arith.constant 0 : i32
    %c0_i32_1 = arith.constant 0 : i32
    return %c0_i32, %c0_i32_0 : i32, i32
  }
  func.func @transform_22(%arg0: i32) -> (i32, i32) {
    %c0_i32 = arith.constant 0 : i32
    %c0_i32_0 = arith.constant 0 : i32
    %c0_i32_1 = arith.constant 0 : i32
    return %c0_i32, %c0_i32_0 : i32, i32
  }
  func.func @transform_23(%arg0: i32) -> (i32, i32) {
    %c0_i32 = arith.constant 0 : i32
    %c0_i32_0 = arith.constant 0 : i32
    %c0_i32_1 = arith.constant 0 : i32
    return %c0_i32, %c0_i32_0 : i32, i32
  }
  func.func @transform_24(%arg0: i32) -> (i32, i32) {
    %c0_i32 = arith.constant 0 : i32
    %c0_i32_0 = arith.constant 0 : i32
    %c0_i32_1 = arith.constant 0 : i32
    return %c0_i32, %c0_i32_0 : i32, i32
  }
  func.func @transform_25(%arg0: i32) -> (i32, i32) {
    %c0_i32 = arith.constant 0 : i32
    %c0_i32_0 = arith.constant 0 : i32
    %c0_i32_1 = arith.constant 0 : i32
    return %c0_i32, %c0_i32_0 : i32, i32
  }
}

</mosaic_0001>

<bundles_post_ra>
// kernel: transformer_decoder_forward.1
= control target key start
LH: loop header
LB: loop body
LE: loop exit
PB: predicated region body
PF: predicated region fallthrough
CT: control target
= control target key end

     0   :  { %s12413_s0 = inlined_call_operand.vmem [shape: f32[16,128], index: 0, kind: input, shape index: {}]   ;;  %s12414_s1 = inlined_call_operand.vmem [shape: f32[16,16], index: 1, kind: input, shape index: {}]   ;;  %s12415_s2 = inlined_call_operand.vmem [shape: bf16[2,4,32,128], index: 2, kind: input, shape index: {}]   ;;  %s12416_s3 = inlined_call_operand.hbm [shape: f32[2,4,1,32], index: 3, kind: input, shape index: {}]   ;;  %s12417_s4 = inlined_call_operand.vmem [shape: bf16[2,4,32,128], index: 4, kind: input, shape index: {}]   ;;  %s12418_s5 = inlined_call_operand.hbm [shape: f32[2,4,1,32], index: 5, kind: input, shape index: {}]   ;;  %s12419_s6 = inlined_call_operand.hbm [shape: bf16[2,4,32,128], index: 6, kind: input, shape index: {}]   ;;  %s12420_s7 = inlined_call_operand.hbm [shape: f32[2,4,1,32], index: 7, kind: input, shape index: {}]   ;;  %s12421_s8 = inlined_call_operand.hbm [shape: bf16[2,4,32,128], index: 8, kind: input, shape index: {}]   ;;  %s12422_s9 = inlined_call_operand.hbm [shape: f32[2,1,128], index: 9, kind: input, shape index: {}]   ;;  %s12423_s10 = inlined_call_operand.hbm [shape: f32[2,1,128], index: 10, kind: input, shape index: {}]   ;;  %s12424_s11 = inlined_call_operand.hbm [shape: bf16[2,2048,128], index: 11, kind: input, shape index: {}]   ;;  %s12425_s12 = inlined_call_operand.hbm [shape: f32[2,1,2048], index: 12, kind: input, shape index: {}]   ;;  %s12426_s13 = inlined_call_operand.hbm [shape: bf16[2,128,2048], index: 13, kind: input, shape index: {}]   ;;  %s12427_s14 = inlined_call_operand.hbm [shape: f32[2,1,128], index: 14, kind: input, shape index: {}]   ;;  %s12428_s15 = inlined_call_operand.vmem [shape: f32[2,1,128], index: 15, kind: input, shape index: {}]   ;;  %s12429_s16 = inlined_call_operand.hbm [shape: f32[2,1,128], index: 16, kind: input, shape index: {}]   ;;  %s12430_s17 = inlined_call_operand.vmem [shape: f32[2,1,128], index: 17, kind: input, shape index: {}]   ;;  %s12431_s18 = inlined_call_operand.hbm [shape: f32[2,1,128], index: 18, kind: input, shape index: {}]   ;;  %s12432_s19 = inlined_call_operand.vmem [shape: f32[2,1,128], index: 19, kind: input, shape index: {}]   ;;  %s12433_s20 = inlined_call_operand.hbm [shape: f32[2,1,128], index: 20, kind: input, shape index: {}]   ;;  %s12434_s21 = inlined_call_operand.vmem [shape: f32[1,128], index: 21, kind: input, shape index: {}]   ;;  %s12435_s22 = inlined_call_operand.hbm [shape: f32[1,128], index: 22, kind: input, shape index: {}]   ;;  %s12436_s23 = inlined_call_operand.hbm [shape: bf16[128,128], index: 23, kind: input, shape index: {}]   ;;  %s12437_s24 = inlined_call_operand.hbm [shape: f32[1,128], index: 24, kind: input, shape index: {}]   ;;  %s12438_s25 = inlined_call_operand.hbm [shape: f32[16,128], index: 25, kind: output, shape index: {}]  }
   0x1   :  { %12445 = sst [smem:[#allocation40_spill]] %s12413_s0 }
   0x2   :  { %12446 = sst [smem:[#allocation41_spill]] %s12414_s1 }
   0x3   :  { %12447 = sst [smem:[#allocation42_spill]] %s12415_s2 }
   0x4   :  { %12448 = sst [smem:[#allocation43_spill]] %s12416_s3 }
   0x5   :  { %12449 = sst [smem:[#allocation44_spill]] %s12417_s4 }
   0x6   :  { %12450 = sst [smem:[#allocation45_spill]] %s12418_s5 }
   0x7   :  { %12451 = sst [smem:[#allocation46_spill]] %s12419_s6 }
   0x8   :  { %12452 = sst [smem:[#allocation47_spill]] %s12420_s7 }
   0x9   :  { %12453 = sst [smem:[#allocation48_spill]] %s12421_s8 }
   0xa   :  { %12454 = sst [smem:[#allocation49_spill]] %s12422_s9 }
   0xb   :  { %30 = vsyncpa [#allocation3], 0 }
   0xc   :  { %31 = vsyncpa [#allocation6], 0 }
   0xd   :  { %32 = vsyncpa [#allocation9], 0 }
   0xe   :  { %33 = vsyncpa [#allocation12], 0 }
   0xf   :  { %34 = vsyncpa [#allocation15], 0 }
  0x10   :  { %35 = vsyncpa [#allocation18], 0 }
  0x11   :  { %36 = vsyncpa [#allocation21], 0 }
  0x12   :  { %37 = vsyncpa [#allocation24], 0 }
  0x13   :  { %38 = vsyncpa [#allocation27], 0 }
  0x14   :  { %39 = vsyncpa [#allocation4], 0  ;;  %s11391_s29 = smov [#allocation5]   ;;  %s11392_s6 = smov [#allocation8]  }
  0x15   :  { %s65_s2 = sshll.u32 %s11391_s29, 4  ;;  %s89_s30 = sshll.u32 %s11392_s6, 4  ;;  %s66_s2 = int_to_ptr.vmem [resolvable:$true] %s65_s2  ;;  %s90_s30 = int_to_ptr.vmem [resolvable:$true] %s89_s30 }
  0x16   :  { %s11019_s7 = scalar_lea.vmem %s66_s2, 128  ;;  %p11024_p1 = scmp.lt.s32.totalorder %s66_s2, %s66_s2 }
  0x17   :  { %p11020_p0 = scmp.ne.s32.totalorder %s66_s2, %s11019_s7  ;;  %p11025_p2 = scmp.lt.s32.totalorder %s11019_s7, %s11019_s7 }
  0x19   :  { %p11026_p3 = por %p11025_p2, %p11024_p1 }
  0x1b   :  { %p11027_p4 = pnand %p11026_p3, %p11020_p0 }
  0x1d   :  { %11030 = shalt.err (!%p11027_p4)
}
  0x1e   :  { %s12443_s3 = smov 16   ;;  %s11394_s26 = smov 1  }
  0x1f   :  { %s12455_s27 = sld [smem:[#allocation45_spill]]  ;;  %s11039_s4 = scalar_lea.vmem %s90_s30, 128 }
  0x20   :  { %p11040_p5 = scmp.ne.s32.totalorder %s90_s30, %s11039_s4  ;;  %p11044_p6 = scmp.lt.s32.totalorder %s90_s30, %s90_s30 }
  0x21   :  { %p11045_p7 = scmp.lt.s32.totalorder %s11039_s4, %s11039_s4 }
  0x23   :  { %p11046_p8 = por %p11045_p7, %p11044_p6 }
  0x25   :  { %71 = dma.hbm_to_vmem [thread:$0]  %s12455_s27, 128, %s66_s2, [#allocation6], %s12443_s3, %s12443_s3, %s11394_s26  }
  0x26   :  { %p11047_p9 = pnand %p11046_p8, %p11040_p5 }
  0x28   :  { %11050 = shalt.err (!%p11047_p9)
}
  0x29   :  { %s12456_s5 = sld [smem:[#allocation47_spill]]  ;;  %s11395_s0 = smov [#allocation11]  }
  0x2a   :  { %s113_s29 = sshll.u32 %s11395_s0, 4  ;;  %s114_s29 = int_to_ptr.vmem [resolvable:$true] %s113_s29 }
  0x2b   :  { %s11059_s6 = scalar_lea.vmem %s114_s29, 32  ;;  %p11064_p11 = scmp.lt.s32.totalorder %s114_s29, %s114_s29 }
  0x2c   :  { %p11060_p10 = scmp.ne.s32.totalorder %s114_s29, %s11059_s6  ;;  %p11065_p12 = scmp.lt.s32.totalorder %s11059_s6, %s11059_s6 }
  0x2e   :  { %p11066_p13 = por %p11065_p12, %p11064_p11 }
  0x2f   :  { %95 = dma.hbm_to_vmem [thread:$0]  %s12456_s5, 128, %s90_s30, [#allocation9], %s12443_s3, %s12443_s3, %s11394_s26  }
  0x30   :  { %p11067_p0 = pnand %p11066_p13, %p11060_p10 }
  0x32   :  { %11070 = shalt.err (!%p11067_p0)
}
  0x33   :  { %s12457_s1 = sld [smem:[#allocation49_spill]]  ;;  %s11396_s8 = smov [#allocation14]  }
  0x34   :  { %s137_s27 = sshll.u32 %s11396_s8, 4  ;;  %s11397_s30 = smov [#allocation17]   ;;  %s138_s27 = int_to_ptr.vmem [resolvable:$true] %s137_s27 }
  0x35   :  { %s161_s4 = sshll.u32 %s11397_s30, 4  ;;  %s11079_s28 = scalar_lea.vmem %s138_s27, 32768  ;;  %s162_s4 = int_to_ptr.vmem [resolvable:$true] %s161_s4 }
  0x36   :  { %p11080_p1 = scmp.ne.s32.totalorder %s138_s27, %s11079_s28  ;;  %p11084_p2 = scmp.lt.s32.totalorder %s138_s27, %s138_s27 }
  0x37   :  { %p11085_p3 = scmp.lt.s32.totalorder %s11079_s28, %s11079_s28 }
  0x39   :  { %119 = dma.hbm_to_vmem [thread:$0]  %s12457_s1, 32, %s114_s29, [#allocation12], %s12443_s3, %s12443_s3, %s11394_s26  }
  0x3a   :  { %p11086_p4 = por %p11085_p3, %p11084_p2 }
  0x3c   :  { %p11087_p5 = pnand %p11086_p4, %p11080_p1 }
  0x3e   :  { %11090 = shalt.err (!%p11087_p5)
}
  0x3f   :  { %s11398_s9 = smov 64   ;;  %s11399_s5 = smov 4  }
  0x40   :  { %143 = dma.hbm_to_vmem [thread:$0]  %s12424_s11, 32768, %s138_s27, [#allocation15], %s11398_s9, %s11398_s9, %s11399_s5  }
  0x41   :  { %s11099_s29 = scalar_lea.vmem %s162_s4, 32768  ;;  %p11104_p7 = scmp.lt.s32.totalorder %s162_s4, %s162_s4 }
  0x42   :  { %p11100_p6 = scmp.ne.s32.totalorder %s162_s4, %s11099_s29  ;;  %p11105_p8 = scmp.lt.s32.totalorder %s11099_s29, %s11099_s29 }
  0x44   :  { %p11106_p9 = por %p11105_p8, %p11104_p7 }
  0x46   :  { %p11107_p10 = pnand %p11106_p9, %p11100_p6 }
  0x48   :  { %11110 = shalt.err (!%p11107_p10)
}
  0x49   :  { %s11400_s2 = smov 1024   ;;  %s11401_s8 = smov [#allocation20]  }
  0x4a   :  { %167 = dma.hbm_to_vmem [thread:$0]  %s12426_s13, 32768, %s162_s4, [#allocation18], %s11400_s2, %s11400_s2, %s11398_s9  }
  0x4b   :  { %s187_s30 = sshll.u32 %s11401_s8, 4  ;;  %s11402_s28 = smov [#allocation23]   ;;  %s188_s30 = int_to_ptr.vmem [resolvable:$true] %s187_s30 }
  0x4c   :  { %s215_s3 = sshll.u32 %s11402_s28, 4  ;;  %s11119_s11 = scalar_lea.vmem %s188_s30, 32  ;;  %s216_s3 = int_to_ptr.vmem [resolvable:$true] %s215_s3 }
  0x4d   :  { %p11120_p11 = scmp.ne.s32.totalorder %s188_s30, %s11119_s11  ;;  %p11124_p12 = scmp.lt.s32.totalorder %s188_s30, %s188_s30 }
  0x4e   :  { %p11125_p13 = scmp.lt.s32.totalorder %s11119_s11, %s11119_s11 }
  0x50   :  { %p11126_p0 = por %p11125_p13, %p11124_p12 }
  0x52   :  { %p11127_p1 = pnand %p11126_p0, %p11120_p11 }
  0x54   :  { %11130 = shalt.err (!%p11127_p1)
}
  0x55   :  { %s12458_s27 = smov 16   ;;  %s11139_s13 = scalar_lea.vmem %s216_s3, 32 }
  0x56   :  { %193 = dma.hbm_to_vmem [thread:$0]  %s12429_s16, 32, %s188_s30, [#allocation21], %s12458_s27, %s12458_s27, %s11394_s26  }
  0x57   :  { %p11140_p2 = scmp.ne.s32.totalorder %s216_s3, %s11139_s13  ;;  %p11144_p3 = scmp.lt.s32.totalorder %s216_s3, %s216_s3 }
  0x58   :  { %p11145_p4 = scmp.lt.s32.totalorder %s11139_s13, %s11139_s13 }
  0x5a   :  { %p11146_p5 = por %p11145_p4, %p11144_p3 }
  0x5c   :  { %p11147_p6 = pnand %p11146_p5, %p11140_p2 }
  0x5e   :  { %11150 = shalt.err (!%p11147_p6)
}
  0x5f   :  { %221 = dma.hbm_to_vmem [thread:$0]  %s12433_s20, 32, %s216_s3, [#allocation24], %s12458_s27, %s12458_s27, %s11394_s26  }
  0x60   :  { %s11403_s2 = smov [#allocation26]   ;;  %s11404_s1 = smov [#allocation2]  }
  0x61   :  { %s239_s7 = sshll.u32 %s11403_s2, 4  ;;  %s51_s8 = sshll.u32 %s11404_s1, 4  ;;  %s240_s7 = int_to_ptr.vmem [resolvable:$true] %s239_s7  ;;  %s52_s8 = int_to_ptr.vmem [resolvable:$true] %s51_s8 }
  0x62   :  { %s11159_s16 = scalar_lea.vmem %s240_s7, 1024  ;;  %p11164_p8 = scmp.lt.s32.totalorder %s240_s7, %s240_s7 }
  0x63   :  { %p11160_p7 = scmp.ne.s32.totalorder %s240_s7, %s11159_s16  ;;  %p11165_p9 = scmp.lt.s32.totalorder %s11159_s16, %s11159_s16 }
  0x65   :  { %p11166_p10 = por %p11165_p9, %p11164_p8 }
  0x67   :  { %p11167_p11 = pnand %p11166_p10, %p11160_p7 }
  0x69   :  { %11170 = shalt.err (!%p11167_p11)
}
  0x6a   :  { %245 = dma.hbm_to_vmem [thread:$0]  %s12436_s23, 1024, %s240_s7, [#allocation27], %s11398_s9, %s11398_s9, %s11399_s5  }
  0x6b   :  { %s11179_s20 = scalar_lea.vmem %s52_s8, 128  ;;  %p11184_p13 = scmp.lt.s32.totalorder %s52_s8, %s52_s8 }
  0x6c   :  { %p11180_p12 = scmp.ne.s32.totalorder %s52_s8, %s11179_s20  ;;  %p11185_p0 = scmp.lt.s32.totalorder %s11179_s20, %s11179_s20 }
  0x6e   :  { %p11186_p1 = por %p11185_p0, %p11184_p13 }
  0x70   :  { %p11187_p2 = pnand %p11186_p1, %p11180_p12 }
  0x72   :  { %11190 = shalt.err (!%p11187_p2)
}
  0x73   :  { %s12459_s0 = sld [smem:[#allocation43_spill]]  ;;  %s11405_s6 = smov [#allocation7]  }
  0x74   :  { %s77_s13 = sshll.u32 %s11405_s6, 4  ;;  %s11406_s4 = smov [#allocation10]   ;;  %s78_s13 = int_to_ptr.vmem [resolvable:$true] %s77_s13 }
  0x75   :  { %s101_s29 = sshll.u32 %s11406_s4, 4  ;;  %s11199_s23 = scalar_lea.vmem %s78_s13, 2048  ;;  %s102_s29 = int_to_ptr.vmem [resolvable:$true] %s101_s29 }
  0x76   :  { %p11200_p3 = scmp.ne.s32.totalorder %s78_s13, %s11199_s23  ;;  %p11204_p4 = scmp.lt.s32.totalorder %s78_s13, %s78_s13 }
  0x77   :  { %p11205_p5 = scmp.lt.s32.totalorder %s11199_s23, %s11199_s23 }
  0x79   :  { %57 = dma.hbm_to_vmem [thread:$0]  %s12459_s0, 128, %s52_s8, [#allocation3], %s12458_s27, %s12458_s27, %s11394_s26  }
  0x7a   :  { %p11206_p6 = por %p11205_p5, %p11204_p4 }
  0x7c   :  { %p11207_p7 = pnand %p11206_p6, %p11200_p3 }
  0x7e   :  { %11210 = shalt.err (!%p11207_p7)
}
  0x7f   :  { %s12460_s1 = sld [smem:[#allocation46_spill]]  ;;  %s11219_s8 = scalar_lea.vmem %s102_s29, 2048 }
  0x80   :  { %p11220_p8 = scmp.ne.s32.totalorder %s102_s29, %s11219_s8  ;;  %p11224_p9 = scmp.lt.s32.totalorder %s102_s29, %s102_s29 }
  0x81   :  { %p11225_p10 = scmp.lt.s32.totalorder %s11219_s8, %s11219_s8 }
  0x83   :  { %p11226_p11 = por %p11225_p10, %p11224_p9 }
  0x85   :  { %83 = dma.hbm_to_vmem [thread:$0]  %s12460_s1, 2048, %s78_s13, [#allocation6], %s11398_s9, %s11398_s9, %s11399_s5  }
  0x86   :  { %p11227_p12 = pnand %p11226_p11, %p11220_p8 }
  0x88   :  { %11230 = shalt.err (!%p11227_p12)
}
  0x89   :  { %s12461_s28 = sld [smem:[#allocation48_spill]]  ;;  %s11407_s20 = smov [#allocation13]  }
  0x8a   :  { %s125_s3 = sshll.u32 %s11407_s20, 4  ;;  %s11408_s11 = smov [#allocation16]   ;;  %s126_s3 = int_to_ptr.vmem [resolvable:$true] %s125_s3 }
  0x8b   :  { %s149_s0 = sshll.u32 %s11408_s11, 4  ;;  %s11239_s6 = scalar_lea.vmem %s126_s3, 32  ;;  %s150_s0 = int_to_ptr.vmem [resolvable:$true] %s149_s0 }
  0x8c   :  { %p11240_p13 = scmp.ne.s32.totalorder %s126_s3, %s11239_s6  ;;  %p11244_p0 = scmp.lt.s32.totalorder %s126_s3, %s126_s3 }
  0x8d   :  { %p11245_p1 = scmp.lt.s32.totalorder %s11239_s6, %s11239_s6 }
  0x8f   :  { %107 = dma.hbm_to_vmem [thread:$0]  %s12461_s28, 2048, %s102_s29, [#allocation9], %s11398_s9, %s11398_s9, %s11399_s5  }
  0x90   :  { %p11246_p2 = por %p11245_p1, %p11244_p0 }
  0x92   :  { %p11247_p3 = pnand %p11246_p2, %p11240_p13 }
  0x94   :  { %11250 = shalt.err (!%p11247_p3)
}
  0x95   :  { %131 = dma.hbm_to_vmem [thread:$0]  %s12423_s10, 32, %s126_s3, [#allocation12], %s12458_s27, %s12458_s27, %s11394_s26  }
  0x96   :  { %s11259_s9 = scalar_lea.vmem %s150_s0, 512  ;;  %p11264_p5 = scmp.lt.s32.totalorder %s150_s0, %s150_s0 }
  0x97   :  { %p11260_p4 = scmp.ne.s32.totalorder %s150_s0, %s11259_s9  ;;  %p11265_p6 = scmp.lt.s32.totalorder %s11259_s9, %s11259_s9 }
  0x99   :  { %p11266_p7 = por %p11265_p6, %p11264_p5 }
  0x9b   :  { %p11267_p8 = pnand %p11266_p7, %p11260_p4 }
  0x9d   :  { %11270 = shalt.err (!%p11267_p8)
}
  0x9e   :  { %s11409_s5 = smov 256   ;;  %s11410_s2 = smov [#allocation19]  }
  0x9f   :  { %155 = dma.hbm_to_vmem [thread:$0]  %s12425_s12, 512, %s150_s0, [#allocation15], %s11409_s5, %s11409_s5, %s12458_s27  }
  0xa0   :  { %s173_s7 = sshll.u32 %s11410_s2, 4  ;;  %s11411_s1 = smov [#allocation22]   ;;  %s174_s7 = int_to_ptr.vmem [resolvable:$true] %s173_s7 }
  0xa1   :  { %s201_s8 = sshll.u32 %s11411_s1, 4  ;;  %s11279_s16 = scalar_lea.vmem %s174_s7, 32  ;;  %s202_s8 = int_to_ptr.vmem [resolvable:$true] %s201_s8 }
  0xa2   :  { %p11280_p9 = scmp.ne.s32.totalorder %s174_s7, %s11279_s16  ;;  %p11284_p10 = scmp.lt.s32.totalorder %s174_s7, %s174_s7 }
  0xa3   :  { %p11285_p11 = scmp.lt.s32.totalorder %s11279_s16, %s11279_s16 }
  0xa5   :  { %p11286_p12 = por %p11285_p11, %p11284_p10 }
  0xa7   :  { %p11287_p13 = pnand %p11286_p12, %p11280_p9 }
  0xa9   :  { %11290 = shalt.err (!%p11287_p13)
}
  0xaa   :  { %179 = dma.hbm_to_vmem [thread:$0]  %s12427_s14, 32, %s174_s7, [#allocation18], %s12458_s27, %s12458_s27, %s11394_s26  }
  0xab   :  { %s11299_s12 = scalar_lea.vmem %s202_s8, 32  ;;  %p11304_p1 = scmp.lt.s32.totalorder %s202_s8, %s202_s8 }
  0xac   :  { %p11300_p0 = scmp.ne.s32.totalorder %s202_s8, %s11299_s12  ;;  %p11305_p2 = scmp.lt.s32.totalorder %s11299_s12, %s11299_s12 }
  0xae   :  { %p11306_p3 = por %p11305_p2, %p11304_p1 }
  0xb0   :  { %p11307_p4 = pnand %p11306_p3, %p11300_p0 }
  0xb2   :  { %11310 = shalt.err (!%p11307_p4)
}
  0xb3   :  { %207 = dma.hbm_to_vmem [thread:$0]  %s12431_s18, 32, %s202_s8, [#allocation21], %s12458_s27, %s12458_s27, %s11394_s26  }
  0xb4   :  { %s11412_s3 = smov [#allocation25]   ;;  %s11413_s0 = smov [#allocation28]  }
  0xb5   :  { %s230_s11 = sshll.u32 %s11412_s3, 4  ;;  %s252_s14 = sshll.u32 %s11413_s0, 4  ;;  %s231_s11 = int_to_ptr.vmem [resolvable:$true] %s230_s11  ;;  %s253_s14 = int_to_ptr.vmem [resolvable:$true] %s252_s14 }
  0xb6   :  { %s11319_s6 = scalar_lea.vmem %s231_s11, 16  ;;  %s11323_s13 = scalar_lea.vmem %s231_s11, 32 }
  0xb7   :  { %p11320_p5 = scmp.ne.s32.totalorder %s231_s11, %s11319_s6  ;;  %p11324_p6 = scmp.lt.s32.totalorder %s231_s11, %s231_s11 }
  0xb8   :  { %p11325_p7 = scmp.lt.s32.totalorder %s11323_s13, %s11319_s6 }
  0xba   :  { %p11326_p8 = por %p11325_p7, %p11324_p6 }
  0xbc   :  { %p11327_p9 = pnand %p11326_p8, %p11320_p5 }
  0xbe   :  { %11330 = shalt.err (!%p11327_p9)
}
  0xbf   :  { %233 = dma.hbm_to_vmem [thread:$0]  %s12435_s22, 16, %s231_s11, [#allocation24]  }
  0xc0   :  { %s11339_s5 = scalar_lea.vmem %s253_s14, 16  ;;  %s11343_s18 = scalar_lea.vmem %s253_s14, 32 }
  0xc1   :  { %p11340_p10 = scmp.ne.s32.totalorder %s253_s14, %s11339_s5  ;;  %p11344_p11 = scmp.lt.s32.totalorder %s253_s14, %s253_s14 }
  0xc2   :  { %p11345_p12 = scmp.lt.s32.totalorder %s11343_s18, %s11339_s5 }
  0xc4   :  { %p11346_p13 = por %p11345_p12, %p11344_p11 }
  0xc6   :  { %p11347_p0 = pnand %p11346_p13, %p11340_p10 }
  0xc8   :  { %11350 = shalt.err (!%p11347_p0)
}
  0xc9   :  { %255 = dma.hbm_to_vmem [thread:$0]  %s12437_s24, 16, %s253_s14, [#allocation27]  }
  0xca   :  { %11371 = dma.done.wait [#allocation3], 128  }
  0xcb   :  { %11372 = vsyncadd [#allocation3], 4294967168 }
  0xcc   :  { %11373 = dma.done.wait [#allocation6], 2176  }
  0xcd   :  { %11374 = vsyncadd [#allocation6], 4294965120 }
  0xce   :  { %11375 = dma.done.wait [#allocation9], 2176  }
  0xcf   :  { %11376 = vsyncadd [#allocation9], 4294965120 }
  0xd0   :  { %11377 = dma.done.wait [#allocation12], 64  }
  0xd1   :  { %11378 = vsyncadd [#allocation12], 4294967232 }
  0xd2   :  { %11379 = dma.done.wait [#allocation15], 33280  }
  0xd3   :  { %11380 = vsyncadd [#allocation15], 4294934016 }
  0xd4   :  { %11381 = dma.done.wait [#allocation18], 32800  }
  0xd5   :  { %11382 = vsyncadd [#allocation18], 4294934496 }
  0xd6   :  { %11383 = dma.done.wait [#allocation21], 64  }
  0xd7   :  { %11384 = vsyncadd [#allocation21], 4294967232 }
  0xd8   :  { %11385 = dma.done.wait [#allocation24], 48  }
  0xd9   :  { %11386 = vsyncadd [#allocation24], 4294967248 }
  0xda   :  { %11387 = dma.done.wait [#allocation27], 1040  }
  0xdb   :  { %11388 = vsyncadd [#allocation27], 4294966256  ;;  %v11414_v0 = vmov 0.0   ;;  %vm11415_vm0 = vmmov 0   ;;  %s12462_s29 = sld [smem:[#allocation42_spill]]  ;;  %v10591_v8 = vld [vmem:[#allocation7 + $0x8] sm:$0xff]  }
  0xdc   :  { %10187 = vmatprep.subr.bf16.mxu1 %v11414_v0  ;;  %10191 = vmatprep.mubr.msk.bf16.mxu1 %vm11415_vm0, %v11414_v0  ;;  %s12463_s8 = sld [smem:[#allocation40_spill]]  ;;  %v10592_v9 = vld [vmem:[#allocation7] sm:$0xff]   ;;  %v9053_v15 = vld [vmem:[#allocation5] ss:$0 sm:$0xff]  ;;  %vm508_vm1 = vcmask 261120   ;;  %vm560_vm2 = vcmask 130048  }
  0xdd   :  { %10223 = vmatprep.subr.bf16.mxu0 %v11414_v0  ;;  %10227 = vmatprep.mubr.msk.bf16.mxu0 %vm11415_vm0, %v11414_v0  ;;  %s12464_s28 = sld [smem:[#allocation44_spill]]  ;;  %v9050_v23 = vld [vmem:[#allocation2] ss:$0 sm:$0xff]  ;;  %v9056_v27 = vld [vmem:[#allocation8] ss:$0 sm:$0xff]  ;;  %s11416_s26 = smov [#allocation29]  }
  0xde   :  { %s12465_s14 = sld [smem:[#allocation41_spill]] }
  0xe1   :  { %v10587_v1 = vld [vmem:[%s12462_s29 + $0x8] sm:$0xff]   ;;  %v10588_v2 = vld [vmem:[%s12462_s29] sm:$0xff]   ;;  %v10594_v57 = vld [vmem:[%s12462_s29 + $0x18] sm:$0xff]  }
  0xe2   :  { %10188 = vmatpush3.bf16.xpose.msra.mxu1 %v10587_v1  ;;  %v310_v3 = vld [vmem:[%s12463_s8] sm:$0xff]  ;;  %v311_v4 = vld [vmem:[%s12463_s8 + $0x8] sm:$0xff]  ;;  %10224 = vmatpush3.bf16.xpose.msra.mxu0 %v10594_v57  ;;  %v10596_v58 = vld [vmem:[%s12462_s29 + $0x10] sm:$0xff]  }
  0xe3   :  { %10189 = vmatprep.subr.bf16.mxu1 %v11414_v0  ;;  %v10589_v5 = vld [vmem:[%s12464_s28 + $0x8] sm:$0xff]   ;;  %v11664_v6 = vpack.c.bf16 %v311_v4, %v310_v3  ;;  %v10590_v7 = vld [vmem:[%s12464_s28] sm:$0xff]   ;;  %10225 = vmatprep.subr.bf16.mxu0 %v11414_v0  ;;  %v10595_v4 = vld [vmem:[%s12464_s28 + $0x10] sm:$0xff]  }
  0xe4   :  { %v11691_v36 = vld [vmem:[%s12465_s14] sm:$0xff]  ;;  %v11697_v41 = vld [vmem:[%s12465_s14 + $0x8] sm:$0xff] }
  0xea   :  { %10190 = vmatpush3.bf16.xpose.msra.mxu1 %v10588_v2  ;;  %10226 = vmatpush3.bf16.xpose.msra.mxu0 %v10596_v58  ;;  %v10593_v2 = vld [vmem:[%s12464_s28 + $0x18] sm:$0xff]  }
  0xeb   :  { %10195 = vmatprep.subr.bf16.mxu1 %v11414_v0  ;;  %10239 = vmatprep.subr.bf16.mxu0 %v11414_v0 }
  0xf1   :  { %10192 = vmatmul.mubr.bf16.vlgmr.msra.gmra.mxu1 %v11664_v6  ;;  %10228 = vmatmul.mubr.bf16.vlgmr.msra.gmra.mxu0 %v11664_v6 }
  0xf2   :  { %10196 = vmatpush3.bf16.xpose.msra.mxu1 %v10589_v5  ;;  %10199 = vmatprep.mubr.msk.bf16.mxu1 %vm11415_vm0, %v11414_v0  ;;  %v9065_v5 = vld [vmem:[#allocation2 + $0x1] ss:$0 sm:$0xff] }
  0xf3   :  { %10197 = vmatprep.subr.bf16.mxu1 %v11414_v0  ;;  %10243 = vmatprep.mubr.msk.bf16.mxu0 %vm11415_vm0, %v11414_v0 }
  0xfa   :  { %10198 = vmatpush3.bf16.xpose.msra.mxu1 %v10590_v7 }
  0xfb   :  { %10203 = vmatprep.subr.bf16.mxu1 %v11414_v0 }
 0x101   :  { %10200 = vmatmul.mubr.bf16.vlgmr.msra.gmra.mxu1 %v11664_v6 }
 0x102   :  { %10207 = vmatprep.mubr.msk.bf16.mxu1 %vm11415_vm0, %v11414_v0  ;;  %10204 = vmatpush3.bf16.xpose.msra.mxu1 %v10591_v8 }
 0x103   :  { %10205 = vmatprep.subr.bf16.mxu1 %v11414_v0 }
 0x10a   :  { %10206 = vmatpush3.bf16.xpose.msra.mxu1 %v10592_v9 }
 0x10b   :  { %10211 = vmatprep.subr.bf16.mxu1 %v11414_v0 }
 0x111   :  { %10208 = vmatmul.mubr.bf16.vlgmr.msra.gmra.mxu1 %v11664_v6 }
 0x112   :  { %10213 = vmatprep.mubr.msk.bf16.mxu1 %vm11415_vm0, %v11414_v0 }
 0x1b1   :  { %v370_v10 = vpop.f32.mrf.mxu1  ;;  %v692_v7 = vpop.f32.mrf.mxu0 }
 0x1b2   :  { %v371_v25 = vadd.f32 %v9050_v23, %v370_v10  ;;  %v693_v9 = vadd.f32 %v9065_v5, %v692_v7  ;;  %v10600_v7 = vld [vmem:[#allocation10] sm:$0xff]  }
 0x1b3   :  { %v10193_v11 = vpop.f32.mrf.mxu1  ;;  %v10229_v8 = vpop.f32.mrf.mxu0 }
 0x1b4   :  { %v10601_v8 = vld [vmem:[%s12464_s28 + $0x28] sm:$0xff]  }
 0x1b5   :  { %v373_v12 = vpop.f32.mrf.mxu1  ;;  %v695_v10 = vpop.f32.mrf.mxu0 }
 0x1b6   :  { %v374_v24 = vadd.f32 %v9050_v23, %v373_v12  ;;  %v696_v11 = vadd.f32 %v9065_v5, %v695_v10  ;;  %v10604_v10 = vld [vmem:[#allocation10 + $0x10] sm:$0xff]  }
 0x1b7   :  { %v10194_v13 = vpop.f32.mrf.mxu1  ;;  %v10230_v12 = vpop.f32.mrf.mxu0 }
 0x1b8   :  { %v506_v26 = vpack.c.bf16 %v374_v24, %v371_v25  ;;  %v832_v13 = vpack.c.bf16 %v696_v11, %v693_v9  ;;  %v10603_v9 = vld [vmem:[%s12464_s28 + $0x20] sm:$0xff]  }
 0x1c1   :  { %v434_v14 = vpop.f32.mrf.mxu1 }
 0x1c2   :  { %v435_v18 = vadd.f32 %v9053_v15, %v434_v14 }
 0x1c3   :  { %v10201_v16 = vpop.f32.mrf.mxu1 }
 0x1c5   :  { %v437_v17 = vpop.f32.mrf.mxu1 }
 0x1c6   :  { %v438_v19 = vadd.f32 %v9053_v15, %v437_v17 }
 0x1c7   :  { %v10202_v20 = vpop.f32.mrf.mxu1 }
 0x1c8   :  { %v507_v21 = vpack.c.bf16 %v438_v19, %v435_v18  ;;  %v9072_v20 = vld [vmem:[#allocation5 + $0x1] ss:$0 sm:$0xff] }
 0x1ca   :  { %v513_v22 = vsel %vm508_vm1, %v507_v21, 0 }
 0x1cb   :  { %10212 = vmatpush3.bf16.xpose.msra.mxu1 %v513_v22 }
 0x1cc   :  { %10217 = vmatprep.subr.bf16.mxu1 %v11414_v0 }
 0x1d1   :  { %v498_v28 = vpop.f32.mrf.mxu1 }
 0x1d2   :  { %10214 = vmatmul.mubr.msk.bf16.vlgmr.msra.gmra.mxu1 %vm508_vm1, %v506_v26  ;;  %v499_v30 = vadd.f32 %v9056_v27, %v498_v28  ;;  %v10597_v28 = vld [vmem:[#allocation7 + $0x18] sm:$0xff]  }
 0x1d3   :  { %10219 = vmatprep.mubr.msk.bf16.mxu1 %vm11415_vm0, %v11414_v0  ;;  %v10209_v29 = vpop.f32.mrf.mxu1  ;;  %10240 = vmatpush3.bf16.xpose.msra.mxu0 %v10597_v28 }
 0x1d4   :  { %10241 = vmatprep.subr.bf16.mxu0 %v11414_v0  ;;  %v10598_v29 = vld [vmem:[#allocation7 + $0x10] sm:$0xff]  }
 0x1d5   :  { %v501_v31 = vpop.f32.mrf.mxu1 }
 0x1d6   :  { %v502_v32 = vadd.f32 %v9056_v27, %v501_v31 }
 0x1d7   :  { %v10210_v33 = vpop.f32.mrf.mxu1 }
 0x1d8   :  { %v505_v34 = vpack.c.bf16 %v502_v32, %v499_v30 }
 0x1da   :  { %10218 = vmatpush3.bf16.msra.mxu1 %v505_v34 }
 0x1db   :  { %10231 = vmatprep.subr.bf16.mxu1 %v11414_v0  ;;  %10242 = vmatpush3.bf16.xpose.msra.mxu0 %v10598_v29 }
 0x1dc   :  { %10259 = vmatprep.subr.bf16.mxu0 %v11414_v0 }
 0x1e2   :  { %10244 = vmatmul.mubr.bf16.vlgmr.msra.gmra.mxu0 %v11664_v6 }
 0x1e3   :  { %10263 = vmatprep.mubr.msk.bf16.mxu0 %vm11415_vm0, %v11414_v0 }
 0x292   :  { %v549_v35 = vpop.f32.mrf.mxu1 }
 0x293   :  { %v556_v37 = vmul.f32 0.17677669, %v549_v35 }
 0x294   :  { %v10215_v38 = vpop.f32.mrf.mxu1 }
 0x295   :  { %v558_v39 = vadd.f32 %v556_v37, %v11691_v36 }
 0x296   :  { %v552_v40 = vpop.f32.mrf.mxu1 }
 0x297   :  { %v557_v42 = vmul.f32 0.17677669, %v552_v40  ;;  %v561_v43 = vsel %vm560_vm2, %v558_v39, -inf }
 0x298   :  { %v10216_v44 = vpop.f32.mrf.mxu1  ;;  %562 = vmax.xlane.f32.xlu0 %v561_v43 }
 0x299   :  { %v559_v45 = vadd.f32 %v557_v42, %v11697_v41 }
 0x29b   :  { %v564_v46 = vsel %vm560_vm2, %v559_v45, -inf }
 0x29c   :  { %565 = vmax.xlane.f32.xlu0 %v564_v46 }
 0x321   :  { %v563_v47 = vpop.xlane.xlu0 %562 }
 0x322   :  { %v567_v48 = vsub.f32 %v558_v39, %v563_v47 }
 0x324   :  { %v569_v49 = vmul.f32 1.442695, %v567_v48 }
 0x325   :  { %v566_v50 = vpop.xlane.xlu0 %565 }
 0x326   :  { %10915 = vpow2.f32 %v569_v49  ;;  %v568_v51 = vsub.f32 %v559_v45, %v566_v50 }
 0x328   :  { %v571_v52 = vmul.f32 1.442695, %v568_v51 }
 0x32a   :  { %10917 = vpow2.f32 %v571_v52  ;;  %v9075_v52 = vld [vmem:[#allocation8 + $0x1] ss:$0 sm:$0xff] }
 0x333   :  { %v10916_v53 = vpop.eup %10915 }
 0x334   :  { %v573_v54 = vsel %vm560_vm2, %v10916_v53, 0.0 }
 0x335   :  { %574 = vadd.xlane.f32.xlu1 %v573_v54 }
 0x337   :  { %v10918_v55 = vpop.eup %10917 }
 0x338   :  { %v576_v56 = vsel %vm560_vm2, %v10918_v55, 0.0 }
 0x339   :  { %577 = vadd.xlane.f32.xlu1 %v576_v56 }
 0x3be   :  { %v575_v59 = vpop.xlane.xlu1 %574 }
 0x3bf   :  { %10919 = vrcp.f32 %v575_v59 }
 0x3c2   :  { %v578_v60 = vpop.xlane.xlu1 %577 }
 0x3c3   :  { %10921 = vrcp.f32 %v578_v60  ;;  %v10602_v60 = vld [vmem:[#allocation10 + $0x18] sm:$0xff]  }
 0x3c4   :  { %10260 = vmatpush3.bf16.msra.mxu0 %v10602_v60 }
 0x3c5   :  { %10261 = vmatprep.subr.bf16.mxu0 %v11414_v0 }
 0x3c8   :  { %10262 = vmatpush3.bf16.msra.mxu0 %v10604_v10 }
 0x3c9   :  { %10275 = vmatprep.subr.bf16.mxu0 %v11414_v0 }
 0x3cc   :  { %v10920_v61 = vpop.eup %10919 }
 0x3cd   :  { %v581_v63 = vmul.f32 %v10920_v61, %v10916_v53  ;;  %v824_v53 = vpop.f32.mrf.mxu0 }
 0x3cf   :  { %v10245_v54 = vpop.f32.mrf.mxu0 }
 0x3d0   :  { %v10922_v62 = vpop.eup %10921 }
 0x3d1   :  { %v582_v1 = vmul.f32 %v10922_v62, %v10918_v55  ;;  %v825_v55 = vadd.f32 %v9075_v52, %v824_v53  ;;  %v827_v56 = vpop.f32.mrf.mxu0 }
 0x3d2   :  { %v828_v57 = vadd.f32 %v9075_v52, %v827_v56 }
 0x3d3   :  { %v583_v3 = vpack.c.bf16 %v582_v1, %v581_v63  ;;  %v10246_v58 = vpop.f32.mrf.mxu0 }
 0x3d4   :  { %v831_v59 = vpack.c.bf16 %v828_v57, %v825_v55 }
 0x3d5   :  { %10220 = vmatmul.mubr.msk.bf16.vlgmr.msra.gmra.mxu1 %vm560_vm2, %v583_v3 }
 0x3d6   :  { %10232 = vmatpush3.bf16.xpose.msra.mxu1 %v10593_v2  ;;  %10235 = vmatprep.mubr.msk.bf16.mxu1 %vm11415_vm0, %v11414_v0 }
 0x3d7   :  { %10233 = vmatprep.subr.bf16.mxu1 %v11414_v0 }
 0x3de   :  { %10234 = vmatpush3.bf16.xpose.msra.mxu1 %v10595_v4  ;;  %v10599_v4 = vld [vmem:[#allocation10 + $0x8] sm:$0xff]  }
 0x3df   :  { %10247 = vmatprep.subr.bf16.mxu1 %v11414_v0 }
 0x3e5   :  { %10236 = vmatmul.mubr.bf16.vlgmr.msra.gmra.mxu1 %v11664_v6 }
 0x3e6   :  { %10249 = vmatprep.mubr.msk.bf16.mxu1 %vm11415_vm0, %v11414_v0 }
 0x495   :  { %v11729_v14 = vpop.f32.mrf.mxu1 }
 0x497   :  { %v10221_v15 = vpop.f32.mrf.mxu1 }
 0x499   :  { %v11731_v16 = vpop.f32.mrf.mxu1 }
 0x49a   :  { %v632_v17 = vpack.c.bf16 %v11731_v16, %v11729_v14  ;;  %v10605_v14 = vld [vmem:[%s12462_s29 + $0x28] sm:$0xff]  }
 0x49b   :  { %v10222_v18 = vpop.f32.mrf.mxu1 }
 0x4a5   :  { %v758_v19 = vpop.f32.mrf.mxu1 }
 0x4a6   :  { %v759_v23 = vadd.f32 %v9072_v20, %v758_v19 }
 0x4a7   :  { %v10237_v21 = vpop.f32.mrf.mxu1 }
 0x4a9   :  { %v761_v22 = vpop.f32.mrf.mxu1 }
 0x4aa   :  { %v762_v24 = vadd.f32 %v9072_v20, %v761_v22  ;;  %v10606_v20 = vld [vmem:[%s12462_s29 + $0x20] sm:$0xff]   ;;  %v9097_v22 = vld [vmem:[#allocation5 + $0x2] ss:$0 sm:$0xff] }
 0x4ab   :  { %v10238_v25 = vpop.f32.mrf.mxu1 }
 0x4ac   :  { %v833_v26 = vpack.c.bf16 %v762_v24, %v759_v23 }
 0x4ae   :  { %v838_v27 = vsel %vm508_vm1, %v833_v26, 0 }
 0x4af   :  { %10248 = vmatpush3.bf16.xpose.msra.mxu1 %v838_v27 }
 0x4b0   :  { %10253 = vmatprep.subr.bf16.mxu1 %v11414_v0 }
 0x4b6   :  { %10250 = vmatmul.mubr.msk.bf16.vlgmr.msra.gmra.mxu1 %vm508_vm1, %v832_v13 }
 0x4b7   :  { %10255 = vmatprep.mubr.msk.bf16.mxu1 %vm11415_vm0, %v11414_v0  ;;  %10254 = vmatpush3.bf16.msra.mxu1 %v831_v59 }
 0x4b8   :  { %10267 = vmatprep.subr.bf16.mxu1 %v11414_v0 }
 0x576   :  { %v874_v30 = vpop.f32.mrf.mxu1 }
 0x577   :  { %v881_v31 = vmul.f32 0.17677669, %v874_v30 }
 0x578   :  { %v10251_v32 = vpop.f32.mrf.mxu1 }
 0x579   :  { %v883_v33 = vadd.f32 %v881_v31, %v11691_v36 }
 0x57a   :  { %v877_v34 = vpop.f32.mrf.mxu1 }
 0x57b   :  { %v882_v35 = vmul.f32 0.17677669, %v877_v34  ;;  %v885_v37 = vsel %vm560_vm2, %v883_v33, -inf }
 0x57c   :  { %886 = vmax.xlane.f32.xlu0 %v885_v37  ;;  %v10252_v38 = vpop.f32.mrf.mxu1  ;;  %v9090_v37 = vld [vmem:[#allocation2 + $0x2] ss:$0 sm:$0xff] }
 0x57d   :  { %v884_v39 = vadd.f32 %v882_v35, %v11697_v41 }
 0x57f   :  { %v888_v40 = vsel %vm560_vm2, %v884_v39, -inf }
 0x580   :  { %889 = vmax.xlane.f32.xlu1 %v888_v40 }
 0x605   :  { %v887_v42 = vpop.xlane.xlu0 %886 }
 0x606   :  { %v891_v43 = vsub.f32 %v883_v33, %v887_v42 }
 0x608   :  { %v893_v44 = vmul.f32 1.442695, %v891_v43 }
 0x609   :  { %v890_v45 = vpop.xlane.xlu1 %889 }
 0x60a   :  { %10923 = vpow2.f32 %v893_v44  ;;  %v892_v46 = vsub.f32 %v884_v39, %v890_v45  ;;  %v10607_v45 = vld [vmem:[#allocation7 + $0x28] sm:$0xff]  }
 0x60c   :  { %v895_v47 = vmul.f32 1.442695, %v892_v46  ;;  %v10608_v46 = vld [vmem:[#allocation7 + $0x20] sm:$0xff]  }
 0x60e   :  { %10925 = vpow2.f32 %v895_v47 }
 0x617   :  { %v10924_v48 = vpop.eup %10923 }
 0x618   :  { %v897_v49 = vsel %vm560_vm2, %v10924_v48, 0.0 }
 0x619   :  { %898 = vadd.xlane.f32.xlu0 %v897_v49 }
 0x61b   :  { %v10926_v50 = vpop.eup %10925 }
 0x61c   :  { %v900_v51 = vsel %vm560_vm2, %v10926_v50, 0.0 }
 0x61d   :  { %901 = vadd.xlane.f32.xlu1 %v900_v51 }
 0x6a2   :  { %v899_v61 = vpop.xlane.xlu0 %898 }
 0x6a3   :  { %10927 = vrcp.f32 %v899_v61 }
 0x6a6   :  { %v902_v62 = vpop.xlane.xlu1 %901 }
 0x6a7   :  { %10929 = vrcp.f32 %v902_v62 }
 0x6b0   :  { %v10928_v63 = vpop.eup %10927 }
 0x6b1   :  { %v905_v2 = vmul.f32 %v10928_v63, %v10924_v48 }
 0x6b4   :  { %v10930_v1 = vpop.eup %10929 }
 0x6b5   :  { %v906_v3 = vmul.f32 %v10930_v1, %v10926_v50 }
 0x6b7   :  { %v907_v5 = vpack.c.bf16 %v906_v3, %v905_v2 }
 0x6b9   :  { %10256 = vmatmul.mubr.msk.bf16.vlgmr.msra.gmra.mxu1 %vm560_vm2, %v907_v5 }
 0x6ba   :  { %10268 = vmatpush3.bf16.msra.mxu1 %v10599_v4  ;;  %10271 = vmatprep.mubr.msk.bf16.mxu1 %vm11415_vm0, %v11414_v0  ;;  %v9100_v4 = vld [vmem:[#allocation8 + $0x2] ss:$0 sm:$0xff] }
 0x6bb   :  { %10269 = vmatprep.subr.bf16.mxu1 %v11414_v0 }
 0x6be   :  { %10270 = vmatpush3.bf16.msra.mxu1 %v10600_v7 }
 0x6bf   :  { %10283 = vmatprep.subr.bf16.mxu1 %v11414_v0 }
 0x6c1   :  { %10272 = vmatmul.mubr.msk.bf16.vlgmr.msra.gmra.mxu1 %vm508_vm1, %v632_v17 }
 0x6c2   :  { %10284 = vmatpush3.bf16.xpose.msra.mxu1 %v10601_v8  ;;  %10287 = vmatprep.mubr.msk.bf16.mxu1 %vm11415_vm0, %v11414_v0 }
 0x6c3   :  { %10285 = vmatprep.subr.bf16.mxu1 %v11414_v0 }
 0x6ca   :  { %10286 = vmatpush3.bf16.xpose.msra.mxu1 %v10603_v9 }
 0x6cb   :  { %10299 = vmatprep.subr.bf16.mxu1 %v11414_v0 }
 0x6d1   :  { %10288 = vmatmul.mubr.bf16.vlgmr.msra.gmra.mxu1 %v11664_v6 }
 0x6d2   :  { %10301 = vmatprep.mubr.msk.bf16.mxu1 %vm11415_vm0, %v11414_v0 }
 0x779   :  { %v945_v11 = vpop.f32.mrf.mxu1 }
 0x77b   :  { %v10257_v12 = vpop.f32.mrf.mxu1 }
 0x77d   :  { %v948_v13 = vpop.f32.mrf.mxu1 }
 0x77e   :  { %v957_v15 = vpack.c.bf16 %v948_v13, %v945_v11  ;;  %v10609_v13 = vld [vmem:[#allocation10 + $0x28] sm:$0xff]  }
 0x77f   :  { %v10258_v16 = vpop.f32.mrf.mxu1 }
 0x780   :  { %10264 = vmatmul.mubr.msk.bf16.vlgmr.msra.gmra.mxu0 %vm508_vm1, %v957_v15 }
 0x781   :  { %10276 = vmatpush3.bf16.xpose.msra.mxu0 %v10605_v14  ;;  %v11780_v17 = vpop.f32.mrf.mxu1  ;;  %10279 = vmatprep.mubr.msk.bf16.mxu0 %vm11415_vm0, %v11414_v0 }
 0x782   :  { %10277 = vmatprep.subr.bf16.mxu0 %v11414_v0 }
 0x783   :  { %v10273_v18 = vpop.f32.mrf.mxu1 }
 0x785   :  { %v11785_v19 = vpop.f32.mrf.mxu1 }
 0x787   :  { %v10274_v21 = vpop.f32.mrf.mxu1 }
 0x789   :  { %10278 = vmatpush3.bf16.xpose.msra.mxu0 %v10606_v20 }
 0x78a   :  { %10291 = vmatprep.subr.bf16.mxu0 %v11414_v0 }
 0x790   :  { %10280 = vmatmul.mubr.bf16.vlgmr.msra.gmra.mxu0 %v11664_v6 }
 0x791   :  { %10295 = vmatprep.mubr.msk.bf16.mxu0 %vm11415_vm0, %v11414_v0  ;;  %v1195_v23 = vpop.f32.mrf.mxu1  ;;  %10292 = vmatpush3.bf16.xpose.msra.mxu0 %v10607_v45 }
 0x792   :  { %v1196_v25 = vadd.f32 %v9097_v22, %v1195_v23  ;;  %10293 = vmatprep.subr.bf16.mxu0 %v11414_v0  ;;  %v10610_v23 = vld [vmem:[#allocation10 + $0x20] sm:$0xff]  }
 0x793   :  { %v10289_v24 = vpop.f32.mrf.mxu1 }
 0x794   :  { %v10612_v24 = vld [vmem:[%s12462_s29 + $0x38] sm:$0xff]  }
 0x795   :  { %v1198_v26 = vpop.f32.mrf.mxu1 }
 0x796   :  { %v1199_v27 = vadd.f32 %v9097_v22, %v1198_v26 }
 0x797   :  { %v10290_v28 = vpop.f32.mrf.mxu1 }
 0x798   :  { %v1270_v29 = vpack.c.bf16 %v1199_v27, %v1196_v25  ;;  %v10614_v25 = vld [vmem:[%s12462_s29 + $0x30] sm:$0xff]  }
 0x799   :  { %10294 = vmatpush3.bf16.xpose.msra.mxu0 %v10608_v46 }
 0x79a   :  { %v1275_v30 = vsel %vm508_vm1, %v1270_v29, 0  ;;  %10311 = vmatprep.subr.bf16.mxu0 %v11414_v0  ;;  %v10611_v29 = vld [vmem:[%s12464_s28 + $0x38] sm:$0xff]  }
 0x79b   :  { %10300 = vmatpush3.bf16.xpose.msra.mxu1 %v1275_v30 }
 0x79c   :  { %10305 = vmatprep.subr.bf16.mxu1 %v11414_v0 }
 0x7a0   :  { %10296 = vmatmul.mubr.bf16.vlgmr.msra.gmra.mxu0 %v11664_v6 }
 0x7a1   :  { %10315 = vmatprep.mubr.msk.bf16.mxu0 %vm11415_vm0, %v11414_v0  ;;  %10312 = vmatpush3.bf16.msra.mxu0 %v10609_v13 }
 0x7a2   :  { %10313 = vmatprep.subr.bf16.mxu0 %v11414_v0 }
 0x7a5   :  { %10314 = vmatpush3.bf16.msra.mxu0 %v10610_v23 }
 0x7a6   :  { %10327 = vmatprep.subr.bf16.mxu0 %v11414_v0 }
 0x840   :  { %v11796_v31 = vpop.f32.mrf.mxu0 }
 0x841   :  { %v1064_v45 = vadd.f32 %v11780_v17, %v11796_v31  ;;  %v10616_v31 = vld [vmem:[#allocation7 + $0x30] sm:$0xff]  }
 0x842   :  { %v10265_v32 = vpop.f32.mrf.mxu0 }
 0x844   :  { %v11798_v33 = vpop.f32.mrf.mxu0 }
 0x846   :  { %v10266_v34 = vpop.f32.mrf.mxu0 }
 0x847   :  { %v10613_v34 = vld [vmem:[%s12464_s28 + $0x30] sm:$0xff]  }
 0x850   :  { %v1129_v35 = vpop.f32.mrf.mxu0 }
 0x851   :  { %v1130_v40 = vadd.f32 %v9090_v37, %v1129_v35  ;;  %v9112_v35 = vld [vmem:[#allocation2 + $0x3] ss:$0 sm:$0xff] }
 0x852   :  { %v10281_v38 = vpop.f32.mrf.mxu0 }
 0x854   :  { %v1132_v39 = vpop.f32.mrf.mxu0 }
 0x855   :  { %v1133_v42 = vadd.f32 %v9090_v37, %v1132_v39 }
 0x856   :  { %v10282_v43 = vpop.f32.mrf.mxu0 }
 0x857   :  { %v1269_v44 = vpack.c.bf16 %v1133_v42, %v1130_v40 }
 0x859   :  { %10302 = vmatmul.mubr.msk.bf16.vlgmr.msra.gmra.mxu1 %vm508_vm1, %v1269_v44 }
 0x85a   :  { %10307 = vmatprep.mubr.msk.bf16.mxu1 %vm11415_vm0, %v11414_v0 }
 0x860   :  { %v1261_v5 = vpop.f32.mrf.mxu0 }
 0x861   :  { %v1262_v8 = vadd.f32 %v9100_v4, %v1261_v5 }
 0x862   :  { %v10297_v7 = vpop.f32.mrf.mxu0 }
 0x864   :  { %v1264_v9 = vpop.f32.mrf.mxu0 }
 0x865   :  { %v1265_v10 = vadd.f32 %v9100_v4, %v1264_v9 }
 0x866   :  { %v10298_v11 = vpop.f32.mrf.mxu0 }
 0x867   :  { %v1268_v12 = vpack.c.bf16 %v1265_v10, %v1262_v8 }
 0x869   :  { %10306 = vmatpush3.bf16.msra.mxu1 %v1268_v12 }
 0x86a   :  { %10319 = vmatprep.subr.bf16.mxu1 %v11414_v0 }
 0x919   :  { %v1311_v47 = vpop.f32.mrf.mxu1 }
 0x91a   :  { %v1318_v48 = vmul.f32 0.17677669, %v1311_v47 }
 0x91b   :  { %v10303_v49 = vpop.f32.mrf.mxu1 }
 0x91c   :  { %v1320_v50 = vadd.f32 %v1318_v48, %v11691_v36  ;;  %v1067_v49 = vadd.f32 %v11785_v19, %v11798_v33  ;;  %v10615_v19 = vld [vmem:[#allocation7 + $0x38] sm:$0xff]  }
 0x91d   :  { %v1314_v51 = vpop.f32.mrf.mxu1 }
 0x91e   :  { %v1319_v52 = vmul.f32 0.17677669, %v1314_v51  ;;  %v1322_v53 = vsel %vm560_vm2, %v1320_v50, -inf }
 0x91f   :  { %1323 = vmax.xlane.f32.xlu0 %v1322_v53  ;;  %v10304_v54 = vpop.f32.mrf.mxu1 }
 0x920   :  { %v1321_v55 = vadd.f32 %v1319_v52, %v11697_v41  ;;  %v9119_v54 = vld [vmem:[#allocation5 + $0x3] ss:$0 sm:$0xff] }
 0x922   :  { %v1325_v56 = vsel %vm560_vm2, %v1321_v55, -inf }
 0x923   :  { %1326 = vmax.xlane.f32.xlu1 %v1325_v56 }
 0x9a8   :  { %v1324_v57 = vpop.xlane.xlu0 %1323 }
 0x9a9   :  { %v1328_v58 = vsub.f32 %v1320_v50, %v1324_v57 }
 0x9ab   :  { %v1330_v59 = vmul.f32 1.442695, %v1328_v58 }
 0x9ac   :  { %v1327_v60 = vpop.xlane.xlu1 %1326 }
 0x9ad   :  { %10931 = vpow2.f32 %v1330_v59  ;;  %v1329_v61 = vsub.f32 %v1321_v55, %v1327_v60 }
 0x9af   :  { %v1332_v62 = vmul.f32 1.442695, %v1329_v61 }
 0x9b1   :  { %10933 = vpow2.f32 %v1332_v62 }
 0x9ba   :  { %v10932_v63 = vpop.eup %10931 }
 0x9bb   :  { %v1334_v1 = vsel %vm560_vm2, %v10932_v63, 0.0 }
 0x9bc   :  { %1335 = vadd.xlane.f32.xlu0 %v1334_v1 }
 0x9be   :  { %v10934_v2 = vpop.eup %10933 }
 0x9bf   :  { %v1337_v3 = vsel %vm560_vm2, %v10934_v2, 0.0 }
 0x9c0   :  { %1338 = vadd.xlane.f32.xlu1 %v1337_v3 }
 0xa45   :  { %v1336_v14 = vpop.xlane.xlu0 %1335 }
 0xa46   :  { %10935 = vrcp.f32 %v1336_v14 }
 0xa49   :  { %v1339_v15 = vpop.xlane.xlu1 %1338 }
 0xa4a   :  { %10937 = vrcp.f32 %v1339_v15 }
 0xa53   :  { %v10936_v16 = vpop.eup %10935 }
 0xa54   :  { %v1342_v20 = vmul.f32 %v10936_v16, %v10932_v63 }
 0xa57   :  { %v10938_v18 = vpop.eup %10937 }
 0xa58   :  { %v1343_v21 = vmul.f32 %v10938_v18, %v10934_v2 }
 0xa5a   :  { %v1344_v22 = vpack.c.bf16 %v1343_v21, %v1342_v20 }
 0xa5c   :  { %10308 = vmatmul.mubr.msk.bf16.vlgmr.msra.gmra.mxu1 %vm560_vm2, %v1344_v22 }
 0xa5d   :  { %10323 = vmatprep.mubr.msk.bf16.mxu1 %vm11415_vm0, %v11414_v0  ;;  %10320 = vmatpush3.bf16.xpose.msra.mxu1 %v10612_v24 }
 0xa5e   :  { %10321 = vmatprep.subr.bf16.mxu1 %v11414_v0 }
 0xa65   :  { %10322 = vmatpush3.bf16.xpose.msra.mxu1 %v10614_v25 }
 0xa66   :  { %10335 = vmatprep.subr.bf16.mxu1 %v11414_v0 }
 0xa6c   :  { %10324 = vmatmul.mubr.bf16.vlgmr.msra.gmra.mxu1 %v11664_v6 }
 0xa6d   :  { %10339 = vmatprep.mubr.msk.bf16.mxu1 %vm11415_vm0, %v11414_v0  ;;  %10336 = vmatpush3.bf16.xpose.msra.mxu1 %v10615_v19 }
 0xa6e   :  { %10337 = vmatprep.subr.bf16.mxu1 %v11414_v0 }
 0xa75   :  { %10338 = vmatpush3.bf16.xpose.msra.mxu1 %v10616_v31 }
 0xa76   :  { %10355 = vmatprep.subr.bf16.mxu1 %v11414_v0 }
 0xa7c   :  { %10340 = vmatmul.mubr.bf16.vlgmr.msra.gmra.mxu1 %v11664_v6 }
 0xa7d   :  { %10359 = vmatprep.mubr.msk.bf16.mxu1 %vm11415_vm0, %v11414_v0 }
 0xb1c   :  { %v1382_v26 = vpop.f32.mrf.mxu1 }
 0xb1e   :  { %v10309_v27 = vpop.f32.mrf.mxu1 }
 0xb20   :  { %v1385_v28 = vpop.f32.mrf.mxu1 }
 0xb21   :  { %v1394_v30 = vpack.c.bf16 %v1385_v28, %v1382_v26 }
 0xb22   :  { %v10310_v32 = vpop.f32.mrf.mxu1 }
 0xb23   :  { %10316 = vmatmul.mubr.msk.bf16.vlgmr.msra.gmra.mxu0 %vm508_vm1, %v1394_v30 }
 0xb24   :  { %10328 = vmatpush3.bf16.xpose.msra.mxu0 %v10611_v29  ;;  %10331 = vmatprep.mubr.msk.bf16.mxu0 %vm11415_vm0, %v11414_v0 }
 0xb25   :  { %10329 = vmatprep.subr.bf16.mxu0 %v11414_v0 }
 0xb2c   :  { %10330 = vmatpush3.bf16.xpose.msra.mxu0 %v10613_v34  ;;  %v1512_v37 = vpop.f32.mrf.mxu1  ;;  %v10617_v34 = vld [vmem:[#allocation10 + $0x38] sm:$0xff]  }
 0xb2d   :  { %10343 = vmatprep.subr.bf16.mxu0 %v11414_v0  ;;  %v1513_v39 = vadd.f32 %v9112_v35, %v1512_v37  ;;  %10356 = vmatpush3.bf16.msra.mxu1 %v10617_v34  ;;  %v10635_v34 = vld [vmem:[#allocation14 + $0x58] sm:$0xff]  }
 0xb2e   :  { %v10325_v38 = vpop.f32.mrf.mxu1  ;;  %10357 = vmatprep.subr.bf16.mxu1 %v11414_v0 }
 0xb30   :  { %v1515_v40 = vpop.f32.mrf.mxu1 }
 0xb31   :  { %v1516_v42 = vadd.f32 %v9112_v35, %v1515_v40  ;;  %v10618_v35 = vld [vmem:[#allocation10 + $0x30] sm:$0xff]  }
 0xb32   :  { %v10326_v43 = vpop.f32.mrf.mxu1  ;;  %10358 = vmatpush3.bf16.msra.mxu1 %v10618_v35  ;;  %v10636_v35 = vld [vmem:[#allocation14 + $0xd8] sm:$0xff]  }
 0xb33   :  { %10332 = vmatmul.mubr.bf16.vlgmr.msra.gmra.mxu0 %v11664_v6  ;;  %v1652_v44 = vpack.c.bf16 %v1516_v42, %v1513_v39 }
 0xb34   :  { %10345 = vmatprep.mubr.msk.bf16.mxu0 %vm11415_vm0, %v11414_v0 }
 0xb3c   :  { %v1644_v16 = vpop.f32.mrf.mxu1 }
 0xb3e   :  { %v10341_v18 = vpop.f32.mrf.mxu1 }
 0xb3f   :  { %v10622_v18 = vld [vmem:[#allocation14 + $0xb8] sm:$0xff]  }
 0xb40   :  { %v1647_v21 = vpop.f32.mrf.mxu1 }
 0xb42   :  { %v10342_v23 = vpop.f32.mrf.mxu1 }
 0xb43   :  { %v10626_v23 = vld [vmem:[#allocation14 + $0xb0] sm:$0xff]  }
 0xbe3   :  { %v1444_v46 = vpop.f32.mrf.mxu0 }
 0xbe4   :  { %v11847_v47 = vadd.f32 %v1444_v46, %v1064_v45 }
 0xbe5   :  { %v10317_v48 = vpop.f32.mrf.mxu0 }
 0xbe7   :  { %v1447_v50 = vpop.f32.mrf.mxu0 }
 0xbe8   :  { %v11851_v51 = vadd.f32 %v1447_v50, %v1067_v49 }
 0xbe9   :  { %v10318_v52 = vpop.f32.mrf.mxu0 }
 0xbea   :  { %v11007_v52 = vld [vmem:[%s12463_s8] sm:$0xff] }
 0xbf3   :  { %v1578_v53 = vpop.f32.mrf.mxu0 }
 0xbf4   :  { %v1579_v57 = vadd.f32 %v9119_v54, %v1578_v53 }
 0xbf5   :  { %v10333_v55 = vpop.f32.mrf.mxu0 }
 0xbf7   :  { %v1581_v56 = vpop.f32.mrf.mxu0 }
 0xbf8   :  { %v1582_v58 = vadd.f32 %v9119_v54, %v1581_v56  ;;  %v11008_v56 = vld [vmem:[%s12463_s8 + $0x8] sm:$0xff] }
 0xbf9   :  { %v10334_v59 = vpop.f32.mrf.mxu0 }
 0xbfa   :  { %v1653_v60 = vpack.c.bf16 %v1582_v58, %v1579_v57 }
 0xbfc   :  { %v1658_v17 = vsel %vm508_vm1, %v1653_v60, 0 }
 0xbfd   :  { %10344 = vmatpush3.bf16.xpose.msra.mxu0 %v1658_v17 }
 0xbfe   :  { %10349 = vmatprep.subr.bf16.mxu0 %v11414_v0 }
 0xc04   :  { %10346 = vmatmul.mubr.msk.bf16.vlgmr.msra.gmra.mxu0 %vm508_vm1, %v1652_v44  ;;  %v9130_v44 = vld [vmem:[#allocation11] ss:$0 sm:$0xff] }
 0xc05   :  { %10351 = vmatprep.mubr.msk.bf16.mxu0 %vm11415_vm0, %v11414_v0 }
 0xcc4   :  { %v1694_v33 = vpop.f32.mrf.mxu0 }
 0xcc5   :  { %v1701_v61 = vmul.f32 0.17677669, %v1694_v33 }
 0xcc6   :  { %v10347_v62 = vpop.f32.mrf.mxu0 }
 0xcc7   :  { %v1703_v63 = vadd.f32 %v1701_v61, %v11691_v36 }
 0xcc8   :  { %v1697_v1 = vpop.f32.mrf.mxu0 }
 0xcc9   :  { %v1702_v2 = vmul.f32 0.17677669, %v1697_v1  ;;  %v1705_v3 = vsel %vm560_vm2, %v1703_v63, -inf }
 0xcca   :  { %1706 = vmax.xlane.f32.xlu0 %v1705_v3  ;;  %v10348_v4 = vpop.f32.mrf.mxu0 }
 0xccb   :  { %v1704_v5 = vadd.f32 %v1702_v2, %v11697_v41  ;;  %v9122_v41 = vld [vmem:[#allocation8 + $0x3] ss:$0 sm:$0xff]  ;;  %v9131_v4 = vld [vmem:[%s12428_s15] ss:$0 sm:$0xff] }
 0xccc   :  { %v1645_v20 = vadd.f32 %v9122_v41, %v1644_v16  ;;  %v1648_v22 = vadd.f32 %v9122_v41, %v1647_v21  ;;  %v10620_v41 = vld [vmem:[#allocation14 + $0xf8] sm:$0xff]   ;;  %v10624_v21 = vld [vmem:[#allocation14 + $0xf0] sm:$0xff]  }
 0xccd   :  { %v1708_v7 = vsel %vm560_vm2, %v1704_v5, -inf  ;;  %v10621_v16 = vld [vmem:[#allocation14 + $0x38] sm:$0xff]   ;;  %9844 = vmatprep.subr.bf16.mxu1 %v10620_v41  ;;  %v10658_v41 = vld [vmem:[#allocation14 + $0x1b0] sm:$0xff]  }
 0xcce   :  { %1709 = vmax.xlane.f32.xlu1 %v1708_v7  ;;  %v1651_v24 = vpack.c.bf16 %v1648_v22, %v1645_v20  ;;  %v9132_v7 = vld [vmem:[#allocation20] ss:$0 sm:$0xff]  ;;  %v10623_v20 = vld [vmem:[#allocation14 + $0x70] sm:$0xff]  }
 0xccf   :  { %v10625_v22 = vld [vmem:[#allocation14 + $0x30] sm:$0xff]  }
 0xcd0   :  { %10350 = vmatpush3.bf16.msra.mxu0 %v1651_v24  ;;  %v10627_v24 = vld [vmem:[#allocation14 + $0x68] sm:$0xff]  }
 0xd53   :  { %v1707_v6 = vpop.xlane.xlu0 %1706 }
 0xd54   :  { %v1711_v8 = vsub.f32 %v1703_v63, %v1707_v6 }
 0xd56   :  { %v1713_v9 = vmul.f32 1.442695, %v1711_v8 }
 0xd57   :  { %v1710_v10 = vpop.xlane.xlu1 %1709 }
 0xd58   :  { %10939 = vpow2.f32 %v1713_v9  ;;  %v1712_v11 = vsub.f32 %v1704_v5, %v1710_v10  ;;  %v9133_v9 = vld [vmem:[#allocation13] ss:$0 sm:$0xff] }
 0xd5a   :  { %v1715_v12 = vmul.f32 1.442695, %v1712_v11 }
 0xd5c   :  { %10941 = vpow2.f32 %v1715_v12 }
 0xd65   :  { %v10940_v36 = vpop.eup %10939 }
 0xd66   :  { %v1717_v13 = vsel %vm560_vm2, %v10940_v36, 0.0 }
 0xd67   :  { %1718 = vadd.xlane.f32.xlu0 %v1717_v13 }
 0xd69   :  { %v10942_v14 = vpop.eup %10941 }
 0xd6a   :  { %v1720_v15 = vsel %vm560_vm2, %v10942_v14, 0.0 }
 0xd6b   :  { %1721 = vadd.xlane.f32.xlu1 %v1720_v15  ;;  %v10619_v15 = vld [vmem:[#allocation14 + $0x78] sm:$0xff]  }
 0xd6c   :  { %9826 = vmatprep.subr.bf16.mxu0 %v10619_v15  ;;  %v10657_v15 = vld [vmem:[#allocation14 + $0x130] sm:$0xff]  }
 0xdf0   :  { %v1719_v25 = vpop.xlane.xlu0 %1718 }
 0xdf1   :  { %10943 = vrcp.f32 %v1719_v25  ;;  %v10628_v25 = vld [vmem:[#allocation14 + $0xe8] sm:$0xff]  }
 0xdf4   :  { %v1722_v26 = vpop.xlane.xlu1 %1721 }
 0xdf5   :  { %10945 = vrcp.f32 %v1722_v26  ;;  %v10629_v26 = vld [vmem:[#allocation14 + $0x28] sm:$0xff]  }
 0xdfe   :  { %v10944_v27 = vpop.eup %10943 }
 0xdff   :  { %v1725_v29 = vmul.f32 %v10944_v27, %v10940_v36  ;;  %v10630_v27 = vld [vmem:[#allocation14 + $0xa8] sm:$0xff]  }
 0xe02   :  { %v10946_v28 = vpop.eup %10945 }
 0xe03   :  { %v1726_v30 = vmul.f32 %v10946_v28, %v10942_v14  ;;  %v10631_v28 = vld [vmem:[#allocation14 + $0x60] sm:$0xff]  }
 0xe05   :  { %v1727_v32 = vpack.c.bf16 %v1726_v30, %v1725_v29  ;;  %v10632_v29 = vld [vmem:[#allocation14 + $0xe0] sm:$0xff]  }
 0xe06   :  { %v10633_v30 = vld [vmem:[#allocation14 + $0x20] sm:$0xff]  }
 0xe07   :  { %10352 = vmatmul.mubr.msk.bf16.vlgmr.msra.gmra.mxu0 %vm560_vm2, %v1727_v32  ;;  %v10634_v32 = vld [vmem:[#allocation14 + $0xa0] sm:$0xff]  }
 0xe08   :  { %9827 = vmatpush3.bf16.xpose.msra.mxu0 %v10621_v16  ;;  %v10659_v16 = vld [vmem:[#allocation14 + $0x168] sm:$0xff]  }
 0xe09   :  { %9828 = vmatprep.subr.bf16.mxu0 %v10623_v20  ;;  %v10661_v20 = vld [vmem:[#allocation14 + $0x128] sm:$0xff]  }
 0xe10   :  { %9829 = vmatpush3.bf16.xpose.msra.mxu0 %v10625_v22  ;;  %v10663_v22 = vld [vmem:[#allocation14 + $0x160] sm:$0xff]  }
 0xe11   :  { %9830 = vmatprep.subr.bf16.mxu0 %v10627_v24  ;;  %v10665_v24 = vld [vmem:[#allocation14 + $0x120] sm:$0xff]  }
 0xe18   :  { %9831 = vmatpush3.bf16.xpose.msra.mxu0 %v10629_v26  ;;  %v10667_v26 = vld [vmem:[#allocation14 + $0x158] sm:$0xff]  }
 0xe19   :  { %9832 = vmatprep.subr.bf16.mxu0 %v10631_v28  ;;  %v10669_v28 = vld [vmem:[#allocation14 + $0x118] sm:$0xff]  }
 0xe20   :  { %9833 = vmatpush3.bf16.xpose.msra.mxu0 %v10633_v30  ;;  %v10671_v30 = vld [vmem:[#allocation14 + $0x150] sm:$0xff]  }
 0xe21   :  { %9834 = vmatprep.subr.bf16.mxu0 %v10635_v34  ;;  %v10673_v34 = vld [vmem:[#allocation14 + $0x110] sm:$0xff]  }
 0xec7   :  { %v1765_v37 = vpop.f32.mrf.mxu0 }
 0xec9   :  { %v10353_v38 = vpop.f32.mrf.mxu0 }
 0xeca   :  { %v10638_v38 = vld [vmem:[#allocation14 + $0x98] sm:$0xff]  }
 0xecb   :  { %v1768_v39 = vpop.f32.mrf.mxu0 }
 0xecc   :  { %v1777_v40 = vpack.c.bf16 %v1768_v39, %v1765_v37  ;;  %v10637_v37 = vld [vmem:[#allocation14 + $0x18] sm:$0xff]  }
 0xecd   :  { %v10354_v42 = vpop.f32.mrf.mxu0  ;;  %9835 = vmatpush3.bf16.xpose.msra.mxu0 %v10637_v37  ;;  %v10675_v37 = vld [vmem:[#allocation14 + $0x148] sm:$0xff]  }
 0xece   :  { %10360 = vmatmul.mubr.msk.bf16.vlgmr.msra.gmra.mxu1 %vm508_vm1, %v1777_v40 }
 0xecf   :  { %9845 = vmatpush3.bf16.xpose.msra.mxu1 %v10622_v18  ;;  %v10660_v18 = vld [vmem:[#allocation14 + $0x1e8] sm:$0xff]  }
 0xed0   :  { %9846 = vmatprep.subr.bf16.mxu1 %v10624_v21  ;;  %v10662_v21 = vld [vmem:[#allocation14 + $0x1a8] sm:$0xff]  }
 0xed7   :  { %9847 = vmatpush3.bf16.xpose.msra.mxu1 %v10626_v23  ;;  %v10664_v23 = vld [vmem:[#allocation14 + $0x1e0] sm:$0xff]  }
 0xed8   :  { %9848 = vmatprep.subr.bf16.mxu1 %v10628_v25  ;;  %v10666_v25 = vld [vmem:[#allocation14 + $0x1a0] sm:$0xff]  }
 0xedf   :  { %9849 = vmatpush3.bf16.xpose.msra.mxu1 %v10630_v27  ;;  %v10668_v27 = vld [vmem:[#allocation14 + $0x1d8] sm:$0xff]  }
 0xee0   :  { %9850 = vmatprep.subr.bf16.mxu1 %v10632_v29  ;;  %v10670_v29 = vld [vmem:[#allocation14 + $0x198] sm:$0xff]  }
 0xee7   :  { %9851 = vmatpush3.bf16.xpose.msra.mxu1 %v10634_v32  ;;  %v10672_v32 = vld [vmem:[#allocation14 + $0x1d0] sm:$0xff]  }
 0xee8   :  { %9852 = vmatprep.subr.bf16.mxu1 %v10636_v35  ;;  %v10674_v35 = vld [vmem:[#allocation14 + $0x190] sm:$0xff]  }
 0xeef   :  { %9853 = vmatpush3.bf16.xpose.msra.mxu1 %v10638_v38  ;;  %v10676_v38 = vld [vmem:[#allocation14 + $0x1c8] sm:$0xff]  }
 0xf8e   :  { %v1827_v43 = vpop.f32.mrf.mxu1 }
 0xf8f   :  { %v1834_v45 = vadd.f32 %v1827_v43, %v11847_v47 }
 0xf90   :  { %v10361_v46 = vpop.f32.mrf.mxu1 }
 0xf91   :  { %v1843_v48 = vadd.f32 %v9130_v44, %v1834_v45 }
 0xf92   :  { %v1830_v49 = vpop.f32.mrf.mxu1 }
 0xf93   :  { %v1835_v50 = vadd.f32 %v1830_v49, %v11851_v51  ;;  %v1845_v53 = vadd.f32 %v11007_v52, %v1843_v48  ;;  %v10639_v49 = vld [vmem:[#allocation14 + $0x50] sm:$0xff]  }
 0xf94   :  { %v10362_v54 = vpop.f32.mrf.mxu1  ;;  %v10641_v52 = vld [vmem:[#allocation14 + $0x10] sm:$0xff]   ;;  %9836 = vmatprep.subr.bf16.mxu0 %v10639_v49  ;;  %v10685_v49 = vld [vmem:[#allocation14 + $0x238] sm:$0xff]  }
 0xf95   :  { %v1844_v55 = vadd.f32 %v9130_v44, %v1835_v50  ;;  %1849 = vadd.xlane.f32.xlu0 %v1845_v53  ;;  %v10640_v50 = vld [vmem:[#allocation14 + $0xd0] sm:$0xff]   ;;  %9837 = vmatpush3.bf16.xpose.msra.mxu0 %v10641_v52  ;;  %v10643_v54 = vld [vmem:[#allocation14 + $0x48] sm:$0xff]  }
 0xf96   :  { %9854 = vmatprep.subr.bf16.mxu1 %v10640_v50  ;;  %9838 = vmatprep.subr.bf16.mxu0 %v10643_v54  ;;  %v10686_v50 = vld [vmem:[#allocation14 + $0x2b8] sm:$0xff]   ;;  %v10687_v52 = vld [vmem:[#allocation14 + $0x270] sm:$0xff]  }
 0xf97   :  { %v1846_v57 = vadd.f32 %v11008_v56, %v1844_v55  ;;  %v10644_v55 = vld [vmem:[#allocation14 + $0xc8] sm:$0xff]   ;;  %v10689_v54 = vld [vmem:[#allocation14 + $0x230] sm:$0xff]  }
 0xf98   :  { %v10645_v56 = vld [vmem:[#allocation14 + $0x8] sm:$0xff]  }
 0xf99   :  { %1851 = vadd.xlane.f32.xlu1 %v1846_v57 }
 0xf9d   :  { %9839 = vmatpush3.bf16.xpose.msra.mxu0 %v10645_v56  ;;  %v10691_v56 = vld [vmem:[#allocation14 + $0x268] sm:$0xff]  }
0x101e   :  { %v1850_v47 = vpop.xlane.xlu0 %1849 }
0x101f   :  { %v1854_v58 = vmul.f32 0.0078125, %v1850_v47  ;;  %v10647_v47 = vld [vmem:[#allocation14 + $0x40] sm:$0xff]  }
0x1020   :  { %9840 = vmatprep.subr.bf16.mxu0 %v10647_v47  ;;  %v10693_v47 = vld [vmem:[#allocation14 + $0x228] sm:$0xff]  }
0x1021   :  { %v1856_v59 = vsub.f32 %v1845_v53, %v1854_v58  ;;  %v10642_v53 = vld [vmem:[#allocation14 + $0x90] sm:$0xff]   ;;  %v10648_v58 = vld [vmem:[#allocation14 + $0xc0] sm:$0xff]  }
0x1022   :  { %v1852_v60 = vpop.xlane.xlu1 %1851  ;;  %9855 = vmatpush3.bf16.xpose.msra.mxu1 %v10642_v53  ;;  %v10688_v53 = vld [vmem:[#allocation14 + $0x2f0] sm:$0xff]  }
0x1023   :  { %v1855_v17 = vmul.f32 0.0078125, %v1852_v60  ;;  %v1858_v51 = vmul.f32 %v1856_v59, %v1856_v59  ;;  %9856 = vmatprep.subr.bf16.mxu1 %v10644_v55  ;;  %v10650_v60 = vld [vmem:[#allocation14 + $0x80] sm:$0xff]   ;;  %v10690_v55 = vld [vmem:[#allocation14 + $0x2b0] sm:$0xff]  }
0x1025   :  { %v1857_v19 = vsub.f32 %v1846_v57, %v1855_v17  ;;  %1860 = vadd.xlane.f32.xlu0 %v1858_v51  ;;  %v10646_v57 = vld [vmem:[#allocation14 + $0x88] sm:$0xff]   ;;  %v10651_v17 = vld [vmem:[#allocation14 + $0x178] sm:$0xff]  }
0x1026   :  { %v10652_v51 = vld [vmem:[#allocation14 + $0x1f8] sm:$0xff]  }
0x1027   :  { %v1859_v31 = vmul.f32 %v1857_v19, %v1857_v19 }
0x1029   :  { %1862 = vadd.xlane.f32.xlu1 %v1859_v31 }
0x102a   :  { %9857 = vmatpush3.bf16.xpose.msra.mxu1 %v10646_v57  ;;  %v10692_v57 = vld [vmem:[#allocation14 + $0x2e8] sm:$0xff]  }
0x102b   :  { %9858 = vmatprep.subr.bf16.mxu1 %v10648_v58  ;;  %v10694_v58 = vld [vmem:[#allocation14 + $0x2a8] sm:$0xff]  }
0x1032   :  { %9859 = vmatpush3.bf16.xpose.msra.mxu1 %v10650_v60  ;;  %v10696_v60 = vld [vmem:[#allocation14 + $0x2e0] sm:$0xff]  }
0x1033   :  { %9880 = vmatprep.subr.bf16.mxu1 %v10652_v51  ;;  %v10698_v51 = vld [vmem:[#allocation14 + $0x2a0] sm:$0xff]  }
0x10ae   :  { %v1861_v33 = vpop.xlane.xlu0 %1860 }
0x10af   :  { %v1864_v61 = vmul.f32 0.0078125, %v1861_v33 }
0x10b1   :  { %v1866_v62 = vadd.f32 1e-05, %v1864_v61 }
0x10b2   :  { %v1863_v63 = vpop.xlane.xlu1 %1862 }
0x10b3   :  { %10947 = vrsqrt.f32 %v1866_v62  ;;  %v1865_v1 = vmul.f32 0.0078125, %v1863_v63 }
0x10b5   :  { %v1867_v2 = vadd.f32 1e-05, %v1865_v1 }
0x10b7   :  { %10949 = vrsqrt.f32 %v1867_v2 }
0x10c0   :  { %v10948_v3 = vpop.eup %10947 }
0x10c1   :  { %v1870_v5 = vmul.f32 %v10948_v3, %v1856_v59  ;;  %v10649_v59 = vld [vmem:[#allocation14] sm:$0xff]  }
0x10c2   :  { %9841 = vmatpush3.bf16.xpose.msra.mxu0 %v10649_v59  ;;  %v9134_v3 = vld [vmem:[%s12430_s17] ss:$0 sm:$0xff] }
0x10c3   :  { %v1878_v6 = vmul.f32 %v9131_v4, %v1870_v5  ;;  %9862 = vmatprep.subr.bf16.mxu0 %v10651_v17  ;;  %v10695_v59 = vld [vmem:[#allocation14 + $0x260] sm:$0xff]  }
0x10c4   :  { %v10950_v8 = vpop.eup %10949  ;;  %v10697_v17 = vld [vmem:[#allocation14 + $0x220] sm:$0xff]  }
0x10c5   :  { %v1886_v10 = vadd.f32 %v9132_v7, %v1878_v6  ;;  %v1871_v11 = vmul.f32 %v10950_v8, %v1857_v19  ;;  %v9135_v6 = vld [vmem:[#allocation22] ss:$0 sm:$0xff] }
0x10c7   :  { %v1895_v12 = vadd.f32 %v9133_v9, %v1886_v10  ;;  %v1879_v36 = vmul.f32 %v9131_v4, %v1871_v11 }
0x10c9   :  { %1899 = vadd.xlane.f32.xlu0 %v1895_v12  ;;  %v1887_v13 = vadd.f32 %v9132_v7, %v1879_v36  ;;  %v10654_v36 = vld [vmem:[#allocation14 + $0x1b8] sm:$0xff]  }
0x10cb   :  { %v1896_v14 = vadd.f32 %v9133_v9, %v1887_v13  ;;  %v10655_v13 = vld [vmem:[#allocation14 + $0x170] sm:$0xff]  }
0x10cd   :  { %1901 = vadd.xlane.f32.xlu1 %v1896_v14 }
0x1152   :  { %v1900_v39 = vpop.xlane.xlu0 %1899 }
0x1153   :  { %v1903_v40 = vmul.f32 0.0078125, %v1900_v39  ;;  %v10677_v39 = vld [vmem:[#allocation14 + $0x108] sm:$0xff]  }
0x1155   :  { %v1905_v42 = vsub.f32 %v1895_v12, %v1903_v40  ;;  %v10653_v12 = vld [vmem:[#allocation14 + $0x138] sm:$0xff]   ;;  %v10678_v40 = vld [vmem:[#allocation14 + $0x188] sm:$0xff]  }
0x1156   :  { %v1902_v43 = vpop.xlane.xlu1 %1901 }
0x1157   :  { %v1904_v44 = vmul.f32 0.0078125, %v1902_v43  ;;  %v1907_v45 = vmul.f32 %v1905_v42, %v1905_v42  ;;  %v10680_v43 = vld [vmem:[#allocation14 + $0x1c0] sm:$0xff]  }
0x1159   :  { %v1906_v46 = vsub.f32 %v1896_v14, %v1904_v44  ;;  %1909 = vadd.xlane.f32.xlu0 %v1907_v45  ;;  %v10656_v14 = vld [vmem:[#allocation14 + $0x1f0] sm:$0xff]   ;;  %v10681_v44 = vld [vmem:[#allocation14 + $0x100] sm:$0xff]  }
0x115a   :  { %v10682_v45 = vld [vmem:[#allocation14 + $0x180] sm:$0xff]  }
0x115b   :  { %v1908_v48 = vmul.f32 %v1906_v46, %v1906_v46 }
0x115d   :  { %1911 = vadd.xlane.f32.xlu1 %v1908_v48  ;;  %v10684_v48 = vld [vmem:[#allocation14 + $0x2f8] sm:$0xff]  }
0x11e2   :  { %v1910_v19 = vpop.xlane.xlu0 %1909 }
0x11e3   :  { %v1913_v31 = vmul.f32 0.0078125, %v1910_v19  ;;  %v10699_v19 = vld [vmem:[#allocation14 + $0x258] sm:$0xff]  }
0x11e5   :  { %v1915_v33 = vadd.f32 1e-05, %v1913_v31  ;;  %v10700_v31 = vld [vmem:[#allocation14 + $0x2d8] sm:$0xff]  }
0x11e6   :  { %v1912_v61 = vpop.xlane.xlu1 %1911 }
0x11e7   :  { %10951 = vrsqrt.f32 %v1915_v33  ;;  %v1914_v62 = vmul.f32 0.0078125, %v1912_v61  ;;  %v10701_v33 = vld [vmem:[#allocation14 + $0x218] sm:$0xff]  }
0x11e8   :  { %v10702_v61 = vld [vmem:[#allocation14 + $0x298] sm:$0xff]  }
0x11e9   :  { %v1916_v63 = vadd.f32 1e-05, %v1914_v62  ;;  %v10703_v62 = vld [vmem:[#allocation14 + $0x250] sm:$0xff]  }
0x11eb   :  { %10953 = vrsqrt.f32 %v1916_v63  ;;  %v10704_v63 = vld [vmem:[#allocation14 + $0x2d0] sm:$0xff]  }
0x11f4   :  { %v10952_v1 = vpop.eup %10951 }
0x11f5   :  { %v1919_v2 = vmul.f32 %v10952_v1, %v1905_v42  ;;  %v10679_v42 = vld [vmem:[#allocation14 + $0x140] sm:$0xff]   ;;  %v10705_v1 = vld [vmem:[#allocation14 + $0x210] sm:$0xff]  }
0x11f7   :  { %v1927_v5 = vmul.f32 %v9134_v3, %v1919_v2  ;;  %v10706_v2 = vld [vmem:[#allocation14 + $0x290] sm:$0xff]  }
0x11f8   :  { %v10954_v4 = vpop.eup %10953 }
0x11f9   :  { %v1920_v7 = vmul.f32 %v10954_v4, %v1906_v46  ;;  %v11886_v9 = vadd.f32 %v9135_v6, %v1927_v5  ;;  %v10683_v46 = vld [vmem:[#allocation14 + $0x278] sm:$0xff]   ;;  %v10708_v4 = vld [vmem:[#allocation14 + $0x2c8] sm:$0xff]  }
0x11fa   :  { %v10709_v5 = vld [vmem:[#allocation14 + $0x208] sm:$0xff]  }
0x11fb   :  { %v1928_v8 = vmul.f32 %v9134_v3, %v1920_v7  ;;  %v10707_v3 = vld [vmem:[#allocation14 + $0x248] sm:$0xff]  }
0x11fc   :  { %v10710_v7 = vld [vmem:[#allocation14 + $0x288] sm:$0xff]  }
0x11fd   :  { %v11888_v10 = vadd.f32 %v9135_v6, %v1928_v8  ;;  %v10711_v6 = vld [vmem:[#allocation14 + $0x240] sm:$0xff]  }
0x11fe   :  { %v10712_v8 = vld [vmem:[#allocation14 + $0x2c0] sm:$0xff]  }
0x11ff   :  { %v11892_v11 = vpack.c.bf16 %v11888_v10, %v11886_v9 }
0x1201   :  { %9842 = vmatprep.mubr.bf16.mxu0 %v11892_v11  ;;  %9860 = vmatprep.mubr.bf16.mxu1 %v11892_v11 }
0x1202   :  { %9843 = vmatmul.mubr.bf16.vlgmr.msra.gmra.mxu0 %v11892_v11  ;;  %9861 = vmatmul.mubr.bf16.vlgmr.msra.gmra.mxu1 %v11892_v11 }
0x1203   :  { %9863 = vmatpush3.bf16.xpose.msra.mxu0 %v10653_v12  ;;  %9881 = vmatpush3.bf16.xpose.msra.mxu1 %v10654_v36  ;;  %v10713_v12 = vld [vmem:[#allocation14 + $0x200] sm:$0xff]  }
0x1204   :  { %9878 = vmatprep.mubr.bf16.mxu0 %v11892_v11  ;;  %9896 = vmatprep.mubr.bf16.mxu1 %v11892_v11  ;;  %v10714_v36 = vld [vmem:[#allocation14 + $0x280] sm:$0xff]  }
0x1205   :  { %9864 = vmatprep.subr.bf16.mxu0 %v10655_v13  ;;  %9882 = vmatprep.subr.bf16.mxu1 %v10656_v14  ;;  %v10715_v13 = vld [vmem:[#allocation14 + $0x378] sm:$0xff]  }
0x1206   :  { %v10716_v14 = vld [vmem:[#allocation14 + $0x3f8] sm:$0xff]  }
0x120b   :  { %9865 = vmatpush3.bf16.xpose.msra.mxu0 %v10657_v15  ;;  %9883 = vmatpush3.bf16.xpose.msra.mxu1 %v10658_v41  ;;  %v10717_v15 = vld [vmem:[#allocation14 + $0x338] sm:$0xff]  }
0x120c   :  { %9866 = vmatprep.subr.bf16.mxu0 %v10659_v16  ;;  %9884 = vmatprep.subr.bf16.mxu1 %v10660_v18  ;;  %v10718_v41 = vld [vmem:[#allocation14 + $0x3b8] sm:$0xff]   ;;  %v10719_v16 = vld [vmem:[#allocation14 + $0x370] sm:$0xff]  }
0x120d   :  { %v10720_v18 = vld [vmem:[#allocation14 + $0x3f0] sm:$0xff]  }
0x1213   :  { %9867 = vmatpush3.bf16.xpose.msra.mxu0 %v10661_v20  ;;  %9885 = vmatpush3.bf16.xpose.msra.mxu1 %v10662_v21  ;;  %v10721_v20 = vld [vmem:[#allocation14 + $0x330] sm:$0xff]  }
0x1214   :  { %9868 = vmatprep.subr.bf16.mxu0 %v10663_v22  ;;  %9886 = vmatprep.subr.bf16.mxu1 %v10664_v23  ;;  %v10722_v21 = vld [vmem:[#allocation14 + $0x3b0] sm:$0xff]   ;;  %v10723_v22 = vld [vmem:[#allocation14 + $0x368] sm:$0xff]  }
0x1215   :  { %v10724_v23 = vld [vmem:[#allocation14 + $0x3e8] sm:$0xff]  }
0x121b   :  { %9869 = vmatpush3.bf16.xpose.msra.mxu0 %v10665_v24  ;;  %9887 = vmatpush3.bf16.xpose.msra.mxu1 %v10666_v25  ;;  %v10725_v24 = vld [vmem:[#allocation14 + $0x328] sm:$0xff]  }
0x121c   :  { %9870 = vmatprep.subr.bf16.mxu0 %v10667_v26  ;;  %9888 = vmatprep.subr.bf16.mxu1 %v10668_v27  ;;  %v10726_v25 = vld [vmem:[#allocation14 + $0x3a8] sm:$0xff]   ;;  %v10727_v26 = vld [vmem:[#allocation14 + $0x360] sm:$0xff]  }
0x121d   :  { %v10728_v27 = vld [vmem:[#allocation14 + $0x3e0] sm:$0xff]  }
0x1223   :  { %9871 = vmatpush3.bf16.xpose.msra.mxu0 %v10669_v28  ;;  %9889 = vmatpush3.bf16.xpose.msra.mxu1 %v10670_v29  ;;  %v10729_v28 = vld [vmem:[#allocation14 + $0x320] sm:$0xff]  }
0x1224   :  { %9872 = vmatprep.subr.bf16.mxu0 %v10671_v30  ;;  %9890 = vmatprep.subr.bf16.mxu1 %v10672_v32  ;;  %v10730_v29 = vld [vmem:[#allocation14 + $0x3a0] sm:$0xff]   ;;  %v10731_v30 = vld [vmem:[#allocation14 + $0x358] sm:$0xff]  }
0x1225   :  { %v10732_v32 = vld [vmem:[#allocation14 + $0x3d8] sm:$0xff]  }
0x122b   :  { %9873 = vmatpush3.bf16.xpose.msra.mxu0 %v10673_v34  ;;  %9891 = vmatpush3.bf16.xpose.msra.mxu1 %v10674_v35  ;;  %v10733_v34 = vld [vmem:[#allocation14 + $0x318] sm:$0xff]  }
0x122c   :  { %9874 = vmatprep.subr.bf16.mxu0 %v10675_v37  ;;  %9892 = vmatprep.subr.bf16.mxu1 %v10676_v38  ;;  %v10734_v35 = vld [vmem:[#allocation14 + $0x398] sm:$0xff]   ;;  %v10735_v37 = vld [vmem:[#allocation14 + $0x350] sm:$0xff]  }
0x122d   :  { %v10736_v38 = vld [vmem:[#allocation14 + $0x3d0] sm:$0xff]  }
0x1233   :  { %9875 = vmatpush3.bf16.xpose.msra.mxu0 %v10677_v39  ;;  %9893 = vmatpush3.bf16.xpose.msra.mxu1 %v10678_v40  ;;  %v10737_v39 = vld [vmem:[#allocation14 + $0x310] sm:$0xff]  }
0x1234   :  { %9876 = vmatprep.subr.bf16.mxu0 %v10679_v42  ;;  %9894 = vmatprep.subr.bf16.mxu1 %v10680_v43  ;;  %v10738_v40 = vld [vmem:[#allocation14 + $0x390] sm:$0xff]   ;;  %v10739_v42 = vld [vmem:[#allocation14 + $0x348] sm:$0xff]  }
0x1235   :  { %v10740_v43 = vld [vmem:[#allocation14 + $0x3c8] sm:$0xff]  }
0x123b   :  { %9877 = vmatpush3.bf16.xpose.msra.mxu0 %v10681_v44  ;;  %9895 = vmatpush3.bf16.xpose.msra.mxu1 %v10682_v45  ;;  %v10741_v44 = vld [vmem:[#allocation14 + $0x308] sm:$0xff]  }
0x123c   :  { %9898 = vmatprep.subr.bf16.mxu0 %v10683_v46  ;;  %9916 = vmatprep.subr.bf16.mxu1 %v10684_v48  ;;  %v10742_v45 = vld [vmem:[#allocation14 + $0x388] sm:$0xff]   ;;  %v10743_v46 = vld [vmem:[#allocation14 + $0x340] sm:$0xff]  }
0x123d   :  { %v10744_v48 = vld [vmem:[#allocation14 + $0x3c0] sm:$0xff]  }
0x1242   :  { %9879 = vmatmul.mubr.bf16.vlgmr.msra.gmra.mxu0 %v11892_v11  ;;  %9897 = vmatmul.mubr.bf16.vlgmr.msra.gmra.mxu1 %v11892_v11 }
0x1243   :  { %9899 = vmatpush3.bf16.xpose.msra.mxu0 %v10685_v49  ;;  %9914 = vmatprep.mubr.bf16.mxu0 %v11892_v11  ;;  %v3550_v49 = vld [vmem:[#allocation17 + $0x380] sm:$0xff] }
0x1244   :  { %9917 = vmatpush3.bf16.xpose.msra.mxu1 %v10686_v50  ;;  %9932 = vmatprep.mubr.bf16.mxu1 %v11892_v11  ;;  %v3558_v50 = vld [vmem:[#allocation17 + $0x3c0] sm:$0xff] }
0x1245   :  { %9900 = vmatprep.subr.bf16.mxu0 %v10687_v52  ;;  %9918 = vmatprep.subr.bf16.mxu1 %v10688_v53  ;;  %v3551_v52 = vld [vmem:[#allocation17 + $0x388] sm:$0xff] }
0x1246   :  { %v3559_v53 = vld [vmem:[#allocation17 + $0x3c8] sm:$0xff] }
0x124b   :  { %9901 = vmatpush3.bf16.xpose.msra.mxu0 %v10689_v54  ;;  %v10745_v54 = vld [vmem:[#allocation14 + $0x300] sm:$0xff]  }
0x124c   :  { %9919 = vmatpush3.bf16.xpose.msra.mxu1 %v10690_v55  ;;  %9902 = vmatprep.subr.bf16.mxu0 %v10691_v56  ;;  %v10746_v55 = vld [vmem:[#allocation14 + $0x380] sm:$0xff]   ;;  %v9378_v56 = vcombine.high %v3550_v49, %v3558_v50 }
0x124d   :  { %9920 = vmatprep.subr.bf16.mxu1 %v10692_v57  ;;  %v9380_v57 = vcombine.high %v3551_v52, %v3559_v53 }
0x1253   :  { %9903 = vmatpush3.bf16.xpose.msra.mxu0 %v10693_v47  ;;  %v2198_v47 = vlaneseq }
0x1254   :  { %9921 = vmatpush3.bf16.xpose.msra.mxu1 %v10694_v58  ;;  %9904 = vmatprep.subr.bf16.mxu0 %v10695_v59  ;;  %v3534_v59 = vld [vmem:[#allocation17 + $0x300] sm:$0xff] }
0x1255   :  { %9922 = vmatprep.subr.bf16.mxu1 %v10696_v60  ;;  %v11908_v58 = vshrl.u32 %v2198_v47, 7  ;;  %v3542_v60 = vld [vmem:[#allocation17 + $0x340] sm:$0xff] }
0x125b   :  { %9905 = vmatpush3.bf16.xpose.msra.mxu0 %v10697_v17  ;;  %v3535_v17 = vld [vmem:[#allocation17 + $0x308] sm:$0xff] }
0x125c   :  { %9923 = vmatpush3.bf16.xpose.msra.mxu1 %v10698_v51  ;;  %9906 = vmatprep.subr.bf16.mxu0 %v10699_v19  ;;  %v3543_v51 = vld [vmem:[#allocation17 + $0x348] sm:$0xff]  ;;  %v9377_v19 = vcombine.low %v3550_v49, %v3558_v50 }
0x125d   :  { %9924 = vmatprep.subr.bf16.mxu1 %v10700_v31  ;;  %v11911_v31 = vsub.s32 1, %v11908_v58 }
0x1263   :  { %9907 = vmatpush3.bf16.xpose.msra.mxu0 %v10701_v33  ;;  %v11914_v33 = vsub.s32 3, %v11908_v58 }
0x1264   :  { %9925 = vmatpush3.bf16.xpose.msra.mxu1 %v10702_v61  ;;  %9908 = vmatprep.subr.bf16.mxu0 %v10703_v62  ;;  %v9379_v61 = vcombine.low %v3551_v52, %v3559_v53  ;;  %v9362_v62 = vcombine.high %v3534_v59, %v3542_v60 }
0x1265   :  { %9926 = vmatprep.subr.bf16.mxu1 %v10704_v63  ;;  %v9364_v63 = vcombine.high %v3535_v17, %v3543_v51 }
0x126b   :  { %9909 = vmatpush3.bf16.xpose.msra.mxu0 %v10705_v1  ;;  %v11917_v1 = vld [vmem:[#allocation16] sm:$0xff] }
0x126c   :  { %9927 = vmatpush3.bf16.xpose.msra.mxu1 %v10706_v2  ;;  %9910 = vmatprep.subr.bf16.mxu0 %v10707_v3 }
0x126d   :  { %9928 = vmatprep.subr.bf16.mxu1 %v10708_v4  ;;  %v2205_v4 = vrot.slane %v11917_v1, %v11911_v31 }
0x1273   :  { %9911 = vmatpush3.bf16.xpose.msra.mxu0 %v10709_v5  ;;  %v2213_v5 = vrot.slane %v11917_v1, %v11914_v33 }
0x1274   :  { %9929 = vmatpush3.bf16.xpose.msra.mxu1 %v10710_v7  ;;  %9912 = vmatprep.subr.bf16.mxu0 %v10711_v6 }
0x1275   :  { %9930 = vmatprep.subr.bf16.mxu1 %v10712_v8  ;;  %v3518_v8 = vld [vmem:[#allocation17 + $0x280] sm:$0xff] }
0x127b   :  { %9913 = vmatpush3.bf16.xpose.msra.mxu0 %v10713_v12  ;;  %v3526_v12 = vld [vmem:[#allocation17 + $0x2c0] sm:$0xff] }
0x127c   :  { %9931 = vmatpush3.bf16.xpose.msra.mxu1 %v10714_v36  ;;  %9934 = vmatprep.subr.bf16.mxu0 %v10715_v13 }
0x127d   :  { %9952 = vmatprep.subr.bf16.mxu1 %v10716_v14  ;;  %v3519_v14 = vld [vmem:[#allocation17 + $0x288] sm:$0xff] }
0x1282   :  { %9915 = vmatmul.mubr.bf16.vlgmr.msra.gmra.mxu0 %v11892_v11 }
0x1283   :  { %9933 = vmatmul.mubr.bf16.vlgmr.msra.gmra.mxu1 %v11892_v11  ;;  %9935 = vmatpush3.bf16.xpose.msra.mxu0 %v10717_v15 }
0x1284   :  { %9950 = vmatprep.mubr.bf16.mxu0 %v11892_v11  ;;  %9953 = vmatpush3.bf16.xpose.msra.mxu1 %v10718_v41 }
0x1285   :  { %9968 = vmatprep.mubr.bf16.mxu1 %v11892_v11  ;;  %9936 = vmatprep.subr.bf16.mxu0 %v10719_v16  ;;  %v9361_v16 = vcombine.low %v3534_v59, %v3542_v60 }
0x1286   :  { %9954 = vmatprep.subr.bf16.mxu1 %v10720_v18 }
0x128b   :  { %9937 = vmatpush3.bf16.xpose.msra.mxu0 %v10721_v20 }
0x128c   :  { %9955 = vmatpush3.bf16.xpose.msra.mxu1 %v10722_v21  ;;  %9938 = vmatprep.subr.bf16.mxu0 %v10723_v22  ;;  %v9363_v21 = vcombine.low %v3535_v17, %v3543_v51  ;;  %v9346_v22 = vcombine.high %v3518_v8, %v3526_v12  ;;  %v3454_v51 = vld [vmem:[#allocation17 + $0x80] sm:$0xff] }
0x128d   :  { %9956 = vmatprep.subr.bf16.mxu1 %v10724_v23 }
0x1293   :  { %9939 = vmatpush3.bf16.xpose.msra.mxu0 %v10725_v24 }
0x1294   :  { %9957 = vmatpush3.bf16.xpose.msra.mxu1 %v10726_v25  ;;  %9940 = vmatprep.subr.bf16.mxu0 %v10727_v26 }
0x1295   :  { %9958 = vmatprep.subr.bf16.mxu1 %v10728_v27 }
0x129b   :  { %9941 = vmatpush3.bf16.xpose.msra.mxu0 %v10729_v28 }
0x129c   :  { %9959 = vmatpush3.bf16.xpose.msra.mxu1 %v10730_v29  ;;  %9942 = vmatprep.subr.bf16.mxu0 %v10731_v30 }
0x129d   :  { %9960 = vmatprep.subr.bf16.mxu1 %v10732_v32 }
0x12a3   :  { %9943 = vmatpush3.bf16.xpose.msra.mxu0 %v10733_v34  ;;  %v3502_v34 = vld [vmem:[#allocation17 + $0x200] sm:$0xff] }
0x12a4   :  { %9961 = vmatpush3.bf16.xpose.msra.mxu1 %v10734_v35  ;;  %9944 = vmatprep.subr.bf16.mxu0 %v10735_v37  ;;  %v3510_v35 = vld [vmem:[#allocation17 + $0x240] sm:$0xff]  ;;  %v3503_v37 = vld [vmem:[#allocation17 + $0x208] sm:$0xff] }
0x12a5   :  { %9962 = vmatprep.subr.bf16.mxu1 %v10736_v38  ;;  %v3511_v38 = vld [vmem:[#allocation17 + $0x248] sm:$0xff]  ;;  %v9329_v49 = vcombine.low %v3502_v34, %v3510_v35 }
0x12a6   :  { %v9331_v50 = vcombine.low %v3503_v37, %v3511_v38 }
0x12ab   :  { %9945 = vmatpush3.bf16.xpose.msra.mxu0 %v10737_v39  ;;  %v9345_v39 = vcombine.low %v3518_v8, %v3526_v12  ;;  %v3446_v8 = vld [vmem:[#allocation17 + $0x40] sm:$0xff]  ;;  %v3439_v12 = vld [vmem:[#allocation17 + $0x8] sm:$0xff] }
0x12ac   :  { %9963 = vmatpush3.bf16.xpose.msra.mxu1 %v10738_v40  ;;  %9946 = vmatprep.subr.bf16.mxu0 %v10739_v42  ;;  %v9330_v42 = vcombine.high %v3502_v34, %v3510_v35 }
0x12ad   :  { %9964 = vmatprep.subr.bf16.mxu1 %v10740_v43  ;;  %v9332_v43 = vcombine.high %v3503_v37, %v3511_v38 }
0x12b3   :  { %9947 = vmatpush3.bf16.xpose.msra.mxu0 %v10741_v44  ;;  %v3486_v44 = vld [vmem:[#allocation17 + $0x180] sm:$0xff] }
0x12b4   :  { %9965 = vmatpush3.bf16.xpose.msra.mxu1 %v10742_v45  ;;  %9948 = vmatprep.subr.bf16.mxu0 %v10743_v46  ;;  %v3494_v45 = vld [vmem:[#allocation17 + $0x1c0] sm:$0xff]  ;;  %v3487_v46 = vld [vmem:[#allocation17 + $0x188] sm:$0xff] }
0x12b5   :  { %9966 = vmatprep.subr.bf16.mxu1 %v10744_v48  ;;  %v3495_v48 = vld [vmem:[#allocation17 + $0x1c8] sm:$0xff]  ;;  %v9314_v52 = vcombine.high %v3486_v44, %v3494_v45  ;;  %v9313_v47 = vcombine.low %v3486_v44, %v3494_v45  ;;  %v3537_v44 = vld [vmem:[#allocation17 + $0x318] sm:$0xff] }
0x12b6   :  { %v9316_v53 = vcombine.high %v3487_v46, %v3495_v48  ;;  %v9315_v59 = vcombine.low %v3487_v46, %v3495_v48 }
0x12bb   :  { %9949 = vmatpush3.bf16.xpose.msra.mxu0 %v10745_v54  ;;  %v3470_v54 = vld [vmem:[#allocation17 + $0x100] sm:$0xff] }
0x12bc   :  { %9967 = vmatpush3.bf16.xpose.msra.mxu1 %v10746_v55  ;;  %4213 = vmatprep.subr.bf16.mxu0 %v9378_v56  ;;  %v3478_v55 = vld [vmem:[#allocation17 + $0x140] sm:$0xff]  ;;  %v3471_v56 = vld [vmem:[#allocation17 + $0x108] sm:$0xff] }
0x12bd   :  { %4254 = vmatprep.subr.bf16.mxu1 %v9380_v57  ;;  %v3479_v57 = vld [vmem:[#allocation17 + $0x148] sm:$0xff]  ;;  %v9298_v60 = vcombine.high %v3470_v54, %v3478_v55 }
0x12be   :  { %v9300_v17 = vcombine.high %v3471_v56, %v3479_v57 }
0x12c2   :  { %9951 = vmatmul.mubr.bf16.vlgmr.msra.gmra.mxu0 %v11892_v11  ;;  %v11919_v2 = vpop.f32.mrf.mxu0  ;;  %v11921_v3 = vpop.f32.mrf.mxu1 }
0x12c3   :  { %9969 = vmatmul.mubr.bf16.vlgmr.msra.gmra.mxu1 %v11892_v11  ;;  %4214 = vmatpush1.bf16.xpose.msra.mxu0 %v9377_v19  ;;  %v3527_v11 = vld [vmem:[#allocation17 + $0x2c8] sm:$0xff]  ;;  %v3462_v19 = vld [vmem:[#allocation17 + $0xc0] sm:$0xff] }
0x12c4   :  { %4255 = vmatpush1.bf16.xpose.msra.mxu1 %v9379_v61  ;;  %v3082_v7 = vpop.f32.mrf.mxu0  ;;  %v3125_v6 = vpop.f32.mrf.mxu1  ;;  %4215 = vmatprep.subr.bf16.mxu0 %v9362_v62  ;;  %v9348_v25 = vcombine.high %v3519_v14, %v3527_v11  ;;  %v9347_v40 = vcombine.low %v3519_v14, %v3527_v11  ;;  %v3455_v61 = vld [vmem:[#allocation17 + $0x88] sm:$0xff]  ;;  %v9281_v11 = vcombine.low %v3454_v51, %v3462_v19 }
0x12c5   :  { %4256 = vmatprep.subr.bf16.mxu1 %v9364_v63  ;;  %v3083_v15 = vadd.f32 %v3082_v7, %v2205_v4  ;;  %v3126_v41 = vadd.f32 %v3125_v6, %v2213_v5  ;;  %v3463_v62 = vld [vmem:[#allocation17 + $0xc8] sm:$0xff]  ;;  %v9297_v63 = vcombine.low %v3470_v54, %v3478_v55  ;;  %v3438_v6 = vld [vmem:[#allocation17] sm:$0xff] }
0x12c6   :  { %v11928_v36 = vpop.f32.mrf.mxu0  ;;  %v11930_v13 = vpop.f32.mrf.mxu1  ;;  %v9284_v7 = vcombine.high %v3455_v61, %v3463_v62  ;;  %v3447_v14 = vld [vmem:[#allocation17 + $0x48] sm:$0xff] }
0x12c7   :  { %v3391_v26 = vmax.f32 %v3083_v15, 0.0  ;;  %v3393_v27 = vmax.f32 %v3126_v41, 0.0  ;;  %v9283_v15 = vcombine.low %v3455_v61, %v3463_v62  ;;  %v9266_v41 = vcombine.high %v3438_v6, %v3446_v8  ;;  %v3529_v61 = vld [vmem:[#allocation17 + $0x2d8] sm:$0xff] }
0x12c8   :  { %v3086_v18 = vpop.f32.mrf.mxu0  ;;  %v3129_v20 = vpop.f32.mrf.mxu1 }
0x12c9   :  { %v3087_v23 = vadd.f32 %v3086_v18, %v2205_v4  ;;  %v3130_v24 = vadd.f32 %v3129_v20, %v2213_v5  ;;  %v9299_v4 = vcombine.low %v3471_v56, %v3479_v57  ;;  %v9282_v5 = vcombine.high %v3454_v51, %v3462_v19  ;;  %v3521_v19 = vld [vmem:[#allocation17 + $0x298] sm:$0xff] }
0x12ca   :  { %v11933_v18 = vsub.s32 0, %v11908_v58  ;;  %v11936_v20 = vsub.s32 2, %v11908_v58 }
0x12cb   :  { %v3407_v28 = vmax.f32 %v3087_v23, 0.0  ;;  %v3409_v29 = vmax.f32 %v3130_v24, 0.0  ;;  %4216 = vmatpush1.bf16.xpose.msra.mxu0 %v9361_v16  ;;  %v9268_v16 = vcombine.high %v3439_v12, %v3447_v14  ;;  %v3553_v24 = vld [vmem:[#allocation17 + $0x398] sm:$0xff] }
0x12cc   :  { %4257 = vmatpush1.bf16.xpose.msra.mxu1 %v9363_v21  ;;  %4217 = vmatprep.subr.bf16.mxu0 %v9346_v22  ;;  %v3552_v21 = vld [vmem:[#allocation17 + $0x390] sm:$0xff]  ;;  %v2201_v23 = vrot.slane %v11917_v1, %v11933_v18 }
0x12cd   :  { %v3423_v30 = vpack.c.bf16 %v3407_v28, %v3391_v26  ;;  %v3425_v32 = vpack.c.bf16 %v3409_v29, %v3393_v27  ;;  %4258 = vmatprep.subr.bf16.mxu1 %v9348_v25  ;;  %v3560_v22 = vld [vmem:[#allocation17 + $0x3d0] sm:$0xff]  ;;  %v3561_v25 = vld [vmem:[#allocation17 + $0x3d8] sm:$0xff]  ;;  %v2209_v26 = vrot.slane %v11917_v1, %v11936_v20  ;;  %v9265_v27 = vcombine.low %v3438_v6, %v3446_v8 }
0x12ce   :  { %v3085_v28 = vadd.f32 %v11928_v36, %v2201_v23  ;;  %v9267_v29 = vcombine.low %v3439_v12, %v3447_v14  ;;  %v9384_v34 = vcombine.high %v3553_v24, %v3561_v25  ;;  %v3081_v35 = vadd.f32 %v11919_v2, %v2201_v23  ;;  %v3545_v36 = vld [vmem:[#allocation17 + $0x358] sm:$0xff] }
0x12cf   :  { %4245 = vmatprep.mubr.bf16.mxu0 %v3423_v30  ;;  %4286 = vmatprep.mubr.bf16.mxu1 %v3425_v32  ;;  %v9382_v30 = vcombine.high %v3552_v21, %v3560_v22  ;;  %v3128_v32 = vadd.f32 %v11930_v13, %v2209_v26  ;;  %v3124_v37 = vadd.f32 %v11921_v3, %v2209_v26  ;;  %v11947_v13 = vsub.s32 5, %v11908_v58  ;;  %v3505_v26 = vld [vmem:[#allocation17 + $0x218] sm:$0xff] }
0x12d0   :  { %v3406_v38 = vmax.f32 %v3085_v28, 0.0  ;;  %v9381_v46 = vcombine.low %v3552_v21, %v3560_v22  ;;  %v11950_v2 = vsub.s32 7, %v11908_v58  ;;  %v9383_v48 = vcombine.low %v3553_v24, %v3561_v25  ;;  %v3504_v24 = vld [vmem:[#allocation17 + $0x210] sm:$0xff] }
0x12d1   :  { %v3392_v45 = vmax.f32 %v3124_v37, 0.0  ;;  %v2221_v55 = vrot.slane %v11917_v1, %v11947_v13  ;;  %v9367_v6 = vcombine.low %v3537_v44, %v3545_v36  ;;  %v3512_v25 = vld [vmem:[#allocation17 + $0x250] sm:$0xff]  ;;  %v3489_v37 = vld [vmem:[#allocation17 + $0x198] sm:$0xff] }
0x12d2   :  { %v2229_v56 = vrot.slane %v11917_v1, %v11950_v2 }
0x12d3   :  { %4218 = vmatpush1.bf16.xpose.msra.mxu0 %v9345_v39  ;;  %v3408_v39 = vmax.f32 %v3128_v32, 0.0 }
0x12d4   :  { %4259 = vmatpush1.bf16.xpose.msra.mxu1 %v9347_v40  ;;  %4219 = vmatprep.subr.bf16.mxu0 %v9330_v42  ;;  %v3536_v40 = vld [vmem:[#allocation17 + $0x310] sm:$0xff] }
0x12d5   :  { %4260 = vmatprep.subr.bf16.mxu1 %v9332_v43  ;;  %v3544_v42 = vld [vmem:[#allocation17 + $0x350] sm:$0xff]  ;;  %v3390_v43 = vmax.f32 %v3081_v35, 0.0 }
0x12d6   :  { %v3496_v35 = vld [vmem:[#allocation17 + $0x1d0] sm:$0xff] }
0x12d7   :  { %v3422_v3 = vpack.c.bf16 %v3406_v38, %v3390_v43  ;;  %v3497_v38 = vld [vmem:[#allocation17 + $0x1d8] sm:$0xff] }
0x12d8   :  { %v9320_v43 = vcombine.high %v3489_v37, %v3497_v38 }
0x12db   :  { %4220 = vmatpush1.bf16.xpose.msra.mxu0 %v9329_v49  ;;  %v9366_v49 = vcombine.high %v3536_v40, %v3544_v42 }
0x12dc   :  { %4261 = vmatpush1.bf16.xpose.msra.mxu1 %v9331_v50  ;;  %4221 = vmatprep.subr.bf16.mxu0 %v9314_v52  ;;  %v3424_v50 = vpack.c.bf16 %v3408_v39, %v3392_v45  ;;  %v9368_v52 = vcombine.high %v3537_v44, %v3545_v36  ;;  %v9333_v39 = vcombine.low %v3504_v24, %v3512_v25  ;;  %v3472_v44 = vld [vmem:[#allocation17 + $0x110] sm:$0xff]  ;;  %v3473_v45 = vld [vmem:[#allocation17 + $0x118] sm:$0xff] }
0x12dd   :  { %4262 = vmatprep.subr.bf16.mxu1 %v9316_v53  ;;  %v3480_v36 = vld [vmem:[#allocation17 + $0x150] sm:$0xff] }
0x12e3   :  { %4222 = vmatpush1.bf16.xpose.msra.mxu0 %v9313_v47 }
0x12e4   :  { %4263 = vmatpush1.bf16.xpose.msra.mxu1 %v9315_v59  ;;  %4223 = vmatprep.subr.bf16.mxu0 %v9298_v60  ;;  %v3520_v59 = vld [vmem:[#allocation17 + $0x290] sm:$0xff] }
0x12e5   :  { %4264 = vmatprep.subr.bf16.mxu1 %v9300_v17  ;;  %v3528_v60 = vld [vmem:[#allocation17 + $0x2d0] sm:$0xff] }
0x12e6   :  { %v9350_v8 = vcombine.high %v3520_v59, %v3528_v60  ;;  %v9349_v28 = vcombine.low %v3520_v59, %v3528_v60 }
0x12eb   :  { %4224 = vmatpush1.bf16.xpose.msra.mxu0 %v9297_v63 }
0x12ec   :  { %4265 = vmatpush1.bf16.xpose.msra.mxu1 %v9299_v4  ;;  %4225 = vmatprep.subr.bf16.mxu0 %v9282_v5  ;;  %v9365_v4 = vcombine.low %v3536_v40, %v3544_v42 }
0x12ed   :  { %4266 = vmatprep.subr.bf16.mxu1 %v9284_v7 }
0x12f3   :  { %4226 = vmatpush1.bf16.xpose.msra.mxu0 %v9281_v11  ;;  %v9352_v11 = vcombine.high %v3521_v19, %v3529_v61 }
0x12f4   :  { %4267 = vmatpush1.bf16.xpose.msra.mxu1 %v9283_v15  ;;  %4227 = vmatprep.subr.bf16.mxu0 %v9266_v41 }
0x12f5   :  { %4268 = vmatprep.subr.bf16.mxu1 %v9268_v16 }
0x12fb   :  { %4228 = vmatpush1.bf16.xpose.msra.mxu0 %v9265_v27  ;;  %v3513_v27 = vld [vmem:[#allocation17 + $0x258] sm:$0xff] }
0x12fc   :  { %4269 = vmatpush1.bf16.xpose.msra.mxu1 %v9267_v29  ;;  %4295 = vmatprep.subr.bf16.mxu0 %v9382_v30  ;;  %v9351_v29 = vcombine.low %v3521_v19, %v3529_v61  ;;  %v9334_v30 = vcombine.high %v3504_v24, %v3512_v25  ;;  %v9336_v32 = vcombine.high %v3505_v26, %v3513_v27  ;;  %v3440_v61 = vld [vmem:[#allocation17 + $0x10] sm:$0xff] }
0x12fd   :  { %4336 = vmatprep.subr.bf16.mxu1 %v9384_v34  ;;  %v3488_v34 = vld [vmem:[#allocation17 + $0x190] sm:$0xff]  ;;  %v9335_v40 = vcombine.low %v3505_v26, %v3513_v27 }
0x12fe   :  { %v9318_v42 = vcombine.high %v3488_v34, %v3496_v35 }
0x1302   :  { %v11952_v53 = vpop.f32.mrf.mxu0  ;;  %v11954_v54 = vpop.f32.mrf.mxu1  ;;  %4246 = vmatmul.mubr.bf16.vlgmr.msra.gmra.mxu0 %v3422_v3  ;;  %v9317_v3 = vcombine.low %v3488_v34, %v3496_v35  ;;  %v3538_v34 = vld [vmem:[#allocation17 + $0x320] sm:$0xff] }
0x1303   :  { %4287 = vmatmul.mubr.bf16.vlgmr.msra.gmra.mxu1 %v3424_v50  ;;  %4296 = vmatpush1.bf16.xpose.msra.mxu0 %v9381_v46  ;;  %v3481_v46 = vld [vmem:[#allocation17 + $0x158] sm:$0xff] }
0x1304   :  { %4337 = vmatpush1.bf16.xpose.msra.mxu1 %v9383_v48  ;;  %v3168_v57 = vpop.f32.mrf.mxu0  ;;  %v3211_v47 = vpop.f32.mrf.mxu1  ;;  %4297 = vmatprep.subr.bf16.mxu0 %v9366_v49  ;;  %v9319_v48 = vcombine.low %v3489_v37, %v3497_v38  ;;  %v9302_v49 = vcombine.high %v3472_v44, %v3480_v36  ;;  %v9304_v50 = vcombine.high %v3473_v45, %v3481_v46  ;;  %v3539_v37 = vld [vmem:[#allocation17 + $0x328] sm:$0xff] }
0x1305   :  { %4338 = vmatprep.subr.bf16.mxu1 %v9368_v52  ;;  %v3169_v62 = vadd.f32 %v3168_v57, %v2221_v55  ;;  %v3212_v63 = vadd.f32 %v3211_v47, %v2229_v56  ;;  %v3456_v52 = vld [vmem:[#allocation17 + $0x90] sm:$0xff]  ;;  %v3465_v57 = vld [vmem:[#allocation17 + $0xd8] sm:$0xff]  ;;  %v9301_v47 = vcombine.low %v3472_v44, %v3480_v36  ;;  %v9303_v59 = vcombine.low %v3473_v45, %v3481_v46  ;;  %v11978_v44 = vld [vmem:[#allocation16 + $0x8] sm:$0xff] }
0x1306   :  { %v11960_v17 = vpop.f32.mrf.mxu0  ;;  %v11962_v51 = vpop.f32.mrf.mxu1  ;;  %v2237_v45 = vrot.slane %v11978_v44, %v11911_v31 }
0x1307   :  { %v3395_v15 = vmax.f32 %v3169_v62, 0.0  ;;  %v3397_v41 = vmax.f32 %v3212_v63, 0.0  ;;  %v3448_v62 = vld [vmem:[#allocation17 + $0x50] sm:$0xff]  ;;  %v3441_v63 = vld [vmem:[#allocation17 + $0x18] sm:$0xff] }
0x1308   :  { %v3172_v5 = vpop.f32.mrf.mxu0  ;;  %v3215_v7 = vpop.f32.mrf.mxu1 }
0x1309   :  { %v3173_v12 = vadd.f32 %v3172_v5, %v2221_v55  ;;  %v3216_v14 = vadd.f32 %v3215_v7, %v2229_v56  ;;  %v3464_v55 = vld [vmem:[#allocation17 + $0xd0] sm:$0xff]  ;;  %v3457_v56 = vld [vmem:[#allocation17 + $0x98] sm:$0xff] }
0x130a   :  { %v9286_v60 = vcombine.high %v3456_v52, %v3464_v55  ;;  %v9288_v19 = vcombine.high %v3457_v56, %v3465_v57  ;;  %v9285_v5 = vcombine.low %v3456_v52, %v3464_v55  ;;  %v9287_v7 = vcombine.low %v3457_v56, %v3465_v57  ;;  %v3523_v55 = vld [vmem:[#allocation17 + $0x2a8] sm:$0xff] }
0x130b   :  { %v3411_v16 = vmax.f32 %v3173_v12, 0.0  ;;  %v3413_v21 = vmax.f32 %v3216_v14, 0.0  ;;  %4298 = vmatpush1.bf16.xpose.msra.mxu0 %v9365_v4  ;;  %v3449_v4 = vld [vmem:[#allocation17 + $0x58] sm:$0xff]  ;;  %v11965_v12 = vsub.s32 4, %v11908_v58  ;;  %v11968_v14 = vsub.s32 6, %v11908_v58  ;;  %v3531_v56 = vld [vmem:[#allocation17 + $0x2e8] sm:$0xff] }
0x130c   :  { %4339 = vmatpush1.bf16.xpose.msra.mxu1 %v9367_v6  ;;  %4299 = vmatprep.subr.bf16.mxu0 %v9350_v8  ;;  %v9270_v6 = vcombine.high %v3440_v61, %v3448_v62  ;;  %v9272_v8 = vcombine.high %v3441_v63, %v3449_v4  ;;  %v9271_v25 = vcombine.low %v3441_v63, %v3449_v4 }
0x130d   :  { %v3427_v22 = vpack.c.bf16 %v3411_v16, %v3395_v15  ;;  %v3429_v23 = vpack.c.bf16 %v3413_v21, %v3397_v41  ;;  %4340 = vmatprep.subr.bf16.mxu1 %v9352_v11  ;;  %v3554_v11 = vld [vmem:[#allocation17 + $0x3a0] sm:$0xff]  ;;  %v2217_v41 = vrot.slane %v11917_v1, %v11965_v12  ;;  %v3555_v16 = vld [vmem:[#allocation17 + $0x3a8] sm:$0xff] }
0x130e   :  { %v3562_v15 = vld [vmem:[#allocation17 + $0x3e0] sm:$0xff]  ;;  %v3563_v21 = vld [vmem:[#allocation17 + $0x3e8] sm:$0xff] }
0x130f   :  { %4327 = vmatprep.mubr.bf16.mxu0 %v3427_v22  ;;  %4368 = vmatprep.mubr.bf16.mxu1 %v3429_v23  ;;  %v2225_v22 = vrot.slane %v11917_v1, %v11968_v14  ;;  %v9269_v23 = vcombine.low %v3440_v61, %v3448_v62  ;;  %v3171_v24 = vadd.f32 %v11960_v17, %v2217_v41  ;;  %v3546_v1 = vld [vmem:[#allocation17 + $0x360] sm:$0xff]  ;;  %v3547_v17 = vld [vmem:[#allocation17 + $0x368] sm:$0xff] }
0x1310   :  { %v9386_v58 = vcombine.high %v3554_v11, %v3562_v15  ;;  %v9388_v27 = vcombine.high %v3555_v16, %v3563_v21  ;;  %v9371_v61 = vcombine.low %v3539_v37, %v3547_v17 }
0x1311   :  { %v3214_v26 = vadd.f32 %v11962_v51, %v2225_v22  ;;  %v9387_v51 = vcombine.low %v3555_v16, %v3563_v21  ;;  %v3506_v16 = vld [vmem:[#allocation17 + $0x220] sm:$0xff] }
0x1312   :  { %v3514_v21 = vld [vmem:[#allocation17 + $0x260] sm:$0xff] }
0x1313   :  { %4300 = vmatpush1.bf16.xpose.msra.mxu0 %v9349_v28  ;;  %v3167_v28 = vadd.f32 %v11952_v53, %v2217_v41  ;;  %v9372_v53 = vcombine.high %v3539_v37, %v3547_v17  ;;  %v3474_v17 = vld [vmem:[#allocation17 + $0x120] sm:$0xff] }
0x1314   :  { %4341 = vmatpush1.bf16.xpose.msra.mxu1 %v9351_v29  ;;  %4301 = vmatprep.subr.bf16.mxu0 %v9334_v30  ;;  %v3210_v29 = vadd.f32 %v11954_v54, %v2225_v22  ;;  %v3410_v30 = vmax.f32 %v3171_v24, 0.0  ;;  %v3515_v24 = vld [vmem:[#allocation17 + $0x268] sm:$0xff] }
0x1315   :  { %4342 = vmatprep.subr.bf16.mxu1 %v9336_v32  ;;  %v3412_v32 = vmax.f32 %v3214_v26, 0.0  ;;  %v3394_v35 = vmax.f32 %v3167_v28, 0.0  ;;  %v9338_v26 = vcombine.high %v3506_v16, %v3514_v21  ;;  %v3490_v28 = vld [vmem:[#allocation17 + $0x1a0] sm:$0xff] }
0x1316   :  { %v3396_v38 = vmax.f32 %v3210_v29, 0.0  ;;  %v3498_v29 = vld [vmem:[#allocation17 + $0x1e0] sm:$0xff] }
0x131b   :  { %4302 = vmatpush1.bf16.xpose.msra.mxu0 %v9333_v39  ;;  %v9385_v39 = vcombine.low %v3554_v11, %v3562_v15 }
0x131c   :  { %4343 = vmatpush1.bf16.xpose.msra.mxu1 %v9335_v40  ;;  %4303 = vmatprep.subr.bf16.mxu0 %v9318_v42  ;;  %v3426_v40 = vpack.c.bf16 %v3410_v30, %v3394_v35  ;;  %v9370_v42 = vcombine.high %v3538_v34, %v3546_v1  ;;  %v3491_v30 = vld [vmem:[#allocation17 + $0x1a8] sm:$0xff]  ;;  %v9322_v35 = vcombine.high %v3490_v28, %v3498_v29 }
0x131d   :  { %4344 = vmatprep.subr.bf16.mxu1 %v9320_v43  ;;  %v3428_v43 = vpack.c.bf16 %v3412_v32, %v3396_v38  ;;  %v3499_v32 = vld [vmem:[#allocation17 + $0x1e8] sm:$0xff]  ;;  %v3482_v38 = vld [vmem:[#allocation17 + $0x160] sm:$0xff] }
0x131e   :  { %v9324_v37 = vcombine.high %v3491_v30, %v3499_v32 }
0x1323   :  { %4304 = vmatpush1.bf16.xpose.msra.mxu0 %v9317_v3  ;;  %v2245_v3 = vrot.slane %v11978_v44, %v11914_v33 }
0x1324   :  { %4345 = vmatpush1.bf16.xpose.msra.mxu1 %v9319_v48  ;;  %4305 = vmatprep.subr.bf16.mxu0 %v9302_v49  ;;  %v3522_v49 = vld [vmem:[#allocation17 + $0x2a0] sm:$0xff] }
0x1325   :  { %4346 = vmatprep.subr.bf16.mxu1 %v9304_v50  ;;  %v3530_v50 = vld [vmem:[#allocation17 + $0x2e0] sm:$0xff] }
0x1326   :  { %v9354_v62 = vcombine.high %v3522_v49, %v3530_v50 }
0x132b   :  { %4306 = vmatpush1.bf16.xpose.msra.mxu0 %v9301_v47 }
0x132c   :  { %4347 = vmatpush1.bf16.xpose.msra.mxu1 %v9303_v59  ;;  %4307 = vmatprep.subr.bf16.mxu0 %v9286_v60  ;;  %v9369_v59 = vcombine.low %v3538_v34, %v3546_v1  ;;  %v9337_v34 = vcombine.low %v3506_v16, %v3514_v21 }
0x132d   :  { %4348 = vmatprep.subr.bf16.mxu1 %v9288_v19 }
0x1333   :  { %4308 = vmatpush1.bf16.xpose.msra.mxu0 %v9285_v5  ;;  %v9356_v5 = vcombine.high %v3523_v55, %v3531_v56 }
0x1334   :  { %4349 = vmatpush1.bf16.xpose.msra.mxu1 %v9287_v7  ;;  %4309 = vmatprep.subr.bf16.mxu0 %v9270_v6 }
0x1335   :  { %4350 = vmatprep.subr.bf16.mxu1 %v9272_v8 }
0x133b   :  { %4310 = vmatpush1.bf16.xpose.msra.mxu0 %v9269_v23  ;;  %v3507_v23 = vld [vmem:[#allocation17 + $0x228] sm:$0xff] }
0x133c   :  { %4351 = vmatpush1.bf16.xpose.msra.mxu1 %v9271_v25  ;;  %4377 = vmatprep.subr.bf16.mxu0 %v9386_v58  ;;  %v9353_v25 = vcombine.low %v3522_v49, %v3530_v50  ;;  %v9355_v58 = vcombine.low %v3523_v55, %v3531_v56  ;;  %v9339_v1 = vcombine.low %v3507_v23, %v3515_v24 }
0x133d   :  { %4418 = vmatprep.subr.bf16.mxu1 %v9388_v27  ;;  %v9340_v27 = vcombine.high %v3507_v23, %v3515_v24  ;;  %v9305_v49 = vcombine.low %v3474_v17, %v3482_v38 }
0x1342   :  { %v11980_v54 = vpop.f32.mrf.mxu0  ;;  %4328 = vmatmul.mubr.bf16.vlgmr.msra.gmra.mxu0 %v3426_v40  ;;  %v3483_v40 = vld [vmem:[#allocation17 + $0x168] sm:$0xff] }
0x1343   :  { %v11982_v36 = vpop.f32.mrf.mxu1  ;;  %4369 = vmatmul.mubr.bf16.vlgmr.msra.gmra.mxu1 %v3428_v43  ;;  %4378 = vmatpush1.bf16.xpose.msra.mxu0 %v9385_v39  ;;  %v3475_v39 = vld [vmem:[#allocation17 + $0x128] sm:$0xff]  ;;  %v9306_v43 = vcombine.high %v3474_v17, %v3482_v38 }
0x1344   :  { %4419 = vmatpush1.bf16.xpose.msra.mxu1 %v9387_v51  ;;  %v3254_v46 = vpop.f32.mrf.mxu0  ;;  %4379 = vmatprep.subr.bf16.mxu0 %v9370_v42  ;;  %v9321_v51 = vcombine.low %v3490_v28, %v3498_v29  ;;  %v9323_v42 = vcombine.low %v3491_v30, %v3499_v32  ;;  %v9307_v50 = vcombine.low %v3475_v39, %v3483_v40  ;;  %v3540_v28 = vld [vmem:[#allocation17 + $0x330] sm:$0xff]  ;;  %v3541_v32 = vld [vmem:[#allocation17 + $0x338] sm:$0xff] }
0x1345   :  { %v3297_v48 = vpop.f32.mrf.mxu1  ;;  %4420 = vmatprep.subr.bf16.mxu1 %v9372_v53  ;;  %v3255_v57 = vadd.f32 %v3254_v46, %v2237_v45  ;;  %v9308_v53 = vcombine.high %v3475_v39, %v3483_v40  ;;  %v3466_v46 = vld [vmem:[#allocation17 + $0xe0] sm:$0xff]  ;;  %v3548_v29 = vld [vmem:[#allocation17 + $0x370] sm:$0xff]  ;;  %v2253_v39 = vrot.slane %v11978_v44, %v11947_v13 }
0x1346   :  { %v11988_v52 = vpop.f32.mrf.mxu0  ;;  %v3298_v60 = vadd.f32 %v3297_v48, %v2245_v3  ;;  %v3467_v48 = vld [vmem:[#allocation17 + $0xe8] sm:$0xff] }
0x1347   :  { %v11990_v47 = vpop.f32.mrf.mxu1  ;;  %v3399_v6 = vmax.f32 %v3255_v57, 0.0  ;;  %v3442_v57 = vld [vmem:[#allocation17 + $0x20] sm:$0xff] }
0x1348   :  { %v3258_v19 = vpop.f32.mrf.mxu0  ;;  %v3401_v11 = vmax.f32 %v3298_v60, 0.0  ;;  %v3443_v60 = vld [vmem:[#allocation17 + $0x28] sm:$0xff] }
0x1349   :  { %v3259_v63 = vadd.f32 %v3258_v19, %v2237_v45  ;;  %v3301_v4 = vpop.f32.mrf.mxu1  ;;  %v3458_v45 = vld [vmem:[#allocation17 + $0xa0] sm:$0xff]  ;;  %v3451_v19 = vld [vmem:[#allocation17 + $0x68] sm:$0xff] }
0x134a   :  { %v3302_v7 = vadd.f32 %v3301_v4, %v2245_v3  ;;  %v3459_v3 = vld [vmem:[#allocation17 + $0xa8] sm:$0xff]  ;;  %v9290_v55 = vcombine.high %v3458_v45, %v3466_v46  ;;  %v9276_v4 = vcombine.high %v3443_v60, %v3451_v19  ;;  %v9275_v21 = vcombine.low %v3443_v60, %v3451_v19 }
0x134b   :  { %v3415_v8 = vmax.f32 %v3259_v63, 0.0  ;;  %4380 = vmatpush1.bf16.xpose.msra.mxu0 %v9369_v59  ;;  %v9292_v56 = vcombine.high %v3459_v3, %v3467_v48  ;;  %v3450_v59 = vld [vmem:[#allocation17 + $0x60] sm:$0xff] }
0x134c   :  { %v3417_v15 = vmax.f32 %v3302_v7, 0.0  ;;  %4421 = vmatpush1.bf16.xpose.msra.mxu1 %v9371_v61  ;;  %4381 = vmatprep.subr.bf16.mxu0 %v9354_v62  ;;  %v9289_v61 = vcombine.low %v3458_v45, %v3466_v46  ;;  %v9291_v62 = vcombine.low %v3459_v3, %v3467_v48  ;;  %v9274_v63 = vcombine.high %v3442_v57, %v3450_v59  ;;  %v3564_v7 = vld [vmem:[#allocation17 + $0x3f0] sm:$0xff]  ;;  %v3525_v46 = vld [vmem:[#allocation17 + $0x2b8] sm:$0xff] }
0x134d   :  { %v3431_v41 = vpack.c.bf16 %v3415_v8, %v3399_v6  ;;  %4422 = vmatprep.subr.bf16.mxu1 %v9356_v5  ;;  %v3556_v5 = vld [vmem:[#allocation17 + $0x3b0] sm:$0xff]  ;;  %v2233_v6 = vrot.slane %v11978_v44, %v11933_v18  ;;  %v3557_v8 = vld [vmem:[#allocation17 + $0x3b8] sm:$0xff] }
0x134e   :  { %v3433_v22 = vpack.c.bf16 %v3417_v15, %v3401_v11  ;;  %v3565_v11 = vld [vmem:[#allocation17 + $0x3f8] sm:$0xff]  ;;  %v2241_v15 = vrot.slane %v11978_v44, %v11936_v20 }
0x134f   :  { %4409 = vmatprep.mubr.bf16.mxu0 %v3431_v41  ;;  %v9273_v41 = vcombine.low %v3442_v57, %v3450_v59  ;;  %v3257_v16 = vadd.f32 %v11988_v52, %v2233_v6  ;;  %v9392_v24 = vcombine.high %v3557_v8, %v3565_v11  ;;  %v3549_v52 = vld [vmem:[#allocation17 + $0x378] sm:$0xff] }
0x1350   :  { %4450 = vmatprep.mubr.bf16.mxu1 %v3433_v22  ;;  %v9390_v22 = vcombine.high %v3556_v5, %v3564_v7  ;;  %v3300_v23 = vadd.f32 %v11990_v47, %v2241_v15  ;;  %v9391_v47 = vcombine.low %v3557_v8, %v3565_v11  ;;  %v3533_v3 = vld [vmem:[#allocation17 + $0x2f8] sm:$0xff]  ;;  %v9375_v57 = vcombine.low %v3541_v32, %v3549_v52  ;;  %v3508_v8 = vld [vmem:[#allocation17 + $0x230] sm:$0xff] }
0x1351   :  { %v3516_v11 = vld [vmem:[#allocation17 + $0x270] sm:$0xff] }
0x1353   :  { %4382 = vmatpush1.bf16.xpose.msra.mxu0 %v9353_v25  ;;  %v3253_v25 = vadd.f32 %v11980_v54, %v2233_v6  ;;  %v9376_v54 = vcombine.high %v3541_v32, %v3549_v52  ;;  %v3476_v52 = vld [vmem:[#allocation17 + $0x130] sm:$0xff] }
0x1354   :  { %4423 = vmatpush1.bf16.xpose.msra.mxu1 %v9355_v58  ;;  %4383 = vmatprep.subr.bf16.mxu0 %v9338_v26  ;;  %v3296_v58 = vadd.f32 %v11982_v36, %v2241_v15  ;;  %v3414_v26 = vmax.f32 %v3257_v16, 0.0  ;;  %v3517_v16 = vld [vmem:[#allocation17 + $0x278] sm:$0xff] }
0x1355   :  { %4424 = vmatprep.subr.bf16.mxu1 %v9340_v27  ;;  %v3416_v27 = vmax.f32 %v3300_v23, 0.0  ;;  %v3398_v30 = vmax.f32 %v3253_v25, 0.0  ;;  %v9342_v23 = vcombine.high %v3508_v8, %v3516_v11  ;;  %v3492_v25 = vld [vmem:[#allocation17 + $0x1b0] sm:$0xff] }
0x135b   :  { %4384 = vmatpush1.bf16.xpose.msra.mxu0 %v9337_v34  ;;  %v3400_v34 = vmax.f32 %v3296_v58, 0.0  ;;  %v3500_v58 = vld [vmem:[#allocation17 + $0x1f0] sm:$0xff] }
0x135c   :  { %4425 = vmatpush1.bf16.xpose.msra.mxu1 %v9339_v1  ;;  %4385 = vmatprep.subr.bf16.mxu0 %v9322_v35  ;;  %v9389_v1 = vcombine.low %v3556_v5, %v3564_v7  ;;  %v3430_v35 = vpack.c.bf16 %v3414_v26, %v3398_v30  ;;  %v3493_v26 = vld [vmem:[#allocation17 + $0x1b8] sm:$0xff]  ;;  %v9326_v30 = vcombine.high %v3492_v25, %v3500_v58 }
0x135d   :  { %4426 = vmatprep.subr.bf16.mxu1 %v9324_v37  ;;  %v9374_v37 = vcombine.high %v3540_v28, %v3548_v29  ;;  %v3432_v17 = vpack.c.bf16 %v3416_v27, %v3400_v34  ;;  %v3501_v27 = vld [vmem:[#allocation17 + $0x1f8] sm:$0xff]  ;;  %v3484_v34 = vld [vmem:[#allocation17 + $0x170] sm:$0xff] }
0x135e   :  { %v9328_v32 = vcombine.high %v3493_v26, %v3501_v27 }
0x1363   :  { %4386 = vmatpush1.bf16.xpose.msra.mxu0 %v9321_v51  ;;  %v2261_v51 = vrot.slane %v11978_v44, %v11950_v2 }
0x1364   :  { %4427 = vmatpush1.bf16.xpose.msra.mxu1 %v9323_v42  ;;  %4387 = vmatprep.subr.bf16.mxu0 %v9306_v43  ;;  %v3524_v43 = vld [vmem:[#allocation17 + $0x2b0] sm:$0xff] }
0x1365   :  { %4428 = vmatprep.subr.bf16.mxu1 %v9308_v53  ;;  %v3532_v53 = vld [vmem:[#allocation17 + $0x2f0] sm:$0xff] }
0x1366   :  { %v9358_v59 = vcombine.high %v3524_v43, %v3532_v53 }
0x136b   :  { %4388 = vmatpush1.bf16.xpose.msra.mxu0 %v9305_v49 }
0x136c   :  { %4429 = vmatpush1.bf16.xpose.msra.mxu1 %v9307_v50  ;;  %4389 = vmatprep.subr.bf16.mxu0 %v9290_v55  ;;  %v9373_v50 = vcombine.low %v3540_v28, %v3548_v29  ;;  %v9341_v28 = vcombine.low %v3508_v8, %v3516_v11 }
0x136d   :  { %4430 = vmatprep.subr.bf16.mxu1 %v9292_v56 }
0x1373   :  { %4390 = vmatpush1.bf16.xpose.msra.mxu0 %v9289_v61  ;;  %v9360_v61 = vcombine.high %v3525_v46, %v3533_v3 }
0x1374   :  { %4431 = vmatpush1.bf16.xpose.msra.mxu1 %v9291_v62  ;;  %4391 = vmatprep.subr.bf16.mxu0 %v9274_v63 }
0x1375   :  { %4432 = vmatprep.subr.bf16.mxu1 %v9276_v4 }
0x137b   :  { %4392 = vmatpush1.bf16.xpose.msra.mxu0 %v9273_v41  ;;  %v3509_v41 = vld [vmem:[#allocation17 + $0x238] sm:$0xff] }
0x137c   :  { %4433 = vmatpush1.bf16.xpose.msra.mxu1 %v9275_v21  ;;  %4459 = vmatprep.subr.bf16.mxu0 %v9390_v22  ;;  %v9357_v21 = vcombine.low %v3524_v43, %v3532_v53  ;;  %v9359_v22 = vcombine.low %v3525_v46, %v3533_v3  ;;  %v9343_v29 = vcombine.low %v3509_v41, %v3517_v16 }
0x137d   :  { %4500 = vmatprep.subr.bf16.mxu1 %v9392_v24  ;;  %v9344_v24 = vcombine.high %v3509_v41, %v3517_v16  ;;  %v9309_v43 = vcombine.low %v3476_v52, %v3484_v34 }
0x1382   :  { %v12000_v38 = vpop.f32.mrf.mxu0  ;;  %4410 = vmatmul.mubr.bf16.vlgmr.msra.gmra.mxu0 %v3430_v35  ;;  %v3485_v35 = vld [vmem:[#allocation17 + $0x178] sm:$0xff] }
0x1383   :  { %v12002_v36 = vpop.f32.mrf.mxu1  ;;  %4451 = vmatmul.mubr.bf16.vlgmr.msra.gmra.mxu1 %v3432_v17  ;;  %4460 = vmatpush1.bf16.xpose.msra.mxu0 %v9389_v1  ;;  %v3477_v1 = vld [vmem:[#allocation17 + $0x138] sm:$0xff]  ;;  %v9310_v17 = vcombine.high %v3476_v52, %v3484_v34 }
0x1384   :  { %4501 = vmatpush1.bf16.xpose.msra.mxu1 %v9391_v47  ;;  %v3340_v40 = vpop.f32.mrf.mxu0  ;;  %4461 = vmatprep.subr.bf16.mxu0 %v9374_v37  ;;  %v9325_v47 = vcombine.low %v3492_v25, %v3500_v58  ;;  %v9327_v37 = vcombine.low %v3493_v26, %v3501_v27  ;;  %v9311_v53 = vcombine.low %v3477_v1, %v3485_v35 }
0x1385   :  { %v3383_v42 = vpop.f32.mrf.mxu1  ;;  %4502 = vmatprep.subr.bf16.mxu1 %v9376_v54  ;;  %v3341_v48 = vadd.f32 %v3340_v40, %v2253_v39  ;;  %v9312_v54 = vcombine.high %v3477_v1, %v3485_v35  ;;  %v3468_v40 = vld [vmem:[#allocation17 + $0xf0] sm:$0xff] }
0x1386   :  { %v12008_v45 = vpop.f32.mrf.mxu0  ;;  %v3384_v55 = vadd.f32 %v3383_v42, %v2261_v51  ;;  %v3469_v42 = vld [vmem:[#allocation17 + $0xf8] sm:$0xff] }
0x1387   :  { %v12010_v49 = vpop.f32.mrf.mxu1  ;;  %v3403_v63 = vmax.f32 %v3341_v48, 0.0  ;;  %v3444_v48 = vld [vmem:[#allocation17 + $0x30] sm:$0xff] }
0x1388   :  { %v3344_v56 = vpop.f32.mrf.mxu0  ;;  %v3405_v5 = vmax.f32 %v3384_v55, 0.0  ;;  %v3445_v55 = vld [vmem:[#allocation17 + $0x38] sm:$0xff] }
0x1389   :  { %v3345_v60 = vadd.f32 %v3344_v56, %v2253_v39  ;;  %v3387_v19 = vpop.f32.mrf.mxu1  ;;  %v3460_v39 = vld [vmem:[#allocation17 + $0xb0] sm:$0xff]  ;;  %v3453_v56 = vld [vmem:[#allocation17 + $0x78] sm:$0xff] }
0x138a   :  { %v3388_v62 = vadd.f32 %v3387_v19, %v2261_v51  ;;  %v3461_v51 = vld [vmem:[#allocation17 + $0xb8] sm:$0xff]  ;;  %v9294_v46 = vcombine.high %v3460_v39, %v3468_v40  ;;  %v9280_v19 = vcombine.high %v3445_v55, %v3453_v56 }
0x138b   :  { %v3419_v4 = vmax.f32 %v3345_v60, 0.0  ;;  %4462 = vmatpush1.bf16.xpose.msra.mxu0 %v9373_v50  ;;  %v9296_v3 = vcombine.high %v3461_v51, %v3469_v42  ;;  %v3452_v50 = vld [vmem:[#allocation17 + $0x70] sm:$0xff] }
0x138c   :  { %v3421_v7 = vmax.f32 %v3388_v62, 0.0  ;;  %4503 = vmatpush1.bf16.xpose.msra.mxu1 %v9375_v57  ;;  %4463 = vmatprep.subr.bf16.mxu0 %v9358_v59  ;;  %v9293_v57 = vcombine.low %v3460_v39, %v3468_v40  ;;  %v9295_v59 = vcombine.low %v3461_v51, %v3469_v42  ;;  %v9278_v60 = vcombine.high %v3444_v48, %v3452_v50 }
0x138d   :  { %v3435_v6 = vpack.c.bf16 %v3419_v4, %v3403_v63  ;;  %4504 = vmatprep.subr.bf16.mxu1 %v9360_v61  ;;  %v2249_v61 = vrot.slane %v11978_v44, %v11965_v12  ;;  %v2257_v62 = vrot.slane %v11978_v44, %v11968_v14  ;;  %v9277_v63 = vcombine.low %v3444_v48, %v3452_v50 }
0x138e   :  { %v3437_v15 = vpack.c.bf16 %v3421_v7, %v3405_v5  ;;  %v9279_v5 = vcombine.low %v3445_v55, %v3453_v56 }
0x138f   :  { %4491 = vmatprep.mubr.bf16.mxu0 %v3435_v6  ;;  %v3343_v4 = vadd.f32 %v12008_v45, %v2249_v61  ;;  %v3386_v7 = vadd.f32 %v12010_v49, %v2257_v62  ;;  %v3339_v6 = vadd.f32 %v12000_v38, %v2249_v61  ;;  %v3382_v8 = vadd.f32 %v12002_v36, %v2257_v62 }
0x1390   :  { %4532 = vmatprep.mubr.bf16.mxu1 %v3437_v15 }
0x1391   :  { %v3418_v11 = vmax.f32 %v3343_v4, 0.0  ;;  %v3420_v15 = vmax.f32 %v3386_v7, 0.0  ;;  %v3402_v41 = vmax.f32 %v3339_v6, 0.0  ;;  %v3404_v44 = vmax.f32 %v3382_v8, 0.0 }
0x1393   :  { %4464 = vmatpush1.bf16.xpose.msra.mxu0 %v9357_v21  ;;  %v3434_v16 = vpack.c.bf16 %v3418_v11, %v3402_v41  ;;  %v9264_v21 = vld [vmem:[#allocation19] ss:$0 sm:$0xff]  ;;  %v3436_v45 = vpack.c.bf16 %v3420_v15, %v3404_v44 }
0x1394   :  { %4505 = vmatpush1.bf16.xpose.msra.mxu1 %v9359_v22  ;;  %4465 = vmatprep.subr.bf16.mxu0 %v9342_v23 }
0x1395   :  { %4506 = vmatprep.subr.bf16.mxu1 %v9344_v24 }
0x139b   :  { %4466 = vmatpush1.bf16.xpose.msra.mxu0 %v9341_v28 }
0x139c   :  { %4507 = vmatpush1.bf16.xpose.msra.mxu1 %v9343_v29  ;;  %4467 = vmatprep.subr.bf16.mxu0 %v9326_v30 }
0x139d   :  { %4508 = vmatprep.subr.bf16.mxu1 %v9328_v32 }
0x13a3   :  { %4468 = vmatpush1.bf16.xpose.msra.mxu0 %v9325_v47 }
0x13a4   :  { %4509 = vmatpush1.bf16.xpose.msra.mxu1 %v9327_v37  ;;  %4469 = vmatprep.subr.bf16.mxu0 %v9310_v17 }
0x13a5   :  { %4510 = vmatprep.subr.bf16.mxu1 %v9312_v54 }
0x13ab   :  { %4470 = vmatpush1.bf16.xpose.msra.mxu0 %v9309_v43 }
0x13ac   :  { %4511 = vmatpush1.bf16.xpose.msra.mxu1 %v9311_v53  ;;  %4471 = vmatprep.subr.bf16.mxu0 %v9294_v46 }
0x13ad   :  { %4512 = vmatprep.subr.bf16.mxu1 %v9296_v3 }
0x13b3   :  { %4472 = vmatpush1.bf16.xpose.msra.mxu0 %v9293_v57 }
0x13b4   :  { %4513 = vmatpush1.bf16.xpose.msra.mxu1 %v9295_v59  ;;  %4473 = vmatprep.subr.bf16.mxu0 %v9278_v60 }
0x13b5   :  { %4514 = vmatprep.subr.bf16.mxu1 %v9280_v19 }
0x13bb   :  { %4474 = vmatpush1.bf16.xpose.msra.mxu0 %v9277_v63 }
0x13bc   :  { %4515 = vmatpush1.bf16.xpose.msra.mxu1 %v9279_v5  ;;  %10363 = vmatprep.subr.bf16.mxu0 %v11414_v0 }
0x13bd   :  { %10371 = vmatprep.subr.bf16.mxu1 %v11414_v0 }
0x13c2   :  { %v4247_v22 = vpop.f32.mrf.mxu0  ;;  %4492 = vmatmul.mubr.bf16.vlgmr.msra.gmra.mxu0 %v3434_v16 }
0x13c3   :  { %v4248_v49 = vadd.f32 %v9264_v21, %v4247_v22  ;;  %v4288_v23 = vpop.f32.mrf.mxu1  ;;  %4533 = vmatmul.mubr.bf16.vlgmr.msra.gmra.mxu1 %v3436_v45  ;;  %10367 = vmatprep.mubr.msk.bf16.mxu0 %vm11415_vm0, %v11414_v0 }
0x13c4   :  { %v4249_v38 = vpop.f32.mrf.mxu0  ;;  %10375 = vmatprep.mubr.msk.bf16.mxu1 %vm11415_vm0, %v11414_v0 }
0x13c5   :  { %v4289_v36 = vadd.f32 %v4288_v23, %v4248_v49  ;;  %v4290_v24 = vpop.f32.mrf.mxu1 }
0x13c6   :  { %v4250_v25 = vpop.f32.mrf.mxu0  ;;  %v10748_v24 = vld [vmem:[%s12464_s28 + $0x48] sm:$0xff]  }
0x13c7   :  { %v4251_v58 = vadd.f32 %v9264_v21, %v4250_v25  ;;  %v4291_v26 = vpop.f32.mrf.mxu1  ;;  %10372 = vmatpush3.bf16.xpose.msra.mxu1 %v10748_v24  ;;  %v10750_v25 = vld [vmem:[%s12464_s28 + $0x40] sm:$0xff]  }
0x13c8   :  { %v4252_v27 = vpop.f32.mrf.mxu0  ;;  %10373 = vmatprep.subr.bf16.mxu1 %v11414_v0 }
0x13c9   :  { %v4292_v28 = vadd.f32 %v4291_v26, %v4251_v58  ;;  %v4293_v29 = vpop.f32.mrf.mxu1 }
0x13cf   :  { %10374 = vmatpush3.bf16.xpose.msra.mxu1 %v10750_v25 }
0x13d0   :  { %10387 = vmatprep.subr.bf16.mxu1 %v11414_v0 }
0x1402   :  { %v4329_v30 = vpop.f32.mrf.mxu0 }
0x1403   :  { %v4330_v32 = vadd.f32 %v4329_v30, %v4289_v36  ;;  %v4370_v52 = vpop.f32.mrf.mxu1 }
0x1404   :  { %v4331_v34 = vpop.f32.mrf.mxu0 }
0x1405   :  { %v4371_v1 = vadd.f32 %v4370_v52, %v4330_v32  ;;  %v4372_v35 = vpop.f32.mrf.mxu1  ;;  %v9393_v34 = vld [vmem:[%s12432_s19] ss:$0 sm:$0xff] }
0x1406   :  { %v4332_v47 = vpop.f32.mrf.mxu0 }
0x1407   :  { %v4333_v37 = vadd.f32 %v4332_v47, %v4292_v28  ;;  %v4373_v17 = vpop.f32.mrf.mxu1 }
0x1408   :  { %v4334_v54 = vpop.f32.mrf.mxu0 }
0x1409   :  { %v4374_v39 = vadd.f32 %v4373_v17, %v4333_v37  ;;  %v4375_v40 = vpop.f32.mrf.mxu1  ;;  %v9394_v37 = vld [vmem:[#allocation23] ss:$0 sm:$0xff] }
0x140a   :  { %v10751_v40 = vld [vmem:[#allocation7 + $0x48] sm:$0xff]  }
0x1442   :  { %v4411_v51 = vpop.f32.mrf.mxu0 }
0x1443   :  { %v4452_v42 = vpop.f32.mrf.mxu1  ;;  %v4412_v55 = vadd.f32 %v4411_v51, %v4371_v1 }
0x1444   :  { %v4413_v43 = vpop.f32.mrf.mxu0 }
0x1445   :  { %v4454_v53 = vpop.f32.mrf.mxu1  ;;  %v4453_v56 = vadd.f32 %v4452_v42, %v4412_v55  ;;  %v10752_v42 = vld [vmem:[#allocation7 + $0x40] sm:$0xff]   ;;  %v10753_v43 = vld [vmem:[%s12462_s29 + $0x58] sm:$0xff]   ;;  %v9406_v55 = vld [vmem:[#allocation5 + $0x4] ss:$0 sm:$0xff] }
0x1446   :  { %v4414_v46 = vpop.f32.mrf.mxu0  ;;  %v10754_v53 = vld [vmem:[%s12462_s29 + $0x50] sm:$0xff]  }
0x1447   :  { %v4455_v3 = vpop.f32.mrf.mxu1  ;;  %v4415_v57 = vadd.f32 %v4414_v46, %v4374_v39  ;;  %v10755_v46 = vld [vmem:[#allocation7 + $0x58] sm:$0xff]  }
0x1448   :  { %v4416_v48 = vpop.f32.mrf.mxu0 }
0x1449   :  { %v4457_v50 = vpop.f32.mrf.mxu1  ;;  %v4456_v62 = vadd.f32 %v4455_v3, %v4415_v57  ;;  %v10756_v3 = vld [vmem:[#allocation7 + $0x50] sm:$0xff]  }
0x1482   :  { %v4493_v59 = vpop.f32.mrf.mxu0 }
0x1483   :  { %v4494_v60 = vadd.f32 %v4493_v59, %v4453_v56  ;;  %v4534_v19 = vpop.f32.mrf.mxu1 }
0x1484   :  { %v4495_v61 = vpop.f32.mrf.mxu0 }
0x1485   :  { %v4535_v63 = vadd.f32 %v4534_v19, %v4494_v60  ;;  %v4536_v4 = vpop.f32.mrf.mxu1 }
0x1486   :  { %v4496_v5 = vpop.f32.mrf.mxu0 }
0x1487   :  { %v4497_v7 = vadd.f32 %v4496_v5, %v4456_v62  ;;  %v4537_v6 = vpop.f32.mrf.mxu1  ;;  %v4541_v8 = vadd.f32 %v4535_v63, %v11886_v9  ;;  %v10747_v9 = vld [vmem:[%s12462_s29 + $0x48] sm:$0xff]  }
0x1488   :  { %v4498_v11 = vpop.f32.mrf.mxu0  ;;  %10364 = vmatpush3.bf16.xpose.msra.mxu0 %v10747_v9 }
0x1489   :  { %v4538_v15 = vadd.f32 %v4537_v6, %v4497_v7  ;;  %v4539_v41 = vpop.f32.mrf.mxu1  ;;  %4545 = vadd.xlane.f32.xlu0 %v4541_v8  ;;  %10365 = vmatprep.subr.bf16.mxu0 %v11414_v0  ;;  %v9399_v7 = vld [vmem:[#allocation2 + $0x4] ss:$0 sm:$0xff] }
0x148a   :  { %v9409_v41 = vld [vmem:[#allocation8 + $0x4] ss:$0 sm:$0xff] }
0x148b   :  { %v4542_v44 = vadd.f32 %v4538_v15, %v11888_v10  ;;  %v10749_v10 = vld [vmem:[%s12462_s29 + $0x40] sm:$0xff]  }
0x148d   :  { %4547 = vadd.xlane.f32.xlu1 %v4542_v44 }
0x1490   :  { %10366 = vmatpush3.bf16.xpose.msra.mxu0 %v10749_v10 }
0x1491   :  { %10379 = vmatprep.subr.bf16.mxu0 %v11414_v0 }
0x1512   :  { %v4546_v16 = vpop.xlane.xlu0 %4545 }
0x1513   :  { %v4549_v21 = vmul.f32 0.0078125, %v4546_v16 }
0x1515   :  { %v4551_v45 = vsub.f32 %v4541_v8, %v4549_v21 }
0x1516   :  { %v4548_v22 = vpop.xlane.xlu1 %4547 }
0x1517   :  { %v4550_v49 = vmul.f32 0.0078125, %v4548_v22  ;;  %v4553_v23 = vmul.f32 %v4551_v45, %v4551_v45 }
0x1519   :  { %v4552_v38 = vsub.f32 %v4542_v44, %v4550_v49  ;;  %4555 = vadd.xlane.f32.xlu0 %v4553_v23 }
0x151b   :  { %v4554_v36 = vmul.f32 %v4552_v38, %v4552_v38 }
0x151d   :  { %4557 = vadd.xlane.f32.xlu1 %v4554_v36 }
0x15a2   :  { %v4556_v58 = vpop.xlane.xlu0 %4555 }
0x15a3   :  { %v4559_v26 = vmul.f32 0.0078125, %v4556_v58 }
0x15a5   :  { %v4561_v27 = vadd.f32 1e-05, %v4559_v26 }
0x15a6   :  { %v4558_v28 = vpop.xlane.xlu1 %4557 }
0x15a7   :  { %10955 = vrsqrt.f32 %v4561_v27  ;;  %v4560_v29 = vmul.f32 0.0078125, %v4558_v28  ;;  %v9428_v27 = vld [vmem:[#allocation8 + $0x5] ss:$0 sm:$0xff] }
0x15a9   :  { %v4562_v30 = vadd.f32 1e-05, %v4560_v29 }
0x15ab   :  { %10957 = vrsqrt.f32 %v4562_v30 }
0x15b4   :  { %v10956_v32 = vpop.eup %10955 }
0x15b5   :  { %v4565_v52 = vmul.f32 %v10956_v32, %v4551_v45 }
0x15b7   :  { %v4573_v35 = vmul.f32 %v9393_v34, %v4565_v52 }
0x15b8   :  { %v10958_v1 = vpop.eup %10957 }
0x15b9   :  { %v4566_v47 = vmul.f32 %v10958_v1, %v4552_v38  ;;  %v12047_v54 = vadd.f32 %v9394_v37, %v4573_v35  ;;  %v9418_v38 = vld [vmem:[#allocation2 + $0x5] ss:$0 sm:$0xff] }
0x15bb   :  { %v4574_v17 = vmul.f32 %v9393_v34, %v4566_v47 }
0x15bd   :  { %v12049_v39 = vadd.f32 %v9394_v37, %v4574_v17  ;;  %v12103_v37 = vld [vmem:[%s12465_s14] sm:$0xff] }
0x15bf   :  { %v12053_v51 = vpack.c.bf16 %v12049_v39, %v12047_v54 }
0x15c1   :  { %10368 = vmatmul.mubr.bf16.vlgmr.msra.gmra.mxu0 %v12053_v51  ;;  %10376 = vmatmul.mubr.bf16.vlgmr.msra.gmra.mxu1 %v12053_v51 }
0x15c2   :  { %10380 = vmatpush3.bf16.xpose.msra.mxu0 %v10751_v40  ;;  %10383 = vmatprep.mubr.msk.bf16.mxu0 %vm11415_vm0, %v11414_v0 }
0x15c3   :  { %10381 = vmatprep.subr.bf16.mxu0 %v11414_v0  ;;  %10389 = vmatprep.mubr.msk.bf16.mxu1 %vm11415_vm0, %v11414_v0 }
0x15ca   :  { %10382 = vmatpush3.bf16.xpose.msra.mxu0 %v10752_v42 }
0x15cb   :  { %10399 = vmatprep.subr.bf16.mxu0 %v11414_v0 }
0x15d1   :  { %10384 = vmatmul.mubr.bf16.vlgmr.msra.gmra.mxu0 %v12053_v51 }
0x15d2   :  { %10400 = vmatpush3.bf16.xpose.msra.mxu0 %v10753_v43  ;;  %10403 = vmatprep.mubr.msk.bf16.mxu0 %vm11415_vm0, %v11414_v0 }
0x15d3   :  { %10401 = vmatprep.subr.bf16.mxu0 %v11414_v0 }
0x15da   :  { %10402 = vmatpush3.bf16.xpose.msra.mxu0 %v10754_v53 }
0x15db   :  { %10415 = vmatprep.subr.bf16.mxu0 %v11414_v0 }
0x15e1   :  { %10404 = vmatmul.mubr.bf16.vlgmr.msra.gmra.mxu0 %v12053_v51 }
0x15e2   :  { %10416 = vmatpush3.bf16.xpose.msra.mxu0 %v10755_v46  ;;  %10419 = vmatprep.mubr.msk.bf16.mxu0 %vm11415_vm0, %v11414_v0  ;;  %v12110_v46 = vld [vmem:[%s12465_s14 + $0x8] sm:$0xff]  ;;  %s9030_s14 = sshll.u32 %s11416_s26, 4  ;;  %s9031_s14 = int_to_ptr.vmem [resolvable:$true] %s9030_s14 }
0x15e3   :  { %10417 = vmatprep.subr.bf16.mxu0 %v11414_v0  ;;  %p11356_p2 = scmp.lt.s32.totalorder %s9031_s14, %s9031_s14 }
0x15ea   :  { %10418 = vmatpush3.bf16.xpose.msra.mxu0 %v10756_v3 }
0x15eb   :  { %10435 = vmatprep.subr.bf16.mxu0 %v11414_v0 }
0x15f1   :  { %10420 = vmatmul.mubr.bf16.vlgmr.msra.gmra.mxu0 %v12053_v51 }
0x15f2   :  { %10439 = vmatprep.mubr.msk.bf16.mxu0 %vm11415_vm0, %v11414_v0 }
0x1681   :  { %v4643_v48 = vpop.f32.mrf.mxu0  ;;  %v4709_v50 = vpop.f32.mrf.mxu1 }
0x1682   :  { %v4710_v19 = vadd.f32 %v9406_v55, %v4709_v50  ;;  %v4644_v8 = vadd.f32 %v9399_v7, %v4643_v48 }
0x1683   :  { %v10369_v56 = vpop.f32.mrf.mxu0  ;;  %v10377_v57 = vpop.f32.mrf.mxu1 }
0x1685   :  { %v4646_v59 = vpop.f32.mrf.mxu0  ;;  %v4712_v60 = vpop.f32.mrf.mxu1 }
0x1686   :  { %v4713_v61 = vadd.f32 %v9406_v55, %v4712_v60  ;;  %v4647_v6 = vadd.f32 %v9399_v7, %v4646_v59 }
0x1687   :  { %v10370_v62 = vpop.f32.mrf.mxu0  ;;  %v10378_v63 = vpop.f32.mrf.mxu1 }
0x1688   :  { %v4784_v4 = vpack.c.bf16 %v4713_v61, %v4710_v19  ;;  %v4783_v11 = vpack.c.bf16 %v4647_v6, %v4644_v8 }
0x168a   :  { %v4789_v5 = vsel %vm508_vm1, %v4784_v4, 0 }
0x168b   :  { %10388 = vmatpush3.bf16.xpose.msra.mxu1 %v4789_v5 }
0x168c   :  { %10393 = vmatprep.subr.bf16.mxu1 %v11414_v0 }
0x1691   :  { %v4775_v15 = vpop.f32.mrf.mxu0 }
0x1692   :  { %10390 = vmatmul.mubr.msk.bf16.vlgmr.msra.gmra.mxu1 %vm508_vm1, %v4783_v11  ;;  %v4776_v21 = vadd.f32 %v9409_v41, %v4775_v15  ;;  %v10757_v15 = vld [vmem:[%s12464_s28 + $0x58] sm:$0xff]  }
0x1693   :  { %v10385_v44 = vpop.f32.mrf.mxu0  ;;  %10395 = vmatprep.mubr.msk.bf16.mxu1 %vm11415_vm0, %v11414_v0 }
0x1694   :  { %v10758_v44 = vld [vmem:[%s12464_s28 + $0x50] sm:$0xff]  }
0x1695   :  { %v4778_v16 = vpop.f32.mrf.mxu0 }
0x1696   :  { %v4779_v45 = vadd.f32 %v9409_v41, %v4778_v16 }
0x1697   :  { %v10386_v22 = vpop.f32.mrf.mxu0 }
0x1698   :  { %v4782_v49 = vpack.c.bf16 %v4779_v45, %v4776_v21 }
0x169a   :  { %10394 = vmatpush3.bf16.msra.mxu1 %v4782_v49 }
0x169b   :  { %10407 = vmatprep.subr.bf16.mxu1 %v11414_v0 }
0x16a1   :  { %v4968_v23 = vpop.f32.mrf.mxu0 }
0x16a2   :  { %v12088_v24 = vadd.f32 %v9418_v38, %v4968_v23 }
0x16a3   :  { %v10405_v36 = vpop.f32.mrf.mxu0 }
0x16a5   :  { %v4971_v9 = vpop.f32.mrf.mxu0 }
0x16a6   :  { %v12090_v10 = vadd.f32 %v9418_v38, %v4971_v9  ;;  %v9425_v38 = vld [vmem:[#allocation5 + $0x5] ss:$0 sm:$0xff] }
0x16a7   :  { %v10406_v25 = vpop.f32.mrf.mxu0 }
0x16a8   :  { %v5108_v58 = vpack.c.bf16 %v12090_v10, %v12088_v24 }
0x16b1   :  { %v5100_v26 = vpop.f32.mrf.mxu0 }
0x16b2   :  { %v12094_v30 = vadd.f32 %v9428_v27, %v5100_v26 }
0x16b3   :  { %v10421_v28 = vpop.f32.mrf.mxu0 }
0x16b5   :  { %v5103_v29 = vpop.f32.mrf.mxu0 }
0x16b6   :  { %v12096_v32 = vadd.f32 %v9428_v27, %v5103_v29 }
0x16b7   :  { %v10422_v52 = vpop.f32.mrf.mxu0 }
0x16b8   :  { %v5107_v34 = vpack.c.bf16 %v12096_v32, %v12094_v30 }
0x1752   :  { %v4825_v1 = vpop.f32.mrf.mxu1 }
0x1753   :  { %v4832_v35 = vmul.f32 0.17677669, %v4825_v1 }
0x1754   :  { %v10391_v47 = vpop.f32.mrf.mxu1 }
0x1755   :  { %v4834_v17 = vadd.f32 %v12103_v37, %v4832_v35 }
0x1756   :  { %v4828_v40 = vpop.f32.mrf.mxu1 }
0x1757   :  { %v4833_v42 = vmul.f32 0.17677669, %v4828_v40  ;;  %v4836_v43 = vsel %vm560_vm2, %v4834_v17, -inf }
0x1758   :  { %4837 = vmax.xlane.f32.xlu0 %v4836_v43  ;;  %v10392_v53 = vpop.f32.mrf.mxu1 }
0x1759   :  { %v4835_v3 = vadd.f32 %v12110_v46, %v4833_v42 }
0x175b   :  { %v4839_v48 = vsel %vm560_vm2, %v4835_v3, -inf }
0x175c   :  { %4840 = vmax.xlane.f32.xlu1 %v4839_v48 }
0x17e1   :  { %v4838_v50 = vpop.xlane.xlu0 %4837 }
0x17e2   :  { %v4842_v55 = vsub.f32 %v4834_v17, %v4838_v50 }
0x17e4   :  { %v4844_v56 = vmul.f32 1.442695, %v4842_v55 }
0x17e5   :  { %v4841_v57 = vpop.xlane.xlu1 %4840 }
0x17e6   :  { %10959 = vpow2.f32 %v4844_v56  ;;  %v4843_v59 = vsub.f32 %v4835_v3, %v4841_v57  ;;  %v10763_v57 = vld [vmem:[#allocation10 + $0x58] sm:$0xff]  }
0x17e7   :  { %10436 = vmatpush3.bf16.msra.mxu0 %v10763_v57 }
0x17e8   :  { %v4846_v60 = vmul.f32 1.442695, %v4843_v59  ;;  %10437 = vmatprep.subr.bf16.mxu0 %v11414_v0 }
0x17ea   :  { %10961 = vpow2.f32 %v4846_v60 }
0x17f3   :  { %v10960_v19 = vpop.eup %10959 }
0x17f4   :  { %v4848_v61 = vsel %vm560_vm2, %v10960_v19, 0.0 }
0x17f5   :  { %4849 = vadd.xlane.f32.xlu0 %v4848_v61 }
0x17f7   :  { %v10962_v62 = vpop.eup %10961 }
0x17f8   :  { %v4851_v63 = vsel %vm560_vm2, %v10962_v62, 0.0 }
0x17f9   :  { %4852 = vadd.xlane.f32.xlu1 %v4851_v63 }
0x187e   :  { %v4850_v4 = vpop.xlane.xlu0 %4849 }
0x187f   :  { %10963 = vrcp.f32 %v4850_v4  ;;  %v10759_v4 = vld [vmem:[#allocation10 + $0x48] sm:$0xff]  }
0x1882   :  { %v4853_v5 = vpop.xlane.xlu1 %4852 }
0x1883   :  { %10965 = vrcp.f32 %v4853_v5 }
0x188c   :  { %v10964_v7 = vpop.eup %10963 }
0x188d   :  { %v4856_v8 = vmul.f32 %v10964_v7, %v10960_v19  ;;  %v10760_v7 = vld [vmem:[#allocation10 + $0x40] sm:$0xff]  }
0x1890   :  { %v10966_v6 = vpop.eup %10965 }
0x1891   :  { %v4857_v11 = vmul.f32 %v10966_v6, %v10962_v62  ;;  %v10761_v6 = vld [vmem:[%s12464_s28 + $0x68] sm:$0xff]  }
0x1893   :  { %v4858_v41 = vpack.c.bf16 %v4857_v11, %v4856_v8  ;;  %v10762_v8 = vld [vmem:[%s12464_s28 + $0x60] sm:$0xff]   ;;  %v10764_v11 = vld [vmem:[#allocation10 + $0x50] sm:$0xff]  }
0x1894   :  { %10438 = vmatpush3.bf16.msra.mxu0 %v10764_v11 }
0x1895   :  { %10396 = vmatmul.mubr.msk.bf16.vlgmr.msra.gmra.mxu1 %vm560_vm2, %v4858_v41  ;;  %10451 = vmatprep.subr.bf16.mxu0 %v11414_v0 }
0x1896   :  { %10408 = vmatpush3.bf16.xpose.msra.mxu1 %v10757_v15  ;;  %10411 = vmatprep.mubr.msk.bf16.mxu1 %vm11415_vm0, %v11414_v0 }
0x1897   :  { %10409 = vmatprep.subr.bf16.mxu1 %v11414_v0 }
0x189e   :  { %10410 = vmatpush3.bf16.xpose.msra.mxu1 %v10758_v44 }
0x189f   :  { %10423 = vmatprep.subr.bf16.mxu1 %v11414_v0 }
0x18a5   :  { %10412 = vmatmul.mubr.bf16.vlgmr.msra.gmra.mxu1 %v12053_v51 }
0x18a6   :  { %10425 = vmatprep.mubr.msk.bf16.mxu1 %vm11415_vm0, %v11414_v0 }
0x1955   :  { %v12130_v16 = vpop.f32.mrf.mxu1 }
0x1957   :  { %v10397_v21 = vpop.f32.mrf.mxu1 }
0x1959   :  { %v12132_v45 = vpop.f32.mrf.mxu1 }
0x195a   :  { %v4908_v22 = vpack.c.bf16 %v12132_v45, %v12130_v16  ;;  %v10765_v16 = vld [vmem:[%s12462_s29 + $0x68] sm:$0xff]  }
0x195b   :  { %v10398_v49 = vpop.f32.mrf.mxu1 }
0x1965   :  { %v5034_v23 = vpop.f32.mrf.mxu1 }
0x1966   :  { %v5035_v25 = vadd.f32 %v9425_v38, %v5034_v23 }
0x1967   :  { %v10413_v36 = vpop.f32.mrf.mxu1 }
0x1969   :  { %v5037_v9 = vpop.f32.mrf.mxu1 }
0x196a   :  { %v5038_v26 = vadd.f32 %v9425_v38, %v5037_v9  ;;  %v10766_v38 = vld [vmem:[%s12462_s29 + $0x60] sm:$0xff]   ;;  %v10767_v9 = vld [vmem:[#allocation7 + $0x68] sm:$0xff]  }
0x196b   :  { %v10414_v27 = vpop.f32.mrf.mxu1 }
0x196c   :  { %v5109_v28 = vpack.c.bf16 %v5038_v26, %v5035_v25  ;;  %v9450_v26 = vld [vmem:[#allocation5 + $0x6] ss:$0 sm:$0xff] }
0x196e   :  { %v5114_v29 = vsel %vm508_vm1, %v5109_v28, 0 }
0x196f   :  { %10424 = vmatpush3.bf16.xpose.msra.mxu1 %v5114_v29  ;;  %v10768_v29 = vld [vmem:[#allocation7 + $0x60] sm:$0xff]  }
0x1970   :  { %10429 = vmatprep.subr.bf16.mxu1 %v11414_v0 }
0x1976   :  { %10426 = vmatmul.mubr.msk.bf16.vlgmr.msra.gmra.mxu1 %vm508_vm1, %v5108_v58 }
0x1977   :  { %10430 = vmatpush3.bf16.msra.mxu1 %v5107_v34  ;;  %10431 = vmatprep.mubr.msk.bf16.mxu1 %vm11415_vm0, %v11414_v0 }
0x1978   :  { %10443 = vmatprep.subr.bf16.mxu1 %v11414_v0 }
0x1a36   :  { %v5150_v52 = vpop.f32.mrf.mxu1 }
0x1a37   :  { %v5157_v1 = vmul.f32 0.17677669, %v5150_v52 }
0x1a38   :  { %v10427_v35 = vpop.f32.mrf.mxu1 }
0x1a39   :  { %v5159_v47 = vadd.f32 %v12103_v37, %v5157_v1 }
0x1a3a   :  { %v5153_v17 = vpop.f32.mrf.mxu1 }
0x1a3b   :  { %v5158_v40 = vmul.f32 0.17677669, %v5153_v17  ;;  %v5161_v24 = vsel %vm560_vm2, %v5159_v47, -inf }
0x1a3c   :  { %5162 = vmax.xlane.f32.xlu0 %v5161_v24  ;;  %v10428_v10 = vpop.f32.mrf.mxu1 }
0x1a3d   :  { %v5160_v58 = vadd.f32 %v12110_v46, %v5158_v40 }
0x1a3f   :  { %v5164_v30 = vsel %vm560_vm2, %v5160_v58, -inf }
0x1a40   :  { %5165 = vmax.xlane.f32.xlu1 %v5164_v30 }
0x1ac5   :  { %v5163_v32 = vpop.xlane.xlu0 %5162 }
0x1ac6   :  { %v5167_v34 = vsub.f32 %v5159_v47, %v5163_v32  ;;  %v9443_v32 = vld [vmem:[#allocation2 + $0x6] ss:$0 sm:$0xff] }
0x1ac8   :  { %v5169_v42 = vmul.f32 1.442695, %v5167_v34 }
0x1ac9   :  { %v5166_v43 = vpop.xlane.xlu1 %5165 }
0x1aca   :  { %10967 = vpow2.f32 %v5169_v42  ;;  %v5168_v53 = vsub.f32 %v5160_v58, %v5166_v43 }
0x1acc   :  { %v5171_v3 = vmul.f32 1.442695, %v5168_v53 }
0x1ace   :  { %10969 = vpow2.f32 %v5171_v3 }
0x1ad7   :  { %v10968_v48 = vpop.eup %10967 }
0x1ad8   :  { %v5173_v50 = vsel %vm560_vm2, %v10968_v48, 0.0 }
0x1ad9   :  { %5174 = vadd.xlane.f32.xlu0 %v5173_v50 }
0x1adb   :  { %v10970_v55 = vpop.eup %10969 }
0x1adc   :  { %v5176_v56 = vsel %vm560_vm2, %v10970_v55, 0.0 }
0x1add   :  { %5177 = vadd.xlane.f32.xlu1 %v5176_v56 }
0x1b62   :  { %v5175_v59 = vpop.xlane.xlu0 %5174 }
0x1b63   :  { %10971 = vrcp.f32 %v5175_v59 }
0x1b66   :  { %v5178_v60 = vpop.xlane.xlu1 %5177 }
0x1b67   :  { %10973 = vrcp.f32 %v5178_v60 }
0x1b70   :  { %v10972_v19 = vpop.eup %10971 }
0x1b71   :  { %v5181_v62 = vmul.f32 %v10972_v19, %v10968_v48 }
0x1b74   :  { %v10974_v61 = vpop.eup %10973 }
0x1b75   :  { %v5182_v63 = vmul.f32 %v10974_v61, %v10970_v55  ;;  %v9453_v55 = vld [vmem:[#allocation8 + $0x6] ss:$0 sm:$0xff] }
0x1b77   :  { %v5183_v5 = vpack.c.bf16 %v5182_v63, %v5181_v62 }
0x1b79   :  { %10432 = vmatmul.mubr.msk.bf16.vlgmr.msra.gmra.mxu1 %vm560_vm2, %v5183_v5 }
0x1b7a   :  { %10444 = vmatpush3.bf16.msra.mxu1 %v10759_v4  ;;  %10447 = vmatprep.mubr.msk.bf16.mxu1 %vm11415_vm0, %v11414_v0 }
0x1b7b   :  { %10445 = vmatprep.subr.bf16.mxu1 %v11414_v0 }
0x1b7e   :  { %10446 = vmatpush3.bf16.msra.mxu1 %v10760_v7 }
0x1b7f   :  { %10459 = vmatprep.subr.bf16.mxu1 %v11414_v0 }
0x1b81   :  { %10448 = vmatmul.mubr.msk.bf16.vlgmr.msra.gmra.mxu1 %vm508_vm1, %v4908_v22 }
0x1b82   :  { %10460 = vmatpush3.bf16.xpose.msra.mxu1 %v10761_v6  ;;  %10463 = vmatprep.mubr.msk.bf16.mxu1 %vm11415_vm0, %v11414_v0 }
0x1b83   :  { %10461 = vmatprep.subr.bf16.mxu1 %v11414_v0 }
0x1b8a   :  { %10462 = vmatpush3.bf16.xpose.msra.mxu1 %v10762_v8 }
0x1b8b   :  { %10475 = vmatprep.subr.bf16.mxu1 %v11414_v0 }
0x1b91   :  { %10464 = vmatmul.mubr.bf16.vlgmr.msra.gmra.mxu1 %v12053_v51 }
0x1b92   :  { %10477 = vmatprep.mubr.msk.bf16.mxu1 %vm11415_vm0, %v11414_v0 }
0x1c39   :  { %v5221_v15 = vpop.f32.mrf.mxu1 }
0x1c3b   :  { %v10433_v41 = vpop.f32.mrf.mxu1 }
0x1c3d   :  { %v5224_v44 = vpop.f32.mrf.mxu1 }
0x1c3e   :  { %v5233_v21 = vpack.c.bf16 %v5224_v44, %v5221_v15 }
0x1c3f   :  { %v10434_v45 = vpop.f32.mrf.mxu1 }
0x1c40   :  { %10440 = vmatmul.mubr.msk.bf16.vlgmr.msra.gmra.mxu0 %vm508_vm1, %v5233_v21 }
0x1c41   :  { %10452 = vmatpush3.bf16.xpose.msra.mxu0 %v10765_v16  ;;  %v12182_v22 = vpop.f32.mrf.mxu1  ;;  %10455 = vmatprep.mubr.msk.bf16.mxu0 %vm11415_vm0, %v11414_v0 }
0x1c42   :  { %10453 = vmatprep.subr.bf16.mxu0 %v11414_v0 }
0x1c43   :  { %v10449_v49 = vpop.f32.mrf.mxu1 }
0x1c45   :  { %v12187_v23 = vpop.f32.mrf.mxu1 }
0x1c47   :  { %v10450_v36 = vpop.f32.mrf.mxu1 }
0x1c49   :  { %10454 = vmatpush3.bf16.xpose.msra.mxu0 %v10766_v38 }
0x1c4a   :  { %10467 = vmatprep.subr.bf16.mxu0 %v11414_v0 }
0x1c50   :  { %10456 = vmatmul.mubr.bf16.vlgmr.msra.gmra.mxu0 %v12053_v51 }
0x1c51   :  { %v5471_v25 = vpop.f32.mrf.mxu1  ;;  %10468 = vmatpush3.bf16.xpose.msra.mxu0 %v10767_v9  ;;  %10471 = vmatprep.mubr.msk.bf16.mxu0 %vm11415_vm0, %v11414_v0 }
0x1c52   :  { %10469 = vmatprep.subr.bf16.mxu0 %v11414_v0  ;;  %v5472_v52 = vadd.f32 %v9450_v26, %v5471_v25 }
0x1c53   :  { %v10465_v27 = vpop.f32.mrf.mxu1 }
0x1c54   :  { %v10773_v27 = vld [vmem:[#allocation10 + $0x68] sm:$0xff]  }
0x1c55   :  { %v5474_v28 = vpop.f32.mrf.mxu1 }
0x1c56   :  { %v5475_v1 = vadd.f32 %v9450_v26, %v5474_v28 }
0x1c57   :  { %v10466_v35 = vpop.f32.mrf.mxu1 }
0x1c58   :  { %v5546_v47 = vpack.c.bf16 %v5475_v1, %v5472_v52 }
0x1c59   :  { %10470 = vmatpush3.bf16.xpose.msra.mxu0 %v10768_v29 }
0x1c5a   :  { %v5551_v17 = vsel %vm508_vm1, %v5546_v47, 0  ;;  %10487 = vmatprep.subr.bf16.mxu0 %v11414_v0 }
0x1c5b   :  { %10476 = vmatpush3.bf16.xpose.msra.mxu1 %v5551_v17  ;;  %v10769_v17 = vld [vmem:[%s12462_s29 + $0x78] sm:$0xff]  }
0x1c5c   :  { %10481 = vmatprep.subr.bf16.mxu1 %v11414_v0 }
0x1c60   :  { %10472 = vmatmul.mubr.bf16.vlgmr.msra.gmra.mxu0 %v12053_v51 }
0x1c61   :  { %10491 = vmatprep.mubr.msk.bf16.mxu0 %vm11415_vm0, %v11414_v0  ;;  %10488 = vmatpush3.bf16.msra.mxu0 %v10773_v27 }
0x1c62   :  { %10489 = vmatprep.subr.bf16.mxu0 %v11414_v0 }
0x1d00   :  { %v12203_v40 = vpop.f32.mrf.mxu0 }
0x1d02   :  { %v10441_v24 = vpop.f32.mrf.mxu0 }
0x1d04   :  { %v12205_v10 = vpop.f32.mrf.mxu0 }
0x1d06   :  { %v10442_v58 = vpop.f32.mrf.mxu0 }
0x1d07   :  { %v10770_v58 = vld [vmem:[%s12462_s29 + $0x70] sm:$0xff]  }
0x1d10   :  { %v5405_v30 = vpop.f32.mrf.mxu0 }
0x1d11   :  { %v5406_v43 = vadd.f32 %v9443_v32, %v5405_v30  ;;  %v10771_v30 = vld [vmem:[#allocation7 + $0x78] sm:$0xff]  }
0x1d12   :  { %v10457_v34 = vpop.f32.mrf.mxu0 }
0x1d13   :  { %v10774_v34 = vld [vmem:[#allocation10 + $0x60] sm:$0xff]  }
0x1d14   :  { %v5408_v42 = vpop.f32.mrf.mxu0  ;;  %10490 = vmatpush3.bf16.msra.mxu0 %v10774_v34 }
0x1d15   :  { %v5409_v53 = vadd.f32 %v9443_v32, %v5408_v42  ;;  %v10772_v32 = vld [vmem:[#allocation7 + $0x70] sm:$0xff]   ;;  %10503 = vmatprep.subr.bf16.mxu0 %v11414_v0 }
0x1d16   :  { %v10458_v3 = vpop.f32.mrf.mxu0 }
0x1d17   :  { %v5545_v48 = vpack.c.bf16 %v5409_v53, %v5406_v43  ;;  %v10775_v3 = vld [vmem:[%s12464_s28 + $0x78] sm:$0xff]  }
0x1d19   :  { %10478 = vmatmul.mubr.msk.bf16.vlgmr.msra.gmra.mxu1 %vm508_vm1, %v5545_v48 }
0x1d1a   :  { %10483 = vmatprep.mubr.msk.bf16.mxu1 %vm11415_vm0, %v11414_v0 }
0x1d20   :  { %v5537_v50 = vpop.f32.mrf.mxu0 }
0x1d21   :  { %v5538_v59 = vadd.f32 %v9453_v55, %v5537_v50 }
0x1d22   :  { %v10473_v56 = vpop.f32.mrf.mxu0 }
0x1d24   :  { %v5540_v57 = vpop.f32.mrf.mxu0 }
0x1d25   :  { %v5541_v60 = vadd.f32 %v9453_v55, %v5540_v57  ;;  %v10776_v55 = vld [vmem:[%s12464_s28 + $0x70] sm:$0xff]   ;;  %v9465_v57 = vld [vmem:[#allocation2 + $0x7] ss:$0 sm:$0xff] }
0x1d26   :  { %v10474_v19 = vpop.f32.mrf.mxu0 }
0x1d27   :  { %v5544_v61 = vpack.c.bf16 %v5541_v60, %v5538_v59 }
0x1d29   :  { %10482 = vmatpush3.bf16.msra.mxu1 %v5544_v61 }
0x1d2a   :  { %10495 = vmatprep.subr.bf16.mxu1 %v11414_v0 }
0x1dd9   :  { %v5587_v62 = vpop.f32.mrf.mxu1 }
0x1dda   :  { %v5594_v63 = vmul.f32 0.17677669, %v5587_v62 }
0x1ddb   :  { %v10479_v4 = vpop.f32.mrf.mxu1 }
0x1ddc   :  { %v5596_v5 = vadd.f32 %v12103_v37, %v5594_v63 }
0x1ddd   :  { %v5590_v7 = vpop.f32.mrf.mxu1 }
0x1dde   :  { %v5595_v6 = vmul.f32 0.17677669, %v5590_v7  ;;  %v5598_v8 = vsel %vm560_vm2, %v5596_v5, -inf }
0x1ddf   :  { %5599 = vmax.xlane.f32.xlu0 %v5598_v8  ;;  %v10480_v11 = vpop.f32.mrf.mxu1 }
0x1de0   :  { %v5597_v15 = vadd.f32 %v12110_v46, %v5595_v6 }
0x1de2   :  { %v5601_v41 = vsel %vm560_vm2, %v5597_v15, -inf }
0x1de3   :  { %5602 = vmax.xlane.f32.xlu1 %v5601_v41 }
0x1e68   :  { %v5600_v44 = vpop.xlane.xlu0 %5599 }
0x1e69   :  { %v5604_v16 = vsub.f32 %v5596_v5, %v5600_v44  ;;  %v9475_v5 = vld [vmem:[#allocation8 + $0x7] ss:$0 sm:$0xff]  ;;  %v5340_v44 = vadd.f32 %v12182_v22, %v12203_v40 }
0x1e6b   :  { %v5606_v21 = vmul.f32 1.442695, %v5604_v16 }
0x1e6c   :  { %v5603_v45 = vpop.xlane.xlu1 %5602 }
0x1e6d   :  { %10975 = vpow2.f32 %v5606_v21  ;;  %v5605_v49 = vsub.f32 %v5597_v15, %v5603_v45 }
0x1e6f   :  { %v5608_v38 = vmul.f32 1.442695, %v5605_v49 }
0x1e71   :  { %10977 = vpow2.f32 %v5608_v38 }
0x1e7a   :  { %v10976_v36 = vpop.eup %10975 }
0x1e7b   :  { %v5610_v9 = vsel %vm560_vm2, %v10976_v36, 0.0 }
0x1e7c   :  { %5611 = vadd.xlane.f32.xlu0 %v5610_v9 }
0x1e7e   :  { %v10978_v25 = vpop.eup %10977 }
0x1e7f   :  { %v5613_v26 = vsel %vm560_vm2, %v10978_v25, 0.0 }
0x1e80   :  { %5614 = vadd.xlane.f32.xlu1 %v5613_v26 }
0x1f05   :  { %v5612_v28 = vpop.xlane.xlu0 %5611 }
0x1f06   :  { %10979 = vrcp.f32 %v5612_v28 }
0x1f09   :  { %v5615_v29 = vpop.xlane.xlu1 %5614 }
0x1f0a   :  { %10981 = vrcp.f32 %v5615_v29 }
0x1f13   :  { %v10980_v52 = vpop.eup %10979 }
0x1f14   :  { %v5618_v35 = vmul.f32 %v10980_v52, %v10976_v36 }
0x1f17   :  { %v10982_v1 = vpop.eup %10981 }
0x1f18   :  { %v5619_v47 = vmul.f32 %v10982_v1, %v10978_v25  ;;  %v9472_v25 = vld [vmem:[#allocation5 + $0x7] ss:$0 sm:$0xff] }
0x1f1a   :  { %v5620_v24 = vpack.c.bf16 %v5619_v47, %v5618_v35 }
0x1f1c   :  { %10484 = vmatmul.mubr.msk.bf16.vlgmr.msra.gmra.mxu1 %vm560_vm2, %v5620_v24 }
0x1f1d   :  { %10496 = vmatpush3.bf16.xpose.msra.mxu1 %v10769_v17  ;;  %10499 = vmatprep.mubr.msk.bf16.mxu1 %vm11415_vm0, %v11414_v0 }
0x1f1e   :  { %10497 = vmatprep.subr.bf16.mxu1 %v11414_v0 }
0x1f25   :  { %10498 = vmatpush3.bf16.xpose.msra.mxu1 %v10770_v58 }
0x1f26   :  { %10511 = vmatprep.subr.bf16.mxu1 %v11414_v0 }
0x1f2c   :  { %10500 = vmatmul.mubr.bf16.vlgmr.msra.gmra.mxu1 %v12053_v51 }
0x1f2d   :  { %10512 = vmatpush3.bf16.xpose.msra.mxu1 %v10771_v30  ;;  %10515 = vmatprep.mubr.msk.bf16.mxu1 %vm11415_vm0, %v11414_v0 }
0x1f2e   :  { %10513 = vmatprep.subr.bf16.mxu1 %v11414_v0 }
0x1f35   :  { %10514 = vmatpush3.bf16.xpose.msra.mxu1 %v10772_v32 }
0x1f36   :  { %10531 = vmatprep.subr.bf16.mxu1 %v11414_v0 }
0x1f3c   :  { %10516 = vmatmul.mubr.bf16.vlgmr.msra.gmra.mxu1 %v12053_v51 }
0x1f3d   :  { %10535 = vmatprep.mubr.msk.bf16.mxu1 %vm11415_vm0, %v11414_v0 }
0x1fdc   :  { %v5658_v42 = vpop.f32.mrf.mxu1 }
0x1fde   :  { %v10485_v43 = vpop.f32.mrf.mxu1 }
0x1fe0   :  { %v5661_v53 = vpop.f32.mrf.mxu1 }
0x1fe1   :  { %v5670_v48 = vpack.c.bf16 %v5661_v53, %v5658_v42 }
0x1fe2   :  { %v10486_v50 = vpop.f32.mrf.mxu1 }
0x1fe3   :  { %10492 = vmatmul.mubr.msk.bf16.vlgmr.msra.gmra.mxu0 %vm508_vm1, %v5670_v48 }
0x1fe4   :  { %10504 = vmatpush3.bf16.xpose.msra.mxu0 %v10775_v3  ;;  %10507 = vmatprep.mubr.msk.bf16.mxu0 %vm11415_vm0, %v11414_v0 }
0x1fe5   :  { %10505 = vmatprep.subr.bf16.mxu0 %v11414_v0 }
0x1fec   :  { %v5788_v56 = vpop.f32.mrf.mxu1  ;;  %10506 = vmatpush3.bf16.xpose.msra.mxu0 %v10776_v55 }
0x1fed   :  { %10519 = vmatprep.subr.bf16.mxu0 %v11414_v0  ;;  %v5789_v19 = vadd.f32 %v9465_v57, %v5788_v56 }
0x1fee   :  { %v10501_v59 = vpop.f32.mrf.mxu1 }
0x1ff0   :  { %v5791_v60 = vpop.f32.mrf.mxu1 }
0x1ff1   :  { %v5792_v61 = vadd.f32 %v9465_v57, %v5791_v60 }
0x1ff2   :  { %v10502_v62 = vpop.f32.mrf.mxu1 }
0x1ff3   :  { %v5928_v63 = vpack.c.bf16 %v5792_v61, %v5789_v19  ;;  %10508 = vmatmul.mubr.bf16.vlgmr.msra.gmra.mxu0 %v12053_v51  ;;  %v5343_v51 = vadd.f32 %v12187_v23, %v12205_v10 }
0x1ff4   :  { %10521 = vmatprep.mubr.msk.bf16.mxu0 %vm11415_vm0, %v11414_v0 }
0x1ffc   :  { %v5920_v4 = vpop.f32.mrf.mxu1 }
0x1ffd   :  { %v5921_v8 = vadd.f32 %v9475_v5, %v5920_v4  ;;  %v10778_v4 = vld [vmem:[#allocation10 + $0x70] sm:$0xff]  }
0x1ffe   :  { %v10517_v7 = vpop.f32.mrf.mxu1 }
0x2000   :  { %v5923_v6 = vpop.f32.mrf.mxu1 }
0x2001   :  { %v5924_v11 = vadd.f32 %v9475_v5, %v5923_v6 }
0x2002   :  { %v10518_v15 = vpop.f32.mrf.mxu1 }
0x2003   :  { %v5927_v41 = vpack.c.bf16 %v5924_v11, %v5921_v8 }
0x20a3   :  { %v5720_v16 = vpop.f32.mrf.mxu0 }
0x20a4   :  { %v12254_v21 = vadd.f32 %v5720_v16, %v5340_v44 }
0x20a5   :  { %v10493_v45 = vpop.f32.mrf.mxu0 }
0x20a7   :  { %v5723_v49 = vpop.f32.mrf.mxu0 }
0x20a8   :  { %v12258_v38 = vadd.f32 %v5723_v49, %v5343_v51 }
0x20a9   :  { %v10494_v36 = vpop.f32.mrf.mxu0 }
0x20b3   :  { %v5854_v9 = vpop.f32.mrf.mxu0 }
0x20b4   :  { %v5855_v28 = vadd.f32 %v9472_v25, %v5854_v9 }
0x20b5   :  { %v10509_v26 = vpop.f32.mrf.mxu0 }
0x20b7   :  { %v5857_v27 = vpop.f32.mrf.mxu0 }
0x20b8   :  { %v5858_v29 = vadd.f32 %v9472_v25, %v5857_v27 }
0x20b9   :  { %v10510_v52 = vpop.f32.mrf.mxu0 }
0x20ba   :  { %v5929_v1 = vpack.c.bf16 %v5858_v29, %v5855_v28 }
0x20bc   :  { %v5934_v22 = vsel %vm508_vm1, %v5929_v1, 0 }
0x20bd   :  { %10520 = vmatpush3.bf16.xpose.msra.mxu0 %v5934_v22 }
0x20be   :  { %10525 = vmatprep.subr.bf16.mxu0 %v11414_v0 }
0x20c4   :  { %10522 = vmatmul.mubr.msk.bf16.vlgmr.msra.gmra.mxu0 %vm508_vm1, %v5928_v63  ;;  %v10777_v63 = vld [vmem:[#allocation10 + $0x78] sm:$0xff]  }
0x20c5   :  { %10526 = vmatpush3.bf16.msra.mxu0 %v5927_v41  ;;  %10527 = vmatprep.mubr.msk.bf16.mxu0 %vm11415_vm0, %v11414_v0  ;;  %v9483_v41 = vld [vmem:[#allocation11 + $0x1] ss:$0 sm:$0xff] }
0x20c6   :  { %10532 = vmatpush3.bf16.msra.mxu1 %v10777_v63  ;;  %v10789_v63 = vld [vmem:[#allocation14 + $0x428] sm:$0xff]  }
0x20c7   :  { %10533 = vmatprep.subr.bf16.mxu1 %v11414_v0 }
0x20ca   :  { %10534 = vmatpush3.bf16.msra.mxu1 %v10778_v4  ;;  %v10790_v4 = vld [vmem:[#allocation14 + $0x4a8] sm:$0xff]  }
0x2184   :  { %v5970_v23 = vpop.f32.mrf.mxu0 }
0x2185   :  { %v5977_v40 = vmul.f32 0.17677669, %v5970_v23 }
0x2186   :  { %v10523_v10 = vpop.f32.mrf.mxu0 }
0x2187   :  { %v5979_v35 = vadd.f32 %v12103_v37, %v5977_v40 }
0x2188   :  { %v5973_v47 = vpop.f32.mrf.mxu0 }
0x2189   :  { %v5978_v17 = vmul.f32 0.17677669, %v5973_v47  ;;  %v5981_v24 = vsel %vm560_vm2, %v5979_v35, -inf }
0x218a   :  { %5982 = vmax.xlane.f32.xlu0 %v5981_v24  ;;  %v10524_v58 = vpop.f32.mrf.mxu0 }
0x218b   :  { %v5980_v30 = vadd.f32 %v12110_v46, %v5978_v17  ;;  %v9485_v17 = vld [vmem:[%s12428_s15 + $0x1] ss:$0 sm:$0xff]  ;;  %v9486_v58 = vld [vmem:[#allocation20 + $0x1] ss:$0 sm:$0xff] }
0x218d   :  { %v5984_v32 = vsel %vm560_vm2, %v5980_v30, -inf }
0x218e   :  { %5985 = vmax.xlane.f32.xlu1 %v5984_v32 }
0x2213   :  { %v5983_v34 = vpop.xlane.xlu0 %5982 }
0x2214   :  { %v5987_v42 = vsub.f32 %v5979_v35, %v5983_v34  ;;  %v9487_v34 = vld [vmem:[#allocation13 + $0x1] ss:$0 sm:$0xff] }
0x2216   :  { %v5989_v43 = vmul.f32 1.442695, %v5987_v42 }
0x2217   :  { %v5986_v53 = vpop.xlane.xlu1 %5985 }
0x2218   :  { %10983 = vpow2.f32 %v5989_v43  ;;  %v5988_v3 = vsub.f32 %v5980_v30, %v5986_v53 }
0x221a   :  { %v5991_v48 = vmul.f32 1.442695, %v5988_v3 }
0x221c   :  { %10985 = vpow2.f32 %v5991_v48 }
0x2225   :  { %v10984_v37 = vpop.eup %10983 }
0x2226   :  { %v5993_v50 = vsel %vm560_vm2, %v10984_v37, 0.0 }
0x2227   :  { %5994 = vadd.xlane.f32.xlu0 %v5993_v50  ;;  %v10779_v50 = vld [vmem:[#allocation14 + $0x478] sm:$0xff]  }
0x2228   :  { %10034 = vmatprep.subr.bf16.mxu0 %v10779_v50 }
0x2229   :  { %v10986_v55 = vpop.eup %10985 }
0x222a   :  { %v5996_v56 = vsel %vm560_vm2, %v10986_v55, 0.0 }
0x222b   :  { %5997 = vadd.xlane.f32.xlu1 %v5996_v56  ;;  %v10781_v56 = vld [vmem:[#allocation14 + $0x438] sm:$0xff]  }
0x22b0   :  { %v5995_v46 = vpop.xlane.xlu0 %5994 }
0x22b1   :  { %10987 = vrcp.f32 %v5995_v46  ;;  %v10782_v46 = vld [vmem:[#allocation14 + $0x4b8] sm:$0xff]  }
0x22b4   :  { %v5998_v57 = vpop.xlane.xlu1 %5997 }
0x22b5   :  { %10989 = vrcp.f32 %v5998_v57  ;;  %v10783_v57 = vld [vmem:[#allocation14 + $0x470] sm:$0xff]  }
0x22be   :  { %v10988_v59 = vpop.eup %10987 }
0x22bf   :  { %v6001_v19 = vmul.f32 %v10988_v59, %v10984_v37  ;;  %v10784_v59 = vld [vmem:[#allocation14 + $0x4f0] sm:$0xff]  }
0x22c2   :  { %v10990_v60 = vpop.eup %10989 }
0x22c3   :  { %v6002_v61 = vmul.f32 %v10990_v60, %v10986_v55  ;;  %v10780_v55 = vld [vmem:[#allocation14 + $0x4f8] sm:$0xff]   ;;  %v10785_v60 = vld [vmem:[#allocation14 + $0x430] sm:$0xff]  }
0x22c4   :  { %10052 = vmatprep.subr.bf16.mxu1 %v10780_v55 }
0x22c5   :  { %v6003_v62 = vpack.c.bf16 %v6002_v61, %v6001_v19  ;;  %v10786_v19 = vld [vmem:[#allocation14 + $0x4b0] sm:$0xff]   ;;  %v10787_v61 = vld [vmem:[#allocation14 + $0x468] sm:$0xff]  }
0x22c7   :  { %10528 = vmatmul.mubr.msk.bf16.vlgmr.msra.gmra.mxu0 %vm560_vm2, %v6003_v62  ;;  %v10788_v62 = vld [vmem:[#allocation14 + $0x4e8] sm:$0xff]  }
0x22c8   :  { %10035 = vmatpush3.bf16.xpose.msra.mxu0 %v10781_v56 }
0x22c9   :  { %10036 = vmatprep.subr.bf16.mxu0 %v10783_v57  ;;  %v10813_v57 = vld [vmem:[#allocation14 + $0x538] sm:$0xff]  }
0x22d0   :  { %10037 = vmatpush3.bf16.xpose.msra.mxu0 %v10785_v60  ;;  %v10815_v60 = vld [vmem:[#allocation14 + $0x570] sm:$0xff]  }
0x22d1   :  { %10038 = vmatprep.subr.bf16.mxu0 %v10787_v61  ;;  %v10817_v61 = vld [vmem:[#allocation14 + $0x530] sm:$0xff]  }
0x22d8   :  { %10039 = vmatpush3.bf16.xpose.msra.mxu0 %v10789_v63  ;;  %v10819_v63 = vld [vmem:[#allocation14 + $0x568] sm:$0xff]  }
0x2387   :  { %v6041_v5 = vpop.f32.mrf.mxu0 }
0x2389   :  { %v10529_v7 = vpop.f32.mrf.mxu0 }
0x238a   :  { %v10792_v7 = vld [vmem:[#allocation14 + $0x4e0] sm:$0xff]  }
0x238b   :  { %v6044_v6 = vpop.f32.mrf.mxu0 }
0x238c   :  { %v6053_v8 = vpack.c.bf16 %v6044_v6, %v6041_v5  ;;  %v10791_v5 = vld [vmem:[#allocation14 + $0x460] sm:$0xff]  }
0x238d   :  { %v10530_v11 = vpop.f32.mrf.mxu0  ;;  %10040 = vmatprep.subr.bf16.mxu0 %v10791_v5  ;;  %v10793_v6 = vld [vmem:[#allocation14 + $0x420] sm:$0xff]   ;;  %v10821_v5 = vld [vmem:[#allocation14 + $0x528] sm:$0xff]  }
0x238e   :  { %10536 = vmatmul.mubr.msk.bf16.vlgmr.msra.gmra.mxu1 %vm508_vm1, %v6053_v8  ;;  %v10794_v8 = vld [vmem:[#allocation14 + $0x4a0] sm:$0xff]   ;;  %v10795_v11 = vld [vmem:[#allocation14 + $0x458] sm:$0xff]   ;;  %10041 = vmatpush3.bf16.xpose.msra.mxu0 %v10793_v6 }
0x238f   :  { %10053 = vmatpush3.bf16.xpose.msra.mxu1 %v10782_v46  ;;  %10042 = vmatprep.subr.bf16.mxu0 %v10795_v11  ;;  %v10823_v6 = vld [vmem:[#allocation14 + $0x560] sm:$0xff]  }
0x2390   :  { %10054 = vmatprep.subr.bf16.mxu1 %v10784_v59  ;;  %v10814_v59 = vld [vmem:[#allocation14 + $0x5b8] sm:$0xff]   ;;  %v10825_v11 = vld [vmem:[#allocation14 + $0x520] sm:$0xff]  }
0x2397   :  { %10055 = vmatpush3.bf16.xpose.msra.mxu1 %v10786_v19  ;;  %v10816_v19 = vld [vmem:[#allocation14 + $0x5f0] sm:$0xff]  }
0x2398   :  { %10056 = vmatprep.subr.bf16.mxu1 %v10788_v62  ;;  %v10818_v62 = vld [vmem:[#allocation14 + $0x5b0] sm:$0xff]  }
0x239f   :  { %10057 = vmatpush3.bf16.xpose.msra.mxu1 %v10790_v4  ;;  %v10820_v4 = vld [vmem:[#allocation14 + $0x5e8] sm:$0xff]  }
0x23a0   :  { %10058 = vmatprep.subr.bf16.mxu1 %v10792_v7  ;;  %v10822_v7 = vld [vmem:[#allocation14 + $0x5a8] sm:$0xff]  }
0x23a7   :  { %10059 = vmatpush3.bf16.xpose.msra.mxu1 %v10794_v8  ;;  %v10824_v8 = vld [vmem:[#allocation14 + $0x5e0] sm:$0xff]  }
0x244e   :  { %v6103_v15 = vpop.f32.mrf.mxu1 }
0x244f   :  { %v6110_v44 = vadd.f32 %v6103_v15, %v12254_v21  ;;  %v10796_v15 = vld [vmem:[#allocation14 + $0x4d8] sm:$0xff]  }
0x2450   :  { %v10537_v16 = vpop.f32.mrf.mxu1  ;;  %10060 = vmatprep.subr.bf16.mxu1 %v10796_v15  ;;  %v10826_v15 = vld [vmem:[#allocation14 + $0x5a0] sm:$0xff]  }
0x2451   :  { %v6120_v45 = vadd.f32 %v9483_v41, %v6110_v44  ;;  %v10798_v44 = vld [vmem:[#allocation14 + $0x498] sm:$0xff]  }
0x2452   :  { %v6106_v51 = vpop.f32.mrf.mxu1  ;;  %10061 = vmatpush3.bf16.xpose.msra.mxu1 %v10798_v44  ;;  %v10828_v44 = vld [vmem:[#allocation14 + $0x5d8] sm:$0xff]  }
0x2453   :  { %v6111_v49 = vadd.f32 %v6106_v51, %v12258_v38  ;;  %v6122_v36 = vadd.f32 %v6120_v45, %v12047_v54 }
0x2454   :  { %v10538_v9 = vpop.f32.mrf.mxu1 }
0x2455   :  { %v6121_v25 = vadd.f32 %v9483_v41, %v6111_v49  ;;  %6128 = vadd.xlane.f32.xlu0 %v6122_v36  ;;  %v10797_v41 = vld [vmem:[#allocation14 + $0x418] sm:$0xff]  }
0x2456   :  { %10043 = vmatpush3.bf16.xpose.msra.mxu0 %v10797_v41  ;;  %v10827_v41 = vld [vmem:[#allocation14 + $0x558] sm:$0xff]  }
0x2457   :  { %v6123_v26 = vadd.f32 %v6121_v25, %v12049_v39 }
0x2459   :  { %6130 = vadd.xlane.f32.xlu1 %v6123_v26 }
0x24de   :  { %v6129_v27 = vpop.xlane.xlu0 %6128 }
0x24df   :  { %v6132_v28 = vmul.f32 0.0078125, %v6129_v27  ;;  %v10799_v27 = vld [vmem:[#allocation14 + $0x450] sm:$0xff]  }
0x24e0   :  { %10044 = vmatprep.subr.bf16.mxu0 %v10799_v27  ;;  %v10837_v27 = vld [vmem:[#allocation14 + $0x508] sm:$0xff]  }
0x24e1   :  { %v6134_v29 = vsub.f32 %v6122_v36, %v6132_v28  ;;  %v10800_v28 = vld [vmem:[#allocation14 + $0x4d0] sm:$0xff]  }
0x24e2   :  { %v6131_v52 = vpop.xlane.xlu1 %6130  ;;  %10062 = vmatprep.subr.bf16.mxu1 %v10800_v28  ;;  %v10838_v28 = vld [vmem:[#allocation14 + $0x588] sm:$0xff]  }
0x24e3   :  { %v6133_v1 = vmul.f32 0.0078125, %v6131_v52  ;;  %v6136_v22 = vmul.f32 %v6134_v29, %v6134_v29  ;;  %v10802_v52 = vld [vmem:[#allocation14 + $0x490] sm:$0xff]  }
0x24e4   :  { %10063 = vmatpush3.bf16.xpose.msra.mxu1 %v10802_v52  ;;  %v10840_v52 = vld [vmem:[#allocation14 + $0x5c0] sm:$0xff]  }
0x24e5   :  { %v6135_v21 = vsub.f32 %v6123_v26, %v6133_v1  ;;  %6138 = vadd.xlane.f32.xlu0 %v6136_v22  ;;  %v10803_v1 = vld [vmem:[#allocation14 + $0x448] sm:$0xff]  }
0x24e6   :  { %v10804_v22 = vld [vmem:[#allocation14 + $0x4c8] sm:$0xff]  }
0x24e7   :  { %v6137_v23 = vmul.f32 %v6135_v21, %v6135_v21  ;;  %10064 = vmatprep.subr.bf16.mxu1 %v10804_v22  ;;  %v10842_v22 = vld [vmem:[#allocation14 + $0x580] sm:$0xff]  }
0x24e9   :  { %6140 = vadd.xlane.f32.xlu1 %v6137_v23  ;;  %v10806_v23 = vld [vmem:[#allocation14 + $0x488] sm:$0xff]  }
0x24ec   :  { %10065 = vmatpush3.bf16.xpose.msra.mxu1 %v10806_v23  ;;  %v10844_v23 = vld [vmem:[#allocation14 + $0x6f8] sm:$0xff]  }
0x256e   :  { %v6139_v40 = vpop.xlane.xlu0 %6138 }
0x256f   :  { %v6142_v38 = vmul.f32 0.0078125, %v6139_v40  ;;  %v10807_v40 = vld [vmem:[#allocation14 + $0x440] sm:$0xff]  }
0x2571   :  { %v6144_v10 = vadd.f32 1e-05, %v6142_v38  ;;  %v10808_v38 = vld [vmem:[#allocation14 + $0x4c0] sm:$0xff]  }
0x2572   :  { %v6141_v54 = vpop.xlane.xlu1 %6140  ;;  %10066 = vmatprep.subr.bf16.mxu1 %v10808_v38  ;;  %v10846_v38 = vld [vmem:[#allocation14 + $0x6b8] sm:$0xff]  }
0x2573   :  { %10991 = vrsqrt.f32 %v6144_v10  ;;  %v6143_v35 = vmul.f32 0.0078125, %v6141_v54  ;;  %v10809_v10 = vld [vmem:[#allocation14 + $0x400] sm:$0xff]  }
0x2574   :  { %v10810_v54 = vld [vmem:[#allocation14 + $0x480] sm:$0xff]  }
0x2575   :  { %v6145_v47 = vadd.f32 1e-05, %v6143_v35  ;;  %10067 = vmatpush3.bf16.xpose.msra.mxu1 %v10810_v54  ;;  %v10811_v35 = vld [vmem:[#allocation14 + $0x578] sm:$0xff]   ;;  %v10848_v54 = vld [vmem:[#allocation14 + $0x6f0] sm:$0xff]  }
0x2577   :  { %10993 = vrsqrt.f32 %v6145_v47  ;;  %v10812_v47 = vld [vmem:[#allocation14 + $0x5f8] sm:$0xff]  }
0x2578   :  { %10088 = vmatprep.subr.bf16.mxu1 %v10812_v47  ;;  %v10850_v47 = vld [vmem:[#allocation14 + $0x6b0] sm:$0xff]  }
0x2580   :  { %v10992_v39 = vpop.eup %10991 }
0x2581   :  { %v6148_v24 = vmul.f32 %v10992_v39, %v6134_v29  ;;  %v10801_v29 = vld [vmem:[#allocation14 + $0x410] sm:$0xff]  }
0x2582   :  { %10045 = vmatpush3.bf16.xpose.msra.mxu0 %v10801_v29  ;;  %v10839_v29 = vld [vmem:[#allocation14 + $0x540] sm:$0xff]  }
0x2583   :  { %v6156_v30 = vmul.f32 %v9485_v17, %v6148_v24  ;;  %10046 = vmatprep.subr.bf16.mxu0 %v10803_v1  ;;  %v10841_v1 = vld [vmem:[#allocation14 + $0x500] sm:$0xff]  }
0x2584   :  { %v10994_v32 = vpop.eup %10993 }
0x2585   :  { %v6164_v42 = vadd.f32 %v9486_v58, %v6156_v30  ;;  %v6149_v43 = vmul.f32 %v10994_v32, %v6135_v21  ;;  %v10805_v21 = vld [vmem:[#allocation14 + $0x408] sm:$0xff]  }
0x2587   :  { %v6174_v53 = vadd.f32 %v9487_v34, %v6164_v42  ;;  %v6157_v3 = vmul.f32 %v9485_v17, %v6149_v43  ;;  %v9489_v43 = vld [vmem:[%s12430_s17 + $0x1] ss:$0 sm:$0xff] }
0x2589   :  { %6180 = vadd.xlane.f32.xlu0 %v6174_v53  ;;  %v6165_v48 = vadd.f32 %v9486_v58, %v6157_v3 }
0x258a   :  { %10047 = vmatpush3.bf16.xpose.msra.mxu0 %v10805_v21  ;;  %v10843_v21 = vld [vmem:[#allocation14 + $0x678] sm:$0xff]  }
0x258b   :  { %v6175_v37 = vadd.f32 %v9487_v34, %v6165_v48  ;;  %10048 = vmatprep.subr.bf16.mxu0 %v10807_v40  ;;  %v10845_v40 = vld [vmem:[#allocation14 + $0x638] sm:$0xff]  }
0x258d   :  { %6182 = vadd.xlane.f32.xlu1 %v6175_v37 }
0x2592   :  { %10049 = vmatpush3.bf16.xpose.msra.mxu0 %v10809_v10  ;;  %v10847_v10 = vld [vmem:[#allocation14 + $0x670] sm:$0xff]  }
0x2593   :  { %10070 = vmatprep.subr.bf16.mxu0 %v10811_v35  ;;  %v10849_v35 = vld [vmem:[#allocation14 + $0x630] sm:$0xff]  }
0x2612   :  { %v6181_v16 = vpop.xlane.xlu0 %6180 }
0x2613   :  { %v6184_v45 = vmul.f32 0.0078125, %v6181_v16  ;;  %v10829_v16 = vld [vmem:[#allocation14 + $0x518] sm:$0xff]  }
0x2615   :  { %v6186_v51 = vsub.f32 %v6174_v53, %v6184_v45  ;;  %v10830_v45 = vld [vmem:[#allocation14 + $0x598] sm:$0xff]  }
0x2616   :  { %v6183_v49 = vpop.xlane.xlu1 %6182 }
0x2617   :  { %v6185_v36 = vmul.f32 0.0078125, %v6183_v49  ;;  %v6188_v9 = vmul.f32 %v6186_v51, %v6186_v51  ;;  %v10832_v49 = vld [vmem:[#allocation14 + $0x5d0] sm:$0xff]  }
0x2619   :  { %v6187_v25 = vsub.f32 %v6175_v37, %v6185_v36  ;;  %6190 = vadd.xlane.f32.xlu0 %v6188_v9  ;;  %v9490_v37 = vld [vmem:[#allocation22 + $0x1] ss:$0 sm:$0xff]  ;;  %v10833_v36 = vld [vmem:[#allocation14 + $0x510] sm:$0xff]  }
0x261a   :  { %v10834_v9 = vld [vmem:[#allocation14 + $0x590] sm:$0xff]  }
0x261b   :  { %v6189_v26 = vmul.f32 %v6187_v25, %v6187_v25 }
0x261d   :  { %6192 = vadd.xlane.f32.xlu1 %v6189_v26  ;;  %v10836_v26 = vld [vmem:[#allocation14 + $0x5c8] sm:$0xff]  }
0x26a2   :  { %v6191_v39 = vpop.xlane.xlu0 %6190 }
0x26a3   :  { %v6194_v17 = vmul.f32 0.0078125, %v6191_v39  ;;  %v10851_v39 = vld [vmem:[#allocation14 + $0x668] sm:$0xff]  }
0x26a5   :  { %v6196_v24 = vadd.f32 1e-05, %v6194_v17  ;;  %v10852_v17 = vld [vmem:[#allocation14 + $0x6e8] sm:$0xff]  }
0x26a6   :  { %v6193_v58 = vpop.xlane.xlu1 %6192 }
0x26a7   :  { %10995 = vrsqrt.f32 %v6196_v24  ;;  %v6195_v30 = vmul.f32 0.0078125, %v6193_v58  ;;  %v10853_v24 = vld [vmem:[#allocation14 + $0x628] sm:$0xff]  }
0x26a8   :  { %v10854_v58 = vld [vmem:[#allocation14 + $0x6a8] sm:$0xff]  }
0x26a9   :  { %v6197_v32 = vadd.f32 1e-05, %v6195_v30  ;;  %v10855_v30 = vld [vmem:[#allocation14 + $0x660] sm:$0xff]  }
0x26ab   :  { %10997 = vrsqrt.f32 %v6197_v32  ;;  %v10856_v32 = vld [vmem:[#allocation14 + $0x6e0] sm:$0xff]  }
0x26b4   :  { %v10996_v34 = vpop.eup %10995 }
0x26b5   :  { %v6200_v42 = vmul.f32 %v10996_v34, %v6186_v51  ;;  %v10831_v51 = vld [vmem:[#allocation14 + $0x550] sm:$0xff]   ;;  %v10857_v34 = vld [vmem:[#allocation14 + $0x620] sm:$0xff]  }
0x26b7   :  { %v6208_v3 = vmul.f32 %v9489_v43, %v6200_v42  ;;  %v10858_v42 = vld [vmem:[#allocation14 + $0x6a0] sm:$0xff]  }
0x26b8   :  { %v10998_v53 = vpop.eup %10997 }
0x26b9   :  { %v6201_v48 = vmul.f32 %v10998_v53, %v6187_v25  ;;  %v12284_v55 = vadd.f32 %v9490_v37, %v6208_v3  ;;  %v10835_v25 = vld [vmem:[#allocation14 + $0x548] sm:$0xff]   ;;  %v10860_v53 = vld [vmem:[#allocation14 + $0x6d8] sm:$0xff]  }
0x26ba   :  { %v10861_v3 = vld [vmem:[#allocation14 + $0x618] sm:$0xff]  }
0x26bb   :  { %v6209_v50 = vmul.f32 %v9489_v43, %v6201_v48  ;;  %v10859_v43 = vld [vmem:[#allocation14 + $0x658] sm:$0xff]  }
0x26bc   :  { %v10862_v48 = vld [vmem:[#allocation14 + $0x698] sm:$0xff]  }
0x26bd   :  { %v12286_v56 = vadd.f32 %v9490_v37, %v6209_v50  ;;  %v10863_v37 = vld [vmem:[#allocation14 + $0x650] sm:$0xff]  }
0x26be   :  { %v10864_v50 = vld [vmem:[#allocation14 + $0x6d0] sm:$0xff]  }
0x26bf   :  { %v12290_v46 = vpack.c.bf16 %v12286_v56, %v12284_v55 }
0x26c1   :  { %10050 = vmatprep.mubr.bf16.mxu0 %v12290_v46  ;;  %10068 = vmatprep.mubr.bf16.mxu1 %v12290_v46 }
0x26c2   :  { %10051 = vmatmul.mubr.bf16.vlgmr.msra.gmra.mxu0 %v12290_v46  ;;  %10069 = vmatmul.mubr.bf16.vlgmr.msra.gmra.mxu1 %v12290_v46 }
0x26c3   :  { %10071 = vmatpush3.bf16.xpose.msra.mxu0 %v10813_v57  ;;  %10089 = vmatpush3.bf16.xpose.msra.mxu1 %v10814_v59  ;;  %v10865_v57 = vld [vmem:[#allocation14 + $0x610] sm:$0xff]  }
0x26c4   :  { %10086 = vmatprep.mubr.bf16.mxu0 %v12290_v46  ;;  %10104 = vmatprep.mubr.bf16.mxu1 %v12290_v46  ;;  %v10866_v59 = vld [vmem:[#allocation14 + $0x690] sm:$0xff]  }
0x26c5   :  { %10072 = vmatprep.subr.bf16.mxu0 %v10815_v60  ;;  %10090 = vmatprep.subr.bf16.mxu1 %v10816_v19  ;;  %v10867_v60 = vld [vmem:[#allocation14 + $0x648] sm:$0xff]  }
0x26c6   :  { %v10868_v19 = vld [vmem:[#allocation14 + $0x6c8] sm:$0xff]  }
0x26cb   :  { %10073 = vmatpush3.bf16.xpose.msra.mxu0 %v10817_v61  ;;  %10091 = vmatpush3.bf16.xpose.msra.mxu1 %v10818_v62  ;;  %v10869_v61 = vld [vmem:[#allocation14 + $0x608] sm:$0xff]  }
0x26cc   :  { %10074 = vmatprep.subr.bf16.mxu0 %v10819_v63  ;;  %10092 = vmatprep.subr.bf16.mxu1 %v10820_v4  ;;  %v10870_v62 = vld [vmem:[#allocation14 + $0x688] sm:$0xff]   ;;  %v10871_v63 = vld [vmem:[#allocation14 + $0x640] sm:$0xff]  }
0x26cd   :  { %v10872_v4 = vld [vmem:[#allocation14 + $0x6c0] sm:$0xff]  }
0x26d3   :  { %10075 = vmatpush3.bf16.xpose.msra.mxu0 %v10821_v5  ;;  %10093 = vmatpush3.bf16.xpose.msra.mxu1 %v10822_v7  ;;  %v10873_v5 = vld [vmem:[#allocation14 + $0x600] sm:$0xff]  }
0x26d4   :  { %10076 = vmatprep.subr.bf16.mxu0 %v10823_v6  ;;  %10094 = vmatprep.subr.bf16.mxu1 %v10824_v8  ;;  %v10874_v7 = vld [vmem:[#allocation14 + $0x680] sm:$0xff]   ;;  %v10875_v6 = vld [vmem:[#allocation14 + $0x778] sm:$0xff]  }
0x26d5   :  { %v10876_v8 = vld [vmem:[#allocation14 + $0x7f8] sm:$0xff]  }
0x26db   :  { %10077 = vmatpush3.bf16.xpose.msra.mxu0 %v10825_v11  ;;  %10095 = vmatpush3.bf16.xpose.msra.mxu1 %v10826_v15  ;;  %v10877_v11 = vld [vmem:[#allocation14 + $0x738] sm:$0xff]  }
0x26dc   :  { %10078 = vmatprep.subr.bf16.mxu0 %v10827_v41  ;;  %10096 = vmatprep.subr.bf16.mxu1 %v10828_v44  ;;  %v10878_v15 = vld [vmem:[#allocation14 + $0x7b8] sm:$0xff]   ;;  %v10879_v41 = vld [vmem:[#allocation14 + $0x770] sm:$0xff]  }
0x26dd   :  { %v10880_v44 = vld [vmem:[#allocation14 + $0x7f0] sm:$0xff]  }
0x26e3   :  { %10079 = vmatpush3.bf16.xpose.msra.mxu0 %v10829_v16  ;;  %10097 = vmatpush3.bf16.xpose.msra.mxu1 %v10830_v45  ;;  %v10881_v16 = vld [vmem:[#allocation14 + $0x730] sm:$0xff]  }
0x26e4   :  { %10080 = vmatprep.subr.bf16.mxu0 %v10831_v51  ;;  %10098 = vmatprep.subr.bf16.mxu1 %v10832_v49  ;;  %v10882_v45 = vld [vmem:[#allocation14 + $0x7b0] sm:$0xff]   ;;  %v10883_v51 = vld [vmem:[#allocation14 + $0x768] sm:$0xff]  }
0x26e5   :  { %v10884_v49 = vld [vmem:[#allocation14 + $0x7e8] sm:$0xff]  }
0x26eb   :  { %10081 = vmatpush3.bf16.xpose.msra.mxu0 %v10833_v36  ;;  %10099 = vmatpush3.bf16.xpose.msra.mxu1 %v10834_v9  ;;  %v10885_v36 = vld [vmem:[#allocation14 + $0x728] sm:$0xff]  }
0x26ec   :  { %10082 = vmatprep.subr.bf16.mxu0 %v10835_v25  ;;  %10100 = vmatprep.subr.bf16.mxu1 %v10836_v26  ;;  %v10886_v9 = vld [vmem:[#allocation14 + $0x7a8] sm:$0xff]   ;;  %v10887_v25 = vld [vmem:[#allocation14 + $0x760] sm:$0xff]  }
0x26ed   :  { %v10888_v26 = vld [vmem:[#allocation14 + $0x7e0] sm:$0xff]  }
0x26f3   :  { %10083 = vmatpush3.bf16.xpose.msra.mxu0 %v10837_v27  ;;  %10101 = vmatpush3.bf16.xpose.msra.mxu1 %v10838_v28  ;;  %v10889_v27 = vld [vmem:[#allocation14 + $0x720] sm:$0xff]  }
0x26f4   :  { %10084 = vmatprep.subr.bf16.mxu0 %v10839_v29  ;;  %10102 = vmatprep.subr.bf16.mxu1 %v10840_v52  ;;  %v10890_v28 = vld [vmem:[#allocation14 + $0x7a0] sm:$0xff]   ;;  %v10891_v29 = vld [vmem:[#allocation14 + $0x758] sm:$0xff]  }
0x26f5   :  { %v10892_v52 = vld [vmem:[#allocation14 + $0x7d8] sm:$0xff]  }
0x26fb   :  { %10085 = vmatpush3.bf16.xpose.msra.mxu0 %v10841_v1  ;;  %10103 = vmatpush3.bf16.xpose.msra.mxu1 %v10842_v22  ;;  %v10893_v1 = vld [vmem:[#allocation14 + $0x718] sm:$0xff]  }
0x26fc   :  { %10106 = vmatprep.subr.bf16.mxu0 %v10843_v21  ;;  %10124 = vmatprep.subr.bf16.mxu1 %v10844_v23  ;;  %v10894_v22 = vld [vmem:[#allocation14 + $0x798] sm:$0xff]   ;;  %v10895_v21 = vld [vmem:[#allocation14 + $0x750] sm:$0xff]  }
0x26fd   :  { %v10896_v23 = vld [vmem:[#allocation14 + $0x7d0] sm:$0xff]  }
0x2702   :  { %10087 = vmatmul.mubr.bf16.vlgmr.msra.gmra.mxu0 %v12290_v46  ;;  %10105 = vmatmul.mubr.bf16.vlgmr.msra.gmra.mxu1 %v12290_v46 }
0x2703   :  { %10107 = vmatpush3.bf16.xpose.msra.mxu0 %v10845_v40  ;;  %10122 = vmatprep.mubr.bf16.mxu0 %v12290_v46  ;;  %v10897_v40 = vld [vmem:[#allocation14 + $0x710] sm:$0xff]  }
0x2704   :  { %10125 = vmatpush3.bf16.xpose.msra.mxu1 %v10846_v38  ;;  %10140 = vmatprep.mubr.bf16.mxu1 %v12290_v46  ;;  %v10898_v38 = vld [vmem:[#allocation14 + $0x790] sm:$0xff]  }
0x2705   :  { %10108 = vmatprep.subr.bf16.mxu0 %v10847_v10  ;;  %10126 = vmatprep.subr.bf16.mxu1 %v10848_v54  ;;  %v10899_v10 = vld [vmem:[#allocation14 + $0x748] sm:$0xff]  }
0x2706   :  { %v10900_v54 = vld [vmem:[#allocation14 + $0x7c8] sm:$0xff]  }
0x270b   :  { %10109 = vmatpush3.bf16.xpose.msra.mxu0 %v10849_v35  ;;  %v10901_v35 = vld [vmem:[#allocation14 + $0x708] sm:$0xff]  }
0x270c   :  { %10127 = vmatpush3.bf16.xpose.msra.mxu1 %v10850_v47  ;;  %10110 = vmatprep.subr.bf16.mxu0 %v10851_v39  ;;  %v10902_v47 = vld [vmem:[#allocation14 + $0x788] sm:$0xff]   ;;  %v10903_v39 = vld [vmem:[#allocation14 + $0x740] sm:$0xff]  }
0x270d   :  { %10128 = vmatprep.subr.bf16.mxu1 %v10852_v17  ;;  %v10904_v17 = vld [vmem:[#allocation14 + $0x7c0] sm:$0xff]  }
0x2713   :  { %10111 = vmatpush3.bf16.xpose.msra.mxu0 %v10853_v24  ;;  %v7834_v24 = vld [vmem:[#allocation17 + $0x780] sm:$0xff] }
0x2714   :  { %10129 = vmatpush3.bf16.xpose.msra.mxu1 %v10854_v58  ;;  %10112 = vmatprep.subr.bf16.mxu0 %v10855_v30  ;;  %v7842_v58 = vld [vmem:[#allocation17 + $0x7c0] sm:$0xff]  ;;  %v7835_v30 = vld [vmem:[#allocation17 + $0x788] sm:$0xff] }
0x2715   :  { %10130 = vmatprep.subr.bf16.mxu1 %v10856_v32  ;;  %v7843_v32 = vld [vmem:[#allocation17 + $0x7c8] sm:$0xff] }
0x271b   :  { %10113 = vmatpush3.bf16.xpose.msra.mxu0 %v10857_v34  ;;  %v10905_v34 = vld [vmem:[#allocation14 + $0x700] sm:$0xff]  }
0x271c   :  { %10131 = vmatpush3.bf16.xpose.msra.mxu1 %v10858_v42  ;;  %10114 = vmatprep.subr.bf16.mxu0 %v10859_v43  ;;  %v10906_v42 = vld [vmem:[#allocation14 + $0x780] sm:$0xff]   ;;  %v9733_v43 = vcombine.high %v7834_v24, %v7842_v58 }
0x271d   :  { %10132 = vmatprep.subr.bf16.mxu1 %v10860_v53  ;;  %v9735_v53 = vcombine.high %v7835_v30, %v7843_v32 }
0x2723   :  { %10115 = vmatpush3.bf16.xpose.msra.mxu0 %v10861_v3  ;;  %v7818_v3 = vld [vmem:[#allocation17 + $0x700] sm:$0xff] }
0x2724   :  { %10133 = vmatpush3.bf16.xpose.msra.mxu1 %v10862_v48  ;;  %10116 = vmatprep.subr.bf16.mxu0 %v10863_v37  ;;  %v7826_v48 = vld [vmem:[#allocation17 + $0x740] sm:$0xff]  ;;  %v7819_v37 = vld [vmem:[#allocation17 + $0x708] sm:$0xff] }
0x2725   :  { %10134 = vmatprep.subr.bf16.mxu1 %v10864_v50  ;;  %v7827_v50 = vld [vmem:[#allocation17 + $0x748] sm:$0xff] }
0x272b   :  { %10117 = vmatpush3.bf16.xpose.msra.mxu0 %v10865_v57  ;;  %v9732_v57 = vcombine.low %v7834_v24, %v7842_v58  ;;  %v7770_v24 = vld [vmem:[#allocation17 + $0x580] sm:$0xff] }
0x272c   :  { %10135 = vmatpush3.bf16.xpose.msra.mxu1 %v10866_v59  ;;  %10118 = vmatprep.subr.bf16.mxu0 %v10867_v60  ;;  %v9734_v59 = vcombine.low %v7835_v30, %v7843_v32  ;;  %v9717_v60 = vcombine.high %v7818_v3, %v7826_v48  ;;  %v7778_v58 = vld [vmem:[#allocation17 + $0x5c0] sm:$0xff]  ;;  %v7771_v30 = vld [vmem:[#allocation17 + $0x588] sm:$0xff] }
0x272d   :  { %10136 = vmatprep.subr.bf16.mxu1 %v10868_v19  ;;  %v9719_v19 = vcombine.high %v7819_v37, %v7827_v50  ;;  %v7779_v32 = vld [vmem:[#allocation17 + $0x5c8] sm:$0xff] }
0x2733   :  { %10119 = vmatpush3.bf16.xpose.msra.mxu0 %v10869_v61  ;;  %v12307_v61 = vld [vmem:[#allocation16 + $0x10] sm:$0xff] }
0x2734   :  { %10137 = vmatpush3.bf16.xpose.msra.mxu1 %v10870_v62  ;;  %10120 = vmatprep.subr.bf16.mxu0 %v10871_v63 }
0x2735   :  { %10138 = vmatprep.subr.bf16.mxu1 %v10872_v4  ;;  %v6488_v4 = vrot.slane %v12307_v61, %v11911_v31 }
0x273b   :  { %10121 = vmatpush3.bf16.xpose.msra.mxu0 %v10873_v5  ;;  %v6496_v5 = vrot.slane %v12307_v61, %v11914_v33 }
0x273c   :  { %10139 = vmatpush3.bf16.xpose.msra.mxu1 %v10874_v7  ;;  %10142 = vmatprep.subr.bf16.mxu0 %v10875_v6 }
0x273d   :  { %10160 = vmatprep.subr.bf16.mxu1 %v10876_v8  ;;  %v7802_v8 = vld [vmem:[#allocation17 + $0x680] sm:$0xff] }
0x2742   :  { %10123 = vmatmul.mubr.bf16.vlgmr.msra.gmra.mxu0 %v12290_v46 }
0x2743   :  { %10141 = vmatmul.mubr.bf16.vlgmr.msra.gmra.mxu1 %v12290_v46  ;;  %10143 = vmatpush3.bf16.xpose.msra.mxu0 %v10877_v11  ;;  %v7810_v11 = vld [vmem:[#allocation17 + $0x6c0] sm:$0xff] }
0x2744   :  { %10158 = vmatprep.mubr.bf16.mxu0 %v12290_v46  ;;  %10161 = vmatpush3.bf16.xpose.msra.mxu1 %v10878_v15 }
0x2745   :  { %10176 = vmatprep.mubr.bf16.mxu1 %v12290_v46  ;;  %10144 = vmatprep.subr.bf16.mxu0 %v10879_v41 }
0x2746   :  { %10162 = vmatprep.subr.bf16.mxu1 %v10880_v44  ;;  %v7803_v44 = vld [vmem:[#allocation17 + $0x688] sm:$0xff] }
0x274b   :  { %10145 = vmatpush3.bf16.xpose.msra.mxu0 %v10881_v16 }
0x274c   :  { %10163 = vmatpush3.bf16.xpose.msra.mxu1 %v10882_v45  ;;  %10146 = vmatprep.subr.bf16.mxu0 %v10883_v51  ;;  %v9716_v51 = vcombine.low %v7818_v3, %v7826_v48  ;;  %v7754_v3 = vld [vmem:[#allocation17 + $0x500] sm:$0xff] }
0x274d   :  { %10164 = vmatprep.subr.bf16.mxu1 %v10884_v49  ;;  %v7762_v48 = vld [vmem:[#allocation17 + $0x540] sm:$0xff] }
0x2753   :  { %10147 = vmatpush3.bf16.xpose.msra.mxu0 %v10885_v36 }
0x2754   :  { %10165 = vmatpush3.bf16.xpose.msra.mxu1 %v10886_v9  ;;  %10148 = vmatprep.subr.bf16.mxu0 %v10887_v25  ;;  %v9718_v9 = vcombine.low %v7819_v37, %v7827_v50  ;;  %v9701_v25 = vcombine.high %v7802_v8, %v7810_v11  ;;  %v7755_v37 = vld [vmem:[#allocation17 + $0x508] sm:$0xff] }
0x2755   :  { %10166 = vmatprep.subr.bf16.mxu1 %v10888_v26  ;;  %v7763_v50 = vld [vmem:[#allocation17 + $0x548] sm:$0xff] }
0x275b   :  { %10149 = vmatpush3.bf16.xpose.msra.mxu0 %v10889_v27 }
0x275c   :  { %10167 = vmatpush3.bf16.xpose.msra.mxu1 %v10890_v28  ;;  %10150 = vmatprep.subr.bf16.mxu0 %v10891_v29 }
0x275d   :  { %10168 = vmatprep.subr.bf16.mxu1 %v10892_v52 }
0x2763   :  { %10151 = vmatpush3.bf16.xpose.msra.mxu0 %v10893_v1 }
0x2764   :  { %10169 = vmatpush3.bf16.xpose.msra.mxu1 %v10894_v22  ;;  %10152 = vmatprep.subr.bf16.mxu0 %v10895_v21 }
0x2765   :  { %10170 = vmatprep.subr.bf16.mxu1 %v10896_v23 }
0x276b   :  { %10153 = vmatpush3.bf16.xpose.msra.mxu0 %v10897_v40  ;;  %v7786_v40 = vld [vmem:[#allocation17 + $0x600] sm:$0xff] }
0x276c   :  { %10171 = vmatpush3.bf16.xpose.msra.mxu1 %v10898_v38  ;;  %10154 = vmatprep.subr.bf16.mxu0 %v10899_v10  ;;  %v7794_v38 = vld [vmem:[#allocation17 + $0x640] sm:$0xff]  ;;  %v7787_v10 = vld [vmem:[#allocation17 + $0x608] sm:$0xff] }
0x276d   :  { %10172 = vmatprep.subr.bf16.mxu1 %v10900_v54  ;;  %v7795_v54 = vld [vmem:[#allocation17 + $0x648] sm:$0xff] }
0x2773   :  { %10155 = vmatpush3.bf16.xpose.msra.mxu0 %v10901_v35  ;;  %v9700_v35 = vcombine.low %v7802_v8, %v7810_v11  ;;  %v9652_v8 = vcombine.low %v7754_v3, %v7762_v48  ;;  %v9654_v11 = vcombine.low %v7755_v37, %v7763_v50 }
0x2774   :  { %10173 = vmatpush3.bf16.xpose.msra.mxu1 %v10902_v47  ;;  %10156 = vmatprep.subr.bf16.mxu0 %v10903_v39  ;;  %v9685_v39 = vcombine.high %v7786_v40, %v7794_v38 }
0x2775   :  { %10174 = vmatprep.subr.bf16.mxu1 %v10904_v17  ;;  %v9687_v17 = vcombine.high %v7787_v10, %v7795_v54 }
0x277b   :  { %10157 = vmatpush3.bf16.xpose.msra.mxu0 %v10905_v34  ;;  %v9684_v34 = vcombine.low %v7786_v40, %v7794_v38 }
0x277c   :  { %10175 = vmatpush3.bf16.xpose.msra.mxu1 %v10906_v42  ;;  %8498 = vmatprep.subr.bf16.mxu0 %v9733_v43  ;;  %v9686_v42 = vcombine.low %v7787_v10, %v7795_v54  ;;  %v9669_v43 = vcombine.high %v7770_v24, %v7778_v58 }
0x277d   :  { %8539 = vmatprep.subr.bf16.mxu1 %v9735_v53  ;;  %v9671_v53 = vcombine.high %v7771_v30, %v7779_v32 }
0x2782   :  { %10159 = vmatmul.mubr.bf16.vlgmr.msra.gmra.mxu0 %v12290_v46  ;;  %v12309_v62 = vpop.f32.mrf.mxu0  ;;  %v12311_v63 = vpop.f32.mrf.mxu1 }
0x2783   :  { %10177 = vmatmul.mubr.bf16.vlgmr.msra.gmra.mxu1 %v12290_v46  ;;  %8499 = vmatpush1.bf16.xpose.msra.mxu0 %v9732_v57  ;;  %v7811_v46 = vld [vmem:[#allocation17 + $0x6c8] sm:$0xff]  ;;  %v9668_v57 = vcombine.low %v7770_v24, %v7778_v58  ;;  %v7820_v24 = vld [vmem:[#allocation17 + $0x710] sm:$0xff] }
0x2784   :  { %8540 = vmatpush1.bf16.xpose.msra.mxu1 %v9734_v59  ;;  %v7365_v7 = vpop.f32.mrf.mxu0  ;;  %v7408_v6 = vpop.f32.mrf.mxu1  ;;  %8500 = vmatprep.subr.bf16.mxu0 %v9717_v60  ;;  %v9703_v28 = vcombine.high %v7803_v44, %v7811_v46  ;;  %v9702_v47 = vcombine.low %v7803_v44, %v7811_v46  ;;  %v9670_v59 = vcombine.low %v7771_v30, %v7779_v32  ;;  %v7828_v58 = vld [vmem:[#allocation17 + $0x750] sm:$0xff]  ;;  %v7821_v32 = vld [vmem:[#allocation17 + $0x718] sm:$0xff] }
0x2785   :  { %8541 = vmatprep.subr.bf16.mxu1 %v9719_v19  ;;  %v7366_v16 = vadd.f32 %v7365_v7, %v6488_v4  ;;  %v7409_v45 = vadd.f32 %v7408_v6, %v6496_v5  ;;  %v9653_v60 = vcombine.high %v7754_v3, %v7762_v48  ;;  %v9655_v19 = vcombine.high %v7755_v37, %v7763_v50  ;;  %v7739_v7 = vld [vmem:[#allocation17 + $0x488] sm:$0xff] }
0x2786   :  { %v12318_v15 = vpop.f32.mrf.mxu0  ;;  %v12320_v41 = vpop.f32.mrf.mxu1  ;;  %v7747_v6 = vld [vmem:[#allocation17 + $0x4c8] sm:$0xff]  ;;  %v6504_v37 = vrot.slane %v12307_v61, %v11947_v13  ;;  %v6512_v50 = vrot.slane %v12307_v61, %v11950_v2 }
0x2787   :  { %v7674_v29 = vmax.f32 %v7366_v16, 0.0  ;;  %v7676_v52 = vmax.f32 %v7409_v45, 0.0  ;;  %v9639_v46 = vcombine.high %v7739_v7, %v7747_v6  ;;  %v7722_v16 = vld [vmem:[#allocation17 + $0x400] sm:$0xff] }
0x2788   :  { %v7369_v49 = vpop.f32.mrf.mxu0  ;;  %v7412_v36 = vpop.f32.mrf.mxu1  ;;  %v7730_v45 = vld [vmem:[#allocation17 + $0x440] sm:$0xff] }
0x2789   :  { %v7370_v26 = vadd.f32 %v7369_v49, %v6488_v4  ;;  %v7413_v27 = vadd.f32 %v7412_v36, %v6496_v5  ;;  %v7738_v4 = vld [vmem:[#allocation17 + $0x480] sm:$0xff]  ;;  %v7731_v49 = vld [vmem:[#allocation17 + $0x448] sm:$0xff] }
0x278a   :  { %v7746_v5 = vld [vmem:[#allocation17 + $0x4c0] sm:$0xff] }
0x278b   :  { %v7690_v1 = vmax.f32 %v7370_v26, 0.0  ;;  %v7692_v22 = vmax.f32 %v7413_v27, 0.0  ;;  %8501 = vmatpush1.bf16.xpose.msra.mxu0 %v9716_v51  ;;  %v9637_v44 = vcombine.high %v7738_v4, %v7746_v5  ;;  %v7723_v51 = vld [vmem:[#allocation17 + $0x408] sm:$0xff]  ;;  %v9636_v36 = vcombine.low %v7738_v4, %v7746_v5  ;;  %v7836_v27 = vld [vmem:[#allocation17 + $0x790] sm:$0xff] }
0x278c   :  { %8542 = vmatpush1.bf16.xpose.msra.mxu1 %v9718_v9  ;;  %8502 = vmatprep.subr.bf16.mxu0 %v9701_v25  ;;  %v9638_v9 = vcombine.low %v7739_v7, %v7747_v6  ;;  %v9621_v25 = vcombine.high %v7722_v16, %v7730_v45  ;;  %v9623_v26 = vcombine.high %v7723_v51, %v7731_v49  ;;  %v7805_v7 = vld [vmem:[#allocation17 + $0x698] sm:$0xff] }
0x278d   :  { %v7706_v21 = vpack.c.bf16 %v7690_v1, %v7674_v29  ;;  %v7708_v23 = vpack.c.bf16 %v7692_v22, %v7676_v52  ;;  %8543 = vmatprep.subr.bf16.mxu1 %v9703_v28  ;;  %v7844_v28 = vld [vmem:[#allocation17 + $0x7d0] sm:$0xff]  ;;  %v6484_v29 = vrot.slane %v12307_v61, %v11933_v18  ;;  %v7837_v52 = vld [vmem:[#allocation17 + $0x798] sm:$0xff]  ;;  %v6492_v22 = vrot.slane %v12307_v61, %v11936_v20 }
0x278e   :  { %v7845_v1 = vld [vmem:[#allocation17 + $0x7d8] sm:$0xff]  ;;  %v9622_v40 = vcombine.low %v7723_v51, %v7731_v49  ;;  %v9737_v38 = vcombine.high %v7836_v27, %v7844_v28 }
0x278f   :  { %8530 = vmatprep.mubr.bf16.mxu0 %v7706_v21  ;;  %8571 = vmatprep.mubr.bf16.mxu1 %v7708_v23  ;;  %v9620_v21 = vcombine.low %v7722_v16, %v7730_v45  ;;  %v7368_v23 = vadd.f32 %v12318_v15, %v6484_v29  ;;  %v7411_v10 = vadd.f32 %v12320_v41, %v6492_v22  ;;  %v7829_v15 = vld [vmem:[#allocation17 + $0x758] sm:$0xff] }
0x2790   :  { %v9739_v54 = vcombine.high %v7837_v52, %v7845_v1  ;;  %v9738_v41 = vcombine.low %v7837_v52, %v7845_v1  ;;  %v7813_v6 = vld [vmem:[#allocation17 + $0x6d8] sm:$0xff]  ;;  %v9722_v45 = vcombine.low %v7821_v32, %v7829_v15  ;;  %v7788_v1 = vld [vmem:[#allocation17 + $0x610] sm:$0xff] }
0x2793   :  { %8503 = vmatpush1.bf16.xpose.msra.mxu0 %v9700_v35  ;;  %v7364_v35 = vadd.f32 %v12309_v62, %v6484_v29  ;;  %v9723_v62 = vcombine.high %v7821_v32, %v7829_v15  ;;  %v7756_v15 = vld [vmem:[#allocation17 + $0x510] sm:$0xff] }
0x2794   :  { %8544 = vmatpush1.bf16.xpose.msra.mxu1 %v9702_v47  ;;  %8504 = vmatprep.subr.bf16.mxu0 %v9685_v39  ;;  %v7407_v47 = vadd.f32 %v12311_v63, %v6492_v22  ;;  %v7689_v39 = vmax.f32 %v7368_v23, 0.0  ;;  %v7796_v22 = vld [vmem:[#allocation17 + $0x650] sm:$0xff]  ;;  %v7797_v23 = vld [vmem:[#allocation17 + $0x658] sm:$0xff] }
0x2795   :  { %8545 = vmatprep.subr.bf16.mxu1 %v9687_v17  ;;  %v7691_v17 = vmax.f32 %v7411_v10, 0.0  ;;  %v7673_v30 = vmax.f32 %v7364_v35, 0.0  ;;  %v9689_v10 = vcombine.high %v7788_v1, %v7796_v22  ;;  %v7772_v35 = vld [vmem:[#allocation17 + $0x590] sm:$0xff] }
0x279b   :  { %8505 = vmatpush1.bf16.xpose.msra.mxu0 %v9684_v34  ;;  %v7675_v34 = vmax.f32 %v7407_v47, 0.0  ;;  %v7780_v47 = vld [vmem:[#allocation17 + $0x5d0] sm:$0xff] }
0x279c   :  { %8546 = vmatpush1.bf16.xpose.msra.mxu1 %v9686_v42  ;;  %8506 = vmatprep.subr.bf16.mxu0 %v9669_v43  ;;  %v9736_v42 = vcombine.low %v7836_v27, %v7844_v28  ;;  %v7705_v43 = vpack.c.bf16 %v7689_v39, %v7673_v30  ;;  %v7773_v39 = vld [vmem:[#allocation17 + $0x598] sm:$0xff]  ;;  %v9673_v30 = vcombine.high %v7772_v35, %v7780_v47 }
0x279d   :  { %8547 = vmatprep.subr.bf16.mxu1 %v9671_v53  ;;  %v9721_v53 = vcombine.high %v7820_v24, %v7828_v58  ;;  %v7707_v3 = vpack.c.bf16 %v7691_v17, %v7675_v34  ;;  %v7781_v17 = vld [vmem:[#allocation17 + $0x5d8] sm:$0xff]  ;;  %v7764_v34 = vld [vmem:[#allocation17 + $0x550] sm:$0xff] }
0x279e   :  { %v9675_v32 = vcombine.high %v7773_v39, %v7781_v17 }
0x27a3   :  { %8507 = vmatpush1.bf16.xpose.msra.mxu0 %v9668_v57 }
0x27a4   :  { %8548 = vmatpush1.bf16.xpose.msra.mxu1 %v9670_v59  ;;  %8508 = vmatprep.subr.bf16.mxu0 %v9653_v60  ;;  %v7804_v60 = vld [vmem:[#allocation17 + $0x690] sm:$0xff] }
0x27a5   :  { %8549 = vmatprep.subr.bf16.mxu1 %v9655_v19  ;;  %v7812_v19 = vld [vmem:[#allocation17 + $0x6d0] sm:$0xff] }
0x27a6   :  { %v9705_v51 = vcombine.high %v7804_v60, %v7812_v19 }
0x27ab   :  { %8509 = vmatpush1.bf16.xpose.msra.mxu0 %v9652_v8 }
0x27ac   :  { %8550 = vmatpush1.bf16.xpose.msra.mxu1 %v9654_v11  ;;  %8510 = vmatprep.subr.bf16.mxu0 %v9637_v44  ;;  %v9720_v44 = vcombine.low %v7820_v24, %v7828_v58  ;;  %v9688_v24 = vcombine.low %v7788_v1, %v7796_v22 }
0x27ad   :  { %8551 = vmatprep.subr.bf16.mxu1 %v9639_v46 }
0x27b3   :  { %8511 = vmatpush1.bf16.xpose.msra.mxu0 %v9636_v36 }
0x27b4   :  { %8552 = vmatpush1.bf16.xpose.msra.mxu1 %v9638_v9  ;;  %8512 = vmatprep.subr.bf16.mxu0 %v9621_v25  ;;  %v9707_v9 = vcombine.high %v7805_v7, %v7813_v6 }
0x27b5   :  { %8553 = vmatprep.subr.bf16.mxu1 %v9623_v26 }
0x27bb   :  { %8513 = vmatpush1.bf16.xpose.msra.mxu0 %v9620_v21  ;;  %v7789_v21 = vld [vmem:[#allocation17 + $0x618] sm:$0xff] }
0x27bc   :  { %8554 = vmatpush1.bf16.xpose.msra.mxu1 %v9622_v40  ;;  %8580 = vmatprep.subr.bf16.mxu0 %v9737_v38  ;;  %v9704_v40 = vcombine.low %v7804_v60, %v7812_v19  ;;  %v9706_v38 = vcombine.low %v7805_v7, %v7813_v6  ;;  %v9690_v58 = vcombine.low %v7789_v21, %v7797_v23 }
0x27bd   :  { %8621 = vmatprep.subr.bf16.mxu1 %v9739_v54  ;;  %v9691_v54 = vcombine.high %v7789_v21, %v7797_v23  ;;  %v9656_v60 = vcombine.low %v7756_v15, %v7764_v34 }
0x27c2   :  { %v12330_v48 = vpop.f32.mrf.mxu0  ;;  %v12332_v63 = vpop.f32.mrf.mxu1  ;;  %8531 = vmatmul.mubr.bf16.vlgmr.msra.gmra.mxu0 %v7705_v43  ;;  %v7765_v43 = vld [vmem:[#allocation17 + $0x558] sm:$0xff] }
0x27c3   :  { %8572 = vmatmul.mubr.bf16.vlgmr.msra.gmra.mxu1 %v7707_v3  ;;  %8581 = vmatpush1.bf16.xpose.msra.mxu0 %v9736_v42  ;;  %v7757_v42 = vld [vmem:[#allocation17 + $0x518] sm:$0xff]  ;;  %v9657_v3 = vcombine.high %v7756_v15, %v7764_v34 }
0x27c4   :  { %8622 = vmatpush1.bf16.xpose.msra.mxu1 %v9738_v41  ;;  %v7451_v57 = vpop.f32.mrf.mxu0  ;;  %v7494_v59 = vpop.f32.mrf.mxu1  ;;  %8582 = vmatprep.subr.bf16.mxu0 %v9721_v53  ;;  %v9672_v41 = vcombine.low %v7772_v35, %v7780_v47  ;;  %v9674_v53 = vcombine.low %v7773_v39, %v7781_v17  ;;  %v9658_v19 = vcombine.low %v7757_v42, %v7765_v43  ;;  %v7822_v35 = vld [vmem:[#allocation17 + $0x720] sm:$0xff]  ;;  %v7823_v39 = vld [vmem:[#allocation17 + $0x728] sm:$0xff]  ;;  %v12350_v15 = vld [vmem:[#allocation16 + $0x18] sm:$0xff] }
0x27c5   :  { %8623 = vmatprep.subr.bf16.mxu1 %v9723_v62  ;;  %v7452_v8 = vadd.f32 %v7451_v57, %v6504_v37  ;;  %v7495_v11 = vadd.f32 %v7494_v59, %v6512_v50  ;;  %v9659_v62 = vcombine.high %v7757_v42, %v7765_v43  ;;  %v7741_v57 = vld [vmem:[#allocation17 + $0x498] sm:$0xff]  ;;  %v6520_v42 = vrot.slane %v12350_v15, %v11911_v31 }
0x27c6   :  { %v12338_v4 = vpop.f32.mrf.mxu0  ;;  %v12340_v5 = vpop.f32.mrf.mxu1  ;;  %v7749_v59 = vld [vmem:[#allocation17 + $0x4d8] sm:$0xff] }
0x27c7   :  { %v7678_v25 = vmax.f32 %v7452_v8, 0.0  ;;  %v7680_v26 = vmax.f32 %v7495_v11, 0.0  ;;  %v9643_v6 = vcombine.high %v7741_v57, %v7749_v59  ;;  %v7724_v8 = vld [vmem:[#allocation17 + $0x410] sm:$0xff] }
0x27c8   :  { %v7455_v46 = vpop.f32.mrf.mxu0  ;;  %v7498_v16 = vpop.f32.mrf.mxu1  ;;  %v7732_v11 = vld [vmem:[#allocation17 + $0x450] sm:$0xff] }
0x27c9   :  { %v7456_v49 = vadd.f32 %v7455_v46, %v6504_v37  ;;  %v7499_v36 = vadd.f32 %v7498_v16, %v6512_v50  ;;  %v7740_v37 = vld [vmem:[#allocation17 + $0x490] sm:$0xff]  ;;  %v7733_v46 = vld [vmem:[#allocation17 + $0x458] sm:$0xff] }
0x27ca   :  { %v7748_v50 = vld [vmem:[#allocation17 + $0x4d0] sm:$0xff] }
0x27cb   :  { %v7694_v27 = vmax.f32 %v7456_v49, 0.0  ;;  %v7696_v28 = vmax.f32 %v7499_v36, 0.0  ;;  %8583 = vmatpush1.bf16.xpose.msra.mxu0 %v9720_v44  ;;  %v9641_v7 = vcombine.high %v7740_v37, %v7748_v50  ;;  %v7725_v44 = vld [vmem:[#allocation17 + $0x418] sm:$0xff]  ;;  %v9640_v16 = vcombine.low %v7740_v37, %v7748_v50  ;;  %v7838_v36 = vld [vmem:[#allocation17 + $0x7a0] sm:$0xff]  ;;  %v7807_v50 = vld [vmem:[#allocation17 + $0x6a8] sm:$0xff] }
0x27cc   :  { %8624 = vmatpush1.bf16.xpose.msra.mxu1 %v9722_v45  ;;  %8584 = vmatprep.subr.bf16.mxu0 %v9705_v51  ;;  %v9642_v45 = vcombine.low %v7741_v57, %v7749_v59  ;;  %v9625_v51 = vcombine.high %v7724_v8, %v7732_v11  ;;  %v9627_v49 = vcombine.high %v7725_v44, %v7733_v46  ;;  %v7815_v57 = vld [vmem:[#allocation17 + $0x6e8] sm:$0xff] }
0x27cd   :  { %v7710_v29 = vpack.c.bf16 %v7694_v27, %v7678_v25  ;;  %v7712_v52 = vpack.c.bf16 %v7696_v28, %v7680_v26  ;;  %8625 = vmatprep.subr.bf16.mxu1 %v9707_v9  ;;  %v7846_v9 = vld [vmem:[#allocation17 + $0x7e0] sm:$0xff]  ;;  %v6500_v25 = vrot.slane %v12307_v61, %v11965_v12  ;;  %v7839_v26 = vld [vmem:[#allocation17 + $0x7a8] sm:$0xff]  ;;  %v6508_v28 = vrot.slane %v12307_v61, %v11968_v14 }
0x27ce   :  { %v7847_v27 = vld [vmem:[#allocation17 + $0x7e8] sm:$0xff]  ;;  %v9626_v1 = vcombine.low %v7725_v44, %v7733_v46  ;;  %v9741_v22 = vcombine.high %v7838_v36, %v7846_v9  ;;  %v7830_v61 = vld [vmem:[#allocation17 + $0x760] sm:$0xff] }
0x27cf   :  { %8612 = vmatprep.mubr.bf16.mxu0 %v7710_v29  ;;  %8653 = vmatprep.mubr.bf16.mxu1 %v7712_v52  ;;  %v9624_v29 = vcombine.low %v7724_v8, %v7732_v11  ;;  %v7454_v52 = vadd.f32 %v12338_v4, %v6500_v25  ;;  %v7497_v21 = vadd.f32 %v12340_v5, %v6508_v28  ;;  %v7831_v4 = vld [vmem:[#allocation17 + $0x768] sm:$0xff] }
0x27d0   :  { %v9743_v23 = vcombine.high %v7839_v26, %v7847_v27  ;;  %v9742_v5 = vcombine.low %v7839_v26, %v7847_v27  ;;  %v7791_v27 = vld [vmem:[#allocation17 + $0x628] sm:$0xff] }
0x27d3   :  { %8585 = vmatpush1.bf16.xpose.msra.mxu0 %v9704_v40  ;;  %v7450_v40 = vadd.f32 %v12330_v48, %v6500_v25  ;;  %v9727_v48 = vcombine.high %v7823_v39, %v7831_v4  ;;  %v7798_v25 = vld [vmem:[#allocation17 + $0x660] sm:$0xff] }
0x27d4   :  { %8626 = vmatpush1.bf16.xpose.msra.mxu1 %v9706_v38  ;;  %8586 = vmatprep.subr.bf16.mxu0 %v9689_v10  ;;  %v7493_v38 = vadd.f32 %v12332_v63, %v6508_v28  ;;  %v7693_v10 = vmax.f32 %v7454_v52, 0.0  ;;  %v7799_v28 = vld [vmem:[#allocation17 + $0x668] sm:$0xff]  ;;  %v9710_v52 = vcombine.low %v7807_v50, %v7815_v57 }
0x27d5   :  { %8627 = vmatprep.subr.bf16.mxu1 %v9691_v54  ;;  %v7695_v54 = vmax.f32 %v7497_v21, 0.0  ;;  %v7677_v47 = vmax.f32 %v7450_v40, 0.0  ;;  %v7774_v21 = vld [vmem:[#allocation17 + $0x5a0] sm:$0xff]  ;;  %v7775_v40 = vld [vmem:[#allocation17 + $0x5a8] sm:$0xff] }
0x27d6   :  { %v7679_v17 = vmax.f32 %v7493_v38, 0.0  ;;  %v7783_v38 = vld [vmem:[#allocation17 + $0x5e8] sm:$0xff] }
0x27db   :  { %8587 = vmatpush1.bf16.xpose.msra.mxu0 %v9688_v24  ;;  %v9740_v24 = vcombine.low %v7838_v36, %v7846_v9  ;;  %v7790_v9 = vld [vmem:[#allocation17 + $0x620] sm:$0xff] }
0x27dc   :  { %8628 = vmatpush1.bf16.xpose.msra.mxu1 %v9690_v58  ;;  %8588 = vmatprep.subr.bf16.mxu0 %v9673_v30  ;;  %v7709_v58 = vpack.c.bf16 %v7693_v10, %v7677_v47  ;;  %v9725_v30 = vcombine.high %v7822_v35, %v7830_v61  ;;  %v9692_v10 = vcombine.low %v7790_v9, %v7798_v25  ;;  %v7758_v47 = vld [vmem:[#allocation17 + $0x520] sm:$0xff] }
0x27dd   :  { %8629 = vmatprep.subr.bf16.mxu1 %v9675_v32  ;;  %v7711_v32 = vpack.c.bf16 %v7695_v54, %v7679_v17  ;;  %v9694_v54 = vcombine.low %v7791_v27, %v7799_v28  ;;  %v7767_v17 = vld [vmem:[#allocation17 + $0x568] sm:$0xff] }
0x27e3   :  { %8589 = vmatpush1.bf16.xpose.msra.mxu0 %v9672_v41  ;;  %v6528_v41 = vrot.slane %v12350_v15, %v11914_v33  ;;  %v9711_v33 = vcombine.high %v7807_v50, %v7815_v57  ;;  %v7726_v50 = vld [vmem:[#allocation17 + $0x420] sm:$0xff] }
0x27e4   :  { %8630 = vmatpush1.bf16.xpose.msra.mxu1 %v9674_v53  ;;  %8590 = vmatprep.subr.bf16.mxu0 %v9657_v3  ;;  %v7806_v3 = vld [vmem:[#allocation17 + $0x6a0] sm:$0xff] }
0x27e5   :  { %8631 = vmatprep.subr.bf16.mxu1 %v9659_v62  ;;  %v7814_v62 = vld [vmem:[#allocation17 + $0x6e0] sm:$0xff] }
0x27e6   :  { %v9709_v8 = vcombine.high %v7806_v3, %v7814_v62  ;;  %v7734_v57 = vld [vmem:[#allocation17 + $0x460] sm:$0xff] }
0x27eb   :  { %8591 = vmatpush1.bf16.xpose.msra.mxu0 %v9656_v60 }
0x27ec   :  { %8632 = vmatpush1.bf16.xpose.msra.mxu1 %v9658_v19  ;;  %8592 = vmatprep.subr.bf16.mxu0 %v9641_v7  ;;  %v9724_v19 = vcombine.low %v7822_v35, %v7830_v61  ;;  %v9679_v61 = vcombine.high %v7775_v40, %v7783_v38 }
0x27ed   :  { %8633 = vmatprep.subr.bf16.mxu1 %v9643_v6  ;;  %v9726_v6 = vcombine.low %v7823_v39, %v7831_v4  ;;  %v7766_v39 = vld [vmem:[#allocation17 + $0x560] sm:$0xff]  ;;  %v7759_v4 = vld [vmem:[#allocation17 + $0x528] sm:$0xff] }
0x27f3   :  { %8593 = vmatpush1.bf16.xpose.msra.mxu0 %v9640_v16 }
0x27f4   :  { %8634 = vmatpush1.bf16.xpose.msra.mxu1 %v9642_v45  ;;  %8594 = vmatprep.subr.bf16.mxu0 %v9625_v51 }
0x27f5   :  { %8635 = vmatprep.subr.bf16.mxu1 %v9627_v49 }
0x27fb   :  { %8595 = vmatpush1.bf16.xpose.msra.mxu0 %v9624_v29  ;;  %v9708_v29 = vcombine.low %v7806_v3, %v7814_v62 }
0x27fc   :  { %8636 = vmatpush1.bf16.xpose.msra.mxu1 %v9626_v1  ;;  %8662 = vmatprep.subr.bf16.mxu0 %v9741_v22  ;;  %v9693_v1 = vcombine.high %v7790_v9, %v7798_v25  ;;  %v9695_v22 = vcombine.high %v7791_v27, %v7799_v28 }
0x27fd   :  { %8703 = vmatprep.subr.bf16.mxu1 %v9743_v23  ;;  %v7782_v23 = vld [vmem:[#allocation17 + $0x5e0] sm:$0xff] }
0x27fe   :  { %v9677_v35 = vcombine.high %v7774_v21, %v7782_v23 }
0x2802   :  { %v12352_v63 = vpop.f32.mrf.mxu0  ;;  %8613 = vmatmul.mubr.bf16.vlgmr.msra.gmra.mxu0 %v7709_v58  ;;  %v9678_v58 = vcombine.low %v7775_v40, %v7783_v38 }
0x2803   :  { %v12354_v34 = vpop.f32.mrf.mxu1  ;;  %8654 = vmatmul.mubr.bf16.vlgmr.msra.gmra.mxu1 %v7711_v32  ;;  %8663 = vmatpush1.bf16.xpose.msra.mxu0 %v9740_v24  ;;  %v9676_v24 = vcombine.low %v7774_v21, %v7782_v23  ;;  %v7742_v32 = vld [vmem:[#allocation17 + $0x4a0] sm:$0xff] }
0x2804   :  { %8704 = vmatpush1.bf16.xpose.msra.mxu1 %v9742_v5  ;;  %v7537_v43 = vpop.f32.mrf.mxu0  ;;  %8664 = vmatprep.subr.bf16.mxu0 %v9725_v30  ;;  %v9661_v5 = vcombine.high %v7758_v47, %v7766_v39  ;;  %v9663_v30 = vcombine.high %v7759_v4, %v7767_v17 }
0x2805   :  { %v7580_v53 = vpop.f32.mrf.mxu1  ;;  %8705 = vmatprep.subr.bf16.mxu1 %v9727_v48  ;;  %v7538_v59 = vadd.f32 %v7537_v43, %v6520_v42  ;;  %v7750_v48 = vld [vmem:[#allocation17 + $0x4e0] sm:$0xff]  ;;  %v7751_v43 = vld [vmem:[#allocation17 + $0x4e8] sm:$0xff] }
0x2806   :  { %v12360_v37 = vpop.f32.mrf.mxu0  ;;  %v7581_v7 = vadd.f32 %v7580_v53, %v6528_v41  ;;  %v9662_v53 = vcombine.low %v7759_v4, %v7767_v17  ;;  %v9645_v3 = vcombine.high %v7742_v32, %v7750_v48  ;;  %v7808_v4 = vld [vmem:[#allocation17 + $0x6b0] sm:$0xff] }
0x2807   :  { %v12362_v60 = vpop.f32.mrf.mxu1  ;;  %v7682_v16 = vmax.f32 %v7538_v59, 0.0  ;;  %v7727_v59 = vld [vmem:[#allocation17 + $0x428] sm:$0xff]  ;;  %v7816_v17 = vld [vmem:[#allocation17 + $0x6f0] sm:$0xff] }
0x2808   :  { %v7541_v31 = vpop.f32.mrf.mxu0  ;;  %v7684_v51 = vmax.f32 %v7581_v7, 0.0  ;;  %v9644_v7 = vcombine.low %v7742_v32, %v7750_v48 }
0x2809   :  { %v7542_v11 = vadd.f32 %v7541_v31, %v6520_v42  ;;  %v7584_v44 = vpop.f32.mrf.mxu1  ;;  %v7743_v42 = vld [vmem:[#allocation17 + $0x4a8] sm:$0xff] }
0x280a   :  { %v7585_v46 = vadd.f32 %v7584_v44, %v6528_v41  ;;  %v9660_v41 = vcombine.low %v7758_v47, %v7766_v39  ;;  %v9647_v62 = vcombine.high %v7743_v42, %v7751_v43  ;;  %v9646_v31 = vcombine.low %v7743_v42, %v7751_v43  ;;  %v7848_v44 = vld [vmem:[#allocation17 + $0x7f0] sm:$0xff] }
0x280b   :  { %v7698_v45 = vmax.f32 %v7542_v11, 0.0  ;;  %8665 = vmatpush1.bf16.xpose.msra.mxu0 %v9724_v19  ;;  %v7735_v19 = vld [vmem:[#allocation17 + $0x468] sm:$0xff]  ;;  %v7840_v11 = vld [vmem:[#allocation17 + $0x7b0] sm:$0xff]  ;;  %v6544_v47 = vrot.slane %v12350_v15, %v11950_v2 }
0x280c   :  { %v7700_v49 = vmax.f32 %v7585_v46, 0.0  ;;  %8706 = vmatpush1.bf16.xpose.msra.mxu1 %v9726_v6  ;;  %8666 = vmatprep.subr.bf16.mxu0 %v9709_v8  ;;  %v9629_v6 = vcombine.high %v7726_v50, %v7734_v57  ;;  %v9631_v8 = vcombine.high %v7727_v59, %v7735_v19  ;;  %v7841_v46 = vld [vmem:[#allocation17 + $0x7b8] sm:$0xff]  ;;  %v9745_v9 = vcombine.high %v7840_v11, %v7848_v44 }
0x280d   :  { %v7714_v36 = vpack.c.bf16 %v7698_v45, %v7682_v16  ;;  %8707 = vmatprep.subr.bf16.mxu1 %v9711_v33  ;;  %v6516_v33 = vrot.slane %v12350_v15, %v11933_v18  ;;  %v7849_v16 = vld [vmem:[#allocation17 + $0x7f8] sm:$0xff]  ;;  %v6524_v45 = vrot.slane %v12350_v15, %v11936_v20  ;;  %v7832_v20 = vld [vmem:[#allocation17 + $0x770] sm:$0xff]  ;;  %v9744_v23 = vcombine.low %v7840_v11, %v7848_v44 }
0x280e   :  { %v7716_v26 = vpack.c.bf16 %v7700_v49, %v7684_v51  ;;  %v9628_v51 = vcombine.low %v7726_v50, %v7734_v57  ;;  %v7793_v11 = vld [vmem:[#allocation17 + $0x638] sm:$0xff] }
0x280f   :  { %8694 = vmatprep.mubr.bf16.mxu0 %v7714_v36  ;;  %v7540_v49 = vadd.f32 %v12360_v37, %v6516_v33  ;;  %v9630_v36 = vcombine.low %v7727_v59, %v7735_v19  ;;  %v7583_v25 = vadd.f32 %v12362_v60, %v6524_v45  ;;  %v7536_v27 = vadd.f32 %v12352_v63, %v6516_v33  ;;  %v7833_v37 = vld [vmem:[#allocation17 + $0x778] sm:$0xff] }
0x2810   :  { %8735 = vmatprep.mubr.bf16.mxu1 %v7716_v26  ;;  %v9747_v26 = vcombine.high %v7841_v46, %v7849_v16  ;;  %v7579_v28 = vadd.f32 %v12354_v34, %v6524_v45  ;;  %v9746_v60 = vcombine.low %v7841_v46, %v7849_v16  ;;  %v7801_v44 = vld [vmem:[#allocation17 + $0x678] sm:$0xff]  ;;  %v9712_v33 = vcombine.low %v7808_v4, %v7816_v17 }
0x2811   :  { %v7699_v18 = vmax.f32 %v7583_v25, 0.0  ;;  %v9699_v45 = vcombine.high %v7793_v11, %v7801_v44 }
0x2812   :  { %v7683_v21 = vmax.f32 %v7579_v28, 0.0 }
0x2813   :  { %8667 = vmatpush1.bf16.xpose.msra.mxu0 %v9708_v29  ;;  %v7697_v29 = vmax.f32 %v7540_v49, 0.0  ;;  %v7784_v49 = vld [vmem:[#allocation17 + $0x5f0] sm:$0xff] }
0x2814   :  { %8708 = vmatpush1.bf16.xpose.msra.mxu1 %v9710_v52  ;;  %8668 = vmatprep.subr.bf16.mxu0 %v9693_v1  ;;  %v7824_v52 = vld [vmem:[#allocation17 + $0x730] sm:$0xff]  ;;  %v7681_v1 = vmax.f32 %v7536_v27, 0.0 }
0x2815   :  { %8709 = vmatprep.subr.bf16.mxu1 %v9695_v22  ;;  %v7825_v22 = vld [vmem:[#allocation17 + $0x738] sm:$0xff]  ;;  %v9729_v38 = vcombine.high %v7824_v52, %v7832_v20  ;;  %v9728_v48 = vcombine.low %v7824_v52, %v7832_v20 }
0x2816   :  { %v7713_v40 = vpack.c.bf16 %v7697_v29, %v7681_v1  ;;  %v9731_v63 = vcombine.high %v7825_v22, %v7833_v37  ;;  %v9730_v43 = vcombine.low %v7825_v22, %v7833_v37  ;;  %v7760_v29 = vld [vmem:[#allocation17 + $0x530] sm:$0xff]  ;;  %v7761_v52 = vld [vmem:[#allocation17 + $0x538] sm:$0xff] }
0x2817   :  { %v7769_v20 = vld [vmem:[#allocation17 + $0x578] sm:$0xff] }
0x281b   :  { %8669 = vmatpush1.bf16.xpose.msra.mxu0 %v9692_v10  ;;  %v7715_v10 = vpack.c.bf16 %v7699_v18, %v7683_v21  ;;  %v7768_v18 = vld [vmem:[#allocation17 + $0x570] sm:$0xff]  ;;  %v9667_v21 = vcombine.high %v7761_v52, %v7769_v20 }
0x281c   :  { %8710 = vmatpush1.bf16.xpose.msra.mxu1 %v9694_v54  ;;  %8670 = vmatprep.subr.bf16.mxu0 %v9677_v35  ;;  %v6536_v35 = vrot.slane %v12350_v15, %v11947_v13  ;;  %v9665_v37 = vcombine.high %v7760_v29, %v7768_v18 }
0x281d   :  { %8711 = vmatprep.subr.bf16.mxu1 %v9679_v61 }
0x2823   :  { %8671 = vmatpush1.bf16.xpose.msra.mxu0 %v9676_v24 }
0x2824   :  { %8712 = vmatpush1.bf16.xpose.msra.mxu1 %v9678_v58  ;;  %8672 = vmatprep.subr.bf16.mxu0 %v9661_v5  ;;  %v7809_v58 = vld [vmem:[#allocation17 + $0x6b8] sm:$0xff] }
0x2825   :  { %8713 = vmatprep.subr.bf16.mxu1 %v9663_v30  ;;  %v7817_v5 = vld [vmem:[#allocation17 + $0x6f8] sm:$0xff] }
0x2826   :  { %v9715_v2 = vcombine.high %v7809_v58, %v7817_v5  ;;  %v9714_v46 = vcombine.low %v7809_v58, %v7817_v5 }
0x282b   :  { %8673 = vmatpush1.bf16.xpose.msra.mxu0 %v9660_v41  ;;  %v9713_v41 = vcombine.high %v7808_v4, %v7816_v17  ;;  %v7729_v4 = vld [vmem:[#allocation17 + $0x438] sm:$0xff] }
0x282c   :  { %8714 = vmatpush1.bf16.xpose.msra.mxu1 %v9662_v53  ;;  %8674 = vmatprep.subr.bf16.mxu0 %v9645_v3  ;;  %v7737_v17 = vld [vmem:[#allocation17 + $0x478] sm:$0xff] }
0x282d   :  { %8715 = vmatprep.subr.bf16.mxu1 %v9647_v62 }
0x2833   :  { %8675 = vmatpush1.bf16.xpose.msra.mxu0 %v9644_v7 }
0x2834   :  { %8716 = vmatpush1.bf16.xpose.msra.mxu1 %v9646_v31  ;;  %8676 = vmatprep.subr.bf16.mxu0 %v9629_v6  ;;  %v7792_v31 = vld [vmem:[#allocation17 + $0x630] sm:$0xff] }
0x2835   :  { %8717 = vmatprep.subr.bf16.mxu1 %v9631_v8  ;;  %v7800_v6 = vld [vmem:[#allocation17 + $0x670] sm:$0xff] }
0x2836   :  { %v9697_v16 = vcombine.high %v7792_v31, %v7800_v6  ;;  %v9696_v25 = vcombine.low %v7792_v31, %v7800_v6 }
0x283b   :  { %8677 = vmatpush1.bf16.xpose.msra.mxu0 %v9628_v51  ;;  %v7776_v51 = vld [vmem:[#allocation17 + $0x5b0] sm:$0xff] }
0x283c   :  { %8718 = vmatpush1.bf16.xpose.msra.mxu1 %v9630_v36  ;;  %8744 = vmatprep.subr.bf16.mxu0 %v9745_v9  ;;  %v7777_v36 = vld [vmem:[#allocation17 + $0x5b8] sm:$0xff]  ;;  %v9681_v27 = vcombine.high %v7776_v51, %v7784_v49  ;;  %v9680_v1 = vcombine.low %v7776_v51, %v7784_v49 }
0x283d   :  { %8785 = vmatprep.subr.bf16.mxu1 %v9747_v26  ;;  %v7785_v9 = vld [vmem:[#allocation17 + $0x5f8] sm:$0xff]  ;;  %v9698_v26 = vcombine.low %v7793_v11, %v7801_v44 }
0x283e   :  { %v9683_v28 = vcombine.high %v7777_v36, %v7785_v9  ;;  %v9682_v22 = vcombine.low %v7777_v36, %v7785_v9 }
0x2842   :  { %v12372_v54 = vpop.f32.mrf.mxu0  ;;  %8695 = vmatmul.mubr.bf16.vlgmr.msra.gmra.mxu0 %v7713_v40  ;;  %v7752_v40 = vld [vmem:[#allocation17 + $0x4f0] sm:$0xff] }
0x2843   :  { %v12374_v34 = vpop.f32.mrf.mxu1  ;;  %8736 = vmatmul.mubr.bf16.vlgmr.msra.gmra.mxu1 %v7715_v10  ;;  %8745 = vmatpush1.bf16.xpose.msra.mxu0 %v9744_v23  ;;  %v7744_v23 = vld [vmem:[#allocation17 + $0x4b0] sm:$0xff]  ;;  %v9664_v10 = vcombine.low %v7760_v29, %v7768_v18 }
0x2844   :  { %8786 = vmatpush1.bf16.xpose.msra.mxu1 %v9746_v60  ;;  %v7623_v61 = vpop.f32.mrf.mxu0  ;;  %8746 = vmatprep.subr.bf16.mxu0 %v9729_v38  ;;  %v7745_v60 = vld [vmem:[#allocation17 + $0x4b8] sm:$0xff]  ;;  %v9648_v58 = vcombine.low %v7744_v23, %v7752_v40 }
0x2845   :  { %v7666_v39 = vpop.f32.mrf.mxu1  ;;  %8787 = vmatprep.subr.bf16.mxu1 %v9731_v63  ;;  %v7624_v30 = vadd.f32 %v7623_v61, %v6536_v35  ;;  %v7753_v38 = vld [vmem:[#allocation17 + $0x4f8] sm:$0xff]  ;;  %v9666_v63 = vcombine.low %v7761_v52, %v7769_v20 }
0x2846   :  { %v12380_v24 = vpop.f32.mrf.mxu0  ;;  %v7667_v42 = vadd.f32 %v7666_v39, %v6544_v47  ;;  %v9651_v61 = vcombine.high %v7745_v60, %v7753_v38  ;;  %v7736_v39 = vld [vmem:[#allocation17 + $0x470] sm:$0xff]  ;;  %v9650_v5 = vcombine.low %v7745_v60, %v7753_v38 }
0x2847   :  { %v12382_v32 = vpop.f32.mrf.mxu1  ;;  %v7686_v50 = vmax.f32 %v7624_v30, 0.0 }
0x2848   :  { %v7627_v13 = vpop.f32.mrf.mxu0  ;;  %v7688_v59 = vmax.f32 %v7667_v42, 0.0  ;;  %v6532_v42 = vrot.slane %v12350_v15, %v11965_v12 }
0x2849   :  { %v7628_v53 = vadd.f32 %v7627_v13, %v6536_v35  ;;  %v7670_v3 = vpop.f32.mrf.mxu1  ;;  %v9649_v35 = vcombine.high %v7744_v23, %v7752_v40  ;;  %v6540_v13 = vrot.slane %v12350_v15, %v11968_v14  ;;  %v9619_v14 = vld [vmem:[#allocation19 + $0x1] ss:$0 sm:$0xff] }
0x284a   :  { %v7671_v62 = vadd.f32 %v7670_v3, %v6544_v47  ;;  %v7728_v47 = vld [vmem:[#allocation17 + $0x430] sm:$0xff] }
0x284b   :  { %v7702_v57 = vmax.f32 %v7628_v53, 0.0  ;;  %8747 = vmatpush1.bf16.xpose.msra.mxu0 %v9728_v48  ;;  %v9633_v30 = vcombine.high %v7728_v47, %v7736_v39  ;;  %v9635_v48 = vcombine.high %v7729_v4, %v7737_v17  ;;  %v9634_v53 = vcombine.low %v7729_v4, %v7737_v17 }
0x284c   :  { %v7704_v19 = vmax.f32 %v7671_v62, 0.0  ;;  %8788 = vmatpush1.bf16.xpose.msra.mxu1 %v9730_v43  ;;  %8748 = vmatprep.subr.bf16.mxu0 %v9713_v41  ;;  %v9632_v43 = vcombine.low %v7728_v47, %v7736_v39  ;;  %v7626_v41 = vadd.f32 %v12380_v24, %v6532_v42  ;;  %v7669_v3 = vadd.f32 %v12382_v32, %v6540_v13 }
0x284d   :  { %v7718_v7 = vpack.c.bf16 %v7702_v57, %v7686_v50  ;;  %8789 = vmatprep.subr.bf16.mxu1 %v9715_v2  ;;  %v7622_v2 = vadd.f32 %v12372_v54, %v6532_v42  ;;  %v7665_v62 = vadd.f32 %v12374_v34, %v6540_v13 }
0x284e   :  { %v7720_v8 = vpack.c.bf16 %v7704_v19, %v7688_v59  ;;  %v7701_v50 = vmax.f32 %v7626_v41, 0.0  ;;  %v7703_v57 = vmax.f32 %v7669_v3, 0.0 }
0x284f   :  { %8776 = vmatprep.mubr.bf16.mxu0 %v7718_v7  ;;  %v7685_v12 = vmax.f32 %v7622_v2, 0.0  ;;  %v7687_v59 = vmax.f32 %v7665_v62, 0.0 }
0x2850   :  { %8817 = vmatprep.mubr.bf16.mxu1 %v7720_v8 }
0x2851   :  { %v7717_v19 = vpack.c.bf16 %v7701_v50, %v7685_v12  ;;  %v7719_v15 = vpack.c.bf16 %v7703_v57, %v7687_v59 }
0x2853   :  { %8749 = vmatpush1.bf16.xpose.msra.mxu0 %v9712_v33 }
0x2854   :  { %8790 = vmatpush1.bf16.xpose.msra.mxu1 %v9714_v46  ;;  %8750 = vmatprep.subr.bf16.mxu0 %v9697_v16 }
0x2855   :  { %8791 = vmatprep.subr.bf16.mxu1 %v9699_v45 }
0x285b   :  { %8751 = vmatpush1.bf16.xpose.msra.mxu0 %v9696_v25 }
0x285c   :  { %8792 = vmatpush1.bf16.xpose.msra.mxu1 %v9698_v26  ;;  %8752 = vmatprep.subr.bf16.mxu0 %v9681_v27 }
0x285d   :  { %8793 = vmatprep.subr.bf16.mxu1 %v9683_v28 }
0x2863   :  { %8753 = vmatpush1.bf16.xpose.msra.mxu0 %v9680_v1 }
0x2864   :  { %8794 = vmatpush1.bf16.xpose.msra.mxu1 %v9682_v22  ;;  %8754 = vmatprep.subr.bf16.mxu0 %v9665_v37 }
0x2865   :  { %8795 = vmatprep.subr.bf16.mxu1 %v9667_v21 }
0x286b   :  { %8755 = vmatpush1.bf16.xpose.msra.mxu0 %v9664_v10 }
0x286c   :  { %8796 = vmatpush1.bf16.xpose.msra.mxu1 %v9666_v63  ;;  %8756 = vmatprep.subr.bf16.mxu0 %v9649_v35 }
0x286d   :  { %8797 = vmatprep.subr.bf16.mxu1 %v9651_v61 }
0x2873   :  { %8757 = vmatpush1.bf16.xpose.msra.mxu0 %v9648_v58 }
0x2874   :  { %8798 = vmatpush1.bf16.xpose.msra.mxu1 %v9650_v5  ;;  %8758 = vmatprep.subr.bf16.mxu0 %v9633_v30 }
0x2875   :  { %8799 = vmatprep.subr.bf16.mxu1 %v9635_v48 }
0x287b   :  { %8759 = vmatpush1.bf16.xpose.msra.mxu0 %v9632_v43 }
0x287c   :  { %8800 = vmatpush1.bf16.xpose.msra.mxu1 %v9634_v53  ;;  %10539 = vmatprep.subr.bf16.mxu0 %v11414_v0 }
0x2882   :  { %v8532_v7 = vpop.f32.mrf.mxu0  ;;  %8777 = vmatmul.mubr.bf16.vlgmr.msra.gmra.mxu0 %v7717_v19 }
0x2883   :  { %v8533_v24 = vadd.f32 %v9619_v14, %v8532_v7  ;;  %v8573_v31 = vpop.f32.mrf.mxu1  ;;  %8818 = vmatmul.mubr.bf16.vlgmr.msra.gmra.mxu1 %v7719_v15  ;;  %10555 = vmatprep.mubr.msk.bf16.mxu0 %vm11415_vm0, %v11414_v0 }
0x2884   :  { %v8534_v54 = vpop.f32.mrf.mxu0 }
0x2885   :  { %v8574_v34 = vadd.f32 %v8573_v31, %v8533_v24  ;;  %v8575_v32 = vpop.f32.mrf.mxu1  ;;  %v9749_v31 = vld [vmem:[%s12432_s19 + $0x1] ss:$0 sm:$0xff] }
0x2886   :  { %v8535_v6 = vpop.f32.mrf.mxu0 }
0x2887   :  { %v8536_v8 = vadd.f32 %v9619_v14, %v8535_v6  ;;  %v8576_v11 = vpop.f32.mrf.mxu1 }
0x2888   :  { %v8537_v44 = vpop.f32.mrf.mxu0 }
0x2889   :  { %v8577_v33 = vadd.f32 %v8576_v11, %v8536_v8  ;;  %v8578_v46 = vpop.f32.mrf.mxu1 }
0x288a   :  { %v10907_v46 = vld [vmem:[#allocation26 + $0x38] sm:$0xff]  }
0x288b   :  { %10540 = vmatpush3.bf16.xpose.msra.mxu0 %v10907_v46 }
0x288c   :  { %10541 = vmatprep.subr.bf16.mxu0 %v11414_v0 }
0x28c2   :  { %v8614_v16 = vpop.f32.mrf.mxu0 }
0x28c3   :  { %v8615_v45 = vadd.f32 %v8614_v16, %v8574_v34  ;;  %v8655_v51 = vpop.f32.mrf.mxu1  ;;  %v9750_v34 = vld [vmem:[#allocation23 + $0x1] ss:$0 sm:$0xff]  ;;  %v10908_v16 = vld [vmem:[#allocation26 + $0x30] sm:$0xff]  }
0x28c4   :  { %v8616_v49 = vpop.f32.mrf.mxu0  ;;  %10542 = vmatpush3.bf16.xpose.msra.mxu0 %v10908_v16 }
0x28c5   :  { %v8656_v36 = vadd.f32 %v8655_v51, %v8615_v45  ;;  %v8657_v9 = vpop.f32.mrf.mxu1  ;;  %10543 = vmatprep.subr.bf16.mxu0 %v11414_v0  ;;  %v10909_v45 = vld [vmem:[#allocation26 + $0x28] sm:$0xff]   ;;  %v10910_v51 = vld [vmem:[#allocation26 + $0x20] sm:$0xff]   ;;  %v10911_v49 = vld [vmem:[#allocation26 + $0x18] sm:$0xff]  }
0x28c6   :  { %v8617_v25 = vpop.f32.mrf.mxu0 }
0x28c7   :  { %v8618_v26 = vadd.f32 %v8617_v25, %v8577_v33  ;;  %v8658_v27 = vpop.f32.mrf.mxu1 }
0x28c8   :  { %v8619_v28 = vpop.f32.mrf.mxu0 }
0x28c9   :  { %v8659_v29 = vadd.f32 %v8658_v27, %v8618_v26  ;;  %v8660_v18 = vpop.f32.mrf.mxu1 }
0x28cc   :  { %10544 = vmatpush3.bf16.xpose.msra.mxu0 %v10909_v45 }
0x28cd   :  { %10545 = vmatprep.subr.bf16.mxu0 %v11414_v0 }
0x28d4   :  { %10546 = vmatpush3.bf16.xpose.msra.mxu0 %v10910_v51 }
0x28d5   :  { %10547 = vmatprep.subr.bf16.mxu0 %v11414_v0 }
0x28dc   :  { %10548 = vmatpush3.bf16.xpose.msra.mxu0 %v10911_v49 }
0x28dd   :  { %10549 = vmatprep.subr.bf16.mxu0 %v11414_v0 }
0x2902   :  { %v8696_v52 = vpop.f32.mrf.mxu0 }
0x2903   :  { %v8737_v20 = vpop.f32.mrf.mxu1  ;;  %v8697_v60 = vadd.f32 %v8696_v52, %v8656_v36  ;;  %v10912_v52 = vld [vmem:[#allocation26 + $0x10] sm:$0xff]  }
0x2904   :  { %v8698_v1 = vpop.f32.mrf.mxu0  ;;  %10550 = vmatpush3.bf16.xpose.msra.mxu0 %v10912_v52 }
0x2905   :  { %v8739_v22 = vpop.f32.mrf.mxu1  ;;  %v8738_v38 = vadd.f32 %v8737_v20, %v8697_v60  ;;  %10551 = vmatprep.subr.bf16.mxu0 %v11414_v0  ;;  %v10913_v20 = vld [vmem:[#allocation26 + $0x8] sm:$0xff]   ;;  %v10914_v1 = vld [vmem:[#allocation26] sm:$0xff]  }
0x2906   :  { %v8699_v37 = vpop.f32.mrf.mxu0 }
0x2907   :  { %v8740_v21 = vpop.f32.mrf.mxu1  ;;  %v8700_v10 = vadd.f32 %v8699_v37, %v8659_v29 }
0x2908   :  { %v8701_v23 = vpop.f32.mrf.mxu0 }
0x2909   :  { %v8742_v40 = vpop.f32.mrf.mxu1  ;;  %v8741_v39 = vadd.f32 %v8740_v21, %v8700_v10 }
0x290c   :  { %10552 = vmatpush3.bf16.xpose.msra.mxu0 %v10913_v20 }
0x290d   :  { %10553 = vmatprep.subr.bf16.mxu0 %v11414_v0  ;;  %v9752_v0 = vld [vmem:[#allocation25] ss:$0 sm:$0xff] }
0x2914   :  { %10554 = vmatpush3.bf16.xpose.msra.mxu0 %v10914_v1 }
0x2942   :  { %v8778_v63 = vpop.f32.mrf.mxu0 }
0x2943   :  { %v8779_v35 = vadd.f32 %v8778_v63, %v8738_v38  ;;  %v8819_v61 = vpop.f32.mrf.mxu1  ;;  %v9751_v63 = vld [vmem:[%s12434_s21] ss:$0 sm:$0xff]  ;;  %s11351_s21 = scalar_lea.vmem %s9031_s14, 256 }
0x2944   :  { %v8780_v47 = vpop.f32.mrf.mxu0  ;;  %p11352_p1 = scmp.ne.s32.totalorder %s9031_s14, %s11351_s21  ;;  %p11357_p3 = scmp.lt.s32.totalorder %s11351_s21, %s11351_s21 }
0x2945   :  { %v8820_v4 = vadd.f32 %v8819_v61, %v8779_v35  ;;  %v8821_v17 = vpop.f32.mrf.mxu1 }
0x2946   :  { %v8781_v58 = vpop.f32.mrf.mxu0  ;;  %p11358_p4 = por %p11357_p3, %p11356_p2 }
0x2947   :  { %v8782_v5 = vadd.f32 %v8781_v58, %v8741_v39  ;;  %v8822_v30 = vpop.f32.mrf.mxu1  ;;  %v8826_v48 = vadd.f32 %v8820_v4, %v12284_v55 }
0x2948   :  { %v8783_v42 = vpop.f32.mrf.mxu0  ;;  %p11359_p5 = pnand %p11358_p4, %p11352_p1 }
0x2949   :  { %v8823_v13 = vadd.f32 %v8822_v30, %v8782_v5  ;;  %v8824_v43 = vpop.f32.mrf.mxu1  ;;  %8832 = vadd.xlane.f32.xlu0 %v8826_v48  ;;  %v9753_v5 = vld [vmem:[#allocation28] ss:$0 sm:$0xff] }
0x294b   :  { %v8827_v41 = vadd.f32 %v8823_v13, %v12286_v56 }
0x294d   :  { %8834 = vadd.xlane.f32.xlu1 %v8827_v41 }
0x29d2   :  { %v8833_v53 = vpop.xlane.xlu0 %8832 }
0x29d3   :  { %v8836_v3 = vmul.f32 0.0078125, %v8833_v53 }
0x29d5   :  { %v8838_v2 = vsub.f32 %v8826_v48, %v8836_v3 }
0x29d6   :  { %v8835_v62 = vpop.xlane.xlu1 %8834 }
0x29d7   :  { %v8837_v50 = vmul.f32 0.0078125, %v8835_v62  ;;  %v8840_v57 = vmul.f32 %v8838_v2, %v8838_v2 }
0x29d9   :  { %v8839_v12 = vsub.f32 %v8827_v41, %v8837_v50  ;;  %8842 = vadd.xlane.f32.xlu0 %v8840_v57 }
0x29db   :  { %v8841_v59 = vmul.f32 %v8839_v12, %v8839_v12 }
0x29dd   :  { %8844 = vadd.xlane.f32.xlu1 %v8841_v59 }
0x2a62   :  { %v8843_v19 = vpop.xlane.xlu0 %8842 }
0x2a63   :  { %v8846_v14 = vmul.f32 0.0078125, %v8843_v19 }
0x2a65   :  { %v8848_v55 = vadd.f32 1e-05, %v8846_v14 }
0x2a66   :  { %v8845_v15 = vpop.xlane.xlu1 %8844 }
0x2a67   :  { %10999 = vrsqrt.f32 %v8848_v55  ;;  %v8847_v7 = vmul.f32 0.0078125, %v8845_v15 }
0x2a69   :  { %v8849_v24 = vadd.f32 1e-05, %v8847_v7 }
0x2a6b   :  { %11001 = vrsqrt.f32 %v8849_v24 }
0x2a74   :  { %v11000_v56 = vpop.eup %10999 }
0x2a75   :  { %v8852_v54 = vmul.f32 %v11000_v56, %v8838_v2 }
0x2a77   :  { %v8860_v32 = vmul.f32 %v9749_v31, %v8852_v54 }
0x2a78   :  { %v11002_v6 = vpop.eup %11001 }
0x2a79   :  { %v8868_v8 = vadd.f32 %v9750_v34, %v8860_v32  ;;  %v8853_v11 = vmul.f32 %v11002_v6, %v8839_v12 }
0x2a7b   :  { %8872 = vadd.xlane.f32.xlu0 %v8868_v8  ;;  %v8861_v44 = vmul.f32 %v9749_v31, %v8853_v11 }
0x2a7d   :  { %v8869_v33 = vadd.f32 %v9750_v34, %v8861_v44 }
0x2a7f   :  { %8874 = vadd.xlane.f32.xlu1 %v8869_v33 }
0x2b04   :  { %v8873_v36 = vpop.xlane.xlu0 %8872 }
0x2b05   :  { %v8876_v9 = vmul.f32 0.0078125, %v8873_v36 }
0x2b07   :  { %v8878_v25 = vsub.f32 %v8868_v8, %v8876_v9 }
0x2b08   :  { %v8875_v26 = vpop.xlane.xlu1 %8874 }
0x2b09   :  { %v8877_v27 = vmul.f32 0.0078125, %v8875_v26  ;;  %v8880_v28 = vmul.f32 %v8878_v25, %v8878_v25 }
0x2b0b   :  { %v8879_v29 = vsub.f32 %v8869_v33, %v8877_v27  ;;  %8882 = vadd.xlane.f32.xlu0 %v8880_v28 }
0x2b0d   :  { %v8881_v18 = vmul.f32 %v8879_v29, %v8879_v29 }
0x2b0f   :  { %8884 = vadd.xlane.f32.xlu1 %v8881_v18 }
0x2b94   :  { %v8883_v22 = vpop.xlane.xlu0 %8882 }
0x2b95   :  { %v8886_v37 = vmul.f32 0.0078125, %v8883_v22 }
0x2b97   :  { %v8888_v21 = vadd.f32 1e-05, %v8886_v37 }
0x2b98   :  { %v8885_v23 = vpop.xlane.xlu1 %8884 }
0x2b99   :  { %11003 = vrsqrt.f32 %v8888_v21  ;;  %v8887_v40 = vmul.f32 0.0078125, %v8885_v23 }
0x2b9b   :  { %v8889_v60 = vadd.f32 1e-05, %v8887_v40 }
0x2b9d   :  { %11005 = vrsqrt.f32 %v8889_v60 }
0x2ba6   :  { %v11004_v38 = vpop.eup %11003 }
0x2ba7   :  { %v8892_v10 = vmul.f32 %v11004_v38, %v8878_v25 }
0x2ba9   :  { %v8900_v47 = vmul.f32 %v9751_v63, %v8892_v10 }
0x2baa   :  { %v11006_v35 = vpop.eup %11005 }
0x2bab   :  { %v8893_v61 = vmul.f32 %v11006_v35, %v8879_v29  ;;  %v8908_v4 = vadd.f32 %v9752_v0, %v8900_v47 }
0x2bad   :  { %v8901_v39 = vmul.f32 %v9751_v63, %v8893_v61 }
0x2baf   :  { %v8909_v17 = vadd.f32 %v9752_v0, %v8901_v39 }
0x2bb1   :  { %v8926_v58 = vpack.c.bf16 %v8909_v17, %v8908_v4 }
0x2bb3   :  { %10556 = vmatmul.mubr.bf16.vlgmr.msra.gmra.mxu0 %v8926_v58 }
0x2c73   :  { %v9016_v30 = vpop.f32.mrf.mxu0 }
0x2c74   :  { %v9017_v48 = vadd.f32 %v9753_v5, %v9016_v30 }
0x2c75   :  { %v10557_v42 = vpop.f32.mrf.mxu0 }
0x2c76   :  { %9023 = vst [vmem:[#allocation29] sm:$0xff] %v9017_v48 }
0x2c77   :  { %v9019_v13 = vpop.f32.mrf.mxu0 }
0x2c78   :  { %v9020_v43 = vadd.f32 %v9753_v5, %v9019_v13 }
0x2c79   :  { %v10558_v41 = vpop.f32.mrf.mxu0 }
0x2c7a   :  { %9024 = vst [vmem:[#allocation29 + $0x8] sm:$0xff] %v9020_v43 }
0x2c7b   :  { %11362 = shalt.err (!%p11359_p5)
}
0x2c7c   :  { %s11417_s27 = smov 128   ;;  %s11418_s8 = smov 8  }
0x2c7d   :  { %9036 = dma.vmem_to_hbm [thread:$0]  %s9031_s14, 256, %s12438_s25, [#allocation4], %s11417_s27, %s11417_s27, %s11418_s8  }
0x2c7e   :  { %11389 = dma.done.wait [#allocation4], 256  }
0x2c7f   :  { %11390 = vsyncadd [#allocation4], 4294967040 }
0x2c80   :  { %9040 = vsyncpa [#allocation3], 1 }
0x2c81   :  { %9041 = vsyncpa [#allocation6], 1 }
0x2c82   :  { %9042 = vsyncpa [#allocation9], 1 }
0x2c83   :  { %9043 = vsyncpa [#allocation12], 1 }
0x2c84   :  { %9044 = vsyncpa [#allocation15], 1 }
0x2c85   :  { %9045 = vsyncpa [#allocation18], 1 }
0x2c86   :  { %9046 = vsyncpa [#allocation21], 1 }
0x2c87   :  { %9047 = vsyncpa [#allocation24], 1 }
0x2c88   :  { %9048 = vsyncpa [#allocation27], 1 }
0x2c89   :  { %9049 = vsyncpa [#allocation4], 1 }

</bundles_post_ra>
